<compile_context>
chip_gen: v5e
topology: v5e:2x2
jax: 0.10.0
libtpu: 0.0.40
codegen_flags: <defaults>
</compile_context>

<pallas_src>
import jax
import jax.numpy as jnp
from jax.experimental import pallas as pl
from jax.experimental.pallas import tpu as pltpu

# Geometry implied by the module (x.view(-1, 1, 48, 48)).
H_IMG = 48
W_IMG = 48
HW = H_IMG * W_IMG                 # 2304 = 18 * 128  -> lane-dense output axis
KH = KW = 5
PAD = 2
C_OUT = 64
NEG_SLOPE = 0.05
BN_EPS = 1e-5

HPAD_LEN = (H_IMG + 2 * PAD) * W_IMG   # 2496 : rows-only padded image, flattened
XFLAT = 2560                           # multiple of 128, >= HW + (KH-1)*W + (KW-1) + PAD


def _conv1_block_kernel(x_ref, w_ref, m_ref, prm_ref, o_ref, patch_ref):
    # x_ref:     (1, 1, XFLAT)   flat row-padded image for this batch element
    # w_ref:     (64, 25)        conv weights, tap t = dy*5 + dx on columns
    # m_ref:     (8, HW)         rows 0..4 = per-dx column-validity masks (1.0/0.0)
    # prm_ref:   (3, 64, 1)      packed per-channel params: [bias, bn_scale, bn_shift]
    # o_ref:     (1, 64, HW)     channel-major, lane-dense output block
    # patch_ref: (25, HW)        VMEM scratch: in-kernel im2col patch matrix
    xflat = x_ref[0]                                   # (1, XFLAT)

    # ---- in-kernel im2col: build the (25, HW) patch matrix ----
    for dx in range(KW):
        mrow = m_ref[pl.ds(dx, 1), :]                  # (1, HW)
        for dy in range(KH):
            t = dy * KW + dx
            off = dy * W_IMG + dx                      # flat-index shift for this tap
            if off == 0:
                shifted = xflat
            else:
                # out[i] = xflat[i + off]  (jnp.roll semantics, shift = -off mod XFLAT)
                shifted = pltpu.roll(xflat, shift=XFLAT - off, axis=1)
            patch_ref[pl.ds(t, 1), :] = shifted[:, :HW] * mrow

    # ---- single MXU matmul: (64, 25) @ (25, HW) -> (64, HW) ----
    acc = jnp.dot(w_ref[...], patch_ref[...], preferred_element_type=jnp.float32)

    # ---- fused epilogue: bias -> LeakyReLU(0.05) -> BatchNorm (folded) ----
    bias = prm_ref[0]                                  # (64, 1)
    scale = prm_ref[1]                                 # (64, 1)
    shift = prm_ref[2]                                 # (64, 1)
    acc = acc + bias
    acc = jnp.where(acc >= 0, acc, NEG_SLOPE * acc)
    o_ref[0] = (acc * scale + shift).astype(o_ref.dtype)


@jax.jit
def conv1_block_forward(x_nchw, conv_w, conv_b, bn_gamma, bn_beta, bn_mean, bn_var):
    """x_nchw: (B, 1, 48, 48) f32 -> (B, 64, 48, 48) f32 (conv+LeakyReLU+BN, eval mode)."""
    B, C, H, W = x_nchw.shape
    assert C == 1 and H == H_IMG and W == W_IMG

    # Flat, rows-only-padded image per batch element (tiny: ~10 KB/image).
    x = x_nchw.reshape(B, H, W)
    xh = jnp.pad(x, ((0, 0), (PAD, PAD), (0, 0)))               # (B, 52, 48)
    xflat = xh.reshape(B, HPAD_LEN)
    xflat = jnp.pad(xflat, ((0, 0), (PAD, XFLAT - HPAD_LEN - PAD)))  # (B, XFLAT)
    xflat = xflat[:, None, :]                                   # (B, 1, XFLAT)

    # PyTorch conv weight (64, 1, 5, 5) -> (64, 25), tap t = dy*5 + dx.
    w2 = conv_w.reshape(C_OUT, KH * KW).astype(jnp.float32)

    # Per-dx column-validity masks (left/right border of the 'same' padding).
    col = jnp.arange(HW, dtype=jnp.int32) % W_IMG
    mask = jnp.stack(
        [((col >= PAD - dx) & (col < W_IMG + PAD - dx)).astype(jnp.float32)
         for dx in range(KW)], axis=0)                          # (5, HW)
    mask = jnp.concatenate([mask, jnp.zeros((8 - KW, HW), jnp.float32)], axis=0)  # (8, HW)

    # Fold BatchNorm (inference) and pack [bias, scale, shift] into one block.
    scale = bn_gamma / jnp.sqrt(bn_var + BN_EPS)
    shift = bn_beta - bn_mean * scale
    params = jnp.stack([conv_b.astype(jnp.float32), scale, shift], axis=0)[:, :, None]  # (3,64,1)

    cost = pl.CostEstimate(
        flops=2 * B * C_OUT * KH * KW * HW,
        transcendentals=0,
        bytes_accessed=4 * (B * XFLAT + C_OUT * KH * KW + 8 * HW + 3 * C_OUT
                            + B * C_OUT * HW),
    )

    out_flat = pl.pallas_call(
        _conv1_block_kernel,
        out_shape=jax.ShapeDtypeStruct((B, C_OUT, HW), jnp.float32),
        grid_spec=pltpu.PrefetchScalarGridSpec(
            num_scalar_prefetch=0,
            grid=(B,),
            in_specs=[
                pl.BlockSpec((1, 1, XFLAT), lambda b: (b, 0, 0)),      # flat image
                pl.BlockSpec((C_OUT, KH * KW), lambda b: (0, 0)),       # weights
                pl.BlockSpec((8, HW), lambda b: (0, 0)),                # dx masks
                pl.BlockSpec((3, C_OUT, 1), lambda b: (0, 0, 0)),       # packed params
            ],
            out_specs=pl.BlockSpec((1, C_OUT, HW), lambda b: (b, 0, 0)),
            scratch_shapes=[pltpu.VMEM((KH * KW, HW), jnp.float32)],
        ),
        compiler_params=pltpu.CompilerParams(
            dimension_semantics=("parallel",)),
        cost_estimate=cost,
    )(xflat, w2, mask, params)

    # (B, 64, 2304) -> (B, 64, 48, 48): contiguous reshape, no transpose pass.
    return out_flat.reshape(B, C_OUT, H_IMG, W_IMG)


def _reference(x_nchw, conv_w, conv_b, bn_gamma, bn_beta, bn_mean, bn_var):
    y = jax.lax.conv_general_dilated(
        x_nchw, conv_w, window_strides=(1, 1), padding=((PAD, PAD), (PAD, PAD)),
        dimension_numbers=("NCHW", "OIHW", "NCHW"))
    y = y + conv_b.reshape(1, C_OUT, 1, 1)
    y = jnp.where(y >= 0, y, NEG_SLOPE * y)
    scale = bn_gamma / jnp.sqrt(bn_var + BN_EPS)
    shift = bn_beta - bn_mean * scale
    return y * scale.reshape(1, C_OUT, 1, 1) + shift.reshape(1, C_OUT, 1, 1)


if __name__ == "__main__":
    key = jax.random.PRNGKey(0)
    k_x, k_w, k_b = jax.random.split(key, 3)

    B = 2  # forward implies x.view(-1, 1, 48, 48)
    x = jax.random.normal(k_x, (B, 1, H_IMG, W_IMG), dtype=jnp.float32)

    # Deterministic parameter init (kaiming-uniform-ish bounds like PyTorch).
    fan_in = 1 * KH * KW
    wbound = (1.0 / fan_in) ** 0.5
    conv_w = jax.random.uniform(k_w, (C_OUT, 1, KH, KW), jnp.float32, -wbound, wbound)
    conv_b = jax.random.uniform(k_b, (C_OUT,), jnp.float32, -wbound, wbound)
    bn_gamma = jnp.ones((C_OUT,), jnp.float32)
    bn_beta = jnp.zeros((C_OUT,), jnp.float32)
    bn_mean = jnp.zeros((C_OUT,), jnp.float32)
    bn_var = jnp.ones((C_OUT,), jnp.float32)

    out = conv1_block_forward(x, conv_w, conv_b, bn_gamma, bn_beta, bn_mean, bn_var)
    out = jax.block_until_ready(out)

    ref = _reference(x, conv_w, conv_b, bn_gamma, bn_beta, bn_mean, bn_var)
    assert out.shape == (B, C_OUT, H_IMG, W_IMG)
    # 2e-4: slack for f32 MXU pass-ordering differences between the Pallas dot and XLA's conv.
    assert jnp.max(jnp.abs(out - ref)) < 2e-4

    print("KERNEL_OK")
</pallas_src>

<mosaic_0001>
module attributes {stable_mosaic.version = 11 : i64} {
  func.func @_conv1_block_kernel(%arg0: i32, %arg1: memref<1x1x2560xf32, #tpu.memory_space<vmem>>, %arg2: memref<64x25xf32, #tpu.memory_space<vmem>>, %arg3: memref<8x2304xf32, #tpu.memory_space<vmem>>, %arg4: memref<3x64x1xf32, #tpu.memory_space<vmem>>, %arg5: memref<1x64x2304xf32, #tpu.memory_space<vmem>>, %arg6: memref<25x2304xf32, #tpu.memory_space<vmem>>) attributes {dimension_semantics = [#tpu.dimension_semantics<parallel>], iteration_bounds = array<i64: 2>, scalar_prefetch = 0 : i64, scratch_operands = 1 : i64, tpu.core_type = #tpu.core_type<tc>, window_params = [{transform_indices = @transform_0, window_bounds = array<i64: 1, 1, 2560>}, {pipeline_mode = #tpu.pipeline_mode<synchronous>, transform_indices = @transform_1, window_bounds = array<i64: 64, 25>}, {pipeline_mode = #tpu.pipeline_mode<synchronous>, transform_indices = @transform_2, window_bounds = array<i64: 8, 2304>}, {pipeline_mode = #tpu.pipeline_mode<synchronous>, transform_indices = @transform_3, window_bounds = array<i64: 3, 64, 1>}, {transform_indices = @transform_4, window_bounds = array<i64: 1, 64, 2304>}]} {
    %c0 = arith.constant 0 : index
    %c0_0 = arith.constant 0 : index
    %c0_1 = arith.constant 0 : index
    %0 = vector.load %arg1[%c0, %c0_0, %c0_1] : memref<1x1x2560xf32, #tpu.memory_space<vmem>>, vector<1x1x2560xf32>
    %1 = vector.shape_cast %0 : vector<1x1x2560xf32> to vector<1x2560xf32>
    %c0_2 = arith.constant 0 : index
    %c0_3 = arith.constant 0 : index
    %2 = vector.load %arg3[%c0_2, %c0_3] : memref<8x2304xf32, #tpu.memory_space<vmem>>, vector<1x2304xf32>
    %3 = vector.extract_strided_slice %1 {offsets = [0, 0], sizes = [1, 2304], strides = [1, 1]} : vector<1x2560xf32> to vector<1x2304xf32>
    %4 = arith.mulf %3, %2 : vector<1x2304xf32>
    %c0_4 = arith.constant 0 : index
    %c0_5 = arith.constant 0 : index
    %5 = vector.load %arg6[%c0_4, %c0_5] : memref<25x2304xf32, #tpu.memory_space<vmem>>, vector<1x2304xf32>
    tpu.vector_store %arg6[%c0_4, %c0_5], %4 {strides = array<i32>} : memref<25x2304xf32, #tpu.memory_space<vmem>>, vector<1x2304xf32>,
    %c2512_i32 = arith.constant 2512 : i32
    %6 = tpu.dynamic_rotate %1 by %c2512_i32 dim 1 : vector<1x2560xf32>, i32 -> vector<1x2560xf32>
    %7 = vector.extract_strided_slice %6 {offsets = [0, 0], sizes = [1, 2304], strides = [1, 1]} : vector<1x2560xf32> to vector<1x2304xf32>
    %8 = arith.mulf %7, %2 : vector<1x2304xf32>
    %c5 = arith.constant 5 : index
    %c0_6 = arith.constant 0 : index
    %9 = vector.load %arg6[%c5, %c0_6] : memref<25x2304xf32, #tpu.memory_space<vmem>>, vector<1x2304xf32>
    tpu.vector_store %arg6[%c5, %c0_6], %8 {strides = array<i32>} : memref<25x2304xf32, #tpu.memory_space<vmem>>, vector<1x2304xf32>,
    %c2464_i32 = arith.constant 2464 : i32
    %10 = tpu.dynamic_rotate %1 by %c2464_i32 dim 1 : vector<1x2560xf32>, i32 -> vector<1x2560xf32>
    %11 = vector.extract_strided_slice %10 {offsets = [0, 0], sizes = [1, 2304], strides = [1, 1]} : vector<1x2560xf32> to vector<1x2304xf32>
    %12 = arith.mulf %11, %2 : vector<1x2304xf32>
    %c10 = arith.constant 10 : index
    %c0_7 = arith.constant 0 : index
    %13 = vector.load %arg6[%c10, %c0_7] : memref<25x2304xf32, #tpu.memory_space<vmem>>, vector<1x2304xf32>
    tpu.vector_store %arg6[%c10, %c0_7], %12 {strides = array<i32>} : memref<25x2304xf32, #tpu.memory_space<vmem>>, vector<1x2304xf32>,
    %c2416_i32 = arith.constant 2416 : i32
    %14 = tpu.dynamic_rotate %1 by %c2416_i32 dim 1 : vector<1x2560xf32>, i32 -> vector<1x2560xf32>
    %15 = vector.extract_strided_slice %14 {offsets = [0, 0], sizes = [1, 2304], strides = [1, 1]} : vector<1x2560xf32> to vector<1x2304xf32>
    %16 = arith.mulf %15, %2 : vector<1x2304xf32>
    %c15 = arith.constant 15 : index
    %c0_8 = arith.constant 0 : index
    %17 = vector.load %arg6[%c15, %c0_8] : memref<25x2304xf32, #tpu.memory_space<vmem>>, vector<1x2304xf32>
    tpu.vector_store %arg6[%c15, %c0_8], %16 {strides = array<i32>} : memref<25x2304xf32, #tpu.memory_space<vmem>>, vector<1x2304xf32>,
    %c2368_i32 = arith.constant 2368 : i32
    %18 = tpu.dynamic_rotate %1 by %c2368_i32 dim 1 : vector<1x2560xf32>, i32 -> vector<1x2560xf32>
    %19 = vector.extract_strided_slice %18 {offsets = [0, 0], sizes = [1, 2304], strides = [1, 1]} : vector<1x2560xf32> to vector<1x2304xf32>
    %20 = arith.mulf %19, %2 : vector<1x2304xf32>
    %c20 = arith.constant 20 : index
    %c0_9 = arith.constant 0 : index
    %21 = vector.load %arg6[%c20, %c0_9] : memref<25x2304xf32, #tpu.memory_space<vmem>>, vector<1x2304xf32>
    tpu.vector_store %arg6[%c20, %c0_9], %20 {strides = array<i32>} : memref<25x2304xf32, #tpu.memory_space<vmem>>, vector<1x2304xf32>,
    %c1 = arith.constant 1 : index
    %c0_10 = arith.constant 0 : index
    %22 = vector.load %arg3[%c1, %c0_10] : memref<8x2304xf32, #tpu.memory_space<vmem>>, vector<1x2304xf32>
    %c2559_i32 = arith.constant 2559 : i32
    %23 = tpu.dynamic_rotate %1 by %c2559_i32 dim 1 : vector<1x2560xf32>, i32 -> vector<1x2560xf32>
    %24 = vector.extract_strided_slice %23 {offsets = [0, 0], sizes = [1, 2304], strides = [1, 1]} : vector<1x2560xf32> to vector<1x2304xf32>
    %25 = arith.mulf %24, %22 : vector<1x2304xf32>
    %c1_11 = arith.constant 1 : index
    %c0_12 = arith.constant 0 : index
    %26 = vector.load %arg6[%c1_11, %c0_12] : memref<25x2304xf32, #tpu.memory_space<vmem>>, vector<1x2304xf32>
    tpu.vector_store %arg6[%c1_11, %c0_12], %25 {strides = array<i32>} : memref<25x2304xf32, #tpu.memory_space<vmem>>, vector<1x2304xf32>,
    %c2511_i32 = arith.constant 2511 : i32
    %27 = tpu.dynamic_rotate %1 by %c2511_i32 dim 1 : vector<1x2560xf32>, i32 -> vector<1x2560xf32>
    %28 = vector.extract_strided_slice %27 {offsets = [0, 0], sizes = [1, 2304], strides = [1, 1]} : vector<1x2560xf32> to vector<1x2304xf32>
    %29 = arith.mulf %28, %22 : vector<1x2304xf32>
    %c6 = arith.constant 6 : index
    %c0_13 = arith.constant 0 : index
    %30 = vector.load %arg6[%c6, %c0_13] : memref<25x2304xf32, #tpu.memory_space<vmem>>, vector<1x2304xf32>
    tpu.vector_store %arg6[%c6, %c0_13], %29 {strides = array<i32>} : memref<25x2304xf32, #tpu.memory_space<vmem>>, vector<1x2304xf32>,
    %c2463_i32 = arith.constant 2463 : i32
    %31 = tpu.dynamic_rotate %1 by %c2463_i32 dim 1 : vector<1x2560xf32>, i32 -> vector<1x2560xf32>
    %32 = vector.extract_strided_slice %31 {offsets = [0, 0], sizes = [1, 2304], strides = [1, 1]} : vector<1x2560xf32> to vector<1x2304xf32>
    %33 = arith.mulf %32, %22 : vector<1x2304xf32>
    %c11 = arith.constant 11 : index
    %c0_14 = arith.constant 0 : index
    %34 = vector.load %arg6[%c11, %c0_14] : memref<25x2304xf32, #tpu.memory_space<vmem>>, vector<1x2304xf32>
    tpu.vector_store %arg6[%c11, %c0_14], %33 {strides = array<i32>} : memref<25x2304xf32, #tpu.memory_space<vmem>>, vector<1x2304xf32>,
    %c2415_i32 = arith.constant 2415 : i32
    %35 = tpu.dynamic_rotate %1 by %c2415_i32 dim 1 : vector<1x2560xf32>, i32 -> vector<1x2560xf32>
    %36 = vector.extract_strided_slice %35 {offsets = [0, 0], sizes = [1, 2304], strides = [1, 1]} : vector<1x2560xf32> to vector<1x2304xf32>
    %37 = arith.mulf %36, %22 : vector<1x2304xf32>
    %c16 = arith.constant 16 : index
    %c0_15 = arith.constant 0 : index
    %38 = vector.load %arg6[%c16, %c0_15] : memref<25x2304xf32, #tpu.memory_space<vmem>>, vector<1x2304xf32>
    tpu.vector_store %arg6[%c16, %c0_15], %37 {strides = array<i32>} : memref<25x2304xf32, #tpu.memory_space<vmem>>, vector<1x2304xf32>,
    %c2367_i32 = arith.constant 2367 : i32
    %39 = tpu.dynamic_rotate %1 by %c2367_i32 dim 1 : vector<1x2560xf32>, i32 -> vector<1x2560xf32>
    %40 = vector.extract_strided_slice %39 {offsets = [0, 0], sizes = [1, 2304], strides = [1, 1]} : vector<1x2560xf32> to vector<1x2304xf32>
    %41 = arith.mulf %40, %22 : vector<1x2304xf32>
    %c21 = arith.constant 21 : index
    %c0_16 = arith.constant 0 : index
    %42 = vector.load %arg6[%c21, %c0_16] : memref<25x2304xf32, #tpu.memory_space<vmem>>, vector<1x2304xf32>
    tpu.vector_store %arg6[%c21, %c0_16], %41 {strides = array<i32>} : memref<25x2304xf32, #tpu.memory_space<vmem>>, vector<1x2304xf32>,
    %c2 = arith.constant 2 : index
    %c0_17 = arith.constant 0 : index
    %43 = vector.load %arg3[%c2, %c0_17] : memref<8x2304xf32, #tpu.memory_space<vmem>>, vector<1x2304xf32>
    %c2558_i32 = arith.constant 2558 : i32
    %44 = tpu.dynamic_rotate %1 by %c2558_i32 dim 1 : vector<1x2560xf32>, i32 -> vector<1x2560xf32>
    %45 = vector.extract_strided_slice %44 {offsets = [0, 0], sizes = [1, 2304], strides = [1, 1]} : vector<1x2560xf32> to vector<1x2304xf32>
    %46 = arith.mulf %45, %43 : vector<1x2304xf32>
    %c2_18 = arith.constant 2 : index
    %c0_19 = arith.constant 0 : index
    %47 = vector.load %arg6[%c2_18, %c0_19] : memref<25x2304xf32, #tpu.memory_space<vmem>>, vector<1x2304xf32>
    tpu.vector_store %arg6[%c2_18, %c0_19], %46 {strides = array<i32>} : memref<25x2304xf32, #tpu.memory_space<vmem>>, vector<1x2304xf32>,
    %c2510_i32 = arith.constant 2510 : i32
    %48 = tpu.dynamic_rotate %1 by %c2510_i32 dim 1 : vector<1x2560xf32>, i32 -> vector<1x2560xf32>
    %49 = vector.extract_strided_slice %48 {offsets = [0, 0], sizes = [1, 2304], strides = [1, 1]} : vector<1x2560xf32> to vector<1x2304xf32>
    %50 = arith.mulf %49, %43 : vector<1x2304xf32>
    %c7 = arith.constant 7 : index
    %c0_20 = arith.constant 0 : index
    %51 = vector.load %arg6[%c7, %c0_20] : memref<25x2304xf32, #tpu.memory_space<vmem>>, vector<1x2304xf32>
    tpu.vector_store %arg6[%c7, %c0_20], %50 {strides = array<i32>} : memref<25x2304xf32, #tpu.memory_space<vmem>>, vector<1x2304xf32>,
    %c2462_i32 = arith.constant 2462 : i32
    %52 = tpu.dynamic_rotate %1 by %c2462_i32 dim 1 : vector<1x2560xf32>, i32 -> vector<1x2560xf32>
    %53 = vector.extract_strided_slice %52 {offsets = [0, 0], sizes = [1, 2304], strides = [1, 1]} : vector<1x2560xf32> to vector<1x2304xf32>
    %54 = arith.mulf %53, %43 : vector<1x2304xf32>
    %c12 = arith.constant 12 : index
    %c0_21 = arith.constant 0 : index
    %55 = vector.load %arg6[%c12, %c0_21] : memref<25x2304xf32, #tpu.memory_space<vmem>>, vector<1x2304xf32>
    tpu.vector_store %arg6[%c12, %c0_21], %54 {strides = array<i32>} : memref<25x2304xf32, #tpu.memory_space<vmem>>, vector<1x2304xf32>,
    %c2414_i32 = arith.constant 2414 : i32
    %56 = tpu.dynamic_rotate %1 by %c2414_i32 dim 1 : vector<1x2560xf32>, i32 -> vector<1x2560xf32>
    %57 = vector.extract_strided_slice %56 {offsets = [0, 0], sizes = [1, 2304], strides = [1, 1]} : vector<1x2560xf32> to vector<1x2304xf32>
    %58 = arith.mulf %57, %43 : vector<1x2304xf32>
    %c17 = arith.constant 17 : index
    %c0_22 = arith.constant 0 : index
    %59 = vector.load %arg6[%c17, %c0_22] : memref<25x2304xf32, #tpu.memory_space<vmem>>, vector<1x2304xf32>
    tpu.vector_store %arg6[%c17, %c0_22], %58 {strides = array<i32>} : memref<25x2304xf32, #tpu.memory_space<vmem>>, vector<1x2304xf32>,
    %c2366_i32 = arith.constant 2366 : i32
    %60 = tpu.dynamic_rotate %1 by %c2366_i32 dim 1 : vector<1x2560xf32>, i32 -> vector<1x2560xf32>
    %61 = vector.extract_strided_slice %60 {offsets = [0, 0], sizes = [1, 2304], strides = [1, 1]} : vector<1x2560xf32> to vector<1x2304xf32>
    %62 = arith.mulf %61, %43 : vector<1x2304xf32>
    %c22 = arith.constant 22 : index
    %c0_23 = arith.constant 0 : index
    %63 = vector.load %arg6[%c22, %c0_23] : memref<25x2304xf32, #tpu.memory_space<vmem>>, vector<1x2304xf32>
    tpu.vector_store %arg6[%c22, %c0_23], %62 {strides = array<i32>} : memref<25x2304xf32, #tpu.memory_space<vmem>>, vector<1x2304xf32>,
    %c3 = arith.constant 3 : index
    %c0_24 = arith.constant 0 : index
    %64 = vector.load %arg3[%c3, %c0_24] : memref<8x2304xf32, #tpu.memory_space<vmem>>, vector<1x2304xf32>
    %c2557_i32 = arith.constant 2557 : i32
    %65 = tpu.dynamic_rotate %1 by %c2557_i32 dim 1 : vector<1x2560xf32>, i32 -> vector<1x2560xf32>
    %66 = vector.extract_strided_slice %65 {offsets = [0, 0], sizes = [1, 2304], strides = [1, 1]} : vector<1x2560xf32> to vector<1x2304xf32>
    %67 = arith.mulf %66, %64 : vector<1x2304xf32>
    %c3_25 = arith.constant 3 : index
    %c0_26 = arith.constant 0 : index
    %68 = vector.load %arg6[%c3_25, %c0_26] : memref<25x2304xf32, #tpu.memory_space<vmem>>, vector<1x2304xf32>
    tpu.vector_store %arg6[%c3_25, %c0_26], %67 {strides = array<i32>} : memref<25x2304xf32, #tpu.memory_space<vmem>>, vector<1x2304xf32>,
    %c2509_i32 = arith.constant 2509 : i32
    %69 = tpu.dynamic_rotate %1 by %c2509_i32 dim 1 : vector<1x2560xf32>, i32 -> vector<1x2560xf32>
    %70 = vector.extract_strided_slice %69 {offsets = [0, 0], sizes = [1, 2304], strides = [1, 1]} : vector<1x2560xf32> to vector<1x2304xf32>
    %71 = arith.mulf %70, %64 : vector<1x2304xf32>
    %c8 = arith.constant 8 : index
    %c0_27 = arith.constant 0 : index
    %72 = vector.load %arg6[%c8, %c0_27] : memref<25x2304xf32, #tpu.memory_space<vmem>>, vector<1x2304xf32>
    tpu.vector_store %arg6[%c8, %c0_27], %71 {strides = array<i32>} : memref<25x2304xf32, #tpu.memory_space<vmem>>, vector<1x2304xf32>,
    %c2461_i32 = arith.constant 2461 : i32
    %73 = tpu.dynamic_rotate %1 by %c2461_i32 dim 1 : vector<1x2560xf32>, i32 -> vector<1x2560xf32>
    %74 = vector.extract_strided_slice %73 {offsets = [0, 0], sizes = [1, 2304], strides = [1, 1]} : vector<1x2560xf32> to vector<1x2304xf32>
    %75 = arith.mulf %74, %64 : vector<1x2304xf32>
    %c13 = arith.constant 13 : index
    %c0_28 = arith.constant 0 : index
    %76 = vector.load %arg6[%c13, %c0_28] : memref<25x2304xf32, #tpu.memory_space<vmem>>, vector<1x2304xf32>
    tpu.vector_store %arg6[%c13, %c0_28], %75 {strides = array<i32>} : memref<25x2304xf32, #tpu.memory_space<vmem>>, vector<1x2304xf32>,
    %c2413_i32 = arith.constant 2413 : i32
    %77 = tpu.dynamic_rotate %1 by %c2413_i32 dim 1 : vector<1x2560xf32>, i32 -> vector<1x2560xf32>
    %78 = vector.extract_strided_slice %77 {offsets = [0, 0], sizes = [1, 2304], strides = [1, 1]} : vector<1x2560xf32> to vector<1x2304xf32>
    %79 = arith.mulf %78, %64 : vector<1x2304xf32>
    %c18 = arith.constant 18 : index
    %c0_29 = arith.constant 0 : index
    %80 = vector.load %arg6[%c18, %c0_29] : memref<25x2304xf32, #tpu.memory_space<vmem>>, vector<1x2304xf32>
    tpu.vector_store %arg6[%c18, %c0_29], %79 {strides = array<i32>} : memref<25x2304xf32, #tpu.memory_space<vmem>>, vector<1x2304xf32>,
    %c2365_i32 = arith.constant 2365 : i32
    %81 = tpu.dynamic_rotate %1 by %c2365_i32 dim 1 : vector<1x2560xf32>, i32 -> vector<1x2560xf32>
    %82 = vector.extract_strided_slice %81 {offsets = [0, 0], sizes = [1, 2304], strides = [1, 1]} : vector<1x2560xf32> to vector<1x2304xf32>
    %83 = arith.mulf %82, %64 : vector<1x2304xf32>
    %c23 = arith.constant 23 : index
    %c0_30 = arith.constant 0 : index
    %84 = vector.load %arg6[%c23, %c0_30] : memref<25x2304xf32, #tpu.memory_space<vmem>>, vector<1x2304xf32>
    tpu.vector_store %arg6[%c23, %c0_30], %83 {strides = array<i32>} : memref<25x2304xf32, #tpu.memory_space<vmem>>, vector<1x2304xf32>,
    %c4 = arith.constant 4 : index
    %c0_31 = arith.constant 0 : index
    %85 = vector.load %arg3[%c4, %c0_31] : memref<8x2304xf32, #tpu.memory_space<vmem>>, vector<1x2304xf32>
    %c2556_i32 = arith.constant 2556 : i32
    %86 = tpu.dynamic_rotate %1 by %c2556_i32 dim 1 : vector<1x2560xf32>, i32 -> vector<1x2560xf32>
    %87 = vector.extract_strided_slice %86 {offsets = [0, 0], sizes = [1, 2304], strides = [1, 1]} : vector<1x2560xf32> to vector<1x2304xf32>
    %88 = arith.mulf %87, %85 : vector<1x2304xf32>
    %c4_32 = arith.constant 4 : index
    %c0_33 = arith.constant 0 : index
    %89 = vector.load %arg6[%c4_32, %c0_33] : memref<25x2304xf32, #tpu.memory_space<vmem>>, vector<1x2304xf32>
    tpu.vector_store %arg6[%c4_32, %c0_33], %88 {strides = array<i32>} : memref<25x2304xf32, #tpu.memory_space<vmem>>, vector<1x2304xf32>,
    %c2508_i32 = arith.constant 2508 : i32
    %90 = tpu.dynamic_rotate %1 by %c2508_i32 dim 1 : vector<1x2560xf32>, i32 -> vector<1x2560xf32>
    %91 = vector.extract_strided_slice %90 {offsets = [0, 0], sizes = [1, 2304], strides = [1, 1]} : vector<1x2560xf32> to vector<1x2304xf32>
    %92 = arith.mulf %91, %85 : vector<1x2304xf32>
    %c9 = arith.constant 9 : index
    %c0_34 = arith.constant 0 : index
    %93 = vector.load %arg6[%c9, %c0_34] : memref<25x2304xf32, #tpu.memory_space<vmem>>, vector<1x2304xf32>
    tpu.vector_store %arg6[%c9, %c0_34], %92 {strides = array<i32>} : memref<25x2304xf32, #tpu.memory_space<vmem>>, vector<1x2304xf32>,
    %c2460_i32 = arith.constant 2460 : i32
    %94 = tpu.dynamic_rotate %1 by %c2460_i32 dim 1 : vector<1x2560xf32>, i32 -> vector<1x2560xf32>
    %95 = vector.extract_strided_slice %94 {offsets = [0, 0], sizes = [1, 2304], strides = [1, 1]} : vector<1x2560xf32> to vector<1x2304xf32>
    %96 = arith.mulf %95, %85 : vector<1x2304xf32>
    %c14 = arith.constant 14 : index
    %c0_35 = arith.constant 0 : index
    %97 = vector.load %arg6[%c14, %c0_35] : memref<25x2304xf32, #tpu.memory_space<vmem>>, vector<1x2304xf32>
    tpu.vector_store %arg6[%c14, %c0_35], %96 {strides = array<i32>} : memref<25x2304xf32, #tpu.memory_space<vmem>>, vector<1x2304xf32>,
    %c2412_i32 = arith.constant 2412 : i32
    %98 = tpu.dynamic_rotate %1 by %c2412_i32 dim 1 : vector<1x2560xf32>, i32 -> vector<1x2560xf32>
    %99 = vector.extract_strided_slice %98 {offsets = [0, 0], sizes = [1, 2304], strides = [1, 1]} : vector<1x2560xf32> to vector<1x2304xf32>
    %100 = arith.mulf %99, %85 : vector<1x2304xf32>
    %c19 = arith.constant 19 : index
    %c0_36 = arith.constant 0 : index
    %101 = vector.load %arg6[%c19, %c0_36] : memref<25x2304xf32, #tpu.memory_space<vmem>>, vector<1x2304xf32>
    tpu.vector_store %arg6[%c19, %c0_36], %100 {strides = array<i32>} : memref<25x2304xf32, #tpu.memory_space<vmem>>, vector<1x2304xf32>,
    %c2364_i32 = arith.constant 2364 : i32
    %102 = tpu.dynamic_rotate %1 by %c2364_i32 dim 1 : vector<1x2560xf32>, i32 -> vector<1x2560xf32>
    %103 = vector.extract_strided_slice %102 {offsets = [0, 0], sizes = [1, 2304], strides = [1, 1]} : vector<1x2560xf32> to vector<1x2304xf32>
    %104 = arith.mulf %103, %85 : vector<1x2304xf32>
    %c24 = arith.constant 24 : index
    %c0_37 = arith.constant 0 : index
    %105 = vector.load %arg6[%c24, %c0_37] : memref<25x2304xf32, #tpu.memory_space<vmem>>, vector<1x2304xf32>
    tpu.vector_store %arg6[%c24, %c0_37], %104 {strides = array<i32>} : memref<25x2304xf32, #tpu.memory_space<vmem>>, vector<1x2304xf32>,
    %c0_38 = arith.constant 0 : index
    %c0_39 = arith.constant 0 : index
    %106 = vector.load %arg2[%c0_38, %c0_39] : memref<64x25xf32, #tpu.memory_space<vmem>>, vector<64x25xf32>
    %c0_40 = arith.constant 0 : index
    %c0_41 = arith.constant 0 : index
    %107 = vector.load %arg6[%c0_40, %c0_41] : memref<25x2304xf32, #tpu.memory_space<vmem>>, vector<25x2304xf32>
    %cst = arith.constant dense<0.000000e+00> : vector<64x2304xf32>
    %108 = tpu.matmul %106, %107, %cst {dimension_numbers = #tpu.dot_dimension_numbers<[1], [0], [0], [1], [0, 0, 1, 1], [], []>} : vector<64x25xf32>, vector<25x2304xf32>, vector<64x2304xf32> -> vector<64x2304xf32>
    %c0_42 = arith.constant 0 : index
    %c0_43 = arith.constant 0 : index
    %c0_44 = arith.constant 0 : index
    %109 = vector.load %arg4[%c0_42, %c0_43, %c0_44] : memref<3x64x1xf32, #tpu.memory_space<vmem>>, vector<1x64x1xf32>
    %110 = vector.shape_cast %109 : vector<1x64x1xf32> to vector<64x1xf32>
    %c1_45 = arith.constant 1 : index
    %c0_46 = arith.constant 0 : index
    %c0_47 = arith.constant 0 : index
    %111 = vector.load %arg4[%c1_45, %c0_46, %c0_47] : memref<3x64x1xf32, #tpu.memory_space<vmem>>, vector<1x64x1xf32>
    %112 = vector.shape_cast %111 : vector<1x64x1xf32> to vector<64x1xf32>
    %c2_48 = arith.constant 2 : index
    %c0_49 = arith.constant 0 : index
    %c0_50 = arith.constant 0 : index
    %113 = vector.load %arg4[%c2_48, %c0_49, %c0_50] : memref<3x64x1xf32, #tpu.memory_space<vmem>>, vector<1x64x1xf32>
    %114 = vector.shape_cast %113 : vector<1x64x1xf32> to vector<64x1xf32>
    %115 = vector.broadcast %110 : vector<64x1xf32> to vector<64x2304xf32>
    %116 = arith.addf %108, %115 : vector<64x2304xf32>
    %cst_51 = arith.constant 0.000000e+00 : f32
    %117 = vector.broadcast %cst_51 : f32 to vector<64x2304xf32>
    %118 = arith.cmpf oge, %116, %117 : vector<64x2304xf32>
    %cst_52 = arith.constant 5.000000e-02 : f32
    %119 = vector.broadcast %cst_52 : f32 to vector<64x2304xf32>
    %120 = arith.mulf %119, %116 : vector<64x2304xf32>
    %121 = arith.select %118, %116, %120 : vector<64x2304xi1>, vector<64x2304xf32>
    %122 = vector.broadcast %112 : vector<64x1xf32> to vector<64x2304xf32>
    %123 = arith.mulf %121, %122 : vector<64x2304xf32>
    %124 = vector.broadcast %114 : vector<64x1xf32> to vector<64x2304xf32>
    %125 = arith.addf %123, %124 : vector<64x2304xf32>
    %c0_53 = arith.constant 0 : index
    %c0_54 = arith.constant 0 : index
    %c0_55 = arith.constant 0 : index
    %126 = vector.load %arg5[%c0_53, %c0_54, %c0_55] : memref<1x64x2304xf32, #tpu.memory_space<vmem>>, vector<1x64x2304xf32>
    %127 = vector.shape_cast %126 : vector<1x64x2304xf32> to vector<64x2304xf32>
    %128 = vector.shape_cast %125 : vector<64x2304xf32> to vector<1x64x2304xf32>
    tpu.vector_store %arg5[%c0_53, %c0_54, %c0_55], %128 {strides = array<i32>} : memref<1x64x2304xf32, #tpu.memory_space<vmem>>, vector<1x64x2304xf32>,
    return
  }
  func.func @transform_0(%arg0: i32) -> (i32, i32, i32) {
    %c0_i32 = arith.constant 0 : i32
    %c0_i32_0 = arith.constant 0 : i32
    %c0_i32_1 = arith.constant 0 : i32
    return %arg0, %c0_i32, %c0_i32_0 : i32, i32, i32
  }
  func.func @transform_1(%arg0: i32) -> (i32, i32) {
    %c0_i32 = arith.constant 0 : i32
    %c0_i32_0 = arith.constant 0 : i32
    %c0_i32_1 = arith.constant 0 : i32
    return %c0_i32, %c0_i32_0 : i32, i32
  }
  func.func @transform_2(%arg0: i32) -> (i32, i32) {
    %c0_i32 = arith.constant 0 : i32
    %c0_i32_0 = arith.constant 0 : i32
    %c0_i32_1 = arith.constant 0 : i32
    return %c0_i32, %c0_i32_0 : i32, i32
  }
  func.func @transform_3(%arg0: i32) -> (i32, i32, i32) {
    %c0_i32 = arith.constant 0 : i32
    %c0_i32_0 = arith.constant 0 : i32
    %c0_i32_1 = arith.constant 0 : i32
    %c0_i32_2 = arith.constant 0 : i32
    return %c0_i32, %c0_i32_0, %c0_i32_1 : i32, i32, i32
  }
  func.func @transform_4(%arg0: i32) -> (i32, i32, i32) {
    %c0_i32 = arith.constant 0 : i32
    %c0_i32_0 = arith.constant 0 : i32
    %c0_i32_1 = arith.constant 0 : i32
    return %arg0, %c0_i32, %c0_i32_0 : i32, i32, i32
  }
}

</mosaic_0001>

<bundles_post_ra>
// kernel: conv1_block_forward.1
= control target key start
LH: loop header
LB: loop body
LE: loop exit
PB: predicated region body
PF: predicated region fallthrough
CT: control target
= control target key end

     0   :  { %s6038_s15 = smov 0   ;;  %s10848_s0 = inlined_call_operand.vmem [shape: f32[2,1,2560], index: 0, kind: input, shape index: {}]   ;;  %s10849_s1 = inlined_call_operand.vmem [shape: f32[64,25], index: 1, kind: input, shape index: {}]   ;;  %s10850_s2 = inlined_call_operand.vmem [shape: f32[8,2304], index: 2, kind: input, shape index: {}]   ;;  %s10851_s3 = inlined_call_operand.vmem [shape: f32[3,64,1], index: 3, kind: input, shape index: {}]   ;;  %s10852_s4 = inlined_call_operand.vmem [shape: f32[2,64,2304], index: 4, kind: output, shape index: {}]  }
   0x1 LB: > { %s5711_s16 = sadd.s32 4294967295, %s5986_s15   ;;  %p5715_p0 = scmp.ge.s32.totalorder %s5986_s15, 1  ;;  %s5986_s15 = sphi %s6038_s15, %s14_s15  }
   0x2   : > { %p161_p1 = scmp.lt.s32.totalorder %s5986_s15, 3 }
   0x4   : > { %p162_p2 = pnand %p5715_p0, %p161_p1 }
   0x6   : > { %165 = sbr.rel (%p162_p2) target bundleno = 1655 (0x677), region = 36 }
   0xb   : > { %p186_p3 = scmp.lt.s32.totalorder %s5711_s16, 1  ;;  %s5988_s21 = smov 80   ;;  %v215_v25 = vlaneseq  ;;  %v198_v29 = vld [vmem:[%s10850_s2] ss:$8 sm:$0xf]  ;;  %v10884_v44 = vmov 0 }
   0xc   : > { %s5989_s22 = smov 32   ;;  %s5990_s23 = smov 112   ;;  %v199_v30 = vld [vmem:[%s10850_s2] ss:$8 sm:$0xf0]  ;;  %vm414_vm2 = vcmask 1042434  }
   0xd   : > { %s10918_s16 = smov (!%p186_p3, %s5711_s16), 1  ;;  %v6181_v31 = vand.u32 127, %v215_v25  ;;  %v6187_v32 = vor.u32 %v199_v30, %v198_v29  ;;  %v6197_v35 = vld [vmem:[%s10850_s2 + $0x80] ss:$8 sm:$0x3]  ;;  %vm6216_vm1 = vcmp.lt.s32.totalorder %v215_v25, 256 }
   0xe   : > { %s5928_s17 = smul.u32 20, %s10918_s16  ;;  %v10885_v44 = vsel %vm6216_vm1, 4294967295, %v10884_v44  ;;  %vm412_vm3 = vcmask 1040384   ;;  %vm416_vm4 = vcmask 1041408   ;;  %vm418_vm5 = vcmask 1044484   ;;  %s5991_s8 = smov 64  }
   0xf   : > { %10883 = vst [vmem:[#allocation7_spill] sm:$0xff] %v6187_v32  ;;  %vm303_vm0 = vcmp.lt.s32.totalorder %v6181_v31, 80  ;;  %v6200_v36 = vperm.slane %v6187_v32, 2  ;;  %v6203_v37 = vperm.slane %v6187_v32, 3  ;;  %v6206_v38 = vperm.slane %v6187_v32, 1  ;;  %s5992_s9 = smov 127  }
  0x10   : > { %s6052_s20 = scalar_lea.vmem %s10848_s0, %s5928_s17  ;;  %10886 = vst [vmem:[#allocation8_spill] sm:$0xff] %v10885_v44  ;;  %v6221_v45 = vperm.slane %v6187_v32, 4  ;;  %v6235_v50 = vperm.slane %v6187_v32, 7  ;;  %v6239_v52 = vperm.slane %v6187_v32, 0  ;;  %v6244_v53 = vperm.slane %v6187_v32, 5  ;;  %s5993_s10 = smov 79  }
  0x11   : > { %v195_v0 = vld [vmem:[%s6052_s20] sm:$0xff]  ;;  %v196_v7 = vld [vmem:[%s6052_s20 + $0x8] sm:$0xff]  ;;  %v6117_v17 = vld [vmem:[%s6052_s20 + $0x10] sm:$0xf]  ;;  %v6247_v54 = vperm.slane %v6187_v32, 6  ;;  %vm420_vm6 = vcmask 1046534  }
  0x12   : > { %v6055_v1 = vperm.slane %v195_v0, 4  ;;  %v6057_v2 = vperm.slane %v195_v0, 2  ;;  %v6059_v3 = vperm.slane %v195_v0, 0  ;;  %v6067_v4 = vperm.slane %v195_v0, 5  ;;  %s5994_s11 = smov 31   ;;  %s5996_s26 = smov 63  }
  0x13   : > { %v6069_v5 = vperm.slane %v195_v0, 3  ;;  %v6071_v6 = vperm.slane %v195_v0, 1  ;;  %v6080_v8 = vperm.slane %v196_v7, 0  ;;  %v6082_v9 = vperm.slane %v195_v0, 7  ;;  %s5997_s27 = smov 126   ;;  %s5998_s28 = smov 78  }
  0x14   : > { %10879 = vst [vmem:[#allocation3_spill] sm:$0xff] %v6059_v3  ;;  %271 = vrot.lane.b32.xlu2 %v6055_v1, %s5988_s21  ;;  %267 = vrot.lane.b32.xlu1 %v6057_v2, %s5988_s21  ;;  %v6084_v10 = vperm.slane %v195_v0, 6  ;;  %v6092_v11 = vperm.slane %v196_v7, 3  ;;  %v6094_v12 = vperm.slane %v196_v7, 2  ;;  %v6096_v13 = vperm.slane %v196_v7, 1  ;;  %s5999_s29 = smov 30  }
  0x15   : > { %263 = vrot.lane.b32.xlu0 %v6059_v3, %s5988_s21  ;;  %10880 = vst [vmem:[#allocation4_spill] sm:$0xff] %v6069_v5  ;;  %v6104_v14 = vperm.slane %v196_v7, 6  ;;  %v6106_v15 = vperm.slane %v196_v7, 5  ;;  %v6108_v16 = vperm.slane %v196_v7, 4  ;;  %v6120_v18 = vperm.slane %v6117_v17, 1  ;;  %s6000_s12 = smov 110  }
  0x16   : > { %v6123_v19 = vperm.slane %v6117_v17, 0  ;;  %v6125_v20 = vperm.slane %v196_v7, 7  ;;  %v6134_v21 = vperm.slane %v6117_v17, 2  ;;  %v209_v40 = vmul.f32 %v6197_v35, %v6117_v17  ;;  %s6001_s17 = smov 62   ;;  %s6002_s18 = smov 125  }
  0x17   : > { %10881 = vst [vmem:[#allocation5_spill] sm:$0xff] %v6104_v14  ;;  %vm422_vm7 = vcmask 1045508   ;;  %vm424_vm8 = vcmask 1043456   ;;  %vm484_vm9 = vcmp.lt.s32.totalorder %v6181_v31, 32  ;;  %vm621_vm10 = vcmp.lt.s32.totalorder %v6181_v31, 112  ;;  %s6003_s19 = smov 77  }
  0x18   : > { %10882 = vst [vmem:[#allocation6_spill] sm:$0xff] %v6106_v15  ;;  %vm756_vm11 = vcmp.lt.s32.totalorder %v6181_v31, 64  ;;  %vm901_vm12 = vcmp.lt.s32.totalorder %v6181_v31, 127  ;;  %vm1075_vm13 = vcmp.lt.s32.totalorder %v6181_v31, 79  ;;  %vm1210_vm14 = vcmp.lt.s32.totalorder %v6181_v31, 31  ;;  %s6005_s30 = smov 109  }
  0x19   : > { %220 = vst.msk [vmem:[#allocation2 + $0x80] ss:$8 sm:$0x3] %vm6216_vm1, %v209_v40  ;;  %vm1345_vm15 = vcmp.lt.s32.totalorder %v6181_v31, 111  ;;  %s6006_s7 = smov 60   ;;  %s5929_s24 = smul.u32 1152, %s10918_s16 }
  0x1c   : > { %273 = vrot.lane.b32.xlu2 %v6067_v4, %s5988_s21  ;;  %269 = vrot.lane.b32.xlu1 %v6069_v5, %s5988_s21 }
  0x1d   : > { %265 = vrot.lane.b32.xlu0 %v6071_v6, %s5988_s21 }
  0x24   : > { %279 = vrot.lane.b32.xlu2 %v6080_v8, %s5988_s21  ;;  %277 = vrot.lane.b32.xlu1 %v6082_v9, %s5988_s21 }
  0x25   : > { %275 = vrot.lane.b32.xlu0 %v6084_v10, %s5988_s21 }
  0x2c   : > { %285 = vrot.lane.b32.xlu2 %v6092_v11, %s5988_s21  ;;  %283 = vrot.lane.b32.xlu1 %v6094_v12, %s5988_s21 }
  0x2d   : > { %281 = vrot.lane.b32.xlu0 %v6096_v13, %s5988_s21 }
  0x34   : > { %291 = vrot.lane.b32.xlu2 %v6104_v14, %s5988_s21  ;;  %289 = vrot.lane.b32.xlu1 %v6106_v15, %s5988_s21 }
  0x35   : > { %287 = vrot.lane.b32.xlu0 %v6108_v16, %s5988_s21 }
  0x3c   : > { %297 = vrot.lane.b32.xlu2 %v6120_v18, %s5988_s21  ;;  %295 = vrot.lane.b32.xlu1 %v6123_v19, %s5988_s21 }
  0x3d   : > { %293 = vrot.lane.b32.xlu0 %v6125_v20, %s5988_s21 }
  0x44   : > { %448 = vrot.lane.b32.xlu2 %v6071_v6, %s5989_s22  ;;  %446 = vrot.lane.b32.xlu1 %v6059_v3, %s5989_s22 }
  0x45   : > { %299 = vrot.lane.b32.xlu0 %v6134_v21, %s5988_s21  ;;  %s6004_s21 = smov 29  }
  0x4c   : > { %454 = vrot.lane.b32.xlu2 %v6055_v1, %s5989_s22  ;;  %452 = vrot.lane.b32.xlu1 %v6069_v5, %s5989_s22 }
  0x4d   : > { %450 = vrot.lane.b32.xlu0 %v6057_v2, %s5989_s22 }
  0x54   : > { %460 = vrot.lane.b32.xlu2 %v6082_v9, %s5989_s22  ;;  %458 = vrot.lane.b32.xlu1 %v6084_v10, %s5989_s22 }
  0x55   : > { %456 = vrot.lane.b32.xlu0 %v6067_v4, %s5989_s22 }
  0x5c   : > { %466 = vrot.lane.b32.xlu2 %v6094_v12, %s5989_s22  ;;  %464 = vrot.lane.b32.xlu1 %v6096_v13, %s5989_s22 }
  0x5d   : > { %462 = vrot.lane.b32.xlu0 %v6080_v8, %s5989_s22 }
  0x64   : > { %472 = vrot.lane.b32.xlu2 %v6106_v15, %s5989_s22  ;;  %470 = vrot.lane.b32.xlu1 %v6108_v16, %s5989_s22 }
  0x65   : > { %468 = vrot.lane.b32.xlu0 %v6092_v11, %s5989_s22 }
  0x6c   : > { %478 = vrot.lane.b32.xlu2 %v6123_v19, %s5989_s22  ;;  %476 = vrot.lane.b32.xlu1 %v6125_v20, %s5989_s22 }
  0x6d   : > { %474 = vrot.lane.b32.xlu0 %v6104_v14, %s5989_s22 }
  0x6e   : > { %v272_v22 = vpop.permute.xlu2 %271 }
  0x74   : > { %583 = vrot.lane.b32.xlu2 %v6071_v6, %s5990_s23  ;;  %482 = vrot.lane.b32.xlu1 %v6134_v21, %s5989_s22 }
  0x75   : > { %480 = vrot.lane.b32.xlu0 %v6120_v18, %s5989_s22 }
  0x76   : > { %v274_v23 = vpop.permute.xlu2 %273 }
  0x77   : > { %v317_v46 = vsel %vm303_vm0, %v272_v22, %v274_v23 }
  0x78   : > { %v365_v51 = vmul.f32 %v6221_v45, %v317_v46 }
  0x7c   : > { %589 = vrot.lane.b32.xlu2 %v6055_v1, %s5990_s23  ;;  %587 = vrot.lane.b32.xlu1 %v6069_v5, %s5990_s23 }
  0x7d   : > { %585 = vrot.lane.b32.xlu0 %v6057_v2, %s5990_s23 }
  0x7e   : > { %v6165_v24 = vpop.permute.xlu2 %279 }
  0x84   : > { %595 = vrot.lane.b32.xlu2 %v6082_v9, %s5990_s23  ;;  %593 = vrot.lane.b32.xlu1 %v6084_v10, %s5990_s23 }
  0x85   : > { %591 = vrot.lane.b32.xlu0 %v6067_v4, %s5990_s23 }
  0x86   : > { %v6173_v26 = vpop.permute.xlu2 %285  ;;  %v268_v27 = vpop.permute.xlu1 %267 }
  0x87   : > { %v264_v28 = vpop.permute.xlu0 %263 }
  0x8c   : > { %601 = vrot.lane.b32.xlu2 %v6094_v12, %s5990_s23  ;;  %599 = vrot.lane.b32.xlu1 %v6096_v13, %s5990_s23 }
  0x8d   : > { %597 = vrot.lane.b32.xlu0 %v6080_v8, %s5990_s23 }
  0x8e   : > { %v6192_v33 = vpop.permute.xlu2 %291  ;;  %v270_v34 = vpop.permute.xlu1 %269 }
  0x8f   : > { %v266_v39 = vpop.permute.xlu0 %265  ;;  %v318_v41 = vsel %vm303_vm0, %v270_v34, %v272_v22  ;;  %v319_v42 = vsel %vm303_vm0, %v268_v27, %v270_v34  ;;  %v400_v22 = vrot.slane %v365_v51, 4 }
  0x90   : > { %v320_v43 = vsel %vm303_vm0, %v266_v39, %v268_v27  ;;  %v363_v47 = vmul.f32 %v6200_v36, %v319_v42  ;;  %v364_v48 = vmul.f32 %v6203_v37, %v318_v41  ;;  %v321_v55 = vsel %vm303_vm0, %v264_v28, %v266_v39 }
  0x91   : > { %v362_v49 = vmul.f32 %v6206_v38, %v320_v43  ;;  %v361_v25 = vmul.f32 %v6239_v52, %v321_v55  ;;  %v6283_v55 = vperm.slane %v6117_v17, 3 }
  0x92   : > { %v398_v58 = vrot.slane %v363_v47, 6  ;;  %v399_v59 = vrot.slane %v364_v48, 5 }
  0x93   : > { %v397_v60 = vrot.slane %v362_v49, 7  ;;  %v5717_v49 = vld [vmem:[%s10850_s2 + $0x40] ss:$8 sm:$0xf]  ;;  %10887 = vst [vmem:[#allocation9_spill] sm:$0xff] %v6283_v55 }
  0x94   : > { %607 = vrot.lane.b32.xlu2 %v6106_v15, %s5990_s23  ;;  %605 = vrot.lane.b32.xlu1 %v6108_v16, %s5990_s23  ;;  %v415_v30 = vsel %vm414_vm2, %v398_v58, %v399_v59 }
  0x95   : > { %603 = vrot.lane.b32.xlu0 %v6092_v11, %s5990_s23  ;;  %v413_v34 = vsel %vm412_vm3, %v361_v25, %v397_v60 }
  0x96   : > { %v6251_v56 = vpop.permute.xlu2 %297  ;;  %v278_v57 = vpop.permute.xlu1 %277  ;;  %v417_v42 = vsel %vm416_vm4, %v413_v34, %v415_v30 }
  0x97   : > { %v314_v61 = vsel %vm303_vm0, %v278_v57, %v6165_v24  ;;  %v276_v62 = vpop.permute.xlu0 %275 }
  0x98   : > { %v368_v63 = vmul.f32 %v6235_v50, %v314_v61  ;;  %v315_v0 = vsel %vm303_vm0, %v276_v62, %v278_v57  ;;  %v316_v7 = vsel %vm303_vm0, %v274_v23, %v276_v62  ;;  %v5718_v57 = vld [vmem:[%s10850_s2 + $0x40] ss:$8 sm:$0xf0] }
  0x99   : > { %v366_v27 = vmul.f32 %v6244_v53, %v316_v7  ;;  %v367_v28 = vmul.f32 %v6247_v54, %v315_v0  ;;  %v6288_v58 = vor.u32 %v5718_v57, %v5717_v49 }
  0x9a   : > { %v403_v29 = vrot.slane %v368_v63, 1 }
  0x9b   : > { %v401_v39 = vrot.slane %v366_v27, 3  ;;  %v402_v40 = vrot.slane %v367_v28, 2  ;;  %10888 = vst [vmem:[#allocation10_spill] sm:$0xff] %v6288_v58  ;;  %v6299_v17 = vperm.slane %v6288_v58, 3  ;;  %v6302_v62 = vperm.slane %v6288_v58, 2 }
  0x9c   : > { %613 = vrot.lane.b32.xlu2 %v6123_v19, %s5990_s23  ;;  %611 = vrot.lane.b32.xlu1 %v6125_v20, %s5990_s23  ;;  %v6305_v63 = vperm.slane %v6288_v58, 1  ;;  %v6316_v25 = vperm.slane %v6288_v58, 5  ;;  %v6319_v27 = vperm.slane %v6288_v58, 4 }
  0x9d   : > { %v419_v23 = vsel %vm418_vm5, %v400_v22, %v401_v39  ;;  %v421_v41 = vsel %vm420_vm6, %v402_v40, %v403_v29  ;;  %609 = vrot.lane.b32.xlu0 %v6104_v14, %s5990_s23 }
  0x9e   : > { %v423_v43 = vsel %vm422_vm7, %v419_v23, %v421_v41  ;;  %v284_v46 = vpop.permute.xlu1 %283  ;;  %v6276_v47 = vpop.permute.xlu2 %448  ;;  %v6338_v23 = vperm.slane %v6288_v58, 6  ;;  %v6341_v41 = vperm.slane %v6288_v58, 7 }
  0x9f   : > { %v425_v48 = vsel %vm424_vm8, %v417_v42, %v423_v43  ;;  %v282_v51 = vpop.permute.xlu0 %281  ;;  %v311_v7 = vsel %vm303_vm0, %v284_v46, %v6173_v26 }
  0xa0   : > { %438 = vst [vmem:[#allocation2 + $0x5] ss:$8 sm:$0xf] %v425_v48  ;;  %v312_v22 = vsel %vm303_vm0, %v282_v51, %v284_v46  ;;  %v6346_v46 = vperm.slane %v6288_v58, 0 }
  0xa1   : > { %439 = vst [vmem:[#allocation2 + $0x5] ss:$8 sm:$0xf0] %v425_v48  ;;  %v370_v34 = vmul.f32 %v6305_v63, %v312_v22  ;;  %v313_v48 = vsel %vm303_vm0, %v6165_v24, %v282_v51 }
  0xa2   : > { %v369_v32 = vmul.f32 %v6346_v46, %v313_v48 }
  0xa4   : > { %619 = vrot.lane.b32.xlu2 %v6283_v55, %s5990_s23  ;;  %617 = vrot.lane.b32.xlu1 %v6134_v21, %s5990_s23 }
  0xa5   : > { %615 = vrot.lane.b32.xlu0 %v6120_v18, %s5990_s23  ;;  %s5995_s23 = smov 111  }
  0xa6   : > { %v290_v59 = vpop.permute.xlu1 %289  ;;  %v6296_v60 = vpop.permute.xlu2 %454 }
  0xa7   : > { %v288_v61 = vpop.permute.xlu0 %287  ;;  %v308_v28 = vsel %vm303_vm0, %v290_v59, %v6192_v33 }
  0xa8   : > { %v310_v0 = vsel %vm303_vm0, %v6173_v26, %v288_v61  ;;  %v309_v29 = vsel %vm303_vm0, %v288_v61, %v290_v59  ;;  %v371_v26 = vmul.f32 %v6302_v62, %v311_v7  ;;  %v374_v39 = vmul.f32 %v6316_v25, %v308_v28 }
  0xa9   : > { %v372_v30 = vmul.f32 %v6299_v17, %v310_v0  ;;  %v373_v40 = vmul.f32 %v6319_v27, %v309_v29  ;;  %v404_v61 = vrot.slane %v370_v34, 7 }
  0xaa   : > { %v405_v59 = vrot.slane %v371_v26, 6  ;;  %v408_v22 = vrot.slane %v374_v39, 3  ;;  %v6370_v39 = vperm.slane %v6197_v35, 1 }
  0xab   : > { %v406_v49 = vrot.slane %v372_v30, 5  ;;  %v407_v28 = vrot.slane %v373_v40, 4 }
  0xac   : > { %722 = vrot.lane.b32.xlu2 %v6069_v5, %s5991_s8  ;;  %720 = vrot.lane.b32.xlu1 %v6057_v2, %s5991_s8  ;;  %10889 = vst [vmem:[#allocation11_spill] sm:$0xff] %v6370_v39 }
  0xad   : > { %718 = vrot.lane.b32.xlu0 %v6071_v6, %s5991_s8  ;;  %v427_v24 = vsel %vm414_vm2, %v405_v59, %v406_v49  ;;  %v429_v26 = vsel %vm418_vm5, %v407_v28, %v408_v22 }
  0xae   : > { %v296_v42 = vpop.permute.xlu1 %295  ;;  %v6343_v43 = vpop.permute.xlu2 %460 }
  0xaf   : > { %v294_v57 = vpop.permute.xlu0 %293 }
  0xb0   : > { %v306_v0 = vsel %vm303_vm0, %v294_v57, %v296_v42  ;;  %v307_v7 = vsel %vm303_vm0, %v6192_v33, %v294_v57  ;;  %v426_v33 = vsel %vm412_vm3, %v369_v32, %v404_v61  ;;  %v6377_v57 = vperm.slane %v6197_v35, 0 }
  0xb1   : > { %v375_v29 = vmul.f32 %v6338_v23, %v307_v7  ;;  %v376_v58 = vmul.f32 %v6341_v41, %v306_v0  ;;  %v305_v61 = vsel %vm303_vm0, %v296_v42, %v6251_v56 }
  0xb2   : > { %v377_v22 = vmul.f32 %v6377_v57, %v305_v61 }
  0xb3   : > { %v409_v51 = vrot.slane %v375_v29, 2  ;;  %v410_v30 = vrot.slane %v376_v58, 1  ;;  %v428_v58 = vsel %vm416_vm4, %v426_v33, %v427_v24 }
  0xb4   : > { %728 = vrot.lane.b32.xlu2 %v6084_v10, %s5991_s8  ;;  %726 = vrot.lane.b32.xlu1 %v6067_v4, %s5991_s8 }
  0xb5   : > { %v430_v34 = vsel %vm420_vm6, %v409_v51, %v410_v30  ;;  %724 = vrot.lane.b32.xlu0 %v6055_v1, %s5991_s8 }
  0xb6   : > { %v431_v40 = vsel %vm422_vm7, %v429_v26, %v430_v34  ;;  %v6374_v48 = vpop.permute.xlu2 %466  ;;  %v447_v49 = vpop.permute.xlu1 %446 }
  0xb7   : > { %v432_v32 = vsel %vm424_vm8, %v428_v58, %v431_v40  ;;  %v300_v59 = vpop.permute.xlu0 %299 }
  0xb8   : > { %441 = vst [vmem:[#allocation2 + $0x45] ss:$8 sm:$0xf] %v432_v32  ;;  %v304_v0 = vsel %vm303_vm0, %v6251_v56, %v300_v59  ;;  %vm1480_vm0 = vcmp.lt.s32.totalorder %v6181_v31, 63 }
  0xb9   : > { %442 = vst [vmem:[#allocation2 + $0x45] ss:$8 sm:$0xf0] %v432_v32  ;;  %v378_v7 = vmul.f32 %v6370_v39, %v304_v0 }
  0xbb   : > { %v411_v28 = vrot.slane %v378_v7, 7 }
  0xbc   : > { %734 = vrot.lane.b32.xlu2 %v6096_v13, %s5991_s8  ;;  %732 = vrot.lane.b32.xlu1 %v6080_v8, %s5991_s8 }
  0xbd   : > { %v433_v35 = vsel %vm412_vm3, %v377_v22, %v411_v28  ;;  %730 = vrot.lane.b32.xlu0 %v6082_v9, %s5991_s8  ;;  %v502_v22 = vsel %vm484_vm9, %v447_v49, %v6276_v47 }
  0xbe   : > { %444 = vst.msk [vmem:[#allocation2 + $0x85] ss:$8 sm:$0x3] %vm6216_vm1, %v433_v35  ;;  %v6397_v56 = vpop.permute.xlu2 %472  ;;  %v453_v42 = vpop.permute.xlu1 %452 }
  0xbf   : > { %v451_v29 = vpop.permute.xlu0 %450  ;;  %v499_v33 = vsel %vm484_vm9, %v453_v42, %v6296_v60 }
  0xc0   : > { %v500_v26 = vsel %vm484_vm9, %v451_v29, %v453_v42  ;;  %v501_v34 = vsel %vm484_vm9, %v6276_v47, %v451_v29  ;;  %v506_v32 = vmul.f32 %v499_v33, %v6203_v37 }
  0xc1   : > { %v504_v59 = vmul.f32 %v501_v34, %v6206_v38  ;;  %v505_v61 = vmul.f32 %v500_v26, %v6200_v36  ;;  %v503_v34 = vmul.f32 %v502_v22, %v6239_v52 }
  0xc2   : > { %v541_v42 = vrot.slane %v506_v32, 5 }
  0xc3   : > { %v539_v29 = vrot.slane %v504_v59, 7 }
  0xc4   : > { %740 = vrot.lane.b32.xlu2 %v6108_v16, %s5991_s8  ;;  %738 = vrot.lane.b32.xlu1 %v6092_v11, %s5991_s8 }
  0xc5   : > { %736 = vrot.lane.b32.xlu0 %v6094_v12, %s5991_s8  ;;  %v554_v47 = vsel %vm412_vm3, %v503_v34, %v539_v29 }
  0xc6   : > { %v6405_v24 = vpop.permute.xlu2 %478  ;;  %v459_v51 = vpop.permute.xlu1 %458 }
  0xc7   : > { %v457_v30 = vpop.permute.xlu0 %456  ;;  %v496_v0 = vsel %vm484_vm9, %v459_v51, %v6343_v43 }
  0xc8   : > { %v497_v58 = vsel %vm484_vm9, %v457_v30, %v459_v51  ;;  %v498_v40 = vsel %vm484_vm9, %v6296_v60, %v457_v30  ;;  %v540_v51 = vrot.slane %v505_v61, 6  ;;  %v509_v30 = vmul.f32 %v496_v0, %v6247_v54 }
  0xc9   : > { %v507_v7 = vmul.f32 %v498_v40, %v6221_v45  ;;  %v508_v60 = vmul.f32 %v497_v58, %v6244_v53 }
  0xca   : > { %v555_v49 = vsel %vm414_vm2, %v540_v51, %v541_v42  ;;  %v544_v32 = vrot.slane %v509_v30, 2 }
  0xcb   : > { %v542_v58 = vrot.slane %v507_v7, 4  ;;  %v543_v40 = vrot.slane %v508_v60, 3  ;;  %v556_v0 = vsel %vm416_vm4, %v554_v47, %v555_v49 }
  0xcc   : > { %746 = vrot.lane.b32.xlu2 %v6125_v20, %s5991_s8  ;;  %744 = vrot.lane.b32.xlu1 %v6104_v14, %s5991_s8 }
  0xcd   : > { %742 = vrot.lane.b32.xlu0 %v6106_v15, %s5991_s8 }
  0xce   : > { %v6438_v28 = vpop.permute.xlu2 %583  ;;  %v465_v35 = vpop.permute.xlu1 %464 }
  0xcf   : > { %v463_v33 = vpop.permute.xlu0 %462  ;;  %v493_v30 = vsel %vm484_vm9, %v465_v35, %v6374_v48 }
  0xd0   : > { %v495_v26 = vsel %vm484_vm9, %v6343_v43, %v463_v33  ;;  %v557_v43 = vsel %vm418_vm5, %v542_v58, %v543_v40  ;;  %v512_v40 = vmul.f32 %v493_v30, %v6305_v63 }
  0xd1   : > { %v510_v14 = vmul.f32 %v495_v26, %v6235_v50 }
  0xd3   : > { %v545_v59 = vrot.slane %v510_v14, 1 }
  0xd4   : > { %752 = vrot.lane.b32.xlu2 %v6134_v21, %s5991_s8  ;;  %750 = vrot.lane.b32.xlu1 %v6120_v18, %s5991_s8 }
  0xd5   : > { %v558_v61 = vsel %vm420_vm6, %v544_v32, %v545_v59  ;;  %748 = vrot.lane.b32.xlu0 %v6123_v19, %s5991_s8 }
  0xd6   : > { %v559_v7 = vsel %vm422_vm7, %v557_v43, %v558_v61  ;;  %v6458_v60 = vpop.permute.xlu2 %589  ;;  %v471_v14 = vpop.permute.xlu1 %470 }
  0xd7   : > { %v560_v22 = vsel %vm424_vm8, %v556_v0, %v559_v7  ;;  %v469_v42 = vpop.permute.xlu0 %468  ;;  %v490_v58 = vsel %vm484_vm9, %v471_v14, %v6397_v56 }
  0xd8   : > { %573 = vst [vmem:[#allocation2 + $0x92] ss:$8 sm:$0xf] %v560_v22  ;;  %v491_v29 = vsel %vm484_vm9, %v469_v42, %v471_v14  ;;  %v492_v51 = vsel %vm484_vm9, %v6374_v48, %v469_v42  ;;  %v494_v48 = vsel %vm484_vm9, %v463_v33, %v465_v35  ;;  %v515_v32 = vmul.f32 %v490_v58, %v6319_v27 }
  0xd9   : > { %574 = vst [vmem:[#allocation2 + $0x92] ss:$8 sm:$0xf0] %v560_v22  ;;  %v513_v26 = vmul.f32 %v492_v51, %v6302_v62  ;;  %v514_v34 = vmul.f32 %v491_v29, %v6299_v17  ;;  %v546_v33 = vrot.slane %v512_v40, 7  ;;  %v511_v29 = vmul.f32 %v494_v48, %v6346_v46 }
  0xda   : > { %v549_v30 = vrot.slane %v515_v32, 4 }
  0xdb   : > { %v547_v59 = vrot.slane %v513_v26, 6  ;;  %v548_v43 = vrot.slane %v514_v34, 5 }
  0xdc   : > { %865 = vrot.lane.b32.xlu2 %v6071_v6, %s5992_s9  ;;  %863 = vrot.lane.b32.xlu1 %v6059_v3, %s5992_s9 }
  0xdd   : > { %754 = vrot.lane.b32.xlu0 %v6283_v55, %s5991_s8  ;;  %v562_v26 = vsel %vm414_vm2, %v547_v59, %v548_v43  ;;  %s6007_s8 = smov 61  }
  0xde   : > { %v6483_v47 = vpop.permute.xlu2 %595  ;;  %v477_v49 = vpop.permute.xlu1 %476 }
  0xdf   : > { %v487_v61 = vsel %vm484_vm9, %v477_v49, %v6405_v24  ;;  %v475_v0 = vpop.permute.xlu0 %474 }
  0xe0   : > { %v518_v7 = vmul.f32 %v487_v61, %v6341_v41  ;;  %v488_v14 = vsel %vm484_vm9, %v475_v0, %v477_v49  ;;  %v489_v35 = vsel %vm484_vm9, %v6397_v56, %v475_v0  ;;  %v561_v56 = vsel %vm412_vm3, %v511_v29, %v546_v33 }
  0xe1   : > { %v516_v22 = vmul.f32 %v489_v35, %v6316_v25  ;;  %v517_v42 = vmul.f32 %v488_v14, %v6338_v23  ;;  %v563_v48 = vsel %vm416_vm4, %v561_v56, %v562_v26 }
  0xe2   : > { %v552_v51 = vrot.slane %v518_v7, 1 }
  0xe3   : > { %v550_v34 = vrot.slane %v516_v22, 3  ;;  %v551_v58 = vrot.slane %v517_v42, 2 }
  0xe4   : > { %871 = vrot.lane.b32.xlu2 %v6055_v1, %s5992_s9  ;;  %869 = vrot.lane.b32.xlu1 %v6069_v5, %s5992_s9 }
  0xe5   : > { %v564_v40 = vsel %vm418_vm5, %v549_v30, %v550_v34  ;;  %v565_v49 = vsel %vm420_vm6, %v551_v58, %v552_v51  ;;  %867 = vrot.lane.b32.xlu0 %v6057_v2, %s5992_s9 }
  0xe6   : > { %v566_v32 = vsel %vm422_vm7, %v564_v40, %v565_v49  ;;  %v6510_v59 = vpop.permute.xlu2 %601  ;;  %v483_v43 = vpop.permute.xlu1 %482 }
  0xe7   : > { %v567_v61 = vsel %vm424_vm8, %v563_v48, %v566_v32  ;;  %v481_v0 = vpop.permute.xlu0 %480 }
  0xe8   : > { %576 = vst [vmem:[#allocation2 + $0xd2] ss:$8 sm:$0xf] %v567_v61  ;;  %v485_v7 = vsel %vm484_vm9, %v481_v0, %v483_v43  ;;  %v486_v14 = vsel %vm484_vm9, %v6405_v24, %v481_v0  ;;  %vm1625_vm9 = vcmp.lt.s32.totalorder %v6181_v31, 126 }
  0xe9   : > { %577 = vst [vmem:[#allocation2 + $0xd2] ss:$8 sm:$0xf0] %v567_v61  ;;  %v520_v35 = vmul.f32 %v485_v7, %v6370_v39  ;;  %v519_v33 = vmul.f32 %v486_v14, %v6377_v57 }
  0xeb   : > { %v553_v22 = vrot.slane %v520_v35, 7 }
  0xec   : > { %877 = vrot.lane.b32.xlu2 %v6082_v9, %s5992_s9  ;;  %875 = vrot.lane.b32.xlu1 %v6084_v10, %s5992_s9 }
  0xed   : > { %v568_v42 = vsel %vm412_vm3, %v519_v33, %v553_v22  ;;  %873 = vrot.lane.b32.xlu0 %v6067_v4, %s5992_s9 }
  0xee   : > { %579 = vst.msk [vmem:[#allocation2 + $0x112] ss:$8 sm:$0x3] %vm6216_vm1, %v568_v42  ;;  %v6529_v24 = vpop.permute.xlu2 %607  ;;  %v588_v29 = vpop.permute.xlu1 %587 }
  0xef   : > { %v586_v51 = vpop.permute.xlu0 %585  ;;  %v637_v56 = vsel %vm621_vm10, %v588_v29, %v6458_v60 }
  0xf0   : > { %v638_v40 = vsel %vm621_vm10, %v586_v51, %v588_v29  ;;  %v642_v43 = vmul.f32 %v637_v56, %v6200_v36  ;;  %v639_v35 = vsel %vm621_vm10, %v6438_v28, %v586_v51 }
  0xf1   : > { %v641_v61 = vmul.f32 %v638_v40, %v6206_v38 }
  0xf2   : > { %v677_v42 = vrot.slane %v642_v43, 6 }
  0xf3   : > { %v676_v29 = vrot.slane %v641_v61, 7 }
  0xf4   : > { %883 = vrot.lane.b32.xlu2 %v6094_v12, %s5992_s9  ;;  %881 = vrot.lane.b32.xlu1 %v6096_v13, %s5992_s9 }
  0xf5   : > { %879 = vrot.lane.b32.xlu0 %v6080_v8, %s5992_s9 }
  0xf6   : > { %v6538_v30 = vpop.permute.xlu2 %613  ;;  %v594_v26 = vpop.permute.xlu1 %593 }
  0xf7   : > { %v592_v34 = vpop.permute.xlu0 %591  ;;  %v634_v49 = vsel %vm621_vm10, %v594_v26, %v6483_v47 }
  0xf8   : > { %v636_v58 = vsel %vm621_vm10, %v6458_v60, %v592_v34  ;;  %v635_v48 = vsel %vm621_vm10, %v592_v34, %v594_v26  ;;  %v645_v60 = vmul.f32 %v634_v49, %v6244_v53 }
  0xf9   : > { %v643_v32 = vmul.f32 %v636_v58, %v6203_v37  ;;  %v644_v0 = vmul.f32 %v635_v48, %v6221_v45  ;;  %v640_v48 = vmul.f32 %v639_v35, %v6239_v52 }
  0xfa   : > { %v680_v58 = vrot.slane %v645_v60, 3  ;;  %v10890_v60 = vld [vmem:[#allocation5_spill] sm:$0xff] }
  0xfb   : > { %v678_v33 = vrot.slane %v643_v32, 5  ;;  %v679_v56 = vrot.slane %v644_v0, 4 }
  0xfc   : > { %889 = vrot.lane.b32.xlu2 %v6106_v15, %s5992_s9  ;;  %887 = vrot.lane.b32.xlu1 %v6108_v16, %s5992_s9 }
  0xfd   : > { %885 = vrot.lane.b32.xlu0 %v6092_v11, %s5992_s9  ;;  %v692_v28 = vsel %vm414_vm2, %v677_v42, %v678_v33  ;;  %v694_v43 = vsel %vm418_vm5, %v679_v56, %v680_v58 }
  0xfe   : > { %v620_v7 = vpop.permute.xlu2 %619  ;;  %v600_v14 = vpop.permute.xlu1 %599 }
  0xff   : > { %v598_v22 = vpop.permute.xlu0 %597 }
 0x100   : > { %v632_v26 = vsel %vm621_vm10, %v598_v22, %v600_v14  ;;  %v633_v34 = vsel %vm621_vm10, %v6483_v47, %v598_v22  ;;  %v691_v47 = vsel %vm412_vm3, %v640_v48, %v676_v29 }
 0x101   : > { %v646_v40 = vmul.f32 %v633_v34, %v6247_v54  ;;  %v647_v49 = vmul.f32 %v632_v26, %v6235_v50  ;;  %v693_v0 = vsel %vm416_vm4, %v691_v47, %v692_v28 }
 0x103   : > { %v681_v51 = vrot.slane %v646_v40, 2  ;;  %v682_v32 = vrot.slane %v647_v49, 1 }
 0x104   : > { %895 = vrot.lane.b32.xlu2 %v6123_v19, %s5992_s9  ;;  %893 = vrot.lane.b32.xlu1 %v6125_v20, %s5992_s9 }
 0x105   : > { %v695_v61 = vsel %vm420_vm6, %v681_v51, %v682_v32  ;;  %891 = vrot.lane.b32.xlu0 %v10890_v60, %s5992_s9 }
 0x106   : > { %v696_v35 = vsel %vm422_vm7, %v694_v43, %v695_v61  ;;  %v6587_v33 = vpop.permute.xlu2 %722  ;;  %v606_v22 = vpop.permute.xlu1 %605 }
 0x107   : > { %v697_v42 = vsel %vm424_vm8, %v693_v0, %v696_v35  ;;  %v604_v26 = vpop.permute.xlu0 %603  ;;  %v628_v58 = vsel %vm621_vm10, %v606_v22, %v6529_v24 }
 0x108   : > { %710 = vst [vmem:[#allocation2 + $0x97] ss:$8 sm:$0xf] %v697_v42  ;;  %v629_v40 = vsel %vm621_vm10, %v604_v26, %v606_v22  ;;  %v630_v49 = vsel %vm621_vm10, %v6510_v59, %v604_v26  ;;  %v651_v48 = vmul.f32 %v628_v58, %v6299_v17 }
 0x109   : > { %711 = vst [vmem:[#allocation2 + $0x97] ss:$8 sm:$0xf0] %v697_v42  ;;  %v649_v32 = vmul.f32 %v630_v49, %v6305_v63  ;;  %v650_v47 = vmul.f32 %v629_v40, %v6302_v62 }
 0x10a   : > { %v685_v35 = vrot.slane %v651_v48, 5 }
 0x10b   : > { %v683_v26 = vrot.slane %v649_v32, 7 }
 0x10c   : > { %1037 = vrot.lane.b32.xlu2 %v6059_v3, %s5993_s10  ;;  %899 = vrot.lane.b32.xlu1 %v6134_v21, %s5992_s9 }
 0x10d   : > { %897 = vrot.lane.b32.xlu0 %v6120_v18, %s5992_s9  ;;  %s6008_s9 = smov 108  }
 0x10e   : > { %v6596_v29 = vpop.permute.xlu2 %728  ;;  %v612_v34 = vpop.permute.xlu1 %611 }
 0x10f   : > { %v610_v56 = vpop.permute.xlu0 %609  ;;  %v625_v43 = vsel %vm621_vm10, %v612_v34, %v6538_v30 }
 0x110   : > { %v626_v28 = vsel %vm621_vm10, %v610_v56, %v612_v34  ;;  %v627_v51 = vsel %vm621_vm10, %v6529_v24, %v610_v56  ;;  %v631_v24 = vsel %vm621_vm10, %v600_v14, %v6510_v59  ;;  %v684_v34 = vrot.slane %v650_v47, 6 }
 0x111   : > { %v652_v61 = vmul.f32 %v627_v51, %v6319_v27  ;;  %v653_v0 = vmul.f32 %v626_v28, %v6316_v25  ;;  %v654_v58 = vmul.f32 %v625_v43, %v6338_v23  ;;  %v648_v14 = vmul.f32 %v631_v24, %v6346_v46 }
 0x113   : > { %v686_v48 = vrot.slane %v652_v61, 4  ;;  %v687_v51 = vrot.slane %v653_v0, 3  ;;  %v688_v55 = vrot.slane %v654_v58, 2 }
 0x114   : > { %1043 = vrot.lane.b32.xlu2 %v6069_v5, %s5993_s10  ;;  %1041 = vrot.lane.b32.xlu1 %v6057_v2, %s5993_s10 }
 0x115   : > { %1039 = vrot.lane.b32.xlu0 %v6071_v6, %s5993_s10 }
 0x116   : > { %v6628_v22 = vpop.permute.xlu2 %734  ;;  %v618_v42 = vpop.permute.xlu1 %617 }
 0x117   : > { %v622_v56 = vsel %vm621_vm10, %v618_v42, %v620_v7  ;;  %v616_v40 = vpop.permute.xlu0 %615  ;;  %v698_v7 = vsel %vm412_vm3, %v648_v14, %v683_v26 }
 0x118   : > { %v657_v49 = vmul.f32 %v622_v56, %v6370_v39  ;;  %v623_v28 = vsel %vm621_vm10, %v616_v40, %v618_v42  ;;  %v624_v59 = vsel %vm621_vm10, %v6538_v30, %v616_v40  ;;  %v699_v56 = vsel %vm414_vm2, %v684_v34, %v685_v35 }
 0x119   : > { %v655_v32 = vmul.f32 %v624_v59, %v6341_v41  ;;  %v656_v43 = vmul.f32 %v623_v28, %v6377_v57  ;;  %v701_v30 = vsel %vm418_vm5, %v686_v48, %v687_v51  ;;  %v700_v0 = vsel %vm416_vm4, %v698_v7, %v699_v56 }
 0x11a   : > { %v690_v47 = vrot.slane %v657_v49, 7  ;;  %vm1799_vm10 = vcmp.lt.s32.totalorder %v6181_v31, 78 }
 0x11b   : > { %v689_v39 = vrot.slane %v655_v32, 1 }
 0x11c   : > { %v705_v42 = vsel %vm412_vm3, %v656_v43, %v690_v47  ;;  %1049 = vrot.lane.b32.xlu2 %v6084_v10, %s5993_s10  ;;  %1047 = vrot.lane.b32.xlu1 %v6067_v4, %s5993_s10 }
 0x11d   : > { %v702_v61 = vsel %vm420_vm6, %v688_v55, %v689_v39  ;;  %716 = vst.msk [vmem:[#allocation2 + $0x117] ss:$8 sm:$0x3] %vm6216_vm1, %v705_v42  ;;  %1045 = vrot.lane.b32.xlu0 %v6055_v1, %s5993_s10 }
 0x11e   : > { %v703_v24 = vsel %vm422_vm7, %v701_v30, %v702_v61  ;;  %v6657_v35 = vpop.permute.xlu2 %740  ;;  %v721_v26 = vpop.permute.xlu1 %720 }
 0x11f   : > { %v704_v34 = vsel %vm424_vm8, %v700_v0, %v703_v24  ;;  %v719_v58 = vpop.permute.xlu0 %718  ;;  %v773_v59 = vsel %vm756_vm11, %v721_v26, %v6587_v33 }
 0x120   : > { %713 = vst [vmem:[#allocation2 + $0xd7] ss:$8 sm:$0xf] %v704_v34  ;;  %v776_v32 = vmul.f32 %v773_v59, %v6206_v38 }
 0x121   : > { %714 = vst [vmem:[#allocation2 + $0xd7] ss:$8 sm:$0xf0] %v704_v34 }
 0x122   : > { %v811_v0 = vrot.slane %v776_v32, 7 }
 0x124   : > { %1055 = vrot.lane.b32.xlu2 %v6096_v13, %s5993_s10  ;;  %1053 = vrot.lane.b32.xlu1 %v6080_v8, %s5993_s10 }
 0x125   : > { %1051 = vrot.lane.b32.xlu0 %v6082_v9, %s5993_s10 }
 0x126   : > { %v6666_v55 = vpop.permute.xlu2 %746  ;;  %v727_v39 = vpop.permute.xlu1 %726 }
 0x127   : > { %v725_v40 = vpop.permute.xlu0 %724  ;;  %v770_v51 = vsel %vm756_vm11, %v727_v39, %v6596_v29 }
 0x128   : > { %v771_v49 = vsel %vm756_vm11, %v725_v40, %v727_v39  ;;  %v772_v28 = vsel %vm756_vm11, %v6587_v33, %v725_v40  ;;  %v779_v47 = vmul.f32 %v770_v51, %v6221_v45 }
 0x129   : > { %v777_v14 = vmul.f32 %v772_v28, %v6200_v36  ;;  %v778_v48 = vmul.f32 %v771_v49, %v6203_v37  ;;  %v774_v36 = vsel %vm756_vm11, %v719_v58, %v721_v26 }
 0x12a   : > { %v775_v26 = vmul.f32 %v774_v36, %v6239_v52  ;;  %v814_v58 = vrot.slane %v779_v47, 4 }
 0x12b   : > { %v812_v43 = vrot.slane %v777_v14, 6  ;;  %v813_v7 = vrot.slane %v778_v48, 5 }
 0x12c   : > { %1061 = vrot.lane.b32.xlu2 %v6108_v16, %s5993_s10  ;;  %1059 = vrot.lane.b32.xlu1 %v6092_v11, %s5993_s10 }
 0x12d   : > { %1057 = vrot.lane.b32.xlu0 %v6094_v12, %s5993_s10  ;;  %v827_v39 = vsel %vm414_vm2, %v812_v43, %v813_v7 }
 0x12e   : > { %v6691_v33 = vpop.permute.xlu2 %752  ;;  %v733_v37 = vpop.permute.xlu1 %732 }
 0x12f   : > { %v767_v56 = vsel %vm756_vm11, %v733_v37, %v6628_v22  ;;  %v731_v42 = vpop.permute.xlu0 %730 }
 0x130   : > { %v782_v38 = vmul.f32 %v767_v56, %v6235_v50  ;;  %v768_v30 = vsel %vm756_vm11, %v731_v42, %v733_v37  ;;  %v769_v61 = vsel %vm756_vm11, %v6596_v29, %v731_v42  ;;  %v826_v29 = vsel %vm412_vm3, %v775_v26, %v811_v0 }
 0x131   : > { %v780_v24 = vmul.f32 %v769_v61, %v6244_v53  ;;  %v781_v45 = vmul.f32 %v768_v30, %v6247_v54  ;;  %v828_v52 = vsel %vm416_vm4, %v826_v29, %v827_v39 }
 0x132   : > { %v817_v34 = vrot.slane %v782_v38, 1 }
 0x133   : > { %v815_v40 = vrot.slane %v780_v24, 3  ;;  %v816_v50 = vrot.slane %v781_v45, 2 }
 0x134   : > { %1067 = vrot.lane.b32.xlu2 %v6125_v20, %s5993_s10  ;;  %1065 = vrot.lane.b32.xlu1 %v10890_v60, %s5993_s10 }
 0x135   : > { %v829_v53 = vsel %vm418_vm5, %v814_v58, %v815_v40  ;;  %v830_v54 = vsel %vm420_vm6, %v816_v50, %v817_v34  ;;  %1063 = vrot.lane.b32.xlu0 %v6106_v15, %s5993_s10 }
 0x136   : > { %v831_v49 = vsel %vm422_vm7, %v829_v53, %v830_v54  ;;  %v6718_v28 = vpop.permute.xlu2 %865  ;;  %v739_v59 = vpop.permute.xlu1 %738 }
 0x137   : > { %v832_v14 = vsel %vm424_vm8, %v828_v52, %v831_v49  ;;  %v737_v48 = vpop.permute.xlu0 %736  ;;  %v764_v47 = vsel %vm756_vm11, %v739_v59, %v6657_v35 }
 0x138   : > { %845 = vst [vmem:[#allocation2 + $0x124] ss:$8 sm:$0xf] %v832_v14  ;;  %v765_v43 = vsel %vm756_vm11, %v737_v48, %v739_v59  ;;  %v785_v38 = vmul.f32 %v764_v47, %v6302_v62  ;;  %v766_v62 = vsel %vm756_vm11, %v6628_v22, %v737_v48 }
 0x139   : > { %846 = vst [vmem:[#allocation2 + $0x124] ss:$8 sm:$0xf0] %v832_v14  ;;  %v784_v30 = vmul.f32 %v765_v43, %v6305_v63  ;;  %v783_v50 = vmul.f32 %v766_v62, %v6346_v46 }
 0x13a   : > { %v819_v45 = vrot.slane %v785_v38, 6  ;;  %v5721_v38 = vld [vmem:[%s10850_s2 + $0x1] ss:$8 sm:$0xf0] }
 0x13b   : > { %v818_v26 = vrot.slane %v784_v30, 7 }
 0x13c   : > { %1073 = vrot.lane.b32.xlu2 %v6134_v21, %s5993_s10  ;;  %1071 = vrot.lane.b32.xlu1 %v6120_v18, %s5993_s10 }
 0x13d   : > { %1069 = vrot.lane.b32.xlu0 %v6123_v19, %s5993_s10  ;;  %s6009_s10 = smov 76  }
 0x13e   : > { %v6727_v51 = vpop.permute.xlu2 %871  ;;  %v745_v32 = vpop.permute.xlu1 %744 }
 0x13f   : > { %v743_v36 = vpop.permute.xlu0 %742  ;;  %v761_v7 = vsel %vm756_vm11, %v745_v32, %v6666_v55 }
 0x140   : > { %v763_v37 = vsel %vm756_vm11, %v6657_v35, %v743_v36  ;;  %v762_v56 = vsel %vm756_vm11, %v743_v36, %v745_v32  ;;  %v788_v35 = vmul.f32 %v761_v7, %v6316_v25  ;;  %v10891_v36 = vld [vmem:[#allocation11_spill] sm:$0xff] }
 0x141   : > { %v786_v42 = vmul.f32 %v763_v37, %v6299_v17  ;;  %v787_v61 = vmul.f32 %v762_v56, %v6319_v27 }
 0x142   : > { %v822_v27 = vrot.slane %v788_v35, 3 }
 0x143   : > { %v820_v63 = vrot.slane %v786_v42, 5  ;;  %v821_v58 = vrot.slane %v787_v61, 4 }
 0x144   : > { %1176 = vrot.lane.b32.xlu2 %v6057_v2, %s5994_s11  ;;  %1174 = vrot.lane.b32.xlu1 %v6071_v6, %s5994_s11 }
 0x145   : > { %1172 = vrot.lane.b32.xlu0 %v6059_v3, %s5994_s11  ;;  %v834_v22 = vsel %vm414_vm2, %v819_v45, %v820_v63  ;;  %v836_v54 = vsel %vm418_vm5, %v821_v58, %v822_v27 }
 0x146   : > { %v6753_v0 = vpop.permute.xlu2 %877  ;;  %v751_v17 = vpop.permute.xlu1 %750 }
 0x147   : > { %v749_v24 = vpop.permute.xlu0 %748  ;;  %v758_v48 = vsel %vm756_vm11, %v751_v17, %v6691_v33 }
 0x148   : > { %v759_v34 = vsel %vm756_vm11, %v749_v24, %v751_v17  ;;  %v760_v25 = vsel %vm756_vm11, %v6666_v55, %v749_v24  ;;  %v833_v55 = vsel %vm412_vm3, %v783_v50, %v818_v26  ;;  %v791_v47 = vmul.f32 %v758_v48, %v6377_v57  ;;  %v5720_v57 = vld [vmem:[%s10850_s2 + $0x1] ss:$8 sm:$0xf] }
 0x149   : > { %v789_v39 = vmul.f32 %v760_v25, %v6338_v23  ;;  %v790_v40 = vmul.f32 %v759_v34, %v6341_v41  ;;  %v835_v41 = vsel %vm416_vm4, %v833_v55, %v834_v22  ;;  %v856_v30 = vor.u32 %v5721_v38, %v5720_v57 }
 0x14b   : > { %v823_v29 = vrot.slane %v789_v39, 2  ;;  %v824_v53 = vrot.slane %v790_v40, 1  ;;  %v6815_v17 = vperm.slane %v856_v30, 3  ;;  %v6817_v62 = vperm.slane %v856_v30, 1 }
 0x14c   : > { %1182 = vrot.lane.b32.xlu2 %v6067_v4, %s5994_s11  ;;  %1180 = vrot.lane.b32.xlu1 %v6055_v1, %s5994_s11  ;;  %v6819_v63 = vperm.slane %v856_v30, 2  ;;  %v6829_v25 = vperm.slane %v856_v30, 4  ;;  %v6831_v27 = vperm.slane %v856_v30, 5  ;;  %v6850_v55 = vperm.slane %v856_v30, 0 }
 0x14d   : > { %v837_v23 = vsel %vm420_vm6, %v823_v29, %v824_v53  ;;  %1178 = vrot.lane.b32.xlu0 %v6069_v5, %s5994_s11  ;;  %v6841_v29 = vperm.slane %v856_v30, 6 }
 0x14e   : > { %v838_v46 = vsel %vm422_vm7, %v836_v54, %v837_v23  ;;  %v6778_v52 = vpop.permute.xlu2 %883  ;;  %v864_v49 = vpop.permute.xlu1 %863  ;;  %v6856_v23 = vperm.slane %v856_v30, 7 }
 0x14f   : > { %v839_v59 = vsel %vm424_vm8, %v835_v41, %v838_v46  ;;  %v755_v14 = vpop.permute.xlu0 %754  ;;  %v919_v41 = vsel %vm901_vm12, %v864_v49, %v6718_v28  ;;  %v5723_v49 = vld [vmem:[%s10850_s2 + $0x41] ss:$8 sm:$0xf0] }
 0x150   : > { %848 = vst [vmem:[#allocation2 + $0x164] ss:$8 sm:$0xf] %v839_v59  ;;  %v757_v32 = vsel %vm756_vm11, %v6691_v33, %v755_v14  ;;  %vm1934_vm11 = vcmp.lt.s32.totalorder %v6181_v31, 30 }
 0x151   : > { %849 = vst [vmem:[#allocation2 + $0x164] ss:$8 sm:$0xf0] %v839_v59  ;;  %v792_v37 = vmul.f32 %v757_v32, %v10891_v36 }
 0x153   : > { %v825_v43 = vrot.slane %v792_v37, 7 }
 0x154   : > { %1188 = vrot.lane.b32.xlu2 %v6080_v8, %s5994_s11  ;;  %1186 = vrot.lane.b32.xlu1 %v6082_v9, %s5994_s11 }
 0x155   : > { %v840_v7 = vsel %vm412_vm3, %v791_v47, %v825_v43  ;;  %1184 = vrot.lane.b32.xlu0 %v6084_v10, %s5994_s11  ;;  %v959_v43 = vmul.f32 %v6850_v55, %v919_v41 }
 0x156   : > { %851 = vst.msk [vmem:[#allocation2 + $0x1a4] ss:$8 sm:$0x3] %vm6216_vm1, %v840_v7  ;;  %v6798_v33 = vpop.permute.xlu2 %889  ;;  %v870_v56 = vpop.permute.xlu1 %869 }
 0x157   : > { %v868_v42 = vpop.permute.xlu0 %867  ;;  %v916_v45 = vsel %vm901_vm12, %v870_v56, %v6727_v51 }
 0x158   : > { %v917_v26 = vsel %vm901_vm12, %v868_v42, %v870_v56  ;;  %v918_v34 = vsel %vm901_vm12, %v6718_v28, %v868_v42  ;;  %v962_v40 = vmul.f32 %v6815_v17, %v916_v45  ;;  %v5722_v28 = vld [vmem:[%s10850_s2 + $0x41] ss:$8 sm:$0xf] }
 0x159   : > { %v960_v50 = vmul.f32 %v6817_v62, %v918_v34  ;;  %v961_v22 = vmul.f32 %v6819_v63, %v917_v26 }
 0x15a   : > { %v997_v14 = vrot.slane %v962_v40, 5 }
 0x15b   : > { %v995_v48 = vrot.slane %v960_v50, 7  ;;  %v996_v32 = vrot.slane %v961_v22, 6 }
 0x15c   : > { %1194 = vrot.lane.b32.xlu2 %v6092_v11, %s5994_s11  ;;  %1192 = vrot.lane.b32.xlu1 %v6094_v12, %s5994_s11 }
 0x15d   : > { %1190 = vrot.lane.b32.xlu0 %v6096_v13, %s5994_s11  ;;  %v1010_v57 = vsel %vm412_vm3, %v959_v43, %v995_v48  ;;  %v1011_v38 = vsel %vm414_vm2, %v996_v32, %v997_v14 }
 0x15e   : > { %v6812_v35 = vpop.permute.xlu2 %895  ;;  %v876_v61 = vpop.permute.xlu1 %875  ;;  %v1012_v26 = vsel %vm416_vm4, %v1010_v57, %v1011_v38 }
 0x15f   : > { %v874_v24 = vpop.permute.xlu0 %873  ;;  %v913_v53 = vsel %vm901_vm12, %v876_v61, %v6753_v0 }
 0x160   : > { %v914_v58 = vsel %vm901_vm12, %v874_v24, %v876_v61  ;;  %v915_v39 = vsel %vm901_vm12, %v6727_v51, %v874_v24  ;;  %v965_v36 = vmul.f32 %v6841_v29, %v913_v53  ;;  %v860_v24 = vor.u32 %v5723_v49, %v5722_v28 }
 0x161   : > { %v963_v51 = vmul.f32 %v6829_v25, %v915_v39  ;;  %v964_v54 = vmul.f32 %v6831_v27, %v914_v58 }
 0x162   : > { %v1000_v30 = vrot.slane %v965_v36, 2  ;;  %v6890_v50 = vperm.slane %v860_v24, 2  ;;  %v6892_v22 = vperm.slane %v860_v24, 3  ;;  %v6899_v41 = vperm.slane %v860_v24, 1 }
 0x163   : > { %v998_v7 = vrot.slane %v963_v51, 4  ;;  %v999_v56 = vrot.slane %v964_v54, 3  ;;  %v6904_v48 = vperm.slane %v860_v24, 4  ;;  %v6915_v43 = vperm.slane %v860_v24, 7 }
 0x164   : > { %1200 = vrot.lane.b32.xlu2 %v10890_v60, %s5994_s11  ;;  %1198 = vrot.lane.b32.xlu1 %v6106_v15, %s5994_s11 }
 0x165   : > { %1196 = vrot.lane.b32.xlu0 %v6108_v16, %s5994_s11  ;;  %v1013_v61 = vsel %vm418_vm5, %v998_v7, %v999_v56  ;;  %v6920_v7 = vperm.slane %v860_v24, 5  ;;  %v6922_v56 = vperm.slane %v860_v24, 6 }
 0x166   : > { %v6861_v46 = vpop.permute.xlu2 %1037  ;;  %v882_v59 = vpop.permute.xlu1 %881 }
 0x167   : > { %v880_v37 = vpop.permute.xlu0 %879  ;;  %v910_v14 = vsel %vm901_vm12, %v882_v59, %v6778_v52 }
 0x168   : > { %v912_v47 = vsel %vm901_vm12, %v6753_v0, %v880_v37  ;;  %v911_v28 = vsel %vm901_vm12, %v880_v37, %v882_v59 }
 0x169   : > { %v966_v42 = vmul.f32 %v6856_v23, %v912_v47 }
 0x16b   : > { %v1001_v0 = vrot.slane %v966_v42, 1  ;;  %v6924_v42 = vperm.slane %v860_v24, 0 }
 0x16c   : > { %1206 = vrot.lane.b32.xlu2 %v6120_v18, %s5994_s11  ;;  %1204 = vrot.lane.b32.xlu1 %v6123_v19, %s5994_s11 }
 0x16d   : > { %v1014_v45 = vsel %vm420_vm6, %v1000_v30, %v1001_v0  ;;  %1202 = vrot.lane.b32.xlu0 %v6125_v20, %s5994_s11 }
 0x16e   : > { %v1015_v34 = vsel %vm422_vm7, %v1013_v61, %v1014_v45  ;;  %v6887_v58 = vpop.permute.xlu2 %1043  ;;  %v888_v39 = vpop.permute.xlu1 %887 }
 0x16f   : > { %v1016_v40 = vsel %vm424_vm8, %v1012_v26, %v1015_v34  ;;  %v886_v53 = vpop.permute.xlu0 %885  ;;  %v907_v47 = vsel %vm901_vm12, %v888_v39, %v6798_v33 }
 0x170   : > { %1029 = vst [vmem:[#allocation2 + $0x1] ss:$8 sm:$0xf] %v1016_v40  ;;  %v908_v51 = vsel %vm901_vm12, %v886_v53, %v888_v39  ;;  %v909_v54 = vsel %vm901_vm12, %v6778_v52, %v886_v53  ;;  %v968_v52 = vmul.f32 %v6899_v41, %v910_v14  ;;  %v971_v38 = vmul.f32 %v6904_v48, %v907_v47 }
 0x171   : > { %1030 = vst [vmem:[#allocation2 + $0x1] ss:$8 sm:$0xf0] %v1016_v40  ;;  %v969_v32 = vmul.f32 %v6890_v50, %v909_v54  ;;  %v970_v36 = vmul.f32 %v6892_v22, %v908_v51  ;;  %v967_v40 = vmul.f32 %v6924_v42, %v911_v28  ;;  %v5724_v51 = vld [vmem:[%s10850_s2 + $0x81] ss:$8 sm:$0x3] }
 0x172   : > { %v1002_v37 = vrot.slane %v968_v52, 7  ;;  %v1005_v54 = vrot.slane %v971_v38, 4  ;;  %v6956_v28 = vperm.slane %v5724_v51, 1 }
 0x173   : > { %v1003_v30 = vrot.slane %v969_v32, 6  ;;  %v1004_v0 = vrot.slane %v970_v36, 5 }
 0x174   : > { %1309 = vrot.lane.b32.xlu2 %v6057_v2, %s5995_s23  ;;  %1307 = vrot.lane.b32.xlu1 %v6071_v6, %s5995_s23  ;;  %10892 = vst [vmem:[#allocation5_spill] sm:$0xff] %v6956_v28 }
 0x175   : > { %1208 = vrot.lane.b32.xlu0 %v6134_v21, %s5994_s11  ;;  %v1018_v14 = vsel %vm414_vm2, %v1003_v30, %v1004_v0  ;;  %s6010_s11 = smov 28  }
 0x176   : > { %v6928_v49 = vpop.permute.xlu2 %1049  ;;  %v894_v57 = vpop.permute.xlu1 %893 }
 0x177   : > { %v904_v61 = vsel %vm901_vm12, %v894_v57, %v6812_v35  ;;  %v892_v45 = vpop.permute.xlu0 %891 }
 0x178   : > { %v974_v26 = vmul.f32 %v6915_v43, %v904_v61  ;;  %v905_v24 = vsel %vm901_vm12, %v892_v45, %v894_v57  ;;  %v906_v59 = vsel %vm901_vm12, %v6798_v33, %v892_v45  ;;  %v1017_v33 = vsel %vm412_vm3, %v967_v40, %v1002_v37 }
 0x179   : > { %v972_v34 = vmul.f32 %v6920_v7, %v906_v59  ;;  %v973_v39 = vmul.f32 %v6922_v56, %v905_v24  ;;  %v1019_v57 = vsel %vm416_vm4, %v1017_v33, %v1018_v14  ;;  %v6963_v45 = vperm.slane %v5724_v51, 0 }
 0x17a   : > { %v1008_v53 = vrot.slane %v974_v26, 1 }
 0x17b   : > { %v1006_v32 = vrot.slane %v972_v34, 3  ;;  %v1007_v36 = vrot.slane %v973_v39, 2 }
 0x17c   : > { %1315 = vrot.lane.b32.xlu2 %v6067_v4, %s5995_s23  ;;  %1313 = vrot.lane.b32.xlu1 %v6055_v1, %s5995_s23 }
 0x17d   : > { %v1020_v47 = vsel %vm418_vm5, %v1005_v54, %v1006_v32  ;;  %v1021_v52 = vsel %vm420_vm6, %v1007_v36, %v1008_v53  ;;  %1311 = vrot.lane.b32.xlu0 %v6069_v5, %s5995_s23 }
 0x17e   : > { %v1022_v38 = vsel %vm422_vm7, %v1020_v47, %v1021_v52  ;;  %v6960_v30 = vpop.permute.xlu2 %1055  ;;  %v900_v0 = vpop.permute.xlu1 %899 }
 0x17f   : > { %v1023_v61 = vsel %vm424_vm8, %v1019_v57, %v1022_v38  ;;  %v898_v26 = vpop.permute.xlu0 %897 }
 0x180   : > { %1032 = vst [vmem:[#allocation2 + $0x41] ss:$8 sm:$0xf] %v1023_v61  ;;  %v902_v24 = vsel %vm901_vm12, %v898_v26, %v900_v0  ;;  %v903_v59 = vsel %vm901_vm12, %v6812_v35, %v898_v26  ;;  %vm2069_vm12 = vcmp.lt.s32.totalorder %v6181_v31, 110 }
 0x181   : > { %1033 = vst [vmem:[#allocation2 + $0x41] ss:$8 sm:$0xf0] %v1023_v61  ;;  %v976_v37 = vmul.f32 %v6956_v28, %v902_v24  ;;  %v975_v34 = vmul.f32 %v6963_v45, %v903_v59 }
 0x183   : > { %v1009_v39 = vrot.slane %v976_v37, 7 }
 0x184   : > { %1321 = vrot.lane.b32.xlu2 %v6080_v8, %s5995_s23  ;;  %1319 = vrot.lane.b32.xlu1 %v6082_v9, %s5995_s23 }
 0x185   : > { %v1024_v40 = vsel %vm412_vm3, %v975_v34, %v1009_v39  ;;  %1317 = vrot.lane.b32.xlu0 %v6084_v10, %s5995_s23 }
 0x186   : > { %1035 = vst.msk [vmem:[#allocation2 + $0x81] ss:$8 sm:$0x3] %vm6216_vm1, %v1024_v40  ;;  %v6981_v35 = vpop.permute.xlu2 %1061  ;;  %v1042_v53 = vpop.permute.xlu1 %1041 }
 0x187   : > { %v1040_v51 = vpop.permute.xlu0 %1039  ;;  %v1091_v33 = vsel %vm1075_vm13, %v1042_v53, %v6887_v58 }
 0x188   : > { %v1092_v47 = vsel %vm1075_vm13, %v1040_v51, %v1042_v53  ;;  %v1096_v0 = vmul.f32 %v1091_v33, %v6819_v63  ;;  %v1093_v37 = vsel %vm1075_vm13, %v6861_v46, %v1040_v51 }
 0x189   : > { %v1095_v61 = vmul.f32 %v1092_v47, %v6817_v62 }
 0x18a   : > { %v1131_v40 = vrot.slane %v1096_v0, 6 }
 0x18b   : > { %v1130_v53 = vrot.slane %v1095_v61, 7 }
 0x18c   : > { %1327 = vrot.lane.b32.xlu2 %v6092_v11, %s5995_s23  ;;  %1325 = vrot.lane.b32.xlu1 %v6094_v12, %s5995_s23 }
 0x18d   : > { %1323 = vrot.lane.b32.xlu0 %v6096_v13, %s5995_s23 }
 0x18e   : > { %v6990_v54 = vpop.permute.xlu2 %1067  ;;  %v1048_v14 = vpop.permute.xlu1 %1047 }
 0x18f   : > { %v1046_v32 = vpop.permute.xlu0 %1045  ;;  %v1088_v52 = vsel %vm1075_vm13, %v1048_v14, %v6928_v49 }
 0x190   : > { %v1090_v36 = vsel %vm1075_vm13, %v6887_v58, %v1046_v32  ;;  %v1089_v57 = vsel %vm1075_vm13, %v1046_v32, %v1048_v14  ;;  %v1099_v58 = vmul.f32 %v1088_v52, %v6831_v27 }
 0x191   : > { %v1097_v38 = vmul.f32 %v1090_v36, %v6815_v17  ;;  %v1098_v26 = vmul.f32 %v1089_v57, %v6829_v25  ;;  %v1094_v57 = vmul.f32 %v1093_v37, %v6850_v55 }
 0x192   : > { %v1134_v36 = vrot.slane %v1099_v58, 3 }
 0x193   : > { %v1132_v34 = vrot.slane %v1097_v38, 5  ;;  %v1133_v33 = vrot.slane %v1098_v26, 4 }
 0x194   : > { %1333 = vrot.lane.b32.xlu2 %v10890_v60, %s5995_s23  ;;  %1331 = vrot.lane.b32.xlu1 %v6106_v15, %s5995_s23 }
 0x195   : > { %1329 = vrot.lane.b32.xlu0 %v6108_v16, %s5995_s23  ;;  %v1146_v46 = vsel %vm414_vm2, %v1131_v40, %v1132_v34  ;;  %v1148_v0 = vsel %vm418_vm5, %v1133_v33, %v1134_v36 }
 0x196   : > { %v1074_v24 = vpop.permute.xlu2 %1073  ;;  %v1054_v59 = vpop.permute.xlu1 %1053 }
 0x197   : > { %v1052_v39 = vpop.permute.xlu0 %1051 }
 0x198   : > { %v1086_v14 = vsel %vm1075_vm13, %v1052_v39, %v1054_v59  ;;  %v1087_v32 = vsel %vm1075_vm13, %v6928_v49, %v1052_v39  ;;  %v1145_v49 = vsel %vm412_vm3, %v1094_v57, %v1130_v53  ;;  %v10893_v53 = vld [vmem:[#allocation9_spill] sm:$0xff] }
 0x199   : > { %v1100_v47 = vmul.f32 %v1087_v32, %v6841_v29  ;;  %v1101_v52 = vmul.f32 %v1086_v14, %v6856_v23  ;;  %v1147_v58 = vsel %vm416_vm4, %v1145_v49, %v1146_v46 }
 0x19b   : > { %v1135_v51 = vrot.slane %v1100_v47, 2  ;;  %v1136_v38 = vrot.slane %v1101_v52, 1 }
 0x19c   : > { %1339 = vrot.lane.b32.xlu2 %v6120_v18, %s5995_s23  ;;  %1337 = vrot.lane.b32.xlu1 %v6123_v19, %s5995_s23 }
 0x19d   : > { %v1149_v61 = vsel %vm420_vm6, %v1135_v51, %v1136_v38  ;;  %1335 = vrot.lane.b32.xlu0 %v6125_v20, %s5995_s23 }
 0x19e   : > { %v1150_v26 = vsel %vm422_vm7, %v1148_v0, %v1149_v61  ;;  %v7039_v37 = vpop.permute.xlu2 %1176  ;;  %v1060_v34 = vpop.permute.xlu1 %1059 }
 0x19f   : > { %v1151_v39 = vsel %vm424_vm8, %v1147_v58, %v1150_v26  ;;  %v1058_v40 = vpop.permute.xlu0 %1057  ;;  %v1082_v36 = vsel %vm1075_vm13, %v1060_v34, %v6981_v35 }
 0x1a0   : > { %1164 = vst [vmem:[#allocation2 + $0x6] ss:$8 sm:$0xf] %v1151_v39  ;;  %v1083_v47 = vsel %vm1075_vm13, %v1058_v40, %v1060_v34  ;;  %v1084_v52 = vsel %vm1075_vm13, %v6960_v30, %v1058_v40  ;;  %v1105_v57 = vmul.f32 %v1082_v36, %v6892_v22 }
 0x1a1   : > { %1165 = vst [vmem:[#allocation2 + $0x6] ss:$8 sm:$0xf0] %v1151_v39  ;;  %v1103_v38 = vmul.f32 %v1084_v52, %v6899_v41  ;;  %v1104_v49 = vmul.f32 %v1083_v47, %v6890_v50 }
 0x1a2   : > { %v1139_v26 = vrot.slane %v1105_v57, 5 }
 0x1a3   : > { %v1137_v40 = vrot.slane %v1103_v38, 7 }
 0x1a4   : > { %1442 = vrot.lane.b32.xlu2 %v6071_v6, %s5996_s26  ;;  %1343 = vrot.lane.b32.xlu1 %v10893_v53, %s5995_s23 }
 0x1a5   : > { %1341 = vrot.lane.b32.xlu0 %v6134_v21, %s5995_s23 }
 0x1a6   : > { %v7048_v14 = vpop.permute.xlu2 %1182  ;;  %v1066_v32 = vpop.permute.xlu1 %1065 }
 0x1a7   : > { %v1064_v33 = vpop.permute.xlu0 %1063  ;;  %v1079_v0 = vsel %vm1075_vm13, %v1066_v32, %v6990_v54 }
 0x1a8   : > { %v1080_v46 = vsel %vm1075_vm13, %v1064_v33, %v1066_v32  ;;  %v1081_v51 = vsel %vm1075_vm13, %v6981_v35, %v1064_v33  ;;  %v1085_v35 = vsel %vm1075_vm13, %v1054_v59, %v6960_v30  ;;  %v1138_v32 = vrot.slane %v1104_v49, 6 }
 0x1a9   : > { %v1106_v61 = vmul.f32 %v1081_v51, %v6904_v48  ;;  %v1107_v58 = vmul.f32 %v1080_v46, %v6920_v7  ;;  %v1108_v36 = vmul.f32 %v1079_v0, %v6922_v56  ;;  %v1102_v59 = vmul.f32 %v1085_v35, %v6924_v42 }
 0x1ab   : > { %v1140_v57 = vrot.slane %v1106_v61, 4  ;;  %v1141_v51 = vrot.slane %v1107_v58, 3 }
 0x1ac   : > { %1448 = vrot.lane.b32.xlu2 %v6055_v1, %s5996_s26  ;;  %1446 = vrot.lane.b32.xlu1 %v6069_v5, %s5996_s26 }
 0x1ad   : > { %1444 = vrot.lane.b32.xlu0 %v6057_v2, %s5996_s26 }
 0x1ae   : > { %v7080_v34 = vpop.permute.xlu2 %1188  ;;  %v1072_v39 = vpop.permute.xlu1 %1071 }
 0x1af   : > { %v1076_v33 = vsel %vm1075_vm13, %v1072_v39, %v1074_v24  ;;  %v1070_v47 = vpop.permute.xlu0 %1069  ;;  %v1152_v24 = vsel %vm412_vm3, %v1102_v59, %v1137_v40 }
 0x1b0   : > { %v1111_v52 = vmul.f32 %v1076_v33, %v6956_v28  ;;  %v1077_v46 = vsel %vm1075_vm13, %v1070_v47, %v1072_v39  ;;  %v1078_v30 = vsel %vm1075_vm13, %v6990_v54, %v1070_v47  ;;  %v1153_v33 = vsel %vm414_vm2, %v1138_v32, %v1139_v26 }
 0x1b1   : > { %v1109_v38 = vmul.f32 %v1078_v30, %v6915_v43  ;;  %v1110_v0 = vmul.f32 %v1077_v46, %v6963_v45  ;;  %v1142_v28 = vrot.slane %v1108_v36, 2  ;;  %v1155_v54 = vsel %vm418_vm5, %v1140_v57, %v1141_v51 }
 0x1b2   : > { %v1144_v49 = vrot.slane %v1111_v52, 7  ;;  %v1154_v58 = vsel %vm416_vm4, %v1152_v24, %v1153_v33  ;;  %vm2204_vm13 = vcmp.lt.s32.totalorder %v6181_v31, 62 }
 0x1b3   : > { %v1143_v5 = vrot.slane %v1109_v38, 1 }
 0x1b4   : > { %v1159_v39 = vsel %vm412_vm3, %v1110_v0, %v1144_v49  ;;  %1454 = vrot.lane.b32.xlu2 %v6082_v9, %s5996_s26  ;;  %1452 = vrot.lane.b32.xlu1 %v6084_v10, %s5996_s26 }
 0x1b5   : > { %v1156_v61 = vsel %vm420_vm6, %v1142_v28, %v1143_v5  ;;  %1170 = vst.msk [vmem:[#allocation2 + $0x86] ss:$8 sm:$0x3] %vm6216_vm1, %v1159_v39  ;;  %1450 = vrot.lane.b32.xlu0 %v6067_v4, %s5996_s26 }
 0x1b6   : > { %v1157_v35 = vsel %vm422_vm7, %v1155_v54, %v1156_v61  ;;  %v7109_v26 = vpop.permute.xlu2 %1194  ;;  %v1175_v40 = vpop.permute.xlu1 %1174 }
 0x1b7   : > { %v1158_v32 = vsel %vm424_vm8, %v1154_v58, %v1157_v35  ;;  %v1173_v36 = vpop.permute.xlu0 %1172  ;;  %v1227_v30 = vsel %vm1210_vm14, %v1175_v40, %v7039_v37 }
 0x1b8   : > { %1167 = vst [vmem:[#allocation2 + $0x46] ss:$8 sm:$0xf] %v1158_v32  ;;  %v1230_v38 = vmul.f32 %v1227_v30, %v6817_v62 }
 0x1b9   : > { %1168 = vst [vmem:[#allocation2 + $0x46] ss:$8 sm:$0xf0] %v1158_v32 }
 0x1ba   : > { %v1265_v32 = vrot.slane %v1230_v38, 7 }
 0x1bc   : > { %1460 = vrot.lane.b32.xlu2 %v6094_v12, %s5996_s26  ;;  %1458 = vrot.lane.b32.xlu1 %v6096_v13, %s5996_s26 }
 0x1bd   : > { %1456 = vrot.lane.b32.xlu0 %v6080_v8, %s5996_s26 }
 0x1be   : > { %v7118_v5 = vpop.permute.xlu2 %1200  ;;  %v1181_v28 = vpop.permute.xlu1 %1180 }
 0x1bf   : > { %v1179_v47 = vpop.permute.xlu0 %1178  ;;  %v1224_v51 = vsel %vm1210_vm14, %v1181_v28, %v7048_v14 }
 0x1c0   : > { %v1225_v52 = vsel %vm1210_vm14, %v1179_v47, %v1181_v28  ;;  %v1226_v46 = vsel %vm1210_vm14, %v7039_v37, %v1179_v47  ;;  %v1228_v37 = vsel %vm1210_vm14, %v1173_v36, %v1175_v40  ;;  %v1233_v24 = vmul.f32 %v1224_v51, %v6829_v25 }
 0x1c1   : > { %v1231_v59 = vmul.f32 %v1226_v46, %v6819_v63  ;;  %v1232_v57 = vmul.f32 %v1225_v52, %v6815_v17  ;;  %v1229_v47 = vmul.f32 %v1228_v37, %v6850_v55 }
 0x1c2   : > { %v1268_v46 = vrot.slane %v1233_v24, 4 }
 0x1c3   : > { %v1266_v33 = vrot.slane %v1231_v59, 6  ;;  %v1267_v39 = vrot.slane %v1232_v57, 5 }
 0x1c4   : > { %1466 = vrot.lane.b32.xlu2 %v6106_v15, %s5996_s26  ;;  %1464 = vrot.lane.b32.xlu1 %v6108_v16, %s5996_s26 }
 0x1c5   : > { %1462 = vrot.lane.b32.xlu0 %v6092_v11, %s5996_s26  ;;  %v1281_v30 = vsel %vm414_vm2, %v1266_v33, %v1267_v39 }
 0x1c6   : > { %v7143_v49 = vpop.permute.xlu2 %1206  ;;  %v1187_v0 = vpop.permute.xlu1 %1186 }
 0x1c7   : > { %v1221_v54 = vsel %vm1210_vm14, %v1187_v0, %v7080_v34  ;;  %v1185_v61 = vpop.permute.xlu0 %1184 }
 0x1c8   : > { %v1236_v58 = vmul.f32 %v1221_v54, %v6856_v23  ;;  %v1222_v35 = vsel %vm1210_vm14, %v1185_v61, %v1187_v0  ;;  %v1223_v40 = vsel %vm1210_vm14, %v7048_v14, %v1185_v61  ;;  %v1280_v14 = vsel %vm412_vm3, %v1229_v47, %v1265_v32 }
 0x1c9   : > { %v1234_v36 = vmul.f32 %v1223_v40, %v6831_v27  ;;  %v1235_v28 = vmul.f32 %v1222_v35, %v6841_v29  ;;  %v1282_v37 = vsel %vm416_vm4, %v1280_v14, %v1281_v30 }
 0x1ca   : > { %v1271_v52 = vrot.slane %v1236_v58, 1 }
 0x1cb   : > { %v1269_v59 = vrot.slane %v1234_v36, 3  ;;  %v1270_v57 = vrot.slane %v1235_v28, 2 }
 0x1cc   : > { %1472 = vrot.lane.b32.xlu2 %v6123_v19, %s5996_s26  ;;  %1470 = vrot.lane.b32.xlu1 %v6125_v20, %s5996_s26 }
 0x1cd   : > { %v1283_v51 = vsel %vm418_vm5, %v1268_v46, %v1269_v59  ;;  %v1284_v38 = vsel %vm420_vm6, %v1270_v57, %v1271_v52  ;;  %1468 = vrot.lane.b32.xlu0 %v10890_v60, %s5996_s26 }
 0x1ce   : > { %v1285_v0 = vsel %vm422_vm7, %v1283_v51, %v1284_v38  ;;  %v7170_v24 = vpop.permute.xlu2 %1309  ;;  %v1193_v33 = vpop.permute.xlu1 %1192 }
 0x1cf   : > { %v1286_v39 = vsel %vm424_vm8, %v1282_v37, %v1285_v0  ;;  %v1191_v54 = vpop.permute.xlu0 %1190  ;;  %v1218_v32 = vsel %vm1210_vm14, %v1193_v33, %v7109_v26 }
 0x1d0   : > { %1299 = vst [vmem:[#allocation2 + $0x93] ss:$8 sm:$0xf] %v1286_v39  ;;  %v1219_v36 = vsel %vm1210_vm14, %v1191_v54, %v1193_v33  ;;  %v1239_v46 = vmul.f32 %v1218_v32, %v6890_v50  ;;  %v1220_v51 = vsel %vm1210_vm14, %v7080_v34, %v1191_v54 }
 0x1d1   : > { %1300 = vst [vmem:[#allocation2 + $0x93] ss:$8 sm:$0xf0] %v1286_v39  ;;  %v1238_v30 = vmul.f32 %v1219_v36, %v6899_v41 }
 0x1d2   : > { %v1273_v0 = vrot.slane %v1239_v46, 6 }
 0x1d3   : > { %v1272_v33 = vrot.slane %v1238_v30, 7  ;;  %v10894_v30 = vld [vmem:[#allocation4_spill] sm:$0xff] }
 0x1d4   : > { %1478 = vrot.lane.b32.xlu2 %v10893_v53, %s5996_s26  ;;  %1476 = vrot.lane.b32.xlu1 %v6134_v21, %s5996_s26 }
 0x1d5   : > { %1474 = vrot.lane.b32.xlu0 %v6120_v18, %s5996_s26  ;;  %s10036_s26 = scalar_lea.vmem %s10852_s4, %s5929_s24 }
 0x1d6   : > { %v7179_v61 = vpop.permute.xlu2 %1315  ;;  %v1199_v58 = vpop.permute.xlu1 %1198 }
 0x1d7   : > { %v1197_v35 = vpop.permute.xlu0 %1196  ;;  %v1215_v28 = vsel %vm1210_vm14, %v1199_v58, %v7118_v5 }
 0x1d8   : > { %v1217_v40 = vsel %vm1210_vm14, %v7109_v26, %v1197_v35  ;;  %v1216_v47 = vsel %vm1210_vm14, %v1197_v35, %v1199_v58  ;;  %v1242_v26 = vmul.f32 %v1215_v28, %v6920_v7  ;;  %v1237_v28 = vmul.f32 %v1220_v51, %v6924_v42 }
 0x1d9   : > { %v1240_v52 = vmul.f32 %v1217_v40, %v6892_v22  ;;  %v1241_v59 = vmul.f32 %v1216_v47, %v6904_v48 }
 0x1da   : > { %v1276_v35 = vrot.slane %v1242_v26, 3 }
 0x1db   : > { %v1274_v38 = vrot.slane %v1240_v52, 5  ;;  %v1275_v40 = vrot.slane %v1241_v59, 4 }
 0x1dc   : > { %1591 = vrot.lane.b32.xlu2 %v6057_v2, %s5997_s27  ;;  %1589 = vrot.lane.b32.xlu1 %v6071_v6, %s5997_s27 }
 0x1dd   : > { %1587 = vrot.lane.b32.xlu0 %v6059_v3, %s5997_s27  ;;  %v1288_v34 = vsel %vm414_vm2, %v1273_v0, %v1274_v38  ;;  %v1290_v52 = vsel %vm418_vm5, %v1275_v40, %v1276_v35 }
 0x1de   : > { %v7205_v57 = vpop.permute.xlu2 %1321  ;;  %v1205_v14 = vpop.permute.xlu1 %1204 }
 0x1df   : > { %v1203_v37 = vpop.permute.xlu0 %1202 }
 0x1e0   : > { %v1213_v39 = vsel %vm1210_vm14, %v1203_v37, %v1205_v14  ;;  %v1214_v58 = vsel %vm1210_vm14, %v7118_v5, %v1203_v37  ;;  %v1287_v5 = vsel %vm412_vm3, %v1237_v28, %v1272_v33  ;;  %v1212_v33 = vsel %vm1210_vm14, %v1205_v14, %v7143_v49 }
 0x1e1   : > { %v1243_v32 = vmul.f32 %v1214_v58, %v6922_v56  ;;  %v1244_v36 = vmul.f32 %v1213_v39, %v6915_v43  ;;  %v1289_v26 = vsel %vm416_vm4, %v1287_v5, %v1288_v34  ;;  %v10895_v58 = vld [vmem:[#allocation5_spill] sm:$0xff]  ;;  %v1245_v40 = vmul.f32 %v1212_v33, %v6963_v45 }
 0x1e3   : > { %v1277_v54 = vrot.slane %v1243_v32, 2  ;;  %v1278_v47 = vrot.slane %v1244_v36, 1 }
 0x1e4   : > { %1597 = vrot.lane.b32.xlu2 %v6067_v4, %s5997_s27  ;;  %1595 = vrot.lane.b32.xlu1 %v6055_v1, %s5997_s27 }
 0x1e5   : > { %v1291_v46 = vsel %vm420_vm6, %v1277_v54, %v1278_v47  ;;  %1593 = vrot.lane.b32.xlu0 %v10894_v30, %s5997_s27 }
 0x1e6   : > { %v1292_v59 = vsel %vm422_vm7, %v1290_v52, %v1291_v46  ;;  %v7230_v51 = vpop.permute.xlu2 %1327  ;;  %v1308_v38 = vpop.permute.xlu1 %1307 }
 0x1e7   : > { %v1293_v37 = vsel %vm424_vm8, %v1289_v26, %v1292_v59  ;;  %v1209_v0 = vpop.permute.xlu0 %1208 }
 0x1e8   : > { %1302 = vst [vmem:[#allocation2 + $0xd3] ss:$8 sm:$0xf] %v1293_v37  ;;  %v1211_v39 = vsel %vm1210_vm14, %v7143_v49, %v1209_v0  ;;  %vm2349_vm14 = vcmp.lt.s32.totalorder %v6181_v31, 125 }
 0x1e9   : > { %1303 = vst [vmem:[#allocation2 + $0xd3] ss:$8 sm:$0xf0] %v1293_v37  ;;  %v1246_v35 = vmul.f32 %v1211_v39, %v10895_v58 }
 0x1eb   : > { %v1279_v32 = vrot.slane %v1246_v35, 7 }
 0x1ec   : > { %1603 = vrot.lane.b32.xlu2 %v6080_v8, %s5997_s27  ;;  %1601 = vrot.lane.b32.xlu1 %v6082_v9, %s5997_s27 }
 0x1ed   : > { %v1294_v36 = vsel %vm412_vm3, %v1245_v40, %v1279_v32  ;;  %1599 = vrot.lane.b32.xlu0 %v6084_v10, %s5997_s27  ;;  %v1363_v40 = vsel %vm1345_vm15, %v1308_v38, %v7170_v24 }
 0x1ee   : > { %1305 = vst.msk [vmem:[#allocation2 + $0x113] ss:$8 sm:$0x3] %vm6216_vm1, %v1294_v36  ;;  %v7250_v49 = vpop.permute.xlu2 %1333  ;;  %v1314_v14 = vpop.permute.xlu1 %1313 }
 0x1ef   : > { %v1312_v28 = vpop.permute.xlu0 %1311  ;;  %v1360_v5 = vsel %vm1345_vm15, %v1314_v14, %v7179_v61 }
 0x1f0   : > { %v1361_v52 = vsel %vm1345_vm15, %v1312_v28, %v1314_v14  ;;  %v1362_v46 = vsel %vm1345_vm15, %v7170_v24, %v1312_v28  ;;  %v1367_v37 = vmul.f32 %v1360_v5, %v6815_v17 }
 0x1f1   : > { %v1365_v0 = vmul.f32 %v1362_v46, %v6817_v62  ;;  %v1366_v33 = vmul.f32 %v1361_v52, %v6819_v63  ;;  %v1364_v46 = vmul.f32 %v1363_v40, %v6850_v55 }
 0x1f2   : > { %v1402_v14 = vrot.slane %v1367_v37, 5 }
 0x1f3   : > { %v1400_v28 = vrot.slane %v1365_v0, 7 }
 0x1f4   : > { %1609 = vrot.lane.b32.xlu2 %v6092_v11, %s5997_s27  ;;  %1607 = vrot.lane.b32.xlu1 %v6094_v12, %s5997_s27 }
 0x1f5   : > { %1605 = vrot.lane.b32.xlu0 %v6096_v13, %s5997_s27  ;;  %v1415_v24 = vsel %vm412_vm3, %v1364_v46, %v1400_v28 }
 0x1f6   : > { %v7258_v34 = vpop.permute.xlu2 %1339  ;;  %v1320_v54 = vpop.permute.xlu1 %1319 }
 0x1f7   : > { %v1318_v47 = vpop.permute.xlu0 %1317  ;;  %v1357_v39 = vsel %vm1345_vm15, %v1320_v54, %v7205_v57 }
 0x1f8   : > { %v1358_v26 = vsel %vm1345_vm15, %v1318_v47, %v1320_v54  ;;  %v1359_v59 = vsel %vm1345_vm15, %v7179_v61, %v1318_v47  ;;  %v1401_v54 = vrot.slane %v1366_v33, 6  ;;  %v1370_v47 = vmul.f32 %v1357_v39, %v6841_v29 }
 0x1f9   : > { %v1368_v35 = vmul.f32 %v1359_v59, %v6829_v25  ;;  %v1369_v61 = vmul.f32 %v1358_v26, %v6831_v27 }
 0x1fa   : > { %v1416_v38 = vsel %vm414_vm2, %v1401_v54, %v1402_v14  ;;  %v1405_v37 = vrot.slane %v1370_v47, 2 }
 0x1fb   : > { %v1403_v26 = vrot.slane %v1368_v35, 4  ;;  %v1404_v59 = vrot.slane %v1369_v61, 3  ;;  %v1417_v39 = vsel %vm416_vm4, %v1415_v24, %v1416_v38 }
 0x1fc   : > { %1615 = vrot.lane.b32.xlu2 %v10890_v60, %s5997_s27  ;;  %1613 = vrot.lane.b32.xlu1 %v6106_v15, %s5997_s27 }
 0x1fd   : > { %1611 = vrot.lane.b32.xlu0 %v6108_v16, %s5997_s27 }
 0x1fe   : > { %v7291_v32 = vpop.permute.xlu2 %1442  ;;  %v1326_v36 = vpop.permute.xlu1 %1325 }
 0x1ff   : > { %v1324_v5 = vpop.permute.xlu0 %1323  ;;  %v1354_v47 = vsel %vm1345_vm15, %v1326_v36, %v7230_v51 }
 0x200   : > { %v1356_v52 = vsel %vm1345_vm15, %v7205_v57, %v1324_v5  ;;  %v1418_v57 = vsel %vm418_vm5, %v1403_v26, %v1404_v59  ;;  %v1373_v59 = vmul.f32 %v1354_v47, %v6899_v41 }
 0x201   : > { %v1371_v53 = vmul.f32 %v1356_v52, %v6856_v23 }
 0x203   : > { %v1406_v0 = vrot.slane %v1371_v53, 1 }
 0x204   : > { %1621 = vrot.lane.b32.xlu2 %v6120_v18, %s5997_s27  ;;  %1619 = vrot.lane.b32.xlu1 %v6123_v19, %s5997_s27 }
 0x205   : > { %v1419_v33 = vsel %vm420_vm6, %v1405_v37, %v1406_v0  ;;  %1617 = vrot.lane.b32.xlu0 %v6125_v20, %s5997_s27 }
 0x206   : > { %v1420_v35 = vsel %vm422_vm7, %v1418_v57, %v1419_v33  ;;  %v7311_v61 = vpop.permute.xlu2 %1448  ;;  %v1332_v53 = vpop.permute.xlu1 %1331 }
 0x207   : > { %v1421_v40 = vsel %vm424_vm8, %v1417_v39, %v1420_v35  ;;  %v1330_v14 = vpop.permute.xlu0 %1329  ;;  %v1351_v26 = vsel %vm1345_vm15, %v1332_v53, %v7250_v49 }
 0x208   : > { %1434 = vst [vmem:[#allocation2 + $0x120] ss:$8 sm:$0xf] %v1421_v40  ;;  %v1352_v28 = vsel %vm1345_vm15, %v1330_v14, %v1332_v53  ;;  %v1353_v54 = vsel %vm1345_vm15, %v7230_v51, %v1330_v14  ;;  %v1355_v51 = vsel %vm1345_vm15, %v1324_v5, %v1326_v36  ;;  %v1376_v37 = vmul.f32 %v1351_v26, %v6904_v48 }
 0x209   : > { %1435 = vst [vmem:[#allocation2 + $0x120] ss:$8 sm:$0xf0] %v1421_v40  ;;  %v1374_v52 = vmul.f32 %v1353_v54, %v6890_v50  ;;  %v1375_v46 = vmul.f32 %v1352_v28, %v6892_v22  ;;  %v1407_v5 = vrot.slane %v1373_v59, 7  ;;  %v1372_v28 = vmul.f32 %v1355_v51, %v6924_v42 }
 0x20a   : > { %v1410_v47 = vrot.slane %v1376_v37, 4 }
 0x20b   : > { %v1408_v0 = vrot.slane %v1374_v52, 6  ;;  %v1409_v57 = vrot.slane %v1375_v46, 5 }
 0x20c   : > { %1763 = vrot.lane.b32.xlu2 %v6071_v6, %s5998_s28  ;;  %1761 = vrot.lane.b32.xlu1 %v6059_v3, %s5998_s28 }
 0x20d   : > { %1623 = vrot.lane.b32.xlu0 %v6134_v21, %s5997_s27  ;;  %v1423_v52 = vsel %vm414_vm2, %v1408_v0, %v1409_v57 }
 0x20e   : > { %v7336_v24 = vpop.permute.xlu2 %1454  ;;  %v1338_v38 = vpop.permute.xlu1 %1337 }
 0x20f   : > { %v1348_v33 = vsel %vm1345_vm15, %v1338_v38, %v7258_v34  ;;  %v1336_v39 = vpop.permute.xlu0 %1335 }
 0x210   : > { %v1379_v35 = vmul.f32 %v1348_v33, %v6915_v43  ;;  %v1349_v53 = vsel %vm1345_vm15, %v1336_v39, %v1338_v38  ;;  %v1350_v36 = vsel %vm1345_vm15, %v7250_v49, %v1336_v39  ;;  %v1422_v49 = vsel %vm412_vm3, %v1372_v28, %v1407_v5 }
 0x211   : > { %v1377_v40 = vmul.f32 %v1350_v36, %v6920_v7  ;;  %v1378_v14 = vmul.f32 %v1349_v53, %v6922_v56  ;;  %v1424_v51 = vsel %vm416_vm4, %v1422_v49, %v1423_v52 }
 0x212   : > { %v1413_v54 = vrot.slane %v1379_v35, 1 }
 0x213   : > { %v1411_v46 = vrot.slane %v1377_v40, 3  ;;  %v1412_v26 = vrot.slane %v1378_v14, 2 }
 0x214   : > { %1769 = vrot.lane.b32.xlu2 %v6055_v1, %s5998_s28  ;;  %1767 = vrot.lane.b32.xlu1 %v10894_v30, %s5998_s28 }
 0x215   : > { %v1425_v59 = vsel %vm418_vm5, %v1410_v47, %v1411_v46  ;;  %v1426_v38 = vsel %vm420_vm6, %v1412_v26, %v1413_v54  ;;  %1765 = vrot.lane.b32.xlu0 %v6057_v2, %s5998_s28 }
 0x216   : > { %v1427_v37 = vsel %vm422_vm7, %v1425_v59, %v1426_v38  ;;  %v7363_v0 = vpop.permute.xlu2 %1460  ;;  %v1344_v57 = vpop.permute.xlu1 %1343 }
 0x217   : > { %v1428_v33 = vsel %vm424_vm8, %v1424_v51, %v1427_v37  ;;  %v1342_v39 = vpop.permute.xlu0 %1341 }
 0x218   : > { %1437 = vst [vmem:[#allocation2 + $0x160] ss:$8 sm:$0xf] %v1428_v33  ;;  %v1346_v35 = vsel %vm1345_vm15, %v1342_v39, %v1344_v57  ;;  %v1347_v53 = vsel %vm1345_vm15, %v7258_v34, %v1342_v39  ;;  %vm2523_vm15 = vcmp.lt.s32.totalorder %v6181_v31, 77 }
 0x219   : > { %1438 = vst [vmem:[#allocation2 + $0x160] ss:$8 sm:$0xf0] %v1428_v33  ;;  %v1381_v36 = vmul.f32 %v1346_v35, %v10895_v58  ;;  %v1380_v5 = vmul.f32 %v1347_v53, %v6963_v45 }
 0x21b   : > { %v1414_v40 = vrot.slane %v1381_v36, 7 }
 0x21c   : > { %1775 = vrot.lane.b32.xlu2 %v6082_v9, %s5998_s28  ;;  %1773 = vrot.lane.b32.xlu1 %v6084_v10, %s5998_s28 }
 0x21d   : > { %v1429_v14 = vsel %vm412_vm3, %v1380_v5, %v1414_v40  ;;  %1771 = vrot.lane.b32.xlu0 %v6067_v4, %s5998_s28 }
 0x21e   : > { %1440 = vst.msk [vmem:[#allocation2 + $0x1a0] ss:$8 sm:$0x3] %vm6216_vm1, %v1429_v14  ;;  %v7382_v34 = vpop.permute.xlu2 %1466  ;;  %v1447_v28 = vpop.permute.xlu1 %1446 }
 0x21f   : > { %v1445_v54 = vpop.permute.xlu0 %1444  ;;  %v1496_v49 = vsel %vm1480_vm0, %v1447_v28, %v7311_v61 }
 0x220   : > { %v1497_v59 = vsel %vm1480_vm0, %v1445_v54, %v1447_v28  ;;  %v1501_v57 = vmul.f32 %v1496_v49, %v6819_v63 }
 0x221   : > { %v1500_v33 = vmul.f32 %v1497_v59, %v6817_v62 }
 0x222   : > { %v1536_v36 = vrot.slane %v1501_v57, 6 }
 0x223   : > { %v1535_v5 = vrot.slane %v1500_v33, 7 }
 0x224   : > { %1781 = vrot.lane.b32.xlu2 %v6094_v12, %s5998_s28  ;;  %1779 = vrot.lane.b32.xlu1 %v6096_v13, %s5998_s28 }
 0x225   : > { %1777 = vrot.lane.b32.xlu0 %v6080_v8, %s5998_s28 }
 0x226   : > { %v7391_v47 = vpop.permute.xlu2 %1472  ;;  %v1453_v52 = vpop.permute.xlu1 %1452 }
 0x227   : > { %v1451_v46 = vpop.permute.xlu0 %1450  ;;  %v1493_v38 = vsel %vm1480_vm0, %v1453_v52, %v7336_v24 }
 0x228   : > { %v1495_v26 = vsel %vm1480_vm0, %v7311_v61, %v1451_v46  ;;  %v1494_v51 = vsel %vm1480_vm0, %v1451_v46, %v1453_v52  ;;  %v1504_v61 = vmul.f32 %v1493_v38, %v6831_v27 }
 0x229   : > { %v1502_v37 = vmul.f32 %v1495_v26, %v6815_v17  ;;  %v1503_v39 = vmul.f32 %v1494_v51, %v6829_v25  ;;  %v1498_v17 = vsel %vm1480_vm0, %v7291_v32, %v1445_v54 }
 0x22a   : > { %v1539_v27 = vrot.slane %v1504_v61, 3  ;;  %v1499_v46 = vmul.f32 %v1498_v17, %v6850_v55 }
 0x22b   : > { %v1537_v62 = vrot.slane %v1502_v37, 5  ;;  %v1538_v14 = vrot.slane %v1503_v39, 4 }
 0x22c   : > { %1787 = vrot.lane.b32.xlu2 %v6106_v15, %s5998_s28  ;;  %1785 = vrot.lane.b32.xlu1 %v6108_v16, %s5998_s28 }
 0x22d   : > { %1783 = vrot.lane.b32.xlu0 %v6092_v11, %s5998_s28  ;;  %v1551_v32 = vsel %vm414_vm2, %v1536_v36, %v1537_v62  ;;  %v1553_v49 = vsel %vm418_vm5, %v1538_v14, %v1539_v27 }
 0x22e   : > { %v1479_v35 = vpop.permute.xlu2 %1478  ;;  %v1459_v53 = vpop.permute.xlu1 %1458 }
 0x22f   : > { %v1457_v63 = vpop.permute.xlu0 %1456 }
 0x230   : > { %v1491_v40 = vsel %vm1480_vm0, %v1457_v63, %v1459_v53  ;;  %v1492_v25 = vsel %vm1480_vm0, %v7336_v24, %v1457_v63  ;;  %v1550_v24 = vsel %vm412_vm3, %v1499_v46, %v1535_v5 }
 0x231   : > { %v1505_v28 = vmul.f32 %v1492_v25, %v6841_v29  ;;  %v1506_v52 = vmul.f32 %v1491_v40, %v6856_v23  ;;  %v1552_v55 = vsel %vm416_vm4, %v1550_v24, %v1551_v32 }
 0x233   : > { %v1540_v54 = vrot.slane %v1505_v28, 2  ;;  %v1541_v26 = vrot.slane %v1506_v52, 1 }
 0x234   : > { %1793 = vrot.lane.b32.xlu2 %v6123_v19, %s5998_s28  ;;  %1791 = vrot.lane.b32.xlu1 %v6125_v20, %s5998_s28 }
 0x235   : > { %v1554_v29 = vsel %vm420_vm6, %v1540_v54, %v1541_v26  ;;  %1789 = vrot.lane.b32.xlu0 %v10890_v60, %s5998_s28 }
 0x236   : > { %v1555_v23 = vsel %vm422_vm7, %v1553_v49, %v1554_v29  ;;  %v7440_v59 = vpop.permute.xlu2 %1591  ;;  %v1465_v38 = vpop.permute.xlu1 %1464 }
 0x237   : > { %v1556_v51 = vsel %vm424_vm8, %v1552_v55, %v1555_v23  ;;  %v1463_v37 = vpop.permute.xlu0 %1462  ;;  %v1487_v61 = vsel %vm1480_vm0, %v1465_v38, %v7382_v34 }
 0x238   : > { %1569 = vst [vmem:[#allocation2 + $0x125] ss:$8 sm:$0xf] %v1556_v51  ;;  %v1488_v17 = vsel %vm1480_vm0, %v1463_v37, %v1465_v38  ;;  %v1489_v62 = vsel %vm1480_vm0, %v7363_v0, %v1463_v37  ;;  %v1510_v63 = vmul.f32 %v1487_v61, %v6892_v22 }
 0x239   : > { %1570 = vst [vmem:[#allocation2 + $0x125] ss:$8 sm:$0xf0] %v1556_v51  ;;  %v1508_v40 = vmul.f32 %v1489_v62, %v6899_v41  ;;  %v1509_v25 = vmul.f32 %v1488_v17, %v6890_v50  ;;  %v1490_v50 = vsel %vm1480_vm0, %v1459_v53, %v7363_v0  ;;  %v5725_v17 = vld [vmem:[%s10850_s2 + $0x2] ss:$8 sm:$0xf] }
 0x23a   : > { %v1544_v41 = vrot.slane %v1510_v63, 5  ;;  %v1507_v53 = vmul.f32 %v1490_v50, %v6924_v42  ;;  %v5726_v62 = vld [vmem:[%s10850_s2 + $0x2] ss:$8 sm:$0xf0] }
 0x23b   : > { %v1542_v52 = vrot.slane %v1508_v40, 7  ;;  %v1543_v46 = vrot.slane %v1509_v25, 6  ;;  %v1580_v63 = vor.u32 %v5726_v62, %v5725_v17 }
 0x23c   : > { %1896 = vrot.lane.b32.xlu2 %v6059_v3, %s5999_s29  ;;  %1797 = vrot.lane.b32.xlu1 %v6134_v21, %s5998_s28 }
 0x23d   : > { %1795 = vrot.lane.b32.xlu0 %v6120_v18, %s5998_s28  ;;  %v7528_v40 = vperm.slane %v1580_v63, 2  ;;  %v7530_v25 = vperm.slane %v1580_v63, 3  ;;  %v7537_v50 = vperm.slane %v1580_v63, 1 }
 0x23e   : > { %v7449_v57 = vpop.permute.xlu2 %1597  ;;  %v1471_v33 = vpop.permute.xlu1 %1470 }
 0x23f   : > { %v1469_v39 = vpop.permute.xlu0 %1468  ;;  %v1484_v27 = vsel %vm1480_vm0, %v1471_v33, %v7391_v47 }
 0x240   : > { %v1485_v36 = vsel %vm1480_vm0, %v1469_v39, %v1471_v33  ;;  %v1486_v5 = vsel %vm1480_vm0, %v7382_v34, %v1469_v39  ;;  %v1513_v32 = vmul.f32 %v1484_v27, %v6922_v56 }
 0x241   : > { %v1511_v22 = vmul.f32 %v1486_v5, %v6904_v48  ;;  %v1512_v14 = vmul.f32 %v1485_v36, %v6920_v7 }
 0x242   : > { %v1547_v23 = vrot.slane %v1513_v32, 2 }
 0x243   : > { %v1545_v24 = vrot.slane %v1511_v22, 4  ;;  %v1546_v49 = vrot.slane %v1512_v14, 3 }
 0x244   : > { %1902 = vrot.lane.b32.xlu2 %v10894_v30, %s5999_s29  ;;  %1900 = vrot.lane.b32.xlu1 %v6057_v2, %s5999_s29 }
 0x245   : > { %1898 = vrot.lane.b32.xlu0 %v6071_v6, %s5999_s29  ;;  %v1560_v42 = vsel %vm418_vm5, %v1545_v24, %v1546_v49 }
 0x246   : > { %v7481_v34 = vpop.permute.xlu2 %1603  ;;  %v1477_v28 = vpop.permute.xlu1 %1476 }
 0x247   : > { %v1481_v48 = vsel %vm1480_vm0, %v1477_v28, %v1479_v35  ;;  %v1475_v54 = vpop.permute.xlu0 %1474  ;;  %v1557_v35 = vsel %vm412_vm3, %v1507_v53, %v1542_v52 }
 0x248   : > { %v1516_v7 = vmul.f32 %v1481_v48, %v10895_v58  ;;  %v1482_v26 = vsel %vm1480_vm0, %v1475_v54, %v1477_v28  ;;  %v1483_v0 = vsel %vm1480_vm0, %v7391_v47, %v1475_v54  ;;  %v1558_v58 = vsel %vm414_vm2, %v1543_v46, %v1544_v41 }
 0x249   : > { %v1514_v29 = vmul.f32 %v1483_v0, %v6915_v43  ;;  %v1515_v55 = vmul.f32 %v1482_v26, %v6963_v45  ;;  %v1559_v45 = vsel %vm416_vm4, %v1557_v35, %v1558_v58  ;;  %v7542_v28 = vperm.slane %v1580_v63, 4 }
 0x24a   : > { %v1549_v56 = vrot.slane %v1516_v7, 7  ;;  %v7553_v48 = vperm.slane %v1580_v63, 7  ;;  %v7558_v54 = vperm.slane %v1580_v63, 5  ;;  %v7560_v7 = vperm.slane %v1580_v63, 6 }
 0x24b   : > { %v1548_v38 = vrot.slane %v1514_v29, 1  ;;  %v7562_v26 = vperm.slane %v1580_v63, 0  ;;  %vm2658_vm0 = vcmp.lt.s32.totalorder %v6181_v31, 29 }
 0x24c   : > { %v1564_v51 = vsel %vm412_vm3, %v1515_v55, %v1549_v56  ;;  %1908 = vrot.lane.b32.xlu2 %v6084_v10, %s5999_s29  ;;  %1906 = vrot.lane.b32.xlu1 %v6067_v4, %s5999_s29 }
 0x24d   : > { %v1561_v43 = vsel %vm420_vm6, %v1547_v23, %v1548_v38  ;;  %1575 = vst.msk [vmem:[#allocation2 + $0x1a5] ss:$8 sm:$0x3] %vm6216_vm1, %v1564_v51  ;;  %1904 = vrot.lane.b32.xlu0 %v6055_v1, %s5999_s29 }
 0x24e   : > { %v1562_v47 = vsel %vm422_vm7, %v1560_v42, %v1561_v43  ;;  %v7510_v37 = vpop.permute.xlu2 %1609  ;;  %v1590_v33 = vpop.permute.xlu1 %1589 }
 0x24f   : > { %v1563_v61 = vsel %vm424_vm8, %v1559_v45, %v1562_v47  ;;  %v1588_v39 = vpop.permute.xlu0 %1587  ;;  %v1642_v41 = vsel %vm1625_vm9, %v1590_v33, %v7440_v59 }
 0x250   : > { %1572 = vst [vmem:[#allocation2 + $0x165] ss:$8 sm:$0xf] %v1563_v61  ;;  %v1643_v0 = vsel %vm1625_vm9, %v1588_v39, %v1590_v33 }
 0x251   : > { %1573 = vst [vmem:[#allocation2 + $0x165] ss:$8 sm:$0xf0] %v1563_v61  ;;  %v1683_v45 = vmul.f32 %v7562_v26, %v1643_v0 }
 0x254   : > { %1914 = vrot.lane.b32.xlu2 %v6096_v13, %s5999_s29  ;;  %1912 = vrot.lane.b32.xlu1 %v6080_v8, %s5999_s29 }
 0x255   : > { %1910 = vrot.lane.b32.xlu0 %v6082_v9, %s5999_s29 }
 0x256   : > { %v7525_v36 = vpop.permute.xlu2 %1615  ;;  %v1596_v5 = vpop.permute.xlu1 %1595 }
 0x257   : > { %v1594_v27 = vpop.permute.xlu0 %1593  ;;  %v1639_v32 = vsel %vm1625_vm9, %v1596_v5, %v7449_v57 }
 0x258   : > { %v1640_v22 = vsel %vm1625_vm9, %v1594_v27, %v1596_v5  ;;  %v1641_v14 = vsel %vm1625_vm9, %v7440_v59, %v1594_v27  ;;  %v1684_v59 = vmul.f32 %v7537_v50, %v1642_v41  ;;  %v1687_v49 = vmul.f32 %v7542_v28, %v1639_v32  ;;  %v5728_v32 = vld [vmem:[%s10850_s2 + $0x42] ss:$8 sm:$0xf0] }
 0x259   : > { %v1685_v52 = vmul.f32 %v7528_v40, %v1641_v14  ;;  %v1686_v46 = vmul.f32 %v7530_v25, %v1640_v22 }
 0x25a   : > { %v1719_v51 = vrot.slane %v1684_v59, 7  ;;  %v1722_v33 = vrot.slane %v1687_v49, 4 }
 0x25b   : > { %v1720_v29 = vrot.slane %v1685_v52, 6  ;;  %v1721_v56 = vrot.slane %v1686_v46, 5  ;;  %v5727_v46 = vld [vmem:[%s10850_s2 + $0x42] ss:$8 sm:$0xf] }
 0x25c   : > { %1920 = vrot.lane.b32.xlu2 %v6108_v16, %s5999_s29  ;;  %1918 = vrot.lane.b32.xlu1 %v6092_v11, %s5999_s29  ;;  %v1584_v59 = vor.u32 %v5728_v32, %v5727_v46 }
 0x25d   : > { %1916 = vrot.lane.b32.xlu0 %v6094_v12, %s5999_s29  ;;  %v1735_v61 = vsel %vm414_vm2, %v1720_v29, %v1721_v56 }
 0x25e   : > { %v7566_v53 = vpop.permute.xlu2 %1621  ;;  %v1602_v24 = vpop.permute.xlu1 %1601  ;;  %v7610_v49 = vperm.slane %v1584_v59, 3  ;;  %v7612_v56 = vperm.slane %v1584_v59, 2 }
 0x25f   : > { %v1636_v55 = vsel %vm1625_vm9, %v1602_v24, %v7481_v34  ;;  %v1600_v35 = vpop.permute.xlu0 %1599 }
 0x260   : > { %v1690_v58 = vmul.f32 %v7553_v48, %v1636_v55  ;;  %v1637_v23 = vsel %vm1625_vm9, %v1600_v35, %v1602_v24  ;;  %v1638_v38 = vsel %vm1625_vm9, %v7449_v57, %v1600_v35  ;;  %v1734_v57 = vsel %vm412_vm3, %v1683_v45, %v1719_v51 }
 0x261   : > { %v1688_v42 = vmul.f32 %v7558_v54, %v1638_v38  ;;  %v1689_v43 = vmul.f32 %v7560_v7, %v1637_v23  ;;  %v1736_v5 = vsel %vm416_vm4, %v1734_v57, %v1735_v61  ;;  %v7614_v55 = vperm.slane %v1584_v59, 1 }
 0x262   : > { %v1725_v47 = vrot.slane %v1690_v58, 1  ;;  %v7624_v38 = vperm.slane %v1584_v59, 5  ;;  %v7626_v51 = vperm.slane %v1584_v59, 4 }
 0x263   : > { %v1723_v39 = vrot.slane %v1688_v42, 3  ;;  %v1724_v17 = vrot.slane %v1689_v43, 2 }
 0x264   : > { %1926 = vrot.lane.b32.xlu2 %v6125_v20, %s5999_s29  ;;  %1924 = vrot.lane.b32.xlu1 %v10890_v60, %s5999_s29 }
 0x265   : > { %v1737_v62 = vsel %vm418_vm5, %v1722_v33, %v1723_v39  ;;  %v1738_v63 = vsel %vm420_vm6, %v1724_v17, %v1725_v47  ;;  %1922 = vrot.lane.b32.xlu0 %v6106_v15, %s5999_s29  ;;  %v7644_v39 = vperm.slane %v1584_v59, 6  ;;  %v7646_v17 = vperm.slane %v1584_v59, 7 }
 0x266   : > { %v1739_v27 = vsel %vm422_vm7, %v1737_v62, %v1738_v63  ;;  %v7593_v22 = vpop.permute.xlu2 %1763  ;;  %v1608_v14 = vpop.permute.xlu1 %1607  ;;  %v7650_v63 = vperm.slane %v1584_v59, 0 }
 0x267   : > { %v1740_v41 = vsel %vm424_vm8, %v1736_v5, %v1739_v27  ;;  %v1606_v52 = vpop.permute.xlu0 %1605  ;;  %v1633_v58 = vsel %vm1625_vm9, %v1608_v14, %v7510_v37 }
 0x268   : > { %1753 = vst [vmem:[#allocation2 + $0x2] ss:$8 sm:$0xf] %v1740_v41  ;;  %v1634_v23 = vsel %vm1625_vm9, %v1606_v52, %v1608_v14  ;;  %v1693_v47 = vmul.f32 %v7612_v56, %v1633_v58  ;;  %v1635_v5 = vsel %vm1625_vm9, %v7481_v34, %v1606_v52 }
 0x269   : > { %1754 = vst [vmem:[#allocation2 + $0x2] ss:$8 sm:$0xf0] %v1740_v41 }
 0x26a   : > { %v1727_v41 = vrot.slane %v1693_v47, 6 }
 0x26c   : > { %1932 = vrot.lane.b32.xlu2 %v6134_v21, %s5999_s29  ;;  %1930 = vrot.lane.b32.xlu1 %v6120_v18, %s5999_s29 }
 0x26d   : > { %1928 = vrot.lane.b32.xlu0 %v6123_v19, %s5999_s29 }
 0x26e   : > { %v7608_v0 = vpop.permute.xlu2 %1769  ;;  %v1614_v24 = vpop.permute.xlu1 %1613 }
 0x26f   : > { %v1612_v29 = vpop.permute.xlu0 %1611  ;;  %v1630_v42 = vsel %vm1625_vm9, %v1614_v24, %v7525_v36 }
 0x270   : > { %v1632_v35 = vsel %vm1625_vm9, %v7510_v37, %v1612_v29  ;;  %v1631_v43 = vsel %vm1625_vm9, %v1612_v29, %v1614_v24  ;;  %v1692_v37 = vmul.f32 %v7614_v55, %v1634_v23  ;;  %v1696_v33 = vmul.f32 %v7624_v38, %v1630_v42 }
 0x271   : > { %v1694_v45 = vmul.f32 %v7610_v49, %v1632_v35  ;;  %v1695_v61 = vmul.f32 %v7626_v51, %v1631_v43  ;;  %v1691_v23 = vmul.f32 %v7650_v63, %v1635_v5  ;;  %v5729_v43 = vld [vmem:[%s10850_s2 + $0x82] ss:$8 sm:$0x3] }
 0x272   : > { %v1726_v46 = vrot.slane %v1692_v37, 7  ;;  %v1730_v29 = vrot.slane %v1696_v33, 3  ;;  %v7676_v37 = vperm.slane %v5729_v43, 1 }
 0x273   : > { %v1728_v27 = vrot.slane %v1694_v45, 5  ;;  %v1729_v35 = vrot.slane %v1695_v61, 4 }
 0x274   : > { %2035 = vrot.lane.b32.xlu2 %v10894_v30, %s6000_s12  ;;  %2033 = vrot.lane.b32.xlu1 %v6057_v2, %s6000_s12 }
 0x275   : > { %2031 = vrot.lane.b32.xlu0 %v6071_v6, %s6000_s12  ;;  %v1742_v34 = vsel %vm414_vm2, %v1727_v41, %v1728_v27  ;;  %v1744_v45 = vsel %vm418_vm5, %v1729_v35, %v1730_v29 }
 0x276   : > { %v7648_v57 = vpop.permute.xlu2 %1775  ;;  %v1620_v62 = vpop.permute.xlu1 %1619 }
 0x277   : > { %v1618_v14 = vpop.permute.xlu0 %1617 }
 0x278   : > { %v1628_v32 = vsel %vm1625_vm9, %v1618_v14, %v1620_v62  ;;  %v1629_v24 = vsel %vm1625_vm9, %v7525_v36, %v1618_v14  ;;  %v1741_v36 = vsel %vm412_vm3, %v1691_v23, %v1726_v46  ;;  %v7682_v14 = vperm.slane %v5729_v43, 0 }
 0x279   : > { %v1697_v59 = vmul.f32 %v7644_v39, %v1629_v24  ;;  %v1698_v58 = vmul.f32 %v7646_v17, %v1628_v32  ;;  %v1743_v33 = vsel %vm416_vm4, %v1741_v36, %v1742_v34  ;;  %v1627_v32 = vsel %vm1625_vm9, %v1620_v62, %v7566_v53 }
 0x27a   : > { %v1699_v35 = vmul.f32 %v7682_v14, %v1627_v32 }
 0x27b   : > { %v1731_v52 = vrot.slane %v1697_v59, 2  ;;  %v1732_v42 = vrot.slane %v1698_v58, 1 }
 0x27c   : > { %2041 = vrot.lane.b32.xlu2 %v6084_v10, %s6000_s12  ;;  %2039 = vrot.lane.b32.xlu1 %v6067_v4, %s6000_s12 }
 0x27d   : > { %v1745_v47 = vsel %vm420_vm6, %v1731_v52, %v1732_v42  ;;  %2037 = vrot.lane.b32.xlu0 %v6055_v1, %s6000_s12 }
 0x27e   : > { %v1746_v61 = vsel %vm422_vm7, %v1744_v45, %v1745_v47  ;;  %v7680_v5 = vpop.permute.xlu2 %1781  ;;  %v1762_v27 = vpop.permute.xlu1 %1761 }
 0x27f   : > { %v1747_v41 = vsel %vm424_vm8, %v1743_v33, %v1746_v61  ;;  %v1624_v46 = vpop.permute.xlu0 %1623 }
 0x280   : > { %1756 = vst [vmem:[#allocation2 + $0x42] ss:$8 sm:$0xf] %v1747_v41  ;;  %v1626_v24 = vsel %vm1625_vm9, %v7566_v53, %v1624_v46  ;;  %vm2793_vm9 = vcmp.lt.s32.totalorder %v6181_v31, 109 }
 0x281   : > { %1757 = vst [vmem:[#allocation2 + $0x42] ss:$8 sm:$0xf0] %v1747_v41  ;;  %v1700_v29 = vmul.f32 %v7676_v37, %v1626_v24 }
 0x283   : > { %v1733_v59 = vrot.slane %v1700_v29, 7  ;;  %v1817_v29 = vsel %vm1799_vm10, %v1762_v27, %v7593_v22 }
 0x284   : > { %2047 = vrot.lane.b32.xlu2 %v6096_v13, %s6000_s12  ;;  %2045 = vrot.lane.b32.xlu1 %v6080_v8, %s6000_s12 }
 0x285   : > { %v1748_v58 = vsel %vm412_vm3, %v1699_v35, %v1733_v59  ;;  %2043 = vrot.lane.b32.xlu0 %v6082_v9, %s6000_s12 }
 0x286   : > { %1759 = vst.msk [vmem:[#allocation2 + $0x82] ss:$8 sm:$0x3] %vm6216_vm1, %v1748_v58  ;;  %v7702_v53 = vpop.permute.xlu2 %1787  ;;  %v1768_v62 = vpop.permute.xlu1 %1767 }
 0x287   : > { %v1766_v23 = vpop.permute.xlu0 %1765  ;;  %v1814_v43 = vsel %vm1799_vm10, %v1768_v62, %v7608_v0 }
 0x288   : > { %v1815_v36 = vsel %vm1799_vm10, %v1766_v23, %v1768_v62  ;;  %v1816_v45 = vsel %vm1799_vm10, %v7593_v22, %v1766_v23  ;;  %v1821_v61 = vmul.f32 %v1814_v43, %v7530_v25 }
 0x289   : > { %v1819_v41 = vmul.f32 %v1816_v45, %v7537_v50  ;;  %v1820_v46 = vmul.f32 %v1815_v36, %v7528_v40  ;;  %v1818_v36 = vmul.f32 %v1817_v29, %v7562_v26 }
 0x28a   : > { %v1856_v58 = vrot.slane %v1821_v61, 5 }
 0x28b   : > { %v1854_v62 = vrot.slane %v1819_v41, 7  ;;  %v1855_v23 = vrot.slane %v1820_v46, 6 }
 0x28c   : > { %2053 = vrot.lane.b32.xlu2 %v6108_v16, %s6000_s12  ;;  %2051 = vrot.lane.b32.xlu1 %v6092_v11, %s6000_s12 }
 0x28d   : > { %2049 = vrot.lane.b32.xlu0 %v6094_v12, %s6000_s12  ;;  %v1869_v22 = vsel %vm412_vm3, %v1818_v36, %v1854_v62  ;;  %v1870_v27 = vsel %vm414_vm2, %v1855_v23, %v1856_v58 }
 0x28e   : > { %v7710_v34 = vpop.permute.xlu2 %1793  ;;  %v1774_v52 = vpop.permute.xlu1 %1773 }
 0x28f   : > { %v1772_v42 = vpop.permute.xlu0 %1771  ;;  %v1811_v32 = vsel %vm1799_vm10, %v1774_v52, %v7648_v57 }
 0x290   : > { %v1812_v47 = vsel %vm1799_vm10, %v1772_v42, %v1774_v52  ;;  %v1813_v33 = vsel %vm1799_vm10, %v7608_v0, %v1772_v42  ;;  %v1824_v52 = vmul.f32 %v1811_v32, %v7560_v7  ;;  %v1871_v32 = vsel %vm416_vm4, %v1869_v22, %v1870_v27  ;;  %v10896_v22 = vld [vmem:[#allocation9_spill] sm:$0xff] }
 0x291   : > { %v1822_v24 = vmul.f32 %v1813_v33, %v7542_v28  ;;  %v1823_v0 = vmul.f32 %v1812_v47, %v7558_v54 }
 0x292   : > { %v1859_v61 = vrot.slane %v1824_v52, 2 }
 0x293   : > { %v1857_v45 = vrot.slane %v1822_v24, 4  ;;  %v1858_v47 = vrot.slane %v1823_v0, 3 }
 0x294   : > { %2059 = vrot.lane.b32.xlu2 %v6125_v20, %s6000_s12  ;;  %2057 = vrot.lane.b32.xlu1 %v10890_v60, %s6000_s12 }
 0x295   : > { %2055 = vrot.lane.b32.xlu0 %v6106_v15, %s6000_s12 }
 0x296   : > { %v7743_v35 = vpop.permute.xlu2 %1896  ;;  %v1780_v59 = vpop.permute.xlu1 %1779 }
 0x297   : > { %v1778_v42 = vpop.permute.xlu0 %1777 }
 0x298   : > { %v1810_v43 = vsel %vm1799_vm10, %v7648_v57, %v1778_v42  ;;  %v1872_v57 = vsel %vm418_vm5, %v1857_v45, %v1858_v47 }
 0x299   : > { %v1825_v33 = vmul.f32 %v1810_v43, %v7553_v48  ;;  %v1808_v43 = vsel %vm1799_vm10, %v1780_v59, %v7680_v5 }
 0x29b   : > { %v1860_v41 = vrot.slane %v1825_v33, 1  ;;  %v1827_v33 = vmul.f32 %v1808_v43, %v7614_v55 }
 0x29c   : > { %2065 = vrot.lane.b32.xlu2 %v6134_v21, %s6000_s12  ;;  %2063 = vrot.lane.b32.xlu1 %v6120_v18, %s6000_s12 }
 0x29d   : > { %v1873_v46 = vsel %vm420_vm6, %v1859_v61, %v1860_v41  ;;  %2061 = vrot.lane.b32.xlu0 %v6123_v19, %s6000_s12 }
 0x29e   : > { %v1874_v24 = vsel %vm422_vm7, %v1872_v57, %v1873_v46  ;;  %v7763_v0 = vpop.permute.xlu2 %1902  ;;  %v1786_v29 = vpop.permute.xlu1 %1785 }
 0x29f   : > { %v1875_v58 = vsel %vm424_vm8, %v1871_v32, %v1874_v24  ;;  %v1784_v62 = vpop.permute.xlu0 %1783  ;;  %v1805_v47 = vsel %vm1799_vm10, %v1786_v29, %v7702_v53 }
 0x2a0   : > { %1888 = vst [vmem:[#allocation2 + $0x7] ss:$8 sm:$0xf] %v1875_v58  ;;  %v1806_v23 = vsel %vm1799_vm10, %v1784_v62, %v1786_v29  ;;  %v1807_v52 = vsel %vm1799_vm10, %v7680_v5, %v1784_v62  ;;  %v1809_v5 = vsel %vm1799_vm10, %v1778_v42, %v1780_v59  ;;  %v1830_v41 = vmul.f32 %v1805_v47, %v7626_v51 }
 0x2a1   : > { %1889 = vst [vmem:[#allocation2 + $0x7] ss:$8 sm:$0xf0] %v1875_v58  ;;  %v1828_v36 = vmul.f32 %v1807_v52, %v7612_v56  ;;  %v1829_v45 = vmul.f32 %v1806_v23, %v7610_v49  ;;  %v1861_v42 = vrot.slane %v1827_v33, 7  ;;  %v1826_v52 = vmul.f32 %v1809_v5, %v7650_v63 }
 0x2a3   : > { %v1862_v57 = vrot.slane %v1828_v36, 6  ;;  %v1863_v46 = vrot.slane %v1829_v45, 5  ;;  %v1864_v36 = vrot.slane %v1830_v41, 4 }
 0x2a4   : > { %2168 = vrot.lane.b32.xlu2 %v6057_v2, %s6001_s17  ;;  %2166 = vrot.lane.b32.xlu1 %v6071_v6, %s6001_s17 }
 0x2a5   : > { %2067 = vrot.lane.b32.xlu0 %v10896_v22, %s6000_s12  ;;  %v1877_v45 = vsel %vm414_vm2, %v1862_v57, %v1863_v46  ;;  %s6011_s12 = smov 124  }
 0x2a6   : > { %v7788_v27 = vpop.permute.xlu2 %1908  ;;  %v1792_v61 = vpop.permute.xlu1 %1791 }
 0x2a7   : > { %v1802_v32 = vsel %vm1799_vm10, %v1792_v61, %v7710_v34  ;;  %v1790_v24 = vpop.permute.xlu0 %1789 }
 0x2a8   : > { %v1833_v29 = vmul.f32 %v1802_v32, %v7646_v17  ;;  %v1803_v58 = vsel %vm1799_vm10, %v1790_v24, %v1792_v61  ;;  %v1804_v59 = vsel %vm1799_vm10, %v7702_v53, %v1790_v24  ;;  %v1876_v53 = vsel %vm412_vm3, %v1826_v52, %v1861_v42 }
 0x2a9   : > { %v1831_v62 = vmul.f32 %v1804_v59, %v7624_v38  ;;  %v1832_v23 = vmul.f32 %v1803_v58, %v7644_v39  ;;  %v1878_v5 = vsel %vm416_vm4, %v1876_v53, %v1877_v45 }
 0x2aa   : > { %v1867_v43 = vrot.slane %v1833_v29, 1 }
 0x2ab   : > { %v1865_v47 = vrot.slane %v1831_v62, 3  ;;  %v1866_v32 = vrot.slane %v1832_v23, 2 }
 0x2ac   : > { %2174 = vrot.lane.b32.xlu2 %v6067_v4, %s6001_s17  ;;  %2172 = vrot.lane.b32.xlu1 %v6055_v1, %s6001_s17 }
 0x2ad   : > { %v1879_v33 = vsel %vm418_vm5, %v1864_v36, %v1865_v47  ;;  %v1880_v61 = vsel %vm420_vm6, %v1866_v32, %v1867_v43  ;;  %2170 = vrot.lane.b32.xlu0 %v10894_v30, %s6001_s17 }
 0x2ae   : > { %v1881_v41 = vsel %vm422_vm7, %v1879_v33, %v1880_v61  ;;  %v7815_v57 = vpop.permute.xlu2 %1914  ;;  %v1798_v46 = vpop.permute.xlu1 %1797 }
 0x2af   : > { %v1882_v24 = vsel %vm424_vm8, %v1878_v5, %v1881_v41  ;;  %v1796_v29 = vpop.permute.xlu0 %1795 }
 0x2b0   : > { %1891 = vst [vmem:[#allocation2 + $0x47] ss:$8 sm:$0xf] %v1882_v24  ;;  %v1800_v58 = vsel %vm1799_vm10, %v1796_v29, %v1798_v46  ;;  %v1801_v59 = vsel %vm1799_vm10, %v7710_v34, %v1796_v29  ;;  %vm2928_vm10 = vcmp.lt.s32.totalorder %v6181_v31, 61 }
 0x2b1   : > { %1892 = vst [vmem:[#allocation2 + $0x47] ss:$8 sm:$0xf0] %v1882_v24  ;;  %v1835_v42 = vmul.f32 %v1800_v58, %v7676_v37  ;;  %v1834_v62 = vmul.f32 %v1801_v59, %v7682_v14 }
 0x2b3   : > { %v1868_v23 = vrot.slane %v1835_v42, 7 }
 0x2b4   : > { %2180 = vrot.lane.b32.xlu2 %v6080_v8, %s6001_s17  ;;  %2178 = vrot.lane.b32.xlu1 %v6082_v9, %s6001_s17 }
 0x2b5   : > { %v1883_v52 = vsel %vm412_vm3, %v1834_v62, %v1868_v23  ;;  %2176 = vrot.lane.b32.xlu0 %v6084_v10, %s6001_s17 }
 0x2b6   : > { %1894 = vst.msk [vmem:[#allocation2 + $0x87] ss:$8 sm:$0x3] %vm6216_vm1, %v1883_v52  ;;  %v7834_v34 = vpop.permute.xlu2 %1920  ;;  %v1901_v43 = vpop.permute.xlu1 %1900 }
 0x2b7   : > { %v1899_v36 = vpop.permute.xlu0 %1898  ;;  %v1950_v33 = vsel %vm1934_vm11, %v1901_v43, %v7763_v0 }
 0x2b8   : > { %v1951_v61 = vsel %vm1934_vm11, %v1899_v36, %v1901_v43  ;;  %v1955_v24 = vmul.f32 %v1950_v33, %v7528_v40  ;;  %v1952_v62 = vsel %vm1934_vm11, %v7743_v35, %v1899_v36 }
 0x2b9   : > { %v1954_v29 = vmul.f32 %v1951_v61, %v7537_v50 }
 0x2ba   : > { %v1990_v43 = vrot.slane %v1955_v24, 6 }
 0x2bc   : > { %2186 = vrot.lane.b32.xlu2 %v6092_v11, %s6001_s17  ;;  %2184 = vrot.lane.b32.xlu1 %v6094_v12, %s6001_s17 }
 0x2bd   : > { %2182 = vrot.lane.b32.xlu0 %v6096_v13, %s6001_s17 }
 0x2be   : > { %v7843_v45 = vpop.permute.xlu2 %1926  ;;  %v1907_v47 = vpop.permute.xlu1 %1906 }
 0x2bf   : > { %v1905_v32 = vpop.permute.xlu0 %1904  ;;  %v1947_v5 = vsel %vm1934_vm11, %v1907_v47, %v7788_v27 }
 0x2c0   : > { %v1949_v53 = vsel %vm1934_vm11, %v7763_v0, %v1905_v32  ;;  %v1948_v41 = vsel %vm1934_vm11, %v1905_v32, %v1907_v47  ;;  %v1958_v0 = vmul.f32 %v1947_v5, %v7558_v54  ;;  %v1989_v47 = vrot.slane %v1954_v29, 7 }
 0x2c1   : > { %v1956_v46 = vmul.f32 %v1949_v53, %v7530_v25  ;;  %v1957_v58 = vmul.f32 %v1948_v41, %v7542_v28 }
 0x2c2   : > { %v1993_v33 = vrot.slane %v1958_v0, 3 }
 0x2c3   : > { %v1991_v23 = vrot.slane %v1956_v46, 5  ;;  %v1992_v61 = vrot.slane %v1957_v58, 4 }
 0x2c4   : > { %2192 = vrot.lane.b32.xlu2 %v10890_v60, %s6001_s17  ;;  %2190 = vrot.lane.b32.xlu1 %v6106_v15, %s6001_s17  ;;  %v1953_v15 = vmul.f32 %v1952_v62, %v7562_v26 }
 0x2c5   : > { %2188 = vrot.lane.b32.xlu0 %v6108_v16, %s6001_s17  ;;  %v2005_v35 = vsel %vm414_vm2, %v1990_v43, %v1991_v23  ;;  %v2007_v24 = vsel %vm418_vm5, %v1992_v61, %v1993_v33 }
 0x2c6   : > { %v1933_v59 = vpop.permute.xlu2 %1932  ;;  %v1913_v42 = vpop.permute.xlu1 %1912 }
 0x2c7   : > { %v1911_v52 = vpop.permute.xlu0 %1910 }
 0x2c8   : > { %v1945_v32 = vsel %vm1934_vm11, %v1911_v52, %v1913_v42  ;;  %v1946_v53 = vsel %vm1934_vm11, %v7788_v27, %v1911_v52  ;;  %v2004_v27 = vsel %vm412_vm3, %v1953_v15, %v1989_v47 }
 0x2c9   : > { %v1959_v5 = vmul.f32 %v1946_v53, %v7560_v7  ;;  %v1960_v41 = vmul.f32 %v1945_v32, %v7553_v48  ;;  %v2006_v0 = vsel %vm416_vm4, %v2004_v27, %v2005_v35 }
 0x2cb   : > { %v1994_v36 = vrot.slane %v1959_v5, 2  ;;  %v1995_v46 = vrot.slane %v1960_v41, 1 }
 0x2cc   : > { %2198 = vrot.lane.b32.xlu2 %v6120_v18, %s6001_s17  ;;  %2196 = vrot.lane.b32.xlu1 %v6123_v19, %s6001_s17 }
 0x2cd   : > { %v2008_v29 = vsel %vm420_vm6, %v1994_v36, %v1995_v46  ;;  %2194 = vrot.lane.b32.xlu0 %v6125_v20, %s6001_s17 }
 0x2ce   : > { %v2009_v58 = vsel %vm422_vm7, %v2007_v24, %v2008_v29  ;;  %v7892_v62 = vpop.permute.xlu2 %2035  ;;  %v1919_v23 = vpop.permute.xlu1 %1918 }
 0x2cf   : > { %v2010_v52 = vsel %vm424_vm8, %v2006_v0, %v2009_v58  ;;  %v1917_v43 = vpop.permute.xlu0 %1916  ;;  %v1941_v32 = vsel %vm1934_vm11, %v1919_v23, %v7834_v34 }
 0x2d0   : > { %2023 = vst [vmem:[#allocation2 + $0x94] ss:$8 sm:$0xf] %v2010_v52  ;;  %v1942_v33 = vsel %vm1934_vm11, %v1917_v43, %v1919_v23  ;;  %v1943_v61 = vsel %vm1934_vm11, %v7815_v57, %v1917_v43  ;;  %v1964_v5 = vmul.f32 %v1941_v32, %v7610_v49 }
 0x2d1   : > { %2024 = vst [vmem:[#allocation2 + $0x94] ss:$8 sm:$0xf0] %v2010_v52  ;;  %v1962_v36 = vmul.f32 %v1943_v61, %v7614_v55  ;;  %v1963_v46 = vmul.f32 %v1942_v33, %v7612_v56 }
 0x2d2   : > { %v1998_v0 = vrot.slane %v1964_v5, 5 }
 0x2d3   : > { %v1996_v52 = vrot.slane %v1962_v36, 7  ;;  %v1997_v43 = vrot.slane %v1963_v46, 6 }
 0x2d4   : > { %2311 = vrot.lane.b32.xlu2 %v6059_v3, %s6002_s18  ;;  %2202 = vrot.lane.b32.xlu1 %v10896_v22, %s6001_s17 }
 0x2d5   : > { %2200 = vrot.lane.b32.xlu0 %v6134_v21, %s6001_s17 }
 0x2d6   : > { %v7901_v15 = vpop.permute.xlu2 %2041  ;;  %v1925_v47 = vpop.permute.xlu1 %1924 }
 0x2d7   : > { %v1923_v53 = vpop.permute.xlu0 %1922  ;;  %v1938_v27 = vsel %vm1934_vm11, %v1925_v47, %v7843_v45 }
 0x2d8   : > { %v1939_v41 = vsel %vm1934_vm11, %v1923_v53, %v1925_v47  ;;  %v1940_v35 = vsel %vm1934_vm11, %v7834_v34, %v1923_v53  ;;  %v1944_v34 = vsel %vm1934_vm11, %v1913_v42, %v7815_v57  ;;  %v1967_v47 = vmul.f32 %v1938_v27, %v7644_v39 }
 0x2d9   : > { %v1965_v24 = vmul.f32 %v1940_v35, %v7626_v51  ;;  %v1966_v29 = vmul.f32 %v1939_v41, %v7624_v38  ;;  %v1961_v42 = vmul.f32 %v1944_v34, %v7650_v63  ;;  %v2012_v27 = vsel %vm414_vm2, %v1997_v43, %v1998_v0 }
 0x2db   : > { %v1999_v5 = vrot.slane %v1965_v24, 4  ;;  %v2000_v41 = vrot.slane %v1966_v29, 3 }
 0x2dc   : > { %2317 = vrot.lane.b32.xlu2 %v10894_v30, %s6002_s18  ;;  %2315 = vrot.lane.b32.xlu1 %v6057_v2, %s6002_s18 }
 0x2dd   : > { %2313 = vrot.lane.b32.xlu0 %v6071_v6, %s6002_s18 }
 0x2de   : > { %v7933_v58 = vpop.permute.xlu2 %2047  ;;  %v1931_v23 = vpop.permute.xlu1 %1930 }
 0x2df   : > { %v1935_v32 = vsel %vm1934_vm11, %v1931_v23, %v1933_v59  ;;  %v1929_v53 = vpop.permute.xlu0 %1928  ;;  %v2011_v59 = vsel %vm412_vm3, %v1961_v42, %v1996_v52 }
 0x2e0   : > { %v1970_v33 = vmul.f32 %v1935_v32, %v7676_v37  ;;  %v1936_v61 = vsel %vm1934_vm11, %v1929_v53, %v1931_v23  ;;  %v1937_v57 = vsel %vm1934_vm11, %v7843_v45, %v1929_v53  ;;  %v2001_v32 = vrot.slane %v1967_v47, 2 }
 0x2e1   : > { %v1968_v35 = vmul.f32 %v1937_v57, %v7646_v17  ;;  %v1969_v46 = vmul.f32 %v1936_v61, %v7682_v14  ;;  %v2014_v45 = vsel %vm418_vm5, %v1999_v5, %v2000_v41  ;;  %v2013_v29 = vsel %vm416_vm4, %v2011_v59, %v2012_v27 }
 0x2e2   : > { %v2003_v36 = vrot.slane %v1970_v33, 7  ;;  %vm3652_vm11 = vcmp.lt.s32.totalorder %v6181_v31, 60 }
 0x2e3   : > { %v2002_v22 = vrot.slane %v1968_v35, 1 }
 0x2e4   : > { %v2018_v23 = vsel %vm412_vm3, %v1969_v46, %v2003_v36  ;;  %2323 = vrot.lane.b32.xlu2 %v6084_v10, %s6002_s18  ;;  %2321 = vrot.lane.b32.xlu1 %v6067_v4, %s6002_s18 }
 0x2e5   : > { %v2015_v24 = vsel %vm420_vm6, %v2001_v32, %v2002_v22  ;;  %2029 = vst.msk [vmem:[#allocation2 + $0x114] ss:$8 sm:$0x3] %vm6216_vm1, %v2018_v23  ;;  %2319 = vrot.lane.b32.xlu0 %v6055_v1, %s6002_s18 }
 0x2e6   : > { %v2016_v34 = vsel %vm422_vm7, %v2014_v45, %v2015_v24  ;;  %v7962_v0 = vpop.permute.xlu2 %2053  ;;  %v2034_v52 = vpop.permute.xlu1 %2033 }
 0x2e7   : > { %v2017_v43 = vsel %vm424_vm8, %v2013_v29, %v2016_v34  ;;  %v2032_v47 = vpop.permute.xlu0 %2031  ;;  %v2086_v42 = vsel %vm2069_vm12, %v2034_v52, %v7892_v62 }
 0x2e8   : > { %2026 = vst [vmem:[#allocation2 + $0xd4] ss:$8 sm:$0xf] %v2017_v43  ;;  %v2089_v36 = vmul.f32 %v2086_v42, %v7537_v50 }
 0x2e9   : > { %2027 = vst [vmem:[#allocation2 + $0xd4] ss:$8 sm:$0xf0] %v2017_v43 }
 0x2ea   : > { %v2124_v43 = vrot.slane %v2089_v36, 7 }
 0x2ec   : > { %2329 = vrot.lane.b32.xlu2 %v6096_v13, %s6002_s18  ;;  %2327 = vrot.lane.b32.xlu1 %v6080_v8, %s6002_s18 }
 0x2ed   : > { %2325 = vrot.lane.b32.xlu0 %v6082_v9, %s6002_s18 }
 0x2ee   : > { %v7971_v22 = vpop.permute.xlu2 %2059  ;;  %v2040_v53 = vpop.permute.xlu1 %2039 }
 0x2ef   : > { %v2038_v33 = vpop.permute.xlu0 %2037  ;;  %v2083_v35 = vsel %vm2069_vm12, %v2040_v53, %v7901_v15 }
 0x2f0   : > { %v2084_v61 = vsel %vm2069_vm12, %v2038_v33, %v2040_v53  ;;  %v2085_v57 = vsel %vm2069_vm12, %v7892_v62, %v2038_v33  ;;  %v2087_v62 = vsel %vm2069_vm12, %v2032_v47, %v2034_v52  ;;  %v2092_v27 = vmul.f32 %v2083_v35, %v7542_v28 }
 0x2f1   : > { %v2090_v5 = vmul.f32 %v2085_v57, %v7528_v40  ;;  %v2091_v41 = vmul.f32 %v2084_v61, %v7530_v25  ;;  %v2088_v33 = vmul.f32 %v2087_v62, %v7562_v26  ;;  %v10897_v62 = vld [vmem:[#allocation6_spill] sm:$0xff] }
 0x2f2   : > { %v2127_v57 = vrot.slane %v2092_v27, 4 }
 0x2f3   : > { %v2125_v32 = vrot.slane %v2090_v5, 6  ;;  %v2126_v23 = vrot.slane %v2091_v41, 5 }
 0x2f4   : > { %2335 = vrot.lane.b32.xlu2 %v6108_v16, %s6002_s18  ;;  %2333 = vrot.lane.b32.xlu1 %v6092_v11, %s6002_s18 }
 0x2f5   : > { %2331 = vrot.lane.b32.xlu0 %v6094_v12, %s6002_s18  ;;  %v2140_v42 = vsel %vm414_vm2, %v2125_v32, %v2126_v23 }
 0x2f6   : > { %v7996_v46 = vpop.permute.xlu2 %2065  ;;  %v2046_v59 = vpop.permute.xlu1 %2045 }
 0x2f7   : > { %v2080_v45 = vsel %vm2069_vm12, %v2046_v59, %v7933_v58  ;;  %v2044_v24 = vpop.permute.xlu0 %2043 }
 0x2f8   : > { %v2095_v29 = vmul.f32 %v2080_v45, %v7553_v48  ;;  %v2081_v34 = vsel %vm2069_vm12, %v2044_v24, %v2046_v59  ;;  %v2082_v52 = vsel %vm2069_vm12, %v7901_v15, %v2044_v24  ;;  %v2139_v15 = vsel %vm412_vm3, %v2088_v33, %v2124_v43 }
 0x2f9   : > { %v2093_v47 = vmul.f32 %v2082_v52, %v7558_v54  ;;  %v2094_v53 = vmul.f32 %v2081_v34, %v7560_v7  ;;  %v2141_v59 = vsel %vm416_vm4, %v2139_v15, %v2140_v42 }
 0x2fa   : > { %v2130_v61 = vrot.slane %v2095_v29, 1 }
 0x2fb   : > { %v2128_v5 = vrot.slane %v2093_v47, 3  ;;  %v2129_v41 = vrot.slane %v2094_v53, 2 }
 0x2fc   : > { %2341 = vrot.lane.b32.xlu2 %v6125_v20, %s6002_s18  ;;  %2339 = vrot.lane.b32.xlu1 %v10890_v60, %s6002_s18 }
 0x2fd   : > { %v2142_v35 = vsel %vm418_vm5, %v2127_v57, %v2128_v5  ;;  %v2143_v36 = vsel %vm420_vm6, %v2129_v41, %v2130_v61  ;;  %2337 = vrot.lane.b32.xlu0 %v10897_v62, %s6002_s18 }
 0x2fe   : > { %v2144_v27 = vsel %vm422_vm7, %v2142_v35, %v2143_v36  ;;  %v8023_v32 = vpop.permute.xlu2 %2168  ;;  %v2052_v23 = vpop.permute.xlu1 %2051 }
 0x2ff   : > { %v2145_v45 = vsel %vm424_vm8, %v2141_v59, %v2144_v27  ;;  %v2050_v24 = vpop.permute.xlu0 %2049  ;;  %v2077_v47 = vsel %vm2069_vm12, %v2052_v23, %v7962_v0 }
 0x300   : > { %2158 = vst [vmem:[#allocation2 + $0x121] ss:$8 sm:$0xf] %v2145_v45  ;;  %v2078_v53 = vsel %vm2069_vm12, %v2050_v24, %v2052_v23  ;;  %v2098_v42 = vmul.f32 %v2077_v47, %v7612_v56  ;;  %v2079_v36 = vsel %vm2069_vm12, %v7933_v58, %v2050_v24 }
 0x301   : > { %2159 = vst [vmem:[#allocation2 + $0x121] ss:$8 sm:$0xf0] %v2145_v45  ;;  %v2097_v5 = vmul.f32 %v2078_v53, %v7614_v55 }
 0x302   : > { %v2132_v23 = vrot.slane %v2098_v42, 6 }
 0x303   : > { %v2131_v45 = vrot.slane %v2097_v5, 7 }
 0x304   : > { %2347 = vrot.lane.b32.xlu2 %v6134_v21, %s6002_s18  ;;  %2345 = vrot.lane.b32.xlu1 %v6120_v18, %s6002_s18 }
 0x305   : > { %2343 = vrot.lane.b32.xlu0 %v6123_v19, %s6002_s18 }
 0x306   : > { %v8032_v29 = vpop.permute.xlu2 %2174  ;;  %v2058_v34 = vpop.permute.xlu1 %2057 }
 0x307   : > { %v2056_v52 = vpop.permute.xlu0 %2055  ;;  %v2074_v33 = vsel %vm2069_vm12, %v2058_v34, %v7971_v22 }
 0x308   : > { %v2076_v43 = vsel %vm2069_vm12, %v7962_v0, %v2056_v52  ;;  %v2075_v61 = vsel %vm2069_vm12, %v2056_v52, %v2058_v34  ;;  %v2101_v0 = vmul.f32 %v2074_v33, %v7624_v38 }
 0x309   : > { %v2099_v57 = vmul.f32 %v2076_v43, %v7610_v49  ;;  %v2100_v41 = vmul.f32 %v2075_v61, %v7626_v51  ;;  %v2096_v61 = vmul.f32 %v2079_v36, %v7650_v63 }
 0x30a   : > { %v2135_v43 = vrot.slane %v2101_v0, 3 }
 0x30b   : > { %v2133_v59 = vrot.slane %v2099_v57, 5  ;;  %v2134_v47 = vrot.slane %v2100_v41, 4 }
 0x30c   : > { %2489 = vrot.lane.b32.xlu2 %v6057_v2, %s6003_s19  ;;  %2487 = vrot.lane.b32.xlu1 %v6071_v6, %s6003_s19 }
 0x30d   : > { %2485 = vrot.lane.b32.xlu0 %v6059_v3, %s6003_s19  ;;  %v2147_v58 = vsel %vm414_vm2, %v2132_v23, %v2133_v59  ;;  %v2149_v42 = vsel %vm418_vm5, %v2134_v47, %v2135_v43 }
 0x30e   : > { %v8058_v15 = vpop.permute.xlu2 %2180  ;;  %v2064_v35 = vpop.permute.xlu1 %2063 }
 0x30f   : > { %v2062_v27 = vpop.permute.xlu0 %2061 }
 0x310   : > { %v2072_v34 = vsel %vm2069_vm12, %v2062_v27, %v2064_v35  ;;  %v2073_v52 = vsel %vm2069_vm12, %v7971_v22, %v2062_v27  ;;  %v2146_v22 = vsel %vm412_vm3, %v2096_v61, %v2131_v45  ;;  %v2071_v45 = vsel %vm2069_vm12, %v2064_v35, %v7996_v46 }
 0x311   : > { %v2102_v53 = vmul.f32 %v2073_v52, %v7644_v39  ;;  %v2103_v33 = vmul.f32 %v2072_v34, %v7646_v17  ;;  %v2148_v0 = vsel %vm416_vm4, %v2146_v22, %v2147_v58  ;;  %v2104_v43 = vmul.f32 %v2071_v45, %v7682_v14 }
 0x313   : > { %v2136_v24 = vrot.slane %v2102_v53, 2  ;;  %v2137_v57 = vrot.slane %v2103_v33, 1 }
 0x314   : > { %2495 = vrot.lane.b32.xlu2 %v6067_v4, %s6003_s19  ;;  %2493 = vrot.lane.b32.xlu1 %v6055_v1, %s6003_s19 }
 0x315   : > { %v2150_v5 = vsel %vm420_vm6, %v2136_v24, %v2137_v57  ;;  %2491 = vrot.lane.b32.xlu0 %v10894_v30, %s6003_s19 }
 0x316   : > { %v2151_v41 = vsel %vm422_vm7, %v2149_v42, %v2150_v5  ;;  %v8083_v36 = vpop.permute.xlu2 %2186  ;;  %v2167_v59 = vpop.permute.xlu1 %2166 }
 0x317   : > { %v2152_v27 = vsel %vm424_vm8, %v2148_v0, %v2151_v41  ;;  %v2068_v23 = vpop.permute.xlu0 %2067 }
 0x318   : > { %2161 = vst [vmem:[#allocation2 + $0x161] ss:$8 sm:$0xf] %v2152_v27  ;;  %v2070_v34 = vsel %vm2069_vm12, %v7996_v46, %v2068_v23  ;;  %vm3517_vm12 = vcmp.lt.s32.totalorder %v6181_v31, 108 }
 0x319   : > { %2162 = vst [vmem:[#allocation2 + $0x161] ss:$8 sm:$0xf0] %v2152_v27  ;;  %v2105_v52 = vmul.f32 %v2070_v34, %v7676_v37 }
 0x31b   : > { %v2138_v47 = vrot.slane %v2105_v52, 7 }
 0x31c   : > { %2501 = vrot.lane.b32.xlu2 %v6080_v8, %s6003_s19  ;;  %2499 = vrot.lane.b32.xlu1 %v6082_v9, %s6003_s19 }
 0x31d   : > { %v2153_v53 = vsel %vm412_vm3, %v2104_v43, %v2138_v47  ;;  %2497 = vrot.lane.b32.xlu0 %v6084_v10, %s6003_s19 }
 0x31e   : > { %2164 = vst.msk [vmem:[#allocation2 + $0x1a1] ss:$8 sm:$0x3] %vm6216_vm1, %v2153_v53  ;;  %v8103_v46 = vpop.permute.xlu2 %2192  ;;  %v2173_v35 = vpop.permute.xlu1 %2172 }
 0x31f   : > { %v2171_v33 = vpop.permute.xlu0 %2170  ;;  %v2219_v57 = vsel %vm2204_vm13, %v2173_v35, %v8032_v29 }
 0x320   : > { %v2220_v22 = vsel %vm2204_vm13, %v2171_v33, %v2173_v35  ;;  %v2221_v42 = vsel %vm2204_vm13, %v8023_v32, %v2171_v33  ;;  %v2226_v41 = vmul.f32 %v2219_v57, %v7530_v25 }
 0x321   : > { %v2224_v27 = vmul.f32 %v2221_v42, %v7537_v50  ;;  %v2225_v23 = vmul.f32 %v2220_v22, %v7528_v40  ;;  %v2222_v40 = vsel %vm2204_vm13, %v2167_v59, %v8023_v32 }
 0x322   : > { %v2261_v52 = vrot.slane %v2226_v41, 5 }
 0x323   : > { %v2259_v43 = vrot.slane %v2224_v27, 7  ;;  %v2260_v47 = vrot.slane %v2225_v23, 6 }
 0x324   : > { %2507 = vrot.lane.b32.xlu2 %v6092_v11, %s6003_s19  ;;  %2505 = vrot.lane.b32.xlu1 %v6094_v12, %s6003_s19 }
 0x325   : > { %2503 = vrot.lane.b32.xlu0 %v6096_v13, %s6003_s19  ;;  %v2275_v59 = vsel %vm414_vm2, %v2260_v47, %v2261_v52 }
 0x326   : > { %v8111_v61 = vpop.permute.xlu2 %2198  ;;  %v2179_v58 = vpop.permute.xlu1 %2178 }
 0x327   : > { %v2177_v24 = vpop.permute.xlu0 %2176  ;;  %v2216_v45 = vsel %vm2204_vm13, %v2179_v58, %v8058_v15 }
 0x328   : > { %v2217_v5 = vsel %vm2204_vm13, %v2177_v24, %v2179_v58  ;;  %v2218_v0 = vsel %vm2204_vm13, %v8032_v29, %v2177_v24  ;;  %v2229_v53 = vmul.f32 %v2216_v45, %v7560_v7 }
 0x329   : > { %v2227_v34 = vmul.f32 %v2218_v0, %v7542_v28  ;;  %v2228_v29 = vmul.f32 %v2217_v5, %v7558_v54  ;;  %v2223_v54 = vmul.f32 %v2222_v40, %v7562_v26 }
 0x32a   : > { %v2264_v57 = vrot.slane %v2229_v53, 2 }
 0x32b   : > { %v2262_v33 = vrot.slane %v2227_v34, 4  ;;  %v2263_v58 = vrot.slane %v2228_v29, 3  ;;  %v2274_v32 = vsel %vm412_vm3, %v2223_v54, %v2259_v43 }
 0x32c   : > { %2513 = vrot.lane.b32.xlu2 %v10890_v60, %s6003_s19  ;;  %2511 = vrot.lane.b32.xlu1 %v10897_v62, %s6003_s19 }
 0x32d   : > { %2509 = vrot.lane.b32.xlu0 %v6108_v16, %s6003_s19  ;;  %v2277_v7 = vsel %vm418_vm5, %v2262_v33, %v2263_v58 }
 0x32e   : > { %v8144_v25 = vpop.permute.xlu2 %2311  ;;  %v2185_v50 = vpop.permute.xlu1 %2184 }
 0x32f   : > { %v2183_v35 = vpop.permute.xlu0 %2182  ;;  %v2213_v45 = vsel %vm2204_vm13, %v2185_v50, %v8083_v36 }
 0x330   : > { %v2215_v28 = vsel %vm2204_vm13, %v8058_v15, %v2183_v35  ;;  %v2232_v52 = vmul.f32 %v2213_v45, %v7614_v55 }
 0x331   : > { %v2230_v24 = vmul.f32 %v2215_v28, %v7553_v48  ;;  %v2276_v48 = vsel %vm416_vm4, %v2274_v32, %v2275_v59 }
 0x333   : > { %v2265_v22 = vrot.slane %v2230_v24, 1 }
 0x334   : > { %2519 = vrot.lane.b32.xlu2 %v6120_v18, %s6003_s19  ;;  %2517 = vrot.lane.b32.xlu1 %v6123_v19, %s6003_s19 }
 0x335   : > { %v2278_v26 = vsel %vm420_vm6, %v2264_v57, %v2265_v22  ;;  %2515 = vrot.lane.b32.xlu0 %v6125_v20, %s6003_s19 }
 0x336   : > { %v2279_v15 = vsel %vm422_vm7, %v2277_v7, %v2278_v26  ;;  %v8164_v42 = vpop.permute.xlu2 %2317  ;;  %v2191_v5 = vpop.permute.xlu1 %2190 }
 0x337   : > { %v2280_v0 = vsel %vm424_vm8, %v2276_v48, %v2279_v15  ;;  %v2189_v41 = vpop.permute.xlu0 %2188  ;;  %v2210_v40 = vsel %vm2204_vm13, %v2191_v5, %v8103_v46 }
 0x338   : > { %2293 = vst [vmem:[#allocation2 + $0x126] ss:$8 sm:$0xf] %v2280_v0  ;;  %v2211_v27 = vsel %vm2204_vm13, %v2189_v41, %v2191_v5  ;;  %v2212_v23 = vsel %vm2204_vm13, %v8083_v36, %v2189_v41  ;;  %v2235_v43 = vmul.f32 %v2210_v40, %v7626_v51  ;;  %v5731_v40 = vld [vmem:[%s10850_s2 + $0x3] ss:$8 sm:$0xf0] }
 0x339   : > { %2294 = vst [vmem:[#allocation2 + $0x126] ss:$8 sm:$0xf0] %v2280_v0  ;;  %v2233_v34 = vmul.f32 %v2212_v23, %v7612_v56  ;;  %v2234_v29 = vmul.f32 %v2211_v27, %v7610_v49  ;;  %v2214_v56 = vsel %vm2204_vm13, %v2183_v35, %v2185_v50  ;;  %v2266_v35 = vrot.slane %v2232_v52, 7 }
 0x33a   : > { %v2231_v24 = vmul.f32 %v2214_v56, %v7650_v63  ;;  %v2269_v59 = vrot.slane %v2235_v43, 4 }
 0x33b   : > { %v2267_v47 = vrot.slane %v2233_v34, 6  ;;  %v2268_v53 = vrot.slane %v2234_v29, 5 }
 0x33c   : > { %2622 = vrot.lane.b32.xlu2 %v6071_v6, %s6004_s21  ;;  %2620 = vrot.lane.b32.xlu1 %v6059_v3, %s6004_s21 }
 0x33d   : > { %2521 = vrot.lane.b32.xlu0 %v6134_v21, %s6003_s19  ;;  %v2282_v57 = vsel %vm414_vm2, %v2267_v47, %v2268_v53 }
 0x33e   : > { %v8189_v49 = vpop.permute.xlu2 %2323  ;;  %v2197_v36 = vpop.permute.xlu1 %2196 }
 0x33f   : > { %v2207_v28 = vsel %vm2204_vm13, %v2197_v36, %v8111_v61  ;;  %v2195_v54 = vpop.permute.xlu0 %2194 }
 0x340   : > { %v2238_v55 = vmul.f32 %v2207_v28, %v7646_v17  ;;  %v2208_v33 = vsel %vm2204_vm13, %v2195_v54, %v2197_v36  ;;  %v2209_v50 = vsel %vm2204_vm13, %v8103_v46, %v2195_v54  ;;  %v2281_v46 = vsel %vm412_vm3, %v2231_v24, %v2266_v35 }
 0x341   : > { %v2236_v58 = vmul.f32 %v2209_v50, %v7624_v38  ;;  %v2237_v51 = vmul.f32 %v2208_v33, %v7644_v39  ;;  %v2283_v63 = vsel %vm416_vm4, %v2281_v46, %v2282_v57 }
 0x342   : > { %v2272_v32 = vrot.slane %v2238_v55, 1 }
 0x343   : > { %v2270_v22 = vrot.slane %v2236_v58, 3  ;;  %v2271_v17 = vrot.slane %v2237_v51, 2 }
 0x344   : > { %2628 = vrot.lane.b32.xlu2 %v6055_v1, %s6004_s21  ;;  %2626 = vrot.lane.b32.xlu1 %v10894_v30, %s6004_s21 }
 0x345   : > { %v2284_v38 = vsel %vm418_vm5, %v2269_v59, %v2270_v22  ;;  %v2285_v39 = vsel %vm420_vm6, %v2271_v17, %v2272_v32  ;;  %2624 = vrot.lane.b32.xlu0 %v6057_v2, %s6004_s21 }
 0x346   : > { %v2286_v7 = vsel %vm422_vm7, %v2284_v38, %v2285_v39  ;;  %v8216_v26 = vpop.permute.xlu2 %2329  ;;  %v2203_v48 = vpop.permute.xlu1 %2202 }
 0x347   : > { %v2287_v15 = vsel %vm424_vm8, %v2283_v63, %v2286_v7  ;;  %v2201_v5 = vpop.permute.xlu0 %2200 }
 0x348   : > { %2296 = vst [vmem:[#allocation2 + $0x166] ss:$8 sm:$0xf] %v2287_v15  ;;  %v2205_v0 = vsel %vm2204_vm13, %v2201_v5, %v2203_v48  ;;  %v2206_v41 = vsel %vm2204_vm13, %v8111_v61, %v2201_v5  ;;  %vm3247_vm13 = vcmp.lt.s32.totalorder %v6181_v31, 76 }
 0x349   : > { %2297 = vst [vmem:[#allocation2 + $0x166] ss:$8 sm:$0xf0] %v2287_v15  ;;  %v2240_v27 = vmul.f32 %v2205_v0, %v7676_v37  ;;  %v2239_v23 = vmul.f32 %v2206_v41, %v7682_v14  ;;  %v5730_v14 = vld [vmem:[%s10850_s2 + $0x3] ss:$8 sm:$0xf] }
 0x34a   : > { %v2304_v52 = vor.u32 %v5731_v40, %v5730_v14 }
 0x34b   : > { %v2273_v45 = vrot.slane %v2240_v27, 7 }
 0x34c   : > { %2634 = vrot.lane.b32.xlu2 %v6082_v9, %s6004_s21  ;;  %2632 = vrot.lane.b32.xlu1 %v6084_v10, %s6004_s21  ;;  %v8252_v43 = vperm.slane %v2304_v52, 3  ;;  %v8254_v53 = vperm.slane %v2304_v52, 2  ;;  %v8256_v28 = vperm.slane %v2304_v52, 1  ;;  %v8266_v50 = vperm.slane %v2304_v52, 5 }
 0x34d   : > { %v2288_v34 = vsel %vm412_vm3, %v2239_v23, %v2273_v45  ;;  %2630 = vrot.lane.b32.xlu0 %v6067_v4, %s6004_s21  ;;  %v8268_v35 = vperm.slane %v2304_v52, 4  ;;  %v8286_v22 = vperm.slane %v2304_v52, 6  ;;  %v8288_v17 = vperm.slane %v2304_v52, 7 }
 0x34e   : > { %2299 = vst.msk [vmem:[#allocation2 + $0x1a6] ss:$8 sm:$0x3] %vm6216_vm1, %v2288_v34  ;;  %v8235_v61 = vpop.permute.xlu2 %2335  ;;  %v2316_v37 = vpop.permute.xlu1 %2315  ;;  %v8294_v39 = vperm.slane %v2304_v52, 0 }
 0x34f   : > { %v2314_v29 = vpop.permute.xlu0 %2313  ;;  %v2365_v55 = vsel %vm2349_vm14, %v2316_v37, %v8164_v42 }
 0x350   : > { %v2366_v33 = vsel %vm2349_vm14, %v2314_v29, %v2316_v37  ;;  %v2409_v32 = vmul.f32 %v8254_v53, %v2365_v55  ;;  %v2367_v63 = vsel %vm2349_vm14, %v8144_v25, %v2314_v29 }
 0x351   : > { %v2407_v25 = vmul.f32 %v8294_v39, %v2367_v63 }
 0x352   : > { %v2444_v15 = vrot.slane %v2409_v32, 6 }
 0x354   : > { %2640 = vrot.lane.b32.xlu2 %v6094_v12, %s6004_s21  ;;  %2638 = vrot.lane.b32.xlu1 %v6096_v13, %s6004_s21 }
 0x355   : > { %2636 = vrot.lane.b32.xlu0 %v6080_v8, %s6004_s21 }
 0x356   : > { %v8250_v56 = vpop.permute.xlu2 %2341  ;;  %v2322_v36 = vpop.permute.xlu1 %2321 }
 0x357   : > { %v2320_v47 = vpop.permute.xlu0 %2319  ;;  %v2362_v58 = vsel %vm2349_vm14, %v2322_v36, %v8189_v49 }
 0x358   : > { %v2364_v54 = vsel %vm2349_vm14, %v8164_v42, %v2320_v47  ;;  %v2363_v51 = vsel %vm2349_vm14, %v2320_v47, %v2322_v36  ;;  %v2408_v42 = vmul.f32 %v8256_v28, %v2366_v33  ;;  %v2412_v59 = vmul.f32 %v8266_v50, %v2362_v58 }
 0x359   : > { %v2410_v24 = vmul.f32 %v8252_v43, %v2364_v54  ;;  %v2411_v57 = vmul.f32 %v8268_v35, %v2363_v51  ;;  %v5732_v51 = vld [vmem:[%s10850_s2 + $0x43] ss:$8 sm:$0xf] }
 0x35a   : > { %v2443_v5 = vrot.slane %v2408_v42, 7  ;;  %v2447_v27 = vrot.slane %v2412_v59, 3 }
 0x35b   : > { %v2445_v7 = vrot.slane %v2410_v24, 5  ;;  %v2446_v23 = vrot.slane %v2411_v57, 4  ;;  %v5733_v24 = vld [vmem:[%s10850_s2 + $0x43] ss:$8 sm:$0xf0] }
 0x35c   : > { %2646 = vrot.lane.b32.xlu2 %v10897_v62, %s6004_s21  ;;  %2644 = vrot.lane.b32.xlu1 %v6108_v16, %s6004_s21  ;;  %v2308_v32 = vor.u32 %v5733_v24, %v5732_v51 }
 0x35d   : > { %2642 = vrot.lane.b32.xlu0 %v6092_v11, %s6004_s21  ;;  %v2459_v37 = vsel %vm414_vm2, %v2444_v15, %v2445_v7  ;;  %v2461_v40 = vsel %vm418_vm5, %v2446_v23, %v2447_v27  ;;  %v5734_v23 = vld [vmem:[%s10850_s2 + $0x83] ss:$8 sm:$0x3] }
 0x35e   : > { %v8290_v46 = vpop.permute.xlu2 %2347  ;;  %v8292_v38 = vpop.permute.xlu1 %2327  ;;  %v8335_v42 = vperm.slane %v2308_v32, 3  ;;  %v8342_v7 = vperm.slane %v2308_v32, 1  ;;  %v8353_v27 = vperm.slane %v2308_v32, 5  ;;  %v8391_v24 = vperm.slane %v5734_v23, 0 }
 0x35f   : > { %v2326_v48 = vpop.permute.xlu0 %2325 }
 0x360   : > { %v2360_v0 = vsel %vm2349_vm14, %v2326_v48, %v8292_v38  ;;  %v2361_v41 = vsel %vm2349_vm14, %v8189_v49, %v2326_v48  ;;  %v2458_v49 = vsel %vm412_vm3, %v2407_v25, %v2443_v5  ;;  %v8344_v48 = vperm.slane %v2308_v32, 2  ;;  %10900 = vst [vmem:[#allocation5_spill] sm:$0xff] %v8391_v24 }
 0x361   : > { %v2413_v45 = vmul.f32 %v8286_v22, %v2361_v41  ;;  %v2414_v34 = vmul.f32 %v8288_v17, %v2360_v0  ;;  %v2460_v36 = vsel %vm416_vm4, %v2458_v49, %v2459_v37  ;;  %v8351_v41 = vperm.slane %v2308_v32, 4 }
 0x363   : > { %v2448_v29 = vrot.slane %v2413_v45, 2  ;;  %v2449_v14 = vrot.slane %v2414_v34, 1 }
 0x364   : > { %2652 = vrot.lane.b32.xlu2 %v6123_v19, %s6004_s21  ;;  %2650 = vrot.lane.b32.xlu1 %v6125_v20, %s6004_s21 }
 0x365   : > { %v2462_v52 = vsel %vm420_vm6, %v2448_v29, %v2449_v14  ;;  %2648 = vrot.lane.b32.xlu0 %v10890_v60, %s6004_s21  ;;  %v8366_v14 = vperm.slane %v2308_v32, 6 }
 0x366   : > { %v2463_v47 = vsel %vm422_vm7, %v2461_v40, %v2462_v52  ;;  %v8320_v54 = vpop.permute.xlu2 %2489  ;;  %v2334_v55 = vpop.permute.xlu1 %2333  ;;  %v8375_v40 = vperm.slane %v5734_v23, 1  ;;  %v8377_v52 = vperm.slane %v2308_v32, 0 }
 0x367   : > { %v2464_v33 = vsel %vm424_vm8, %v2460_v36, %v2463_v47  ;;  %v2332_v58 = vpop.permute.xlu0 %2331  ;;  %v2356_v63 = vsel %vm2349_vm14, %v2334_v55, %v8235_v61  ;;  %v8383_v47 = vperm.slane %v2308_v32, 7 }
 0x368   : > { %2477 = vst [vmem:[#allocation2 + $0x3] ss:$8 sm:$0xf] %v2464_v33  ;;  %v2357_v5 = vsel %vm2349_vm14, %v2332_v58, %v2334_v55  ;;  %v2358_v0 = vsel %vm2349_vm14, %v8216_v26, %v2332_v58  ;;  %v2418_v45 = vmul.f32 %v8335_v42, %v2356_v63  ;;  %v2359_v55 = vsel %vm2349_vm14, %v8292_v38, %v8216_v26 }
 0x369   : > { %2478 = vst [vmem:[#allocation2 + $0x3] ss:$8 sm:$0xf0] %v2464_v33  ;;  %v2416_v37 = vmul.f32 %v8342_v7, %v2358_v0  ;;  %v2417_v29 = vmul.f32 %v8344_v48, %v2357_v5  ;;  %v2415_v23 = vmul.f32 %v8377_v52, %v2359_v55 }
 0x36a   : > { %10898 = vst [vmem:[#allocation11_spill] sm:$0xff] %v8375_v40  ;;  %v2452_v33 = vrot.slane %v2418_v45, 5 }
 0x36b   : > { %10899 = vst [vmem:[#allocation4_spill] sm:$0xff] %v8383_v47  ;;  %v2451_v63 = vrot.slane %v2417_v29, 6 }
 0x36c   : > { %2755 = vrot.lane.b32.xlu2 %v6071_v6, %s6005_s30  ;;  %2656 = vrot.lane.b32.xlu1 %v6134_v21, %s6004_s21 }
 0x36d   : > { %2654 = vrot.lane.b32.xlu0 %v6120_v18, %s6004_s21 }
 0x36e   : > { %v8337_v59 = vpop.permute.xlu2 %2495  ;;  %v2340_v57 = vpop.permute.xlu1 %2339 }
 0x36f   : > { %v2338_v15 = vpop.permute.xlu0 %2337  ;;  %v2353_v49 = vsel %vm2349_vm14, %v2340_v57, %v8250_v56 }
 0x370   : > { %v2354_v34 = vsel %vm2349_vm14, %v2338_v15, %v2340_v57  ;;  %v2355_v25 = vsel %vm2349_vm14, %v8235_v61, %v2338_v15  ;;  %v2450_v57 = vrot.slane %v2416_v37, 7  ;;  %v2421_v15 = vmul.f32 %v8366_v14, %v2353_v49 }
 0x371   : > { %v2419_v61 = vmul.f32 %v8351_v41, %v2355_v25  ;;  %v2420_v36 = vmul.f32 %v8353_v27, %v2354_v34  ;;  %v2466_v49 = vsel %vm414_vm2, %v2451_v63, %v2452_v33 }
 0x373   : > { %v2453_v45 = vrot.slane %v2419_v61, 4  ;;  %v2454_v34 = vrot.slane %v2420_v36, 3 }
 0x374   : > { %2761 = vrot.lane.b32.xlu2 %v6055_v1, %s6005_s30  ;;  %2759 = vrot.lane.b32.xlu1 %v10894_v30, %s6005_s30 }
 0x375   : > { %2757 = vrot.lane.b32.xlu0 %v6057_v2, %s6005_s30 }
 0x376   : > { %v8389_v58 = vpop.permute.xlu2 %2501  ;;  %v2346_v51 = vpop.permute.xlu1 %2345 }
 0x377   : > { %v2350_v32 = vsel %vm2349_vm14, %v2346_v51, %v8290_v46  ;;  %v2344_v5 = vpop.permute.xlu0 %2343  ;;  %v2465_v46 = vsel %vm412_vm3, %v2415_v23, %v2450_v57 }
 0x378   : > { %v2424_v0 = vmul.f32 %v8375_v40, %v2350_v32  ;;  %v2351_v26 = vsel %vm2349_vm14, %v2344_v5, %v2346_v51  ;;  %v2352_v38 = vsel %vm2349_vm14, %v8250_v56, %v2344_v5  ;;  %v2455_v32 = vrot.slane %v2421_v15, 2 }
 0x379   : > { %v2422_v25 = vmul.f32 %v8383_v47, %v2352_v38  ;;  %v2423_v29 = vmul.f32 %v8391_v24, %v2351_v26  ;;  %v2468_v56 = vsel %vm418_vm5, %v2453_v45, %v2454_v34  ;;  %v2467_v36 = vsel %vm416_vm4, %v2465_v46, %v2466_v49 }
 0x37a   : > { %v2457_v37 = vrot.slane %v2424_v0, 7  ;;  %vm3382_vm14 = vcmp.lt.s32.totalorder %v6181_v31, 28 }
 0x37b   : > { %v2456_v3 = vrot.slane %v2422_v25, 1 }
 0x37c   : > { %v2472_v51 = vsel %vm412_vm3, %v2423_v29, %v2457_v37  ;;  %2767 = vrot.lane.b32.xlu2 %v6082_v9, %s6005_s30  ;;  %2765 = vrot.lane.b32.xlu1 %v6084_v10, %s6005_s30 }
 0x37d   : > { %v2469_v61 = vsel %vm420_vm6, %v2455_v32, %v2456_v3  ;;  %2483 = vst.msk [vmem:[#allocation2 + $0x83] ss:$8 sm:$0x3] %vm6216_vm1, %v2472_v51  ;;  %2763 = vrot.lane.b32.xlu0 %v6067_v4, %s6005_s30 }
 0x37e   : > { %v2470_v55 = vsel %vm422_vm7, %v2468_v56, %v2469_v61  ;;  %v8421_v33 = vpop.permute.xlu2 %2507  ;;  %v2488_v57 = vpop.permute.xlu1 %2487 }
 0x37f   : > { %v2471_v63 = vsel %vm424_vm8, %v2467_v36, %v2470_v55  ;;  %v2486_v15 = vpop.permute.xlu0 %2485  ;;  %v2540_v23 = vsel %vm2523_vm15, %v2488_v57, %v8320_v54 }
 0x380   : > { %2480 = vst [vmem:[#allocation2 + $0x43] ss:$8 sm:$0xf] %v2471_v63  ;;  %v2543_v37 = vmul.f32 %v2540_v23, %v8256_v28 }
 0x381   : > { %2481 = vst [vmem:[#allocation2 + $0x43] ss:$8 sm:$0xf0] %v2471_v63 }
 0x382   : > { %v2578_v63 = vrot.slane %v2543_v37, 7 }
 0x384   : > { %2773 = vrot.lane.b32.xlu2 %v6094_v12, %s6005_s30  ;;  %2771 = vrot.lane.b32.xlu1 %v6096_v13, %s6005_s30 }
 0x385   : > { %2769 = vrot.lane.b32.xlu0 %v6080_v8, %s6005_s30 }
 0x386   : > { %v8430_v3 = vpop.permute.xlu2 %2513  ;;  %v2494_v5 = vpop.permute.xlu1 %2493 }
 0x387   : > { %v2492_v0 = vpop.permute.xlu0 %2491  ;;  %v2537_v25 = vsel %vm2523_vm15, %v2494_v5, %v8337_v59 }
 0x388   : > { %v2538_v26 = vsel %vm2523_vm15, %v2492_v0, %v2494_v5  ;;  %v2539_v38 = vsel %vm2523_vm15, %v8320_v54, %v2492_v0  ;;  %v2541_v54 = vsel %vm2523_vm15, %v2486_v15, %v2488_v57  ;;  %v2546_v49 = vmul.f32 %v2537_v25, %v8268_v35 }
 0x389   : > { %v2544_v45 = vmul.f32 %v2539_v38, %v8254_v53  ;;  %v2545_v34 = vmul.f32 %v2538_v26, %v8252_v43  ;;  %v2542_v0 = vmul.f32 %v2541_v54, %v8294_v39 }
 0x38a   : > { %v2581_v38 = vrot.slane %v2546_v49, 4 }
 0x38b   : > { %v2579_v32 = vrot.slane %v2544_v45, 6  ;;  %v2580_v51 = vrot.slane %v2545_v34, 5 }
 0x38c   : > { %2779 = vrot.lane.b32.xlu2 %v10897_v62, %s6005_s30  ;;  %2777 = vrot.lane.b32.xlu1 %v6108_v16, %s6005_s30 }
 0x38d   : > { %2775 = vrot.lane.b32.xlu0 %v6092_v11, %s6005_s30  ;;  %v2594_v23 = vsel %vm414_vm2, %v2579_v32, %v2580_v51 }
 0x38e   : > { %v8455_v29 = vpop.permute.xlu2 %2519  ;;  %v2500_v46 = vpop.permute.xlu1 %2499 }
 0x38f   : > { %v2534_v56 = vsel %vm2523_vm15, %v2500_v46, %v8389_v58  ;;  %v2498_v61 = vpop.permute.xlu0 %2497 }
 0x390   : > { %v2549_v36 = vmul.f32 %v2534_v56, %v8288_v17  ;;  %v2535_v55 = vsel %vm2523_vm15, %v2498_v61, %v2500_v46  ;;  %v2536_v57 = vsel %vm2523_vm15, %v8337_v59, %v2498_v61  ;;  %v2593_v59 = vsel %vm412_vm3, %v2542_v0, %v2578_v63  ;;  %v10901_v61 = vld [vmem:[#allocation9_spill] sm:$0xff] }
 0x391   : > { %v2547_v15 = vmul.f32 %v2536_v57, %v8266_v50  ;;  %v2548_v5 = vmul.f32 %v2535_v55, %v8286_v22  ;;  %v2595_v54 = vsel %vm416_vm4, %v2593_v59, %v2594_v23 }
 0x392   : > { %v2584_v26 = vrot.slane %v2549_v36, 1 }
 0x393   : > { %v2582_v45 = vrot.slane %v2547_v15, 3  ;;  %v2583_v34 = vrot.slane %v2548_v5, 2 }
 0x394   : > { %2785 = vrot.lane.b32.xlu2 %v6123_v19, %s6005_s30  ;;  %2783 = vrot.lane.b32.xlu1 %v6125_v20, %s6005_s30 }
 0x395   : > { %v2596_v25 = vsel %vm418_vm5, %v2581_v38, %v2582_v45  ;;  %v2597_v37 = vsel %vm420_vm6, %v2583_v34, %v2584_v26  ;;  %2781 = vrot.lane.b32.xlu0 %v10890_v60, %s6005_s30 }
 0x396   : > { %v2598_v46 = vsel %vm422_vm7, %v2596_v25, %v2597_v37  ;;  %v8482_v49 = vpop.permute.xlu2 %2622  ;;  %v2506_v32 = vpop.permute.xlu1 %2505 }
 0x397   : > { %v2599_v51 = vsel %vm424_vm8, %v2595_v54, %v2598_v46  ;;  %v2504_v56 = vpop.permute.xlu0 %2503  ;;  %v2531_v15 = vsel %vm2523_vm15, %v2506_v32, %v8421_v33 }
 0x398   : > { %2612 = vst [vmem:[#allocation2 + $0x90] ss:$8 sm:$0xf] %v2599_v51  ;;  %v2532_v5 = vsel %vm2523_vm15, %v2504_v56, %v2506_v32  ;;  %v2552_v23 = vmul.f32 %v2531_v15, %v8344_v48  ;;  %v2533_v37 = vsel %vm2523_vm15, %v8389_v58, %v2504_v56 }
 0x399   : > { %2613 = vst [vmem:[#allocation2 + $0x90] ss:$8 sm:$0xf0] %v2599_v51  ;;  %v2551_v45 = vmul.f32 %v2532_v5, %v8342_v7 }
 0x39a   : > { %v2586_v32 = vrot.slane %v2552_v23, 6 }
 0x39b   : > { %v2585_v51 = vrot.slane %v2551_v45, 7 }
 0x39c   : > { %2791 = vrot.lane.b32.xlu2 %v10901_v61, %s6005_s30  ;;  %2789 = vrot.lane.b32.xlu1 %v6134_v21, %s6005_s30 }
 0x39d   : > { %2787 = vrot.lane.b32.xlu0 %v6120_v18, %s6005_s30 }
 0x39e   : > { %v8491_v36 = vpop.permute.xlu2 %2628  ;;  %v2512_v55 = vpop.permute.xlu1 %2511 }
 0x39f   : > { %v2510_v57 = vpop.permute.xlu0 %2509  ;;  %v2528_v0 = vsel %vm2523_vm15, %v2512_v55, %v8430_v3 }
 0x3a0   : > { %v2530_v63 = vsel %vm2523_vm15, %v8421_v33, %v2510_v57  ;;  %v2529_v26 = vsel %vm2523_vm15, %v2510_v57, %v2512_v55  ;;  %v2555_v33 = vmul.f32 %v2528_v0, %v8353_v27 }
 0x3a1   : > { %v2553_v38 = vmul.f32 %v2530_v63, %v8335_v42  ;;  %v2554_v34 = vmul.f32 %v2529_v26, %v8351_v41  ;;  %v2550_v26 = vmul.f32 %v2533_v37, %v8377_v52 }
 0x3a2   : > { %v2589_v63 = vrot.slane %v2555_v33, 3 }
 0x3a3   : > { %v2587_v54 = vrot.slane %v2553_v38, 5  ;;  %v2588_v15 = vrot.slane %v2554_v34, 4 }
 0x3a4   : > { %3618 = vrot.lane.b32.xlu2 %v10894_v30, %s6006_s7  ;;  %3616 = vrot.lane.b32.xlu1 %v6057_v2, %s6006_s7 }
 0x3a5   : > { %2890 = vrot.lane.b32.xlu0 %v6071_v6, %s6007_s8  ;;  %v2601_v58 = vsel %vm414_vm2, %v2586_v32, %v2587_v54  ;;  %v2603_v23 = vsel %vm418_vm5, %v2588_v15, %v2589_v63 }
 0x3a6   : > { %v8517_v59 = vpop.permute.xlu2 %2634  ;;  %v2518_v25 = vpop.permute.xlu1 %2517 }
 0x3a7   : > { %v2516_v46 = vpop.permute.xlu0 %2515 }
 0x3a8   : > { %v2526_v55 = vsel %vm2523_vm15, %v2516_v46, %v2518_v25  ;;  %v2527_v57 = vsel %vm2523_vm15, %v8430_v3, %v2516_v46  ;;  %v2600_v3 = vsel %vm412_vm3, %v2550_v26, %v2585_v51  ;;  %v2525_v51 = vsel %vm2523_vm15, %v2518_v25, %v8455_v29 }
 0x3a9   : > { %v2556_v5 = vmul.f32 %v2527_v57, %v8366_v14  ;;  %v2557_v0 = vmul.f32 %v2526_v55, %v8383_v47  ;;  %v2602_v33 = vsel %vm416_vm4, %v2600_v3, %v2601_v58  ;;  %v2558_v63 = vmul.f32 %v2525_v51, %v8391_v24 }
 0x3ab   : > { %v2590_v56 = vrot.slane %v2556_v5, 2  ;;  %v2591_v38 = vrot.slane %v2557_v0, 1 }
 0x3ac   : > { %3624 = vrot.lane.b32.xlu2 %v6084_v10, %s6006_s7  ;;  %3622 = vrot.lane.b32.xlu1 %v6067_v4, %s6006_s7 }
 0x3ad   : > { %v2604_v45 = vsel %vm420_vm6, %v2590_v56, %v2591_v38  ;;  %3620 = vrot.lane.b32.xlu0 %v6055_v1, %s6006_s7 }
 0x3ae   : > { %v2605_v34 = vsel %vm422_vm7, %v2603_v23, %v2604_v45  ;;  %v8542_v37 = vpop.permute.xlu2 %2640  ;;  %v2621_v54 = vpop.permute.xlu1 %2620 }
 0x3af   : > { %v2606_v46 = vsel %vm424_vm8, %v2602_v33, %v2605_v34  ;;  %v2522_v32 = vpop.permute.xlu0 %2521 }
 0x3b0   : > { %2615 = vst [vmem:[#allocation2 + $0xd0] ss:$8 sm:$0xf] %v2606_v46  ;;  %v2524_v55 = vsel %vm2523_vm15, %v8455_v29, %v2522_v32  ;;  %vm3073_vm15 = vcmp.lt.s32.totalorder %v6181_v31, 124 }
 0x3b1   : > { %2616 = vst [vmem:[#allocation2 + $0xd0] ss:$8 sm:$0xf0] %v2606_v46  ;;  %v2559_v57 = vmul.f32 %v2524_v55, %v8375_v40 }
 0x3b3   : > { %v2592_v15 = vrot.slane %v2559_v57, 7  ;;  %v2676_v57 = vsel %vm2658_vm0, %v2621_v54, %v8482_v49 }
 0x3b4   : > { %3630 = vrot.lane.b32.xlu2 %v6096_v13, %s6006_s7  ;;  %3628 = vrot.lane.b32.xlu1 %v6080_v8, %s6006_s7 }
 0x3b5   : > { %v2607_v5 = vsel %vm412_vm3, %v2558_v63, %v2592_v15  ;;  %3626 = vrot.lane.b32.xlu0 %v6082_v9, %s6006_s7 }
 0x3b6   : > { %2618 = vst.msk [vmem:[#allocation2 + $0x110] ss:$8 sm:$0x3] %vm6216_vm1, %v2607_v5  ;;  %v8562_v29 = vpop.permute.xlu2 %2646  ;;  %v2627_v25 = vpop.permute.xlu1 %2626 }
 0x3b7   : > { %v2625_v0 = vpop.permute.xlu0 %2624  ;;  %v2673_v38 = vsel %vm2658_vm0, %v2627_v25, %v8491_v36 }
 0x3b8   : > { %v2674_v3 = vsel %vm2658_vm0, %v2625_v0, %v2627_v25  ;;  %v2675_v23 = vsel %vm2658_vm0, %v8482_v49, %v2625_v0  ;;  %v2680_v34 = vmul.f32 %v2673_v38, %v8252_v43 }
 0x3b9   : > { %v2678_v46 = vmul.f32 %v2675_v23, %v8256_v28  ;;  %v2679_v32 = vmul.f32 %v2674_v3, %v8254_v53  ;;  %v2677_v3 = vmul.f32 %v2676_v57, %v8294_v39 }
 0x3ba   : > { %v2715_v5 = vrot.slane %v2680_v34, 5 }
 0x3bb   : > { %v2713_v25 = vrot.slane %v2678_v46, 7  ;;  %v2714_v0 = vrot.slane %v2679_v32, 6 }
 0x3bc   : > { %2896 = vrot.lane.b32.xlu2 %v6055_v1, %s6007_s8  ;;  %2894 = vrot.lane.b32.xlu1 %v10894_v30, %s6007_s8 }
 0x3bd   : > { %2892 = vrot.lane.b32.xlu0 %v6057_v2, %s6007_s8  ;;  %v2728_v49 = vsel %vm412_vm3, %v2677_v3, %v2713_v25  ;;  %v2729_v54 = vsel %vm414_vm2, %v2714_v0, %v2715_v5 }
 0x3be   : > { %v8570_v26 = vpop.permute.xlu2 %2652  ;;  %v2633_v58 = vpop.permute.xlu1 %2632 }
 0x3bf   : > { %v2631_v56 = vpop.permute.xlu0 %2630  ;;  %v2670_v51 = vsel %vm2658_vm0, %v2633_v58, %v8517_v59 }
 0x3c0   : > { %v2671_v45 = vsel %vm2658_vm0, %v2631_v56, %v2633_v58  ;;  %v2672_v33 = vsel %vm2658_vm0, %v8491_v36, %v2631_v56  ;;  %v2683_v58 = vmul.f32 %v2670_v51, %v8286_v22  ;;  %v2730_v51 = vsel %vm416_vm4, %v2728_v49, %v2729_v54 }
 0x3c1   : > { %v2681_v55 = vmul.f32 %v2672_v33, %v8268_v35  ;;  %v2682_v36 = vmul.f32 %v2671_v45, %v8266_v50 }
 0x3c2   : > { %v2718_v34 = vrot.slane %v2683_v58, 2 }
 0x3c3   : > { %v2716_v23 = vrot.slane %v2681_v55, 4  ;;  %v2717_v45 = vrot.slane %v2682_v36, 3 }
 0x3c4   : > { %2902 = vrot.lane.b32.xlu2 %v6082_v9, %s6007_s8  ;;  %2900 = vrot.lane.b32.xlu1 %v6084_v10, %s6007_s8 }
 0x3c5   : > { %2898 = vrot.lane.b32.xlu0 %v6067_v4, %s6007_s8 }
 0x3c6   : > { %v8603_v63 = vpop.permute.xlu2 %2755  ;;  %v2639_v15 = vpop.permute.xlu1 %2638 }
 0x3c7   : > { %v2637_v56 = vpop.permute.xlu0 %2636 }
 0x3c8   : > { %v2669_v38 = vsel %vm2658_vm0, %v8517_v59, %v2637_v56  ;;  %v2731_v59 = vsel %vm418_vm5, %v2716_v23, %v2717_v45 }
 0x3c9   : > { %v2684_v33 = vmul.f32 %v2669_v38, %v8288_v17  ;;  %v2667_v38 = vsel %vm2658_vm0, %v2639_v15, %v8542_v37 }
 0x3cb   : > { %v2719_v46 = vrot.slane %v2684_v33, 1  ;;  %v2686_v33 = vmul.f32 %v2667_v38, %v8342_v7 }
 0x3cc   : > { %3481 = vrot.lane.b32.xlu2 %v6057_v2, %s6008_s9  ;;  %2906 = vrot.lane.b32.xlu1 %v6096_v13, %s6007_s8 }
 0x3cd   : > { %v2732_v32 = vsel %vm420_vm6, %v2718_v34, %v2719_v46  ;;  %2904 = vrot.lane.b32.xlu0 %v6080_v8, %s6007_s8 }
 0x3ce   : > { %v2733_v55 = vsel %vm422_vm7, %v2731_v59, %v2732_v32  ;;  %v8623_v36 = vpop.permute.xlu2 %2761  ;;  %v2645_v57 = vpop.permute.xlu1 %2644 }
 0x3cf   : > { %v2734_v5 = vsel %vm424_vm8, %v2730_v51, %v2733_v55  ;;  %v2643_v25 = vpop.permute.xlu0 %2642  ;;  %v2664_v45 = vsel %vm2658_vm0, %v2645_v57, %v8562_v29 }
 0x3d0   : > { %2747 = vst [vmem:[#allocation2 + $0x95] ss:$8 sm:$0xf] %v2734_v5  ;;  %v2665_v0 = vsel %vm2658_vm0, %v2643_v25, %v2645_v57  ;;  %v2666_v58 = vsel %vm2658_vm0, %v8542_v37, %v2643_v25  ;;  %v2668_v37 = vsel %vm2658_vm0, %v2637_v56, %v2639_v15  ;;  %v2689_v34 = vmul.f32 %v2664_v45, %v8351_v41 }
 0x3d1   : > { %2748 = vst [vmem:[#allocation2 + $0x95] ss:$8 sm:$0xf0] %v2734_v5  ;;  %v2687_v3 = vmul.f32 %v2666_v58, %v8344_v48  ;;  %v2688_v23 = vmul.f32 %v2665_v0, %v8335_v42  ;;  %v2720_v56 = vrot.slane %v2686_v33, 7  ;;  %v2685_v0 = vmul.f32 %v2668_v37, %v8377_v52 }
 0x3d2   : > { %v2723_v38 = vrot.slane %v2689_v34, 4 }
 0x3d3   : > { %v2721_v46 = vrot.slane %v2687_v3, 6  ;;  %v2722_v59 = vrot.slane %v2688_v23, 5 }
 0x3d4   : > { %3487 = vrot.lane.b32.xlu2 %v6067_v4, %s6008_s9  ;;  %3485 = vrot.lane.b32.xlu1 %v6055_v1, %s6008_s9 }
 0x3d5   : > { %3483 = vrot.lane.b32.xlu0 %v10894_v30, %s6008_s9  ;;  %v2736_v3 = vsel %vm414_vm2, %v2721_v46, %v2722_v59 }
 0x3d6   : > { %v8648_v49 = vpop.permute.xlu2 %2767  ;;  %v2651_v54 = vpop.permute.xlu1 %2650 }
 0x3d7   : > { %v2661_v32 = vsel %vm2658_vm0, %v2651_v54, %v8570_v26  ;;  %v2649_v51 = vpop.permute.xlu0 %2648 }
 0x3d8   : > { %v2692_v55 = vmul.f32 %v2661_v32, %v8383_v47  ;;  %v2662_v57 = vsel %vm2658_vm0, %v2649_v51, %v2651_v54  ;;  %v2663_v15 = vsel %vm2658_vm0, %v8562_v29, %v2649_v51  ;;  %v2735_v29 = vsel %vm412_vm3, %v2685_v0, %v2720_v56 }
 0x3d9   : > { %v2690_v5 = vmul.f32 %v2663_v15, %v8353_v27  ;;  %v2691_v25 = vmul.f32 %v2662_v57, %v8366_v14  ;;  %v2737_v37 = vsel %vm416_vm4, %v2735_v29, %v2736_v3 }
 0x3da   : > { %v2726_v58 = vrot.slane %v2692_v55, 1 }
 0x3db   : > { %v2724_v23 = vrot.slane %v2690_v5, 3  ;;  %v2725_v45 = vrot.slane %v2691_v25, 2 }
 0x3dc   : > { %3493 = vrot.lane.b32.xlu2 %v6080_v8, %s6008_s9  ;;  %3491 = vrot.lane.b32.xlu1 %v6082_v9, %s6008_s9 }
 0x3dd   : > { %v2738_v33 = vsel %vm418_vm5, %v2723_v38, %v2724_v23  ;;  %v2739_v54 = vsel %vm420_vm6, %v2725_v45, %v2726_v58  ;;  %3489 = vrot.lane.b32.xlu0 %v6084_v10, %s6008_s9 }
 0x3de   : > { %v2740_v34 = vsel %vm422_vm7, %v2738_v33, %v2739_v54  ;;  %v8675_v46 = vpop.permute.xlu2 %2773  ;;  %v2657_v59 = vpop.permute.xlu1 %2656 }
 0x3df   : > { %v2741_v32 = vsel %vm424_vm8, %v2737_v37, %v2740_v34  ;;  %v2655_v51 = vpop.permute.xlu0 %2654 }
 0x3e0   : > { %2750 = vst [vmem:[#allocation2 + $0xd5] ss:$8 sm:$0xf] %v2741_v32  ;;  %v2659_v55 = vsel %vm2658_vm0, %v2655_v51, %v2657_v59  ;;  %v2660_v57 = vsel %vm2658_vm0, %v8570_v26, %v2655_v51  ;;  %vm3895_vm0 = vcmask 203776  }
 0x3e1   : > { %2751 = vst [vmem:[#allocation2 + $0xd5] ss:$8 sm:$0xf0] %v2741_v32  ;;  %v2694_v15 = vmul.f32 %v2659_v55, %v8375_v40  ;;  %v2693_v56 = vmul.f32 %v2660_v57, %v8391_v24 }
 0x3e3   : > { %v2727_v5 = vrot.slane %v2694_v15, 7 }
 0x3e4   : > { %3211 = vrot.lane.b32.xlu2 %v6071_v6, %s6009_s10  ;;  %3614 = vrot.lane.b32.xlu1 %v6071_v6, %s6006_s7 }
 0x3e5   : > { %v2742_v25 = vsel %vm412_vm3, %v2693_v56, %v2727_v5  ;;  %3495 = vrot.lane.b32.xlu0 %v6096_v13, %s6008_s9 }
 0x3e6   : > { %2753 = vst.msk [vmem:[#allocation2 + $0x115] ss:$8 sm:$0x3] %vm6216_vm1, %v2742_v25  ;;  %v8694_v26 = vpop.permute.xlu2 %2779  ;;  %v2760_v0 = vpop.permute.xlu1 %2759 }
 0x3e7   : > { %v2758_v58 = vpop.permute.xlu0 %2757  ;;  %v2809_v29 = vsel %vm2793_vm9, %v2760_v0, %v8623_v36 }
 0x3e8   : > { %v2810_v33 = vsel %vm2793_vm9, %v2758_v58, %v2760_v0  ;;  %v2814_v59 = vmul.f32 %v2809_v29, %v8254_v53  ;;  %v2811_v15 = vsel %vm2793_vm9, %v8603_v63, %v2758_v58 }
 0x3e9   : > { %v2813_v32 = vmul.f32 %v2810_v33, %v8256_v28 }
 0x3ea   : > { %v2849_v25 = vrot.slane %v2814_v59, 6 }
 0x3eb   : > { %v2848_v0 = vrot.slane %v2813_v32, 7 }
 0x3ec   : > { %3217 = vrot.lane.b32.xlu2 %v6055_v1, %s6009_s10  ;;  %3215 = vrot.lane.b32.xlu1 %v10894_v30, %s6009_s10 }
 0x3ed   : > { %3213 = vrot.lane.b32.xlu0 %v6057_v2, %s6009_s10 }
 0x3ee   : > { %v8703_v38 = vpop.permute.xlu2 %2785  ;;  %v2766_v3 = vpop.permute.xlu1 %2765 }
 0x3ef   : > { %v2764_v23 = vpop.permute.xlu0 %2763  ;;  %v2806_v54 = vsel %vm2793_vm9, %v2766_v3, %v8648_v49 }
 0x3f0   : > { %v2808_v45 = vsel %vm2793_vm9, %v8623_v36, %v2764_v23  ;;  %v2807_v37 = vsel %vm2793_vm9, %v2764_v23, %v2766_v3  ;;  %v2817_v36 = vmul.f32 %v2806_v54, %v8266_v50 }
 0x3f1   : > { %v2815_v34 = vmul.f32 %v2808_v45, %v8252_v43  ;;  %v2816_v51 = vmul.f32 %v2807_v37, %v8268_v35  ;;  %v2812_v37 = vmul.f32 %v2811_v15, %v8294_v39 }
 0x3f2   : > { %v2852_v45 = vrot.slane %v2817_v36, 3 }
 0x3f3   : > { %v2850_v56 = vrot.slane %v2815_v34, 5  ;;  %v2851_v29 = vrot.slane %v2816_v51, 4 }
 0x3f4   : > { %3223 = vrot.lane.b32.xlu2 %v6082_v9, %s6009_s10  ;;  %3221 = vrot.lane.b32.xlu1 %v6084_v10, %s6009_s10 }
 0x3f5   : > { %3219 = vrot.lane.b32.xlu0 %v6067_v4, %s6009_s10  ;;  %v2864_v63 = vsel %vm414_vm2, %v2849_v25, %v2850_v56  ;;  %v2866_v59 = vsel %vm418_vm5, %v2851_v29, %v2852_v45 }
 0x3f6   : > { %v2792_v55 = vpop.permute.xlu2 %2791  ;;  %v2772_v57 = vpop.permute.xlu1 %2771 }
 0x3f7   : > { %v2770_v5 = vpop.permute.xlu0 %2769 }
 0x3f8   : > { %v2804_v3 = vsel %vm2793_vm9, %v2770_v5, %v2772_v57  ;;  %v2805_v23 = vsel %vm2793_vm9, %v8648_v49, %v2770_v5  ;;  %v2863_v49 = vsel %vm412_vm3, %v2812_v37, %v2848_v0 }
 0x3f9   : > { %v2818_v33 = vmul.f32 %v2805_v23, %v8286_v22  ;;  %v2819_v54 = vmul.f32 %v2804_v3, %v8288_v17  ;;  %v2865_v36 = vsel %vm416_vm4, %v2863_v49, %v2864_v63 }
 0x3fb   : > { %v2853_v58 = vrot.slane %v2818_v33, 2  ;;  %v2854_v34 = vrot.slane %v2819_v54, 1 }
 0x3fc   : > { %3348 = vrot.lane.b32.xlu2 %v6057_v2, %s6010_s11  ;;  %3346 = vrot.lane.b32.xlu1 %v6071_v6, %s6010_s11 }
 0x3fd   : > { %v2867_v32 = vsel %vm420_vm6, %v2853_v58, %v2854_v34  ;;  %3225 = vrot.lane.b32.xlu0 %v6080_v8, %s6009_s10 }
 0x3fe   : > { %v2868_v51 = vsel %vm422_vm7, %v2866_v59, %v2867_v32  ;;  %v8752_v15 = vpop.permute.xlu2 %3618  ;;  %v2778_v56 = vpop.permute.xlu1 %2777 }
 0x3ff   : > { %v2869_v5 = vsel %vm424_vm8, %v2865_v36, %v2868_v51  ;;  %v2776_v25 = vpop.permute.xlu0 %2775  ;;  %v2800_v23 = vsel %vm2793_vm9, %v2778_v56, %v8694_v26 }
 0x400   : > { %2882 = vst [vmem:[#allocation2 + $0x122] ss:$8 sm:$0xf] %v2869_v5  ;;  %v2801_v29 = vsel %vm2793_vm9, %v2776_v25, %v2778_v56  ;;  %v2802_v33 = vsel %vm2793_vm9, %v8675_v46, %v2776_v25  ;;  %v2823_v54 = vmul.f32 %v2800_v23, %v8335_v42 }
 0x401   : > { %2883 = vst [vmem:[#allocation2 + $0x122] ss:$8 sm:$0xf0] %v2869_v5  ;;  %v2821_v58 = vmul.f32 %v2802_v33, %v8342_v7  ;;  %v2822_v34 = vmul.f32 %v2801_v29, %v8344_v48 }
 0x402   : > { %v2857_v36 = vrot.slane %v2823_v54, 5 }
 0x403   : > { %v2855_v5 = vrot.slane %v2821_v58, 7  ;;  %v2856_v25 = vrot.slane %v2822_v34, 6 }
 0x404   : > { %3354 = vrot.lane.b32.xlu2 %v6067_v4, %s6010_s11  ;;  %3352 = vrot.lane.b32.xlu1 %v6055_v1, %s6010_s11 }
 0x405   : > { %3350 = vrot.lane.b32.xlu0 %v10894_v30, %s6010_s11 }
 0x406   : > { %v8761_v0 = vpop.permute.xlu2 %3624  ;;  %v2784_v3 = vpop.permute.xlu1 %2783 }
 0x407   : > { %v2782_v45 = vpop.permute.xlu0 %2781  ;;  %v2797_v49 = vsel %vm2793_vm9, %v2784_v3, %v8703_v38 }
 0x408   : > { %v2798_v37 = vsel %vm2793_vm9, %v2782_v45, %v2784_v3  ;;  %v2799_v63 = vsel %vm2793_vm9, %v8694_v26, %v2782_v45  ;;  %v2803_v26 = vsel %vm2793_vm9, %v2772_v57, %v8675_v46  ;;  %v2826_v3 = vmul.f32 %v2797_v49, %v8366_v14 }
 0x409   : > { %v2824_v59 = vmul.f32 %v2799_v63, %v8351_v41  ;;  %v2825_v32 = vmul.f32 %v2798_v37, %v8353_v27  ;;  %v2820_v57 = vmul.f32 %v2803_v26, %v8377_v52  ;;  %v2871_v49 = vsel %vm414_vm2, %v2856_v25, %v2857_v36 }
 0x40b   : > { %v2858_v54 = vrot.slane %v2824_v59, 4  ;;  %v2859_v37 = vrot.slane %v2825_v32, 3 }
 0x40c   : > { %3360 = vrot.lane.b32.xlu2 %v6080_v8, %s6010_s11  ;;  %3358 = vrot.lane.b32.xlu1 %v6082_v9, %s6010_s11 }
 0x40d   : > { %3356 = vrot.lane.b32.xlu0 %v6084_v10, %s6010_s11 }
 0x40e   : > { %v8793_v51 = vpop.permute.xlu2 %3630  ;;  %v2790_v56 = vpop.permute.xlu1 %2789 }
 0x40f   : > { %v2794_v23 = vsel %vm2793_vm9, %v2790_v56, %v2792_v55  ;;  %v2788_v45 = vpop.permute.xlu0 %2787  ;;  %v2870_v55 = vsel %vm412_vm3, %v2820_v57, %v2855_v5 }
 0x410   : > { %v2829_v29 = vmul.f32 %v2794_v23, %v8375_v40  ;;  %v2795_v33 = vsel %vm2793_vm9, %v2788_v45, %v2790_v56  ;;  %v2796_v46 = vsel %vm2793_vm9, %v8703_v38, %v2788_v45  ;;  %v2860_v23 = vrot.slane %v2826_v3, 2 }
 0x411   : > { %v2827_v63 = vmul.f32 %v2796_v46, %v8383_v47  ;;  %v2828_v34 = vmul.f32 %v2795_v33, %v8391_v24  ;;  %v2873_v38 = vsel %vm418_vm5, %v2858_v54, %v2859_v37  ;;  %v2872_v32 = vsel %vm416_vm4, %v2870_v55, %v2871_v49 }
 0x412   : > { %v2862_v58 = vrot.slane %v2829_v29, 7 }
 0x413   : > { %v2861_v40 = vrot.slane %v2827_v63, 1 }
 0x414   : > { %v2877_v56 = vsel %vm412_vm3, %v2828_v34, %v2862_v58  ;;  %3039 = vrot.lane.b32.xlu2 %v6057_v2, %s6011_s12  ;;  %3037 = vrot.lane.b32.xlu1 %v6071_v6, %s6011_s12 }
 0x415   : > { %v2874_v59 = vsel %vm420_vm6, %v2860_v23, %v2861_v40  ;;  %2888 = vst.msk [vmem:[#allocation2 + $0x1a2] ss:$8 sm:$0x3] %vm6216_vm1, %v2877_v56  ;;  %3479 = vrot.lane.b32.xlu0 %v6071_v6, %s6008_s9 }
 0x416   : > { %v2875_v26 = vsel %vm422_vm7, %v2873_v38, %v2874_v59  ;;  %v2897_v36 = vpop.permute.xlu2 %2896  ;;  %v8822_v5 = vpop.permute.xlu1 %3616 }
 0x417   : > { %v2876_v2 = vsel %vm424_vm8, %v2872_v32, %v2875_v26  ;;  %v2891_v25 = vpop.permute.xlu0 %2890 }
 0x418   : > { %2885 = vst [vmem:[#allocation2 + $0x162] ss:$8 sm:$0xf] %v2876_v2 }
 0x419   : > { %2886 = vst [vmem:[#allocation2 + $0x162] ss:$8 sm:$0xf0] %v2876_v2 }
 0x41c   : > { %3045 = vrot.lane.b32.xlu2 %v6067_v4, %s6011_s12  ;;  %3043 = vrot.lane.b32.xlu1 %v6055_v1, %s6011_s12 }
 0x41d   : > { %3041 = vrot.lane.b32.xlu0 %v10894_v30, %s6011_s12  ;;  %v10902_v30 = vld [vmem:[#allocation3_spill] sm:$0xff] }
 0x41e   : > { %v2903_v6 = vpop.permute.xlu2 %2902  ;;  %v8831_v40 = vpop.permute.xlu1 %3622 }
 0x41f   : > { %v8833_v3 = vpop.permute.xlu0 %3620 }
 0x424   : > { %3051 = vrot.lane.b32.xlu2 %v6080_v8, %s6011_s12  ;;  %3049 = vrot.lane.b32.xlu1 %v6082_v9, %s6011_s12 }
 0x425   : > { %3047 = vrot.lane.b32.xlu0 %v6084_v10, %s6011_s12 }
 0x426   : > { %v8841_v4 = vpop.permute.xlu2 %3481  ;;  %v8843_v1 = vpop.permute.xlu1 %3628 }
 0x427   : > { %v8845_v45 = vpop.permute.xlu0 %3626 }
 0x42c   : > { %3035 = vrot.lane.b32.xlu2 %v10902_v30, %s6011_s12  ;;  %3344 = vrot.lane.b32.xlu1 %v10902_v30, %s6010_s11 }
 0x42d   : > { %3209 = vrot.lane.b32.xlu0 %v10902_v30, %s6009_s10 }
 0x42e   : > { %v8853_v8 = vpop.permute.xlu2 %3487  ;;  %v2895_v9 = vpop.permute.xlu1 %2894 }
 0x42f   : > { %v2893_v29 = vpop.permute.xlu0 %2892  ;;  %v2944_v54 = vsel %vm2928_vm10, %v2895_v9, %v2897_v36 }
 0x430   : > { %v2945_v37 = vsel %vm2928_vm10, %v2893_v29, %v2895_v9  ;;  %v2949_v55 = vmul.f32 %v2944_v54, %v8254_v53  ;;  %v2946_v53 = vsel %vm2928_vm10, %v2891_v25, %v2893_v29 }
 0x431   : > { %v2948_v49 = vmul.f32 %v2945_v37, %v8256_v28 }
 0x432   : > { %v2984_v32 = vrot.slane %v2949_v55, 6 }
 0x433   : > { %v2983_v26 = vrot.slane %v2948_v49, 7 }
 0x434   : > { %3636 = vrot.lane.b32.xlu2 %v6108_v16, %s6006_s7  ;;  %3634 = vrot.lane.b32.xlu1 %v6092_v11, %s6006_s7 }
 0x435   : > { %3632 = vrot.lane.b32.xlu0 %v6094_v12, %s6006_s7 }
 0x436   : > { %v8862_v10 = vpop.permute.xlu2 %3493  ;;  %v2901_v33 = vpop.permute.xlu1 %2900 }
 0x437   : > { %v2899_v46 = vpop.permute.xlu0 %2898  ;;  %v2941_v63 = vsel %vm2928_vm10, %v2901_v33, %v2903_v6 }
 0x438   : > { %v2943_v57 = vsel %vm2928_vm10, %v2897_v36, %v2899_v46  ;;  %v2942_v58 = vsel %vm2928_vm10, %v2899_v46, %v2901_v33  ;;  %v2952_v23 = vmul.f32 %v2941_v63, %v8266_v50  ;;  %v2947_v33 = vmul.f32 %v2946_v53, %v8294_v39  ;;  %v5736_v39 = vld [vmem:[%s10850_s2 + $0x4] ss:$8 sm:$0xf0] }
 0x439   : > { %v2950_v34 = vmul.f32 %v2943_v57, %v8252_v43  ;;  %v2951_v56 = vmul.f32 %v2942_v58, %v8268_v35 }
 0x43a   : > { %v2987_v36 = vrot.slane %v2952_v23, 3 }
 0x43b   : > { %v2985_v28 = vrot.slane %v2950_v34, 5  ;;  %v2986_v2 = vrot.slane %v2951_v56, 4  ;;  %v3663_v56 = vsel %vm3652_vm11, %v8843_v1, %v8793_v51 }
 0x43c   : > { %3642 = vrot.lane.b32.xlu2 %v6125_v20, %s6006_s7  ;;  %3640 = vrot.lane.b32.xlu1 %v10890_v60, %s6006_s7 }
 0x43d   : > { %3638 = vrot.lane.b32.xlu0 %v10897_v62, %s6006_s7  ;;  %v2999_v25 = vsel %vm414_vm2, %v2984_v32, %v2985_v28  ;;  %v3001_v57 = vsel %vm418_vm5, %v2986_v2, %v2987_v36  ;;  %v3664_v32 = vsel %vm3652_vm11, %v8845_v45, %v8843_v1 }
 0x43e   : > { %v8885_v38 = vpop.permute.xlu2 %3211  ;;  %v8887_v43 = vpop.permute.xlu1 %2906 }
 0x43f   : > { %v2905_v59 = vpop.permute.xlu0 %2904 }
 0x440   : > { %v2939_v50 = vsel %vm2928_vm10, %v2905_v59, %v8887_v43  ;;  %v2940_v35 = vsel %vm2928_vm10, %v2903_v6, %v2905_v59  ;;  %v2998_v6 = vsel %vm412_vm3, %v2947_v33, %v2983_v26  ;;  %v3665_v26 = vsel %vm3652_vm11, %v8761_v0, %v8845_v45 }
 0x441   : > { %v2953_v30 = vmul.f32 %v2940_v35, %v8286_v22  ;;  %v2954_v9 = vmul.f32 %v2939_v50, %v8288_v17  ;;  %v5735_v17 = vld [vmem:[%s10850_s2 + $0x4] ss:$8 sm:$0xf]  ;;  %v3000_v54 = vsel %vm416_vm4, %v2998_v6, %v2999_v25  ;;  %v3666_v50 = vsel %vm3652_vm11, %v8831_v40, %v8761_v0 }
 0x442   : > { %v3028_v49 = vor.u32 %v5736_v39, %v5735_v17  ;;  %v3667_v45 = vsel %vm3652_vm11, %v8833_v3, %v8831_v40  ;;  %v3669_v25 = vsel %vm3652_vm11, %v8822_v5, %v8752_v15 }
 0x443   : > { %v2988_v29 = vrot.slane %v2953_v30, 2  ;;  %v2989_v46 = vrot.slane %v2954_v9, 1  ;;  %v3668_v9 = vsel %vm3652_vm11, %v8752_v15, %v8833_v3 }
 0x444   : > { %2908 = vrot.lane.b32.xlu2 %v6094_v12, %s6007_s8  ;;  %3646 = vrot.lane.b32.xlu1 %v6120_v18, %s6006_s7  ;;  %v8925_v23 = vperm.slane %v3028_v49, 7  ;;  %v8931_v53 = vperm.slane %v3028_v49, 5  ;;  %v8933_v28 = vperm.slane %v3028_v49, 6  ;;  %v8939_v59 = vperm.slane %v3028_v49, 4 }
 0x445   : > { %v3002_v22 = vsel %vm420_vm6, %v2988_v29, %v2989_v46  ;;  %3644 = vrot.lane.b32.xlu0 %v6123_v19, %s6006_s7  ;;  %v8955_v35 = vperm.slane %v3028_v49, 2  ;;  %v8957_v36 = vperm.slane %v3028_v49, 3  ;;  %v8961_v30 = vperm.slane %v3028_v49, 1 }
 0x446   : > { %v3003_v37 = vsel %vm422_vm7, %v3001_v57, %v3002_v22  ;;  %v8917_v63 = vpop.permute.xlu2 %3217  ;;  %v8919_v58 = vpop.permute.xlu1 %3485  ;;  %v3678_v0 = vmul.f32 %v3663_v56, %v8925_v23  ;;  %v3676_v29 = vmul.f32 %v3665_v26, %v8931_v53  ;;  %v3677_v46 = vmul.f32 %v3664_v32, %v8933_v28 }
 0x447   : > { %v3004_v34 = vsel %vm424_vm8, %v3000_v54, %v3003_v37  ;;  %v8922_v55 = vpop.permute.xlu0 %3483  ;;  %v3675_v6 = vmul.f32 %v3666_v50, %v8939_v59  ;;  %v3673_v40 = vmul.f32 %v3668_v9, %v8955_v35  ;;  %v3674_v3 = vmul.f32 %v3667_v45, %v8957_v36 }
 0x448   : > { %3017 = vst [vmem:[#allocation2 + $0x127] ss:$8 sm:$0xf] %v3004_v34  ;;  %v3672_v15 = vmul.f32 %v3669_v25, %v8961_v30  ;;  %v3713_v17 = vrot.slane %v3678_v0, 1  ;;  %v3711_v39 = vrot.slane %v3676_v29, 3  ;;  %v3712_v54 = vrot.slane %v3677_v46, 2 }
 0x449   : > { %3018 = vst [vmem:[#allocation2 + $0x127] ss:$8 sm:$0xf0] %v3004_v34  ;;  %v8995_v34 = vperm.slane %v3028_v49, 0  ;;  %v3710_v26 = vrot.slane %v3675_v6, 4  ;;  %v3708_v50 = vrot.slane %v3673_v40, 6 }
 0x44a   : > { %v3709_v45 = vrot.slane %v3674_v3, 5  ;;  %v3707_v0 = vrot.slane %v3672_v15, 7  ;;  %v3726_v46 = vsel %vm420_vm6, %v3712_v54, %v3713_v17 }
 0x44b   : > { %v3725_v29 = vsel %vm418_vm5, %v3710_v26, %v3711_v39 }
 0x44c   : > { %2914 = vrot.lane.b32.xlu2 %v10897_v62, %s6007_s8  ;;  %2912 = vrot.lane.b32.xlu1 %v6108_v16, %s6007_s8  ;;  %v3723_v15 = vsel %vm414_vm2, %v3708_v50, %v3709_v45 }
 0x44d   : > { %2910 = vrot.lane.b32.xlu0 %v6092_v11, %s6007_s8 }
 0x44e   : > { %v8959_v2 = vpop.permute.xlu2 %3223  ;;  %v3492_v1 = vpop.permute.xlu1 %3491 }
 0x44f   : > { %v3490_v33 = vpop.permute.xlu0 %3489  ;;  %v3529_v37 = vsel %vm3517_vm12, %v3492_v1, %v8862_v10 }
 0x450   : > { %v3530_v57 = vsel %vm3517_vm12, %v3490_v33, %v3492_v1  ;;  %v3531_v22 = vsel %vm3517_vm12, %v8853_v8, %v3490_v33  ;;  %v3542_v33 = vmul.f32 %v3529_v37, %v8933_v28  ;;  %v3727_v37 = vsel %vm422_vm7, %v3725_v29, %v3726_v46 }
 0x451   : > { %v3540_v56 = vmul.f32 %v3531_v22, %v8939_v59  ;;  %v3541_v32 = vmul.f32 %v3530_v57, %v8931_v53 }
 0x452   : > { %v3577_v39 = vrot.slane %v3542_v33, 2 }
 0x453   : > { %v3575_v3 = vrot.slane %v3540_v56, 4  ;;  %v3576_v57 = vrot.slane %v3541_v32, 3 }
 0x454   : > { %2920 = vrot.lane.b32.xlu2 %v6123_v19, %s6007_s8  ;;  %2918 = vrot.lane.b32.xlu1 %v6125_v20, %s6007_s8 }
 0x455   : > { %2916 = vrot.lane.b32.xlu0 %v10890_v60, %s6007_s8 }
 0x456   : > { %v9001_v9 = vpop.permute.xlu2 %3348  ;;  %v3615_v1 = vpop.permute.xlu1 %3614 }
 0x457   : > { %v3670_v49 = vsel %vm3652_vm11, %v3615_v1, %v8822_v5  ;;  %v9007_v25 = vpop.permute.xlu0 %3495 }
 0x458   : > { %10903 = vst [vmem:[#allocation6_spill] sm:$0xff] %v9007_v25  ;;  %v3671_v6 = vmul.f32 %v3670_v49, %v8995_v34  ;;  %v3528_v40 = vsel %vm3517_vm12, %v8862_v10, %v9007_v25  ;;  %v3590_v10 = vsel %vm418_vm5, %v3575_v3, %v3576_v57 }
 0x459   : > { %v3543_v22 = vmul.f32 %v3528_v40, %v8925_v23 }
 0x45a   : > { %v3722_v5 = vsel %vm412_vm3, %v3671_v6, %v3707_v0 }
 0x45b   : > { %v3724_v17 = vsel %vm416_vm4, %v3722_v5, %v3723_v15  ;;  %v3578_v54 = vrot.slane %v3543_v22, 1 }
 0x45c   : > { %v3728_v26 = vsel %vm424_vm8, %v3724_v17, %v3727_v37  ;;  %3499 = vrot.lane.b32.xlu2 %v6092_v11, %s6008_s9  ;;  %3497 = vrot.lane.b32.xlu1 %v6094_v12, %s6008_s9 }
 0x45d   : > { %3741 = vst [vmem:[#allocation2 + $0x1b0] ss:$8 sm:$0xf] %v3728_v26  ;;  %v3591_v56 = vsel %vm420_vm6, %v3577_v39, %v3578_v54  ;;  %2922 = vrot.lane.b32.xlu0 %v6120_v18, %s6007_s8 }
 0x45e   : > { %3742 = vst [vmem:[#allocation2 + $0x1b0] ss:$8 sm:$0xf0] %v3728_v26  ;;  %v9032_v32 = vsel %vm422_vm7, %v3590_v10, %v3591_v56  ;;  %v9034_v50 = vpop.permute.xlu2 %3354  ;;  %v3216_v45 = vpop.permute.xlu1 %3215 }
 0x45f   : > { %v3262_v1 = vsel %vm3247_vm13, %v3216_v45, %v8917_v63  ;;  %v9039_v0 = vpop.permute.xlu0 %3213 }
 0x460   : > { %v3269_v33 = vmul.f32 %v3262_v1, %v8957_v36  ;;  %v3263_v49 = vsel %vm3247_vm13, %v9039_v0, %v3216_v45 }
 0x461   : > { %v3268_v29 = vmul.f32 %v3263_v49, %v8955_v35 }
 0x462   : > { %v3304_v46 = vrot.slane %v3269_v33, 5 }
 0x463   : > { %v3303_v6 = vrot.slane %v3268_v29, 6 }
 0x464   : > { %3505 = vrot.lane.b32.xlu2 %v10890_v60, %s6008_s9  ;;  %3503 = vrot.lane.b32.xlu1 %v10897_v62, %s6008_s9  ;;  %v3811_v40 = vld [vmem:[#allocation2 + $0x1b0] sm:$0x1]  ;;  %v3812_v3 = vld [vmem:[#allocation2 + $0x1b8] sm:$0x1] }
 0x465   : > { %v9051_v57 = vsel %vm414_vm2, %v3303_v6, %v3304_v46  ;;  %3501 = vrot.lane.b32.xlu0 %v6108_v16, %s6008_s9  ;;  %5756 = vmatpush.msk.msra.mxu0 %vm412_vm3, %v3811_v40 }
 0x466   : > { %5920 = vmatpush.msk.msra.mxu2 %vm412_vm3, %v3811_v40  ;;  %5765 = vmatpush.msk.msra.mxu1 %vm412_vm3, %v3812_v3  ;;  %v9058_v22 = vpop.permute.xlu2 %3360  ;;  %v3222_v15 = vpop.permute.xlu1 %3221 }
 0x467   : > { %10904 = vst [vmem:[#allocation9_spill] sm:$0xff] %v9058_v22  ;;  %5924 = vmatpush.msk.msra.mxu3 %vm412_vm3, %v3812_v3  ;;  %v3220_v5 = vpop.permute.xlu0 %3219  ;;  %v3259_v17 = vsel %vm3247_vm13, %v3222_v15, %v8959_v2 }
 0x468   : > { %v3260_v37 = vsel %vm3247_vm13, %v3220_v5, %v3222_v15  ;;  %v3261_v39 = vsel %vm3247_vm13, %v8917_v63, %v3220_v5  ;;  %v3272_v56 = vmul.f32 %v3259_v17, %v8933_v28 }
 0x469   : > { %v3270_v54 = vmul.f32 %v3261_v39, %v8939_v59  ;;  %v3271_v26 = vmul.f32 %v3260_v37, %v8931_v53 }
 0x46a   : > { %v3307_v46 = vrot.slane %v3272_v56, 2  ;;  %v3533_v56 = vsel %vm3517_vm12, %v8922_v55, %v8919_v58 }
 0x46b   : > { %v3305_v33 = vrot.slane %v3270_v54, 4  ;;  %v3306_v49 = vrot.slane %v3271_v26, 3  ;;  %v3532_v26 = vsel %vm3517_vm12, %v8919_v58, %v8853_v8 }
 0x46c   : > { %3511 = vrot.lane.b32.xlu2 %v6120_v18, %s6008_s9  ;;  %3509 = vrot.lane.b32.xlu1 %v6123_v19, %s6008_s9 }
 0x46d   : > { %3507 = vrot.lane.b32.xlu0 %v6125_v20, %s6008_s9  ;;  %v3320_v40 = vsel %vm418_vm5, %v3305_v33, %v3306_v49  ;;  %v10907_v33 = vld [vmem:[#allocation7_spill] sm:$0xff] }
 0x46e   : > { %v9077_v10 = vpop.permute.xlu2 %3039  ;;  %v9079_v63 = vpop.permute.xlu1 %3346 }
 0x46f   : > { %v9082_v45 = vpop.permute.xlu0 %3225 }
 0x470   : > { %10905 = vst [vmem:[#allocation3_spill] sm:$0xff] %v9082_v45  ;;  %v3258_v1 = vsel %vm3247_vm13, %v8959_v2, %v9082_v45 }
 0x471   : > { %v3273_v29 = vmul.f32 %v3258_v1, %v8925_v23  ;;  %v5966_v1 = vld [vmem:[%s6052_s20] sm:$0xff] }
 0x472   : > { %v207_v49 = vmul.f32 %v5966_v1, %v10907_v33 }
 0x473   : > { %v3308_v6 = vrot.slane %v3273_v29, 1  ;;  %v3534_v29 = vsel %vm3517_vm12, %v8841_v4, %v8922_v55 }
 0x474   : > { %3231 = vrot.lane.b32.xlu2 %v6092_v11, %s6009_s10  ;;  %3229 = vrot.lane.b32.xlu1 %v6094_v12, %s6009_s10  ;;  %210 = vst [vmem:[#allocation2] ss:$8 sm:$0xf] %v207_v49  ;;  %v3537_v8 = vmul.f32 %v3534_v29, %v8961_v30 }
 0x475   : > { %v3321_v3 = vsel %vm420_vm6, %v3307_v46, %v3308_v6  ;;  %3227 = vrot.lane.b32.xlu0 %v6096_v13, %s6009_s10  ;;  %v3539_v46 = vmul.f32 %v3532_v26, %v8957_v36  ;;  %v3538_v6 = vmul.f32 %v3533_v56, %v8955_v35  ;;  %211 = vst [vmem:[#allocation2] ss:$8 sm:$0xf0] %v207_v49 }
 0x476   : > { %v9098_v2 = vsel %vm422_vm7, %v3320_v40, %v3321_v3  ;;  %v9100_v15 = vpop.permute.xlu2 %3045  ;;  %v3353_v5 = vpop.permute.xlu1 %3352  ;;  %v3572_v56 = vrot.slane %v3537_v8, 7 }
 0x477   : > { %v3351_v37 = vpop.permute.xlu0 %3350  ;;  %v3574_v55 = vrot.slane %v3539_v46, 5  ;;  %v3573_v3 = vrot.slane %v3538_v6, 6 }
 0x479   : > { %v3588_v49 = vsel %vm414_vm2, %v3573_v3, %v3574_v55  ;;  %v3399_v55 = vsel %vm3382_vm14, %v9079_v63, %v9001_v9  ;;  %v3264_v3 = vsel %vm3247_vm13, %v8885_v38, %v9039_v0  ;;  %v3396_v0 = vsel %vm3382_vm14, %v3353_v5, %v9034_v50 }
 0x47c   : > { %3237 = vrot.lane.b32.xlu2 %v10890_v60, %s6009_s10  ;;  %3235 = vrot.lane.b32.xlu1 %v10897_v62, %s6009_s10 }
 0x47d   : > { %3233 = vrot.lane.b32.xlu0 %v6108_v16, %s6009_s10 }
 0x47e   : > { %v9108_v39 = vpop.permute.xlu2 %3051  ;;  %v3359_v17 = vpop.permute.xlu1 %3358 }
 0x47f   : > { %10906 = vst [vmem:[#allocation12_spill] sm:$0xff] %v9108_v39  ;;  %v3357_v54 = vpop.permute.xlu0 %3356 }
 0x484   : > { %3362 = vrot.lane.b32.xlu2 %v6096_v13, %s6010_s11  ;;  %3241 = vrot.lane.b32.xlu1 %v6123_v19, %s6009_s10 }
 0x485   : > { %3239 = vrot.lane.b32.xlu0 %v6125_v20, %s6009_s10 }
 0x486   : > { %v3036_v58 = vpop.permute.xlu2 %3035  ;;  %v3038_v40 = vpop.permute.xlu1 %3037 }
 0x487   : > { %v3480_v1 = vpop.permute.xlu0 %3479 }
 0x488   : > { %v3535_v26 = vsel %vm3517_vm12, %v3480_v1, %v8841_v4  ;;  %v3090_v1 = vsel %vm3073_vm15, %v3038_v40, %v9077_v10 }
 0x489   : > { %v3536_v33 = vmul.f32 %v3535_v26, %v8995_v34  ;;  %v3393_v26 = vsel %vm3382_vm14, %v3359_v17, %v9058_v22 }
 0x48b   : > { %v3587_v24 = vsel %vm412_vm3, %v3536_v33, %v3572_v56  ;;  %v3395_v56 = vsel %vm3382_vm14, %v9034_v50, %v3357_v54  ;;  %v3394_v50 = vsel %vm3382_vm14, %v3357_v54, %v3359_v17 }
 0x48c   : > { %v3589_v29 = vsel %vm416_vm4, %v3587_v24, %v3588_v49  ;;  %3368 = vrot.lane.b32.xlu2 %v6108_v16, %s6010_s11  ;;  %3366 = vrot.lane.b32.xlu1 %v6092_v11, %s6010_s11  ;;  %v3406_v44 = vmul.f32 %v3395_v56, %v8931_v53  ;;  %v3407_v56 = vmul.f32 %v3394_v50, %v8933_v28 }
 0x48d   : > { %v3593_v46 = vsel %vm424_vm8, %v3589_v29, %v9032_v32  ;;  %3364 = vrot.lane.b32.xlu0 %v6094_v12, %s6010_s11  ;;  %v9177_v29 = vmul.f32 %v3399_v55, %v8961_v30  ;;  %v3408_v55 = vmul.f32 %v3393_v26, %v8925_v23 }
 0x48e   : > { %3606 = vst [vmem:[#allocation2 + $0x123] ss:$8 sm:$0xf] %v3593_v46  ;;  %v9149_v4 = vpop.permute.xlu2 %3636  ;;  %v3044_v6 = vpop.permute.xlu1 %3043 }
 0x48f   : > { %3607 = vst [vmem:[#allocation2 + $0x123] ss:$8 sm:$0xf0] %v3593_v46  ;;  %v3042_v24 = vpop.permute.xlu0 %3041  ;;  %v3397_v46 = vsel %vm3382_vm14, %v3351_v37, %v3353_v5  ;;  %v3091_v5 = vsel %vm3073_vm15, %v3036_v58, %v3038_v40 }
 0x490   : > { %v3088_v8 = vsel %vm3073_vm15, %v3042_v24, %v3044_v6  ;;  %v3089_v32 = vsel %vm3073_vm15, %v9077_v10, %v3042_v24  ;;  %v3087_v10 = vsel %vm3073_vm15, %v3044_v6, %v9100_v15  ;;  %v3398_v24 = vsel %vm3382_vm14, %v9001_v9, %v3351_v37 }
 0x491   : > { %v3133_v33 = vmul.f32 %v8955_v35, %v3089_v32  ;;  %v3134_v49 = vmul.f32 %v8957_v36, %v3088_v8  ;;  %v3132_v8 = vmul.f32 %v8961_v30, %v3090_v1  ;;  %v3135_v17 = vmul.f32 %v8939_v59, %v3087_v10 }
 0x492   : > { %v3404_v50 = vmul.f32 %v3397_v46, %v8957_v36 }
 0x493   : > { %v3168_v54 = vrot.slane %v3133_v33, 6  ;;  %v3169_v1 = vrot.slane %v3134_v49, 5  ;;  %v3405_v33 = vmul.f32 %v3396_v0, %v8939_v59  ;;  %v3167_v49 = vrot.slane %v3132_v8, 7 }
 0x494   : > { %3374 = vrot.lane.b32.xlu2 %v6125_v20, %s6010_s11  ;;  %3372 = vrot.lane.b32.xlu1 %v10890_v60, %s6010_s11  ;;  %v3170_v45 = vrot.slane %v3135_v17, 4  ;;  %v3443_v59 = vrot.slane %v3408_v55, 1  ;;  %v3442_v0 = vrot.slane %v3407_v56, 2 }
 0x495   : > { %3370 = vrot.lane.b32.xlu0 %v10897_v62, %s6010_s11  ;;  %v3793_v6 = vld [vmem:[#allocation2 + $0x120] sm:$0xff]  ;;  %v3794_v32 = vld [vmem:[#allocation2 + $0x128] sm:$0xff] }
 0x496   : > { %3987 = vmatpush.msra.mxu0 %v3793_v6  ;;  %5921 = vmatpush.msra.mxu2 %v3793_v6  ;;  %v9203_v9 = vpop.permute.xlu2 %3642  ;;  %v3050_v37 = vpop.permute.xlu1 %3049 }
 0x497   : > { %4028 = vmatpush.msra.mxu1 %v3794_v32  ;;  %5925 = vmatpush.msra.mxu3 %v3794_v32  ;;  %v3084_v26 = vsel %vm3073_vm15, %v3050_v37, %v9108_v39  ;;  %v3048_v22 = vpop.permute.xlu0 %3047  ;;  %v3403_v39 = vmul.f32 %v3398_v24, %v8955_v35 }
 0x498   : > { %v3138_v58 = vmul.f32 %v8925_v23, %v3084_v26  ;;  %v3085_v40 = vsel %vm3073_vm15, %v3048_v22, %v3050_v37  ;;  %v3086_v10 = vsel %vm3073_vm15, %v9100_v15, %v3048_v22  ;;  %v3131_v23 = vmul.f32 %v8995_v34, %v3091_v5 }
 0x499   : > { %v3136_v6 = vmul.f32 %v8931_v53, %v3086_v10  ;;  %v3137_v32 = vmul.f32 %v8933_v28, %v3085_v40  ;;  %v3183_v37 = vsel %vm414_vm2, %v3168_v54, %v3169_v1  ;;  %v3267_v22 = vmul.f32 %v3264_v3, %v8961_v30 }
 0x49a   : > { %v3173_v26 = vrot.slane %v3138_v58, 1  ;;  %v3441_v15 = vrot.slane %v3406_v44, 3  ;;  %v3440_v53 = vrot.slane %v3405_v33, 4  ;;  %v3182_v28 = vsel %vm412_vm3, %v3131_v23, %v3167_v49 }
 0x49b   : > { %v3171_v25 = vrot.slane %v3136_v6, 3  ;;  %v3172_v47 = vrot.slane %v3137_v32, 2  ;;  %v3438_v30 = vrot.slane %v3403_v39, 6  ;;  %v3439_v3 = vrot.slane %v3404_v50, 5 }
 0x49c   : > { %3055 = vrot.lane.b32.xlu2 %v6094_v12, %s6011_s12  ;;  %3053 = vrot.lane.b32.xlu1 %v6096_v13, %s6011_s12  ;;  %v3184_v44 = vsel %vm416_vm4, %v3182_v28, %v3183_v37  ;;  %v3437_v13 = vrot.slane %v9177_v29, 7  ;;  %v3456_v39 = vsel %vm420_vm6, %v3442_v0, %v3443_v59  ;;  %v3302_v17 = vrot.slane %v3267_v22, 7 }
 0x49d   : > { %v3185_v35 = vsel %vm418_vm5, %v3170_v45, %v3171_v25  ;;  %v3186_v36 = vsel %vm420_vm6, %v3172_v47, %v3173_v26  ;;  %3376 = vrot.lane.b32.xlu0 %v6123_v19, %s6010_s11  ;;  %v3455_v45 = vsel %vm418_vm5, %v3440_v53, %v3441_v15  ;;  %v3453_v54 = vsel %vm414_vm2, %v3438_v30, %v3439_v3  ;;  %v3814_v30 = vld [vmem:[#allocation2 + $0x1c8] sm:$0x1] }
 0x49e   : > { %v3187_v46 = vsel %vm422_vm7, %v3185_v35, %v3186_v36  ;;  %v9235_v12 = vpop.permute.xlu2 %2908  ;;  %v3345_v24 = vpop.permute.xlu1 %3344  ;;  %v3457_v1 = vsel %vm422_vm7, %v3455_v45, %v3456_v39  ;;  %v3813_v36 = vld [vmem:[#allocation2 + $0x1c0] sm:$0x1] }
 0x49f   : > { %v3188_v8 = vsel %vm424_vm8, %v3184_v44, %v3187_v46  ;;  %v3400_v47 = vsel %vm3382_vm14, %v3345_v24, %v9079_v63  ;;  %v3210_v25 = vpop.permute.xlu0 %3209  ;;  %v3815_v46 = vld [vmem:[#allocation2 + $0x1d0] sm:$0x1]  ;;  %v3816_v24 = vld [vmem:[#allocation2 + $0x1d8] sm:$0x1] }
 0x4a0   : > { %3201 = vst [vmem:[#allocation2 + $0x4] ss:$8 sm:$0xf] %v3188_v8  ;;  %v3401_v55 = vmul.f32 %v3400_v47, %v8995_v34  ;;  %v3265_v5 = vsel %vm3247_vm13, %v3210_v25, %v8885_v38  ;;  %v3795_v47 = vld [vmem:[#allocation2 + $0x130] sm:$0xff]  ;;  %v3796_v25 = vld [vmem:[#allocation2 + $0x138] sm:$0xff] }
 0x4a1   : > { %3202 = vst [vmem:[#allocation2 + $0x4] ss:$8 sm:$0xf0] %v3188_v8  ;;  %v3266_v29 = vmul.f32 %v3265_v5, %v8995_v34  ;;  %v3798_v5 = vld [vmem:[#allocation2 + $0x148] sm:$0xff] }
 0x4a2   : > { %v3452_v63 = vsel %vm412_vm3, %v3401_v55, %v3437_v13  ;;  %v3797_v55 = vld [vmem:[#allocation2 + $0x140] sm:$0xff] }
 0x4a3   : > { %v3454_v56 = vsel %vm416_vm4, %v3452_v63, %v3453_v54  ;;  %v3317_v58 = vsel %vm412_vm3, %v3266_v29, %v3302_v17 }
 0x4a4   : > { %v3458_v40 = vsel %vm424_vm8, %v3454_v56, %v3457_v1  ;;  %v3319_v10 = vsel %vm416_vm4, %v3317_v58, %v9051_v57  ;;  %3061 = vrot.lane.b32.xlu2 %v10897_v62, %s6011_s12  ;;  %3059 = vrot.lane.b32.xlu1 %v6108_v16, %s6011_s12  ;;  %v5737_v62 = vld [vmem:[%s10850_s2 + $0x44] ss:$8 sm:$0xf] }
 0x4a5   : > { %3471 = vst [vmem:[#allocation2 + $0x96] ss:$8 sm:$0xf] %v3458_v40  ;;  %v3323_v38 = vsel %vm424_vm8, %v3319_v10, %v9098_v2  ;;  %3057 = vrot.lane.b32.xlu0 %v6092_v11, %s6011_s12  ;;  %v5738_v16 = vld [vmem:[%s10850_s2 + $0x44] ss:$8 sm:$0xf0] }
 0x4a6   : > { %3472 = vst [vmem:[#allocation2 + $0x96] ss:$8 sm:$0xf0] %v3458_v40  ;;  %v9265_v34 = vpop.permute.xlu2 %2914  ;;  %v3635_v33 = vpop.permute.xlu1 %3634  ;;  %v3032_v57 = vor.u32 %v5738_v16, %v5737_v62 }
 0x4a7   : > { %3336 = vst [vmem:[#allocation2 + $0x91] ss:$8 sm:$0xf] %v3323_v38  ;;  %v3633_v49 = vpop.permute.xlu0 %3632  ;;  %v3660_v22 = vsel %vm3652_vm11, %v3635_v33, %v9149_v4  ;;  %v3758_v53 = vld [vmem:[#allocation2 + $0x8] sm:$0xff] }
 0x4a8   : > { %3337 = vst [vmem:[#allocation2 + $0x91] ss:$8 sm:$0xf0] %v3323_v38  ;;  %v9281_v50 = vperm.slane %v3032_v57, 3  ;;  %v9283_v26 = vperm.slane %v3032_v57, 2  ;;  %v9285_v37 = vperm.slane %v3032_v57, 1  ;;  %v3661_v59 = vsel %vm3652_vm11, %v3633_v49, %v3635_v33 }
 0x4a9   : > { %v9300_v15 = vperm.slane %v3032_v57, 5  ;;  %v9302_v0 = vperm.slane %v3032_v57, 4  ;;  %v9322_v45 = vperm.slane %v3032_v57, 6  ;;  %v9324_v39 = vperm.slane %v3032_v57, 7 }
 0x4aa   : > { %v3681_v3 = vmul.f32 %v3660_v22, %v9283_v26  ;;  %v3680_v44 = vmul.f32 %v3661_v59, %v9285_v37  ;;  %v9330_v54 = vperm.slane %v3032_v57, 0  ;;  %v3662_v63 = vsel %vm3652_vm11, %v8793_v51, %v3633_v49  ;;  %v3760_v22 = vld [vmem:[#allocation2 + $0x18] sm:$0xff]  ;;  %v3761_v59 = vld [vmem:[#allocation2 + $0x20] sm:$0xff] }
 0x4ac   : > { %3067 = vrot.lane.b32.xlu2 %v6123_v19, %s6011_s12  ;;  %3065 = vrot.lane.b32.xlu1 %v6125_v20, %s6011_s12  ;;  %v3757_v20 = vld [vmem:[#allocation2] sm:$0xff]  ;;  %v3715_v58 = vrot.slane %v3681_v3, 6  ;;  %v3714_v40 = vrot.slane %v3680_v44, 7  ;;  %v3818_v3 = vld [vmem:[#allocation2 + $0x1e8] sm:$0x1] }
 0x4ad   : > { %3063 = vrot.lane.b32.xlu0 %v10890_v60, %s6011_s12  ;;  %v9293_v60 = vld [vmem:[%s10849_s1 + $0x20] sm:$0xff] }
 0x4ae   : > { %v3775_v11 = vld [vmem:[#allocation2 + $0x90] sm:$0xff]  ;;  %v3776_v2 = vld [vmem:[#allocation2 + $0x98] sm:$0xff]  ;;  %v9279_v6 = vpop.permute.xlu2 %2920  ;;  %v3641_v32 = vpop.permute.xlu1 %3640  ;;  %v3777_v10 = vld [vmem:[#allocation2 + $0xa0] sm:$0xff] }
 0x4af   : > { %3988 = vmatpush.msra.mxu0 %v3775_v11  ;;  %5922 = vmatpush.msra.mxu2 %v3775_v11  ;;  %v3639_v23 = vpop.permute.xlu0 %3638  ;;  %v3657_v28 = vsel %vm3652_vm11, %v3641_v32, %v9203_v9  ;;  %v3778_v62 = vld [vmem:[#allocation2 + $0xa8] sm:$0xff]  ;;  %v3779_v16 = vld [vmem:[#allocation2 + $0xb0] sm:$0xff] }
 0x4b0   : > { %4029 = vmatpush.msra.mxu1 %v3776_v2  ;;  %5926 = vmatpush.msra.mxu3 %v3776_v2  ;;  %v3659_v19 = vsel %vm3652_vm11, %v9149_v4, %v3639_v23  ;;  %v3658_v35 = vsel %vm3652_vm11, %v3639_v23, %v3641_v32  ;;  %v3684_v13 = vmul.f32 %v3657_v28, %v9300_v15  ;;  %v3780_v2 = vld [vmem:[#allocation2 + $0xb8] sm:$0xff]  ;;  %v3759_v32 = vld [vmem:[#allocation2 + $0x10] sm:$0xff]  ;;  %v3762_v28 = vld [vmem:[#allocation2 + $0x28] sm:$0xff] }
 0x4b1   : > { %3989 = vmatpush.msra.mxu0 %v3757_v20  ;;  %5923 = vmatpush.msra.mxu2 %v3757_v20  ;;  %v3682_v4 = vmul.f32 %v3659_v19, %v9281_v50  ;;  %v3683_v8 = vmul.f32 %v3658_v35, %v9302_v0  ;;  %v3679_v23 = vmul.f32 %v3662_v63, %v9330_v54  ;;  %v3817_v35 = vld [vmem:[#allocation2 + $0x1e0] sm:$0x1] }
 0x4b2   : > { %4030 = vmatpush.msra.mxu1 %v3758_v53  ;;  %5927 = vmatpush.msra.mxu3 %v3758_v53  ;;  %v3718_v33 = vrot.slane %v3684_v13, 3  ;;  %v9354_v53 = vld [vmem:[%s10849_s1 + $0x28] sm:$0xff]  ;;  %v9375_v63 = vld [vmem:[%s10849_s1] sm:$0xff] }
 0x4b3   : > { %5761 = vmatmul.msk.f32.vlgmr.msra.gmra.mxu2 %vm3895_vm0, %v9293_v60  ;;  %5770 = vmatmul.msk.f32.vlgmr.msra.gmra.mxu3 %vm3895_vm0, %v9293_v60  ;;  %v3716_v1 = vrot.slane %v3682_v4, 5  ;;  %v3717_v49 = vrot.slane %v3683_v8, 4  ;;  %v3729_v4 = vsel %vm412_vm3, %v3679_v23, %v3714_v40  ;;  %v9384_v40 = vld [vmem:[%s10849_s1 + $0x30] sm:$0xff] }
 0x4b4   : > { %5774 = vmatpush.msk.msrb.mxu2 %vm412_vm3, %v3813_v36  ;;  %5783 = vmatpush.msk.msrb.mxu3 %vm412_vm3, %v3814_v30 }
 0x4b5   : > { %5792 = vmatpush.msk.msrb.mxu0 %vm412_vm3, %v3815_v46  ;;  %5801 = vmatpush.msk.msrb.mxu1 %vm412_vm3, %v3816_v24  ;;  %v3732_v36 = vsel %vm418_vm5, %v3717_v49, %v3718_v33  ;;  %v3799_v24 = vld [vmem:[#allocation2 + $0x150] sm:$0xff] }
 0x4b6   : > { %4069 = vmatpush.msrb.mxu2 %v3795_v47  ;;  %4110 = vmatpush.msrb.mxu3 %v3796_v25  ;;  %v9326_v17 = vpop.permute.xlu2 %3499  ;;  %v9328_v29 = vpop.permute.xlu1 %3646  ;;  %v3800_v25 = vld [vmem:[#allocation2 + $0x158] sm:$0xff] }
 0x4b7   : > { %4151 = vmatpush.msrb.mxu0 %v3797_v55  ;;  %4192 = vmatpush.msrb.mxu1 %v3798_v5  ;;  %v3645_v56 = vpop.permute.xlu0 %3644  ;;  %v3781_v5 = vld [vmem:[#allocation2 + $0xc0] sm:$0xff] }
 0x4b8   : > { %2924 = vrot.lane.b32.xlu2 %v6134_v21, %s6007_s8  ;;  %3650 = vrot.lane.b32.xlu1 %v10901_v61, %s6006_s7  ;;  %v3655_v38 = vsel %vm3652_vm11, %v3645_v56, %v9328_v29  ;;  %v3656_v51 = vsel %vm3652_vm11, %v9203_v9, %v3645_v56  ;;  %v3730_v9 = vsel %vm414_vm2, %v3715_v58, %v3716_v1  ;;  %v3782_v1 = vld [vmem:[#allocation2 + $0xc8] sm:$0xff]  ;;  %v3763_v56 = vld [vmem:[#allocation2 + $0x30] sm:$0xff]  ;;  %v3764_v58 = vld [vmem:[#allocation2 + $0x38] sm:$0xff] }
 0x4b9   : > { %3648 = vrot.lane.b32.xlu0 %v6134_v21, %s6006_s7  ;;  %4070 = vmatpush.msrb.mxu2 %v3777_v10  ;;  %v3685_v57 = vmul.f32 %v3656_v51, %v9322_v45  ;;  %v3686_v11 = vmul.f32 %v3655_v38, %v9324_v39  ;;  %v3731_v44 = vsel %vm416_vm4, %v3729_v4, %v3730_v9  ;;  %v6012_v10 = vmov 0  }
 0x4ba   : > { %4111 = vmatpush.msrb.mxu3 %v3778_v62  ;;  %4152 = vmatpush.msrb.mxu0 %v3779_v16 }
 0x4bb   : > { %4193 = vmatpush.msrb.mxu1 %v3780_v2  ;;  %v3719_v19 = vrot.slane %v3685_v57, 2  ;;  %v3720_v20 = vrot.slane %v3686_v11, 1  ;;  %4071 = vmatpush.msrb.mxu2 %v3759_v32  ;;  %v9410_v11 = vld [vmem:[%s10849_s1 + $0x8] sm:$0xff] }
 0x4bc   : > { %4112 = vmatpush.msrb.mxu3 %v3760_v22  ;;  %4153 = vmatpush.msrb.mxu0 %v3761_v59 }
 0x4bd   : > { %v3733_v30 = vsel %vm420_vm6, %v3719_v19, %v3720_v20  ;;  %4194 = vmatpush.msrb.mxu1 %v3762_v28  ;;  %5810 = vmatpush.msk.msra.mxu2 %vm412_vm3, %v3817_v35  ;;  %v9428_v20 = vld [vmem:[%s10849_s1 + $0x38] sm:$0xff] }
 0x4be   : > { %v3734_v46 = vsel %vm422_vm7, %v3732_v36, %v3733_v30  ;;  %5819 = vmatpush.msk.msra.mxu3 %vm412_vm3, %v3818_v3  ;;  %5762 = vmatmul.msk.f32.gmra.mxu2 %vm3895_vm0, %v9354_v53  ;;  %v9365_v13 = vpop.permute.xlu2 %3505  ;;  %v2913_v8 = vpop.permute.xlu1 %2912  ;;  %v10908_v3 = vld [vmem:[#allocation4_spill] sm:$0xff] }
 0x4bf   : > { %v3735_v47 = vsel %vm424_vm8, %v3731_v44, %v3734_v46  ;;  %5771 = vmatmul.msk.f32.gmra.mxu3 %vm3895_vm0, %v9354_v53  ;;  %4233 = vmatpush.msra.mxu2 %v3799_v24  ;;  %v2911_v55 = vpop.permute.xlu0 %2910  ;;  %v2935_v62 = vsel %vm2928_vm10, %v2913_v8, %v9265_v34 }
 0x4c0   : > { %3744 = vst [vmem:[#allocation2 + $0x1f0] ss:$8 sm:$0xf] %v3735_v47  ;;  %4274 = vmatpush.msra.mxu3 %v3800_v25  ;;  %3515 = vrot.lane.b32.xlu2 %v10901_v61, %s6008_s9  ;;  %v2936_v16 = vsel %vm2928_vm10, %v2911_v55, %v2913_v8  ;;  %v2937_v57 = vsel %vm2928_vm10, %v9235_v12, %v2911_v55 }
 0x4c1   : > { %3745 = vst [vmem:[#allocation2 + $0x1f0] ss:$8 sm:$0xf0] %v3735_v47  ;;  %4234 = vmatpush.msra.mxu2 %v3781_v5  ;;  %3513 = vrot.lane.b32.xlu1 %v6134_v21, %s6008_s9  ;;  %v2958_v23 = vmul.f32 %v2935_v62, %v8335_v42  ;;  %v2956_v9 = vmul.f32 %v2937_v57, %v8342_v7  ;;  %v3830_v5 = vld [vmem:[%s10851_s3 + $0x8] sm:$0xff]  ;;  %v9505_v62 = vld [vmem:[%s10849_s1 + $0x18] sm:$0xff] }
 0x4c2   : > { %4275 = vmatpush.msra.mxu3 %v3782_v1  ;;  %2926 = vrot.lane.b32.xlu0 %v10901_v61, %s6007_s8  ;;  %v2957_v19 = vmul.f32 %v2936_v16, %v8344_v48  ;;  %v2938_v48 = vsel %vm2928_vm10, %v8887_v43, %v9235_v12  ;;  %v9461_v43 = vld [vmem:[%s10849_s1 + $0x10] sm:$0xff] }
 0x4c3   : > { %4235 = vmatpush.msra.mxu2 %v3763_v56  ;;  %5757 = vmatmul.msk.f32.vlgmr.msra.gmra.mxu0 %vm3895_vm0, %v9375_v63  ;;  %v2992_v28 = vrot.slane %v2958_v23, 5  ;;  %v2990_v35 = vrot.slane %v2956_v9, 7  ;;  %v10909_v9 = vld [vmem:[#allocation6_spill] sm:$0xff] }
 0x4c4   : > { %4276 = vmatpush.msra.mxu3 %v3764_v58  ;;  %5766 = vmatmul.msk.f32.vlgmr.msra.gmra.mxu1 %vm3895_vm0, %v9375_v63  ;;  %v2991_v4 = vrot.slane %v2957_v19, 6 }
 0x4c5   : > { %5964 = vset.pattern.permute.xlu1 %v6012_v10  ;;  %5963 = vset.pattern.permute.xlu0 %v6012_v10 }
 0x4c6   : > { %5763 = vmatmul.msk.f32.gmra.mxu2 %vm3895_vm0, %v9384_v40  ;;  %v9392_v61 = vpop.permute.xlu2 %3511  ;;  %v2919_v38 = vpop.permute.xlu1 %2918  ;;  %5965 = vset.pattern.permute.xlu2 %v6012_v10  ;;  %v3006_v46 = vsel %vm414_vm2, %v2991_v4, %v2992_v28 }
 0x4c7   : > { %5772 = vmatmul.msk.f32.gmra.mxu3 %vm3895_vm0, %v9384_v40  ;;  %v2917_v51 = vpop.permute.xlu0 %2916  ;;  %v3819_v33 = vld [vmem:[#allocation2 + $0x1f0] sm:$0x1]  ;;  %v3820_v49 = vld [vmem:[#allocation2 + $0x1f8] sm:$0x1]  ;;  %v2932_v22 = vsel %vm2928_vm10, %v2919_v38, %v9279_v6  ;;  %v3821_v55 = vld [vmem:[#allocation2 + $0x200] sm:$0x1] }
 0x4c8   : > { %3378 = vrot.lane.b32.xlu2 %v6120_v18, %s6010_s11  ;;  %5828 = vmatpush.msk.msra.mxu0 %vm412_vm3, %v3819_v33  ;;  %v2933_v2 = vsel %vm2928_vm10, %v2917_v51, %v2919_v38  ;;  %v2934_v32 = vsel %vm2928_vm10, %v9265_v34, %v2917_v51  ;;  %v2961_v36 = vmul.f32 %v2932_v22, %v8366_v14  ;;  %v3822_v10 = vld [vmem:[#allocation2 + $0x208] sm:$0x1]  ;;  %v3829_v38 = vld [vmem:[%s10851_s3] sm:$0xff]  ;;  %v3832_v22 = vld [vmem:[%s10851_s3 + $0x18] sm:$0xff] }
 0x4c9   : > { %3245 = vrot.lane.b32.xlu1 %v6134_v21, %s6009_s10  ;;  %5837 = vmatpush.msk.msra.mxu1 %vm412_vm3, %v3820_v49  ;;  %v2959_v42 = vmul.f32 %v2934_v32, %v8351_v41  ;;  %v2960_v7 = vmul.f32 %v2933_v2, %v8353_v27  ;;  %v2955_v14 = vmul.f32 %v2938_v48, %v8377_v52 }
 0x4ca   : > { %3243 = vrot.lane.b32.xlu0 %v6120_v18, %s6009_s10  ;;  %v2995_v24 = vrot.slane %v2961_v36, 2 }
 0x4cb   : > { %5758 = vmatmul.msk.f32.gmra.mxu0 %vm3895_vm0, %v9410_v11  ;;  %v2993_v12 = vrot.slane %v2959_v42, 4  ;;  %v2994_v30 = vrot.slane %v2960_v7, 3 }
 0x4cc   : > { %5767 = vmatmul.msk.f32.gmra.mxu1 %vm3895_vm0, %v9410_v11 }
 0x4cd   : > { %v3008_v52 = vsel %vm418_vm5, %v2993_v12, %v2994_v30 }
 0x4ce   : > { %5764 = vmatmul.msk.f32.gmra.mxu2 %vm3895_vm0, %v9428_v20  ;;  %v9445_v34 = vpop.permute.xlu2 %3231  ;;  %v3498_v59 = vpop.permute.xlu1 %3497 }
 0x4cf   : > { %5773 = vmatmul.msk.f32.gmra.mxu3 %vm3895_vm0, %v9428_v20  ;;  %v9450_v41 = vpop.permute.xlu0 %2922  ;;  %v3526_v16 = vsel %vm3517_vm12, %v3498_v59, %v9326_v17  ;;  %v3527_v19 = vsel %vm3517_vm12, %v10909_v9, %v3498_v59  ;;  %v3834_v59 = vld [vmem:[%s10851_s3 + $0x28] sm:$0xff] }
 0x4d0   : > { %v2931_v27 = vsel %vm2928_vm10, %v9279_v6, %v9450_v41  ;;  %3071 = vrot.lane.b32.xlu2 %v6134_v21, %s6011_s12  ;;  %v3005_v6 = vsel %vm412_vm3, %v2955_v14, %v2990_v35  ;;  %v3545_v23 = vmul.f32 %v3526_v16, %v9285_v37  ;;  %v5743_v16 = vld [vmem:[%s10851_s3 + $0x58] sm:$0xff] }
 0x4d1   : > { %3069 = vrot.lane.b32.xlu1 %v6120_v18, %s6011_s12  ;;  %v2962_v44 = vmul.f32 %v2931_v27, %v10908_v3  ;;  %v3007_v47 = vsel %vm416_vm4, %v3005_v6, %v3006_v46  ;;  %v3544_v6 = vmul.f32 %v3527_v19, %v9330_v54 }
 0x4d2   : > { %3380 = vrot.lane.b32.xlu0 %v6134_v21, %s6010_s11  ;;  %v3831_v21 = vld [vmem:[%s10851_s3 + $0x10] sm:$0xff]  ;;  %v3579_v30 = vrot.slane %v3545_v23, 7 }
 0x4d3   : > { %v2996_v8 = vrot.slane %v2962_v44, 1  ;;  %5759 = vmatmul.msk.f32.gmra.mxu0 %vm3895_vm0, %v9461_v43 }
 0x4d4   : > { %5768 = vmatmul.msk.f32.gmra.mxu1 %vm3895_vm0, %v9461_v43 }
 0x4d5   : > { %v3009_v18 = vsel %vm420_vm6, %v2995_v24, %v2996_v8 }
 0x4d6   : > { %v3010_v25 = vsel %vm422_vm7, %v3008_v52, %v3009_v18  ;;  %5775 = vmatmul.msk.f32.vlgmr.msrb.gmra.mxu2 %vm3895_vm0, %v9375_v63  ;;  %v9487_v1 = vpop.permute.xlu2 %3237  ;;  %v3504_v56 = vpop.permute.xlu1 %3503 }
 0x4d7   : > { %v3011_v58 = vsel %vm424_vm8, %v3007_v47, %v3010_v25  ;;  %5784 = vmatmul.msk.f32.vlgmr.msrb.gmra.mxu3 %vm3895_vm0, %v9375_v63  ;;  %5846 = vmatpush.msk.msrb.mxu2 %vm412_vm3, %v3821_v55  ;;  %v3502_v51 = vpop.permute.xlu0 %3501  ;;  %v3523_v32 = vsel %vm3517_vm12, %v3504_v56, %v9365_v13  ;;  %v3836_v25 = vld [vmem:[%s10851_s3 + $0x38] sm:$0xff] }
 0x4d8   : > { %3020 = vst [vmem:[#allocation2 + $0x167] ss:$8 sm:$0xf] %v3011_v58  ;;  %5855 = vmatpush.msk.msrb.mxu3 %vm412_vm3, %v3822_v10  ;;  %v3524_v33 = vsel %vm3517_vm12, %v3502_v51, %v3504_v56  ;;  %v3525_v49 = vsel %vm3517_vm12, %v9326_v17, %v3502_v51  ;;  %3867 = vperm.xlu2 %5965, %v3831_v21   ;;  %v3833_v17 = vld [vmem:[%s10851_s3 + $0x20] sm:$0xff]  ;;  %v3835_v56 = vld [vmem:[%s10851_s3 + $0x30] sm:$0xff] }
 0x4d9   : > { %3021 = vst [vmem:[#allocation2 + $0x167] ss:$8 sm:$0xf0] %v3011_v58  ;;  %3862 = vperm.xlu1 %5964, %v3830_v5   ;;  %v3546_v57 = vmul.f32 %v3525_v49, %v9283_v26  ;;  %v3547_v2 = vmul.f32 %v3524_v33, %v9281_v50  ;;  %v3548_v48 = vmul.f32 %v3523_v32, %v9302_v0  ;;  %v5740_v51 = vld [vmem:[%s10851_s3 + $0x40] sm:$0xff]  ;;  %v5741_v49 = vld [vmem:[%s10851_s3 + $0x48] sm:$0xff] }
 0x4da   : > { %3857 = vperm.xlu0 %5963, %v3829_v38  }
 0x4db   : > { %5760 = vmatmul.msk.f32.gmra.mxu0 %vm3895_vm0, %v9505_v62  ;;  %v3580_v28 = vrot.slane %v3546_v57, 6  ;;  %v3581_v35 = vrot.slane %v3547_v2, 5  ;;  %v3582_v24 = vrot.slane %v3548_v48, 4 }
 0x4dc   : > { %5769 = vmatmul.msk.f32.gmra.mxu1 %vm3895_vm0, %v9505_v62 }
 0x4dd   : > { %v3595_v8 = vsel %vm414_vm2, %v3580_v28, %v3581_v35 }
 0x4de   : > { %5776 = vmatmul.msk.f32.gmra.mxu2 %vm3895_vm0, %v9410_v11  ;;  %v9531_v42 = vpop.permute.xlu2 %3362  ;;  %v3510_v7 = vpop.permute.xlu1 %3509 }
 0x4df   : > { %5785 = vmatmul.msk.f32.gmra.mxu3 %vm3895_vm0, %v9410_v11  ;;  %v3520_v4 = vsel %vm3517_vm12, %v3510_v7, %v9392_v61  ;;  %v3508_v36 = vpop.permute.xlu0 %3507 }
 0x4e0   : > { %v3551_v27 = vmul.f32 %v3520_v4, %v9324_v39  ;;  %v3521_v14 = vsel %vm3517_vm12, %v3508_v36, %v3510_v7  ;;  %v3522_v12 = vsel %vm3517_vm12, %v9365_v13, %v3508_v36  ;;  %3877 = vperm.xlu2 %5965, %v3833_v17   ;;  %v3594_v13 = vsel %vm412_vm3, %v3544_v6, %v3579_v30  ;;  %v5742_v7 = vld [vmem:[%s10851_s3 + $0x50] sm:$0xff] }
 0x4e1   : > { %3872 = vperm.xlu1 %5964, %v3832_v22   ;;  %v3549_v3 = vmul.f32 %v3522_v12, %v9300_v15  ;;  %v3550_v44 = vmul.f32 %v3521_v14, %v9322_v45  ;;  %v3596_v55 = vsel %vm416_vm4, %v3594_v13, %v3595_v8  ;;  %v5744_v12 = vld [vmem:[%s10851_s3 + $0x60] sm:$0xff] }
 0x4e2   : > { %3882 = vperm.xlu0 %5963, %v3834_v59   ;;  %v3585_v46 = vrot.slane %v3551_v27, 1 }
 0x4e3   : > { %v3583_v52 = vrot.slane %v3549_v3, 3  ;;  %v3584_v18 = vrot.slane %v3550_v44, 2  ;;  %5793 = vmatmul.msk.f32.vlgmr.msrb.gmra.mxu0 %vm3895_vm0, %v9375_v63  ;;  %v10910_v44 = vld [vmem:[#allocation3_spill] sm:$0xff] }
 0x4e4   : > { %5802 = vmatmul.msk.f32.vlgmr.msrb.gmra.mxu1 %vm3895_vm0, %v9375_v63 }
 0x4e5   : > { %v3597_v21 = vsel %vm418_vm5, %v3582_v24, %v3583_v52  ;;  %v3598_v47 = vsel %vm420_vm6, %v3584_v18, %v3585_v46  ;;  %v5746_v24 = vld [vmem:[%s10851_s3 + $0x70] sm:$0xff] }
 0x4e6   : > { %v3599_v5 = vsel %vm422_vm7, %v3597_v21, %v3598_v47  ;;  %5777 = vmatmul.msk.f32.gmra.mxu2 %vm3895_vm0, %v9461_v43  ;;  %v9569_v58 = vpop.permute.xlu2 %3368  ;;  %v3230_v10 = vpop.permute.xlu1 %3229  ;;  %v5745_v47 = vld [vmem:[%s10851_s3 + $0x68] sm:$0xff] }
 0x4e7   : > { %v3600_v38 = vsel %vm424_vm8, %v3596_v55, %v3599_v5  ;;  %5786 = vmatmul.msk.f32.gmra.mxu3 %vm3895_vm0, %v9461_v43  ;;  %v3228_v33 = vpop.permute.xlu0 %3227  ;;  %v3255_v48 = vsel %vm3247_vm13, %v3230_v10, %v9445_v34 }
 0x4e8   : > { %3609 = vst [vmem:[#allocation2 + $0x163] ss:$8 sm:$0xf] %v3600_v38  ;;  %3892 = vperm.xlu2 %5965, %v3836_v25   ;;  %v3256_v28 = vsel %vm3247_vm13, %v3228_v33, %v3230_v10  ;;  %v3257_v6 = vsel %vm3247_vm13, %v10910_v44, %v3228_v33 }
 0x4e9   : > { %3610 = vst [vmem:[#allocation2 + $0x163] ss:$8 sm:$0xf0] %v3600_v38  ;;  %3887 = vperm.xlu1 %5964, %v3835_v56   ;;  %v3275_v36 = vmul.f32 %v3256_v28, %v9285_v37  ;;  %v3274_v10 = vmul.f32 %v3257_v6, %v9330_v54  ;;  %v5750_v28 = vld [vmem:[%s10851_s3 + $0x90] sm:$0xff] }
 0x4ea   : > { %5146 = vperm.xlu0 %5963, %v5740_v51  }
 0x4eb   : > { %5794 = vmatmul.msk.f32.gmra.mxu0 %vm3895_vm0, %v9410_v11  ;;  %v3309_v18 = vrot.slane %v3275_v36, 7 }
 0x4ec   : > { %5803 = vmatmul.msk.f32.gmra.mxu1 %vm3895_vm0, %v9410_v11 }
 0x4ee   : > { %5778 = vmatmul.msk.f32.gmra.mxu2 %vm3895_vm0, %v9505_v62  ;;  %v9589_v57 = vpop.permute.xlu2 %3374  ;;  %v3236_v2 = vpop.permute.xlu1 %3235 }
 0x4ef   : > { %5787 = vmatmul.msk.f32.gmra.mxu3 %vm3895_vm0, %v9505_v62  ;;  %v3234_v32 = vpop.permute.xlu0 %3233  ;;  %v3801_v23 = vld [vmem:[#allocation2 + $0x160] sm:$0xff]  ;;  %v3802_v17 = vld [vmem:[#allocation2 + $0x168] sm:$0xff]  ;;  %v3803_v9 = vld [vmem:[#allocation2 + $0x170] sm:$0xff]  ;;  %v3252_v35 = vsel %vm3247_vm13, %v3236_v2, %v9487_v1 }
 0x4f0   : > { %v3254_v19 = vsel %vm3247_vm13, %v9445_v34, %v3234_v32  ;;  %4315 = vmatpush.msra.mxu0 %v3801_v23  ;;  %4356 = vmatpush.msra.mxu1 %v3802_v17  ;;  %v3804_v22 = vld [vmem:[#allocation2 + $0x178] sm:$0xff]  ;;  %v3253_v59 = vsel %vm3247_vm13, %v3234_v32, %v3236_v2  ;;  %v3276_v34 = vmul.f32 %v3255_v48, %v9283_v26  ;;  %v5748_v48 = vld [vmem:[%s10851_s3 + $0x80] sm:$0xff] }
 0x4f1   : > { %5151 = vperm.xlu1 %5964, %v5741_v49   ;;  %4397 = vmatpush.msrb.mxu2 %v3803_v9  ;;  %v3277_v4 = vmul.f32 %v3254_v19, %v9281_v50  ;;  %v3279_v27 = vmul.f32 %v3252_v35, %v9300_v15  ;;  %v3278_v14 = vmul.f32 %v3253_v59, %v9302_v0  ;;  %v5747_v23 = vld [vmem:[%s10851_s3 + $0x78] sm:$0xff]  ;;  %v5752_v59 = vld [vmem:[%s10851_s3 + $0xa0] sm:$0xff] }
 0x4f2   : > { %5161 = vperm.xlu0 %5963, %v5743_v16   ;;  %4438 = vmatpush.msrb.mxu3 %v3804_v22  ;;  %v3310_v52 = vrot.slane %v3276_v34, 6  ;;  %v5749_v22 = vld [vmem:[%s10851_s3 + $0x88] sm:$0xff] }
 0x4f3   : > { %5156 = vperm.xlu2 %5965, %v5742_v7   ;;  %5795 = vmatmul.msk.f32.gmra.mxu0 %vm3895_vm0, %v9461_v43  ;;  %v3311_v46 = vrot.slane %v3277_v4, 5  ;;  %v3313_v25 = vrot.slane %v3279_v27, 3  ;;  %v3312_v55 = vrot.slane %v3278_v14, 4 }
 0x4f4   : > { %5804 = vmatmul.msk.f32.gmra.mxu1 %vm3895_vm0, %v9461_v43 }
 0x4f5   : > { %v3325_v38 = vsel %vm414_vm2, %v3310_v52, %v3311_v46  ;;  %v3327_v49 = vsel %vm418_vm5, %v3312_v55, %v3313_v25  ;;  %v10912_v25 = vld [vmem:[#allocation9_spill] sm:$0xff] }
 0x4f6   : > { %5779 = vmatmul.msk.f32.gmra.mxu2 %vm3895_vm0, %v9293_v60  ;;  %v9623_v30 = vpop.permute.xlu2 %3055  ;;  %v9625_v3 = vpop.permute.xlu1 %3241  ;;  %v3392_v55 = vsel %vm3382_vm14, %v10912_v25, %v9531_v42 }
 0x4f7   : > { %5788 = vmatmul.msk.f32.gmra.mxu3 %vm3895_vm0, %v9293_v60  ;;  %v3240_v8 = vpop.permute.xlu0 %3239 }
 0x4f8   : > { %v3250_v13 = vsel %vm3247_vm13, %v3240_v8, %v9625_v3  ;;  %v3251_v21 = vsel %vm3247_vm13, %v9487_v1, %v3240_v8  ;;  %v3324_v1 = vsel %vm412_vm3, %v3274_v10, %v3309_v18 }
 0x4f9   : > { %5166 = vperm.xlu1 %5964, %v5744_v12   ;;  %v3280_v5 = vmul.f32 %v3251_v21, %v9322_v45  ;;  %v3281_v56 = vmul.f32 %v3250_v13, %v9324_v39  ;;  %v3326_v2 = vsel %vm416_vm4, %v3324_v1, %v3325_v38  ;;  %v5751_v12 = vld [vmem:[%s10851_s3 + $0x98] sm:$0xff]  ;;  %v5967_v13 = vld [vmem:[%s6052_s20 + $0x8] sm:$0xff] }
 0x4fa   : > { %5176 = vperm.xlu0 %5963, %v5746_v24   ;;  %v10911_v21 = vld [vmem:[#allocation10_spill] sm:$0xff] }
 0x4fb   : > { %v3314_v51 = vrot.slane %v3280_v5, 2  ;;  %v3315_v33 = vrot.slane %v3281_v56, 1  ;;  %5171 = vperm.xlu2 %5965, %v5745_v47   ;;  %5796 = vmatmul.msk.f32.gmra.mxu0 %vm3895_vm0, %v9505_v62  ;;  %v208_v47 = vmul.f32 %v5967_v13, %v10911_v21  ;;  %v5753_v5 = vld [vmem:[%s10851_s3 + $0xa8] sm:$0xff]  ;;  %v5755_v56 = vld [vmem:[%s10851_s3 + $0xb8] sm:$0xff] }
 0x4fc   : > { %5805 = vmatmul.msk.f32.gmra.mxu1 %vm3895_vm0, %v9505_v62 }
 0x4fd   : > { %v3328_v16 = vsel %vm420_vm6, %v3314_v51, %v3315_v33  ;;  %213 = vst [vmem:[#allocation2 + $0x40] ss:$8 sm:$0xf] %v208_v47 }
 0x4fe   : > { %v3329_v32 = vsel %vm422_vm7, %v3327_v49, %v3328_v16  ;;  %5780 = vmatmul.msk.f32.gmra.mxu2 %vm3895_vm0, %v9354_v53  ;;  %v9662_v17 = vpop.permute.xlu2 %3061  ;;  %v3367_v9 = vpop.permute.xlu1 %3366  ;;  %v5754_v16 = vld [vmem:[%s10851_s3 + $0xb0] sm:$0xff]  ;;  %214 = vst [vmem:[#allocation2 + $0x40] ss:$8 sm:$0xf0] %v208_v47 }
 0x4ff   : > { %v3330_v19 = vsel %vm424_vm8, %v3326_v2, %v3329_v32  ;;  %5789 = vmatmul.msk.f32.gmra.mxu3 %vm3895_vm0, %v9354_v53  ;;  %v3365_v7 = vpop.permute.xlu0 %3364  ;;  %v3389_v34 = vsel %vm3382_vm14, %v3367_v9, %v9569_v58  ;;  %v3409_v2 = vmul.f32 %v3392_v55, %v9330_v54 }
 0x500   : > { %3339 = vst [vmem:[#allocation2 + $0xd1] ss:$8 sm:$0xf] %v3330_v19  ;;  %v3390_v36 = vsel %vm3382_vm14, %v3365_v7, %v3367_v9  ;;  %v3391_v27 = vsel %vm3382_vm14, %v9531_v42, %v3365_v7  ;;  %v3412_v46 = vmul.f32 %v3389_v34, %v9281_v50 }
 0x501   : > { %3340 = vst [vmem:[#allocation2 + $0xd1] ss:$8 sm:$0xf0] %v3330_v19  ;;  %5181 = vperm.xlu1 %5964, %v5747_v23   ;;  %v3410_v24 = vmul.f32 %v3391_v27, %v9285_v37  ;;  %v3411_v8 = vmul.f32 %v3390_v36, %v9283_v26 }
 0x502   : > { %5335 = vperm.xlu0 %5963, %v5749_v22   ;;  %v3446_v38 = vrot.slane %v3412_v46, 5 }
 0x503   : > { %5330 = vperm.xlu2 %5965, %v5748_v48   ;;  %5797 = vmatmul.msk.f32.gmra.mxu0 %vm3895_vm0, %v9293_v60  ;;  %v3444_v51 = vrot.slane %v3410_v24, 7  ;;  %v3445_v33 = vrot.slane %v3411_v8, 6 }
 0x504   : > { %5806 = vmatmul.msk.f32.gmra.mxu1 %vm3895_vm0, %v9293_v60 }
 0x505   : > { %v3459_v22 = vsel %vm412_vm3, %v3409_v2, %v3444_v51  ;;  %v3460_v7 = vsel %vm414_vm2, %v3445_v33, %v3446_v38 }
 0x506   : > { %5781 = vmatmul.msk.f32.gmra.mxu2 %vm3895_vm0, %v9384_v40  ;;  %v3373_v35 = vpop.permute.xlu1 %3372  ;;  %v9695_v14 = vpop.permute.xlu2 %3067 }
 0x507   : > { %5790 = vmatmul.msk.f32.gmra.mxu3 %vm3895_vm0, %v9384_v40  ;;  %v3371_v4 = vpop.permute.xlu0 %3370  ;;  %v3386_v52 = vsel %vm3382_vm14, %v3373_v35, %v9589_v57 }
 0x508   : > { %v3387_v44 = vsel %vm3382_vm14, %v3371_v4, %v3373_v35  ;;  %v3388_v6 = vsel %vm3382_vm14, %v9569_v58, %v3371_v4  ;;  %v3415_v1 = vmul.f32 %v3386_v52, %v9322_v45 }
 0x509   : > { %5340 = vperm.xlu1 %5964, %v5750_v28   ;;  %v3413_v18 = vmul.f32 %v3388_v6, %v9302_v0  ;;  %v3414_v58 = vmul.f32 %v3387_v44, %v9300_v15 }
 0x50a   : > { %5350 = vperm.xlu0 %5963, %v5752_v59   ;;  %v3461_v59 = vsel %vm416_vm4, %v3459_v22, %v3460_v7 }
 0x50b   : > { %5345 = vperm.xlu2 %5965, %v5751_v12   ;;  %5798 = vmatmul.msk.f32.gmra.mxu0 %vm3895_vm0, %v9354_v53  ;;  %v3447_v32 = vrot.slane %v3413_v18, 4  ;;  %v3448_v23 = vrot.slane %v3414_v58, 3  ;;  %v10913_v58 = vld [vmem:[#allocation12_spill] sm:$0xff] }
 0x50c   : > { %5807 = vmatmul.msk.f32.gmra.mxu1 %vm3895_vm0, %v9354_v53 }
 0x50d   : > { %v3462_v28 = vsel %vm418_vm5, %v3447_v32, %v3448_v23 }
 0x50e   : > { %5782 = vmatmul.msk.f32.gmra.mxu2 %vm3895_vm0, %v9428_v20  ;;  %v3054_v10 = vpop.permute.xlu1 %3053 }
 0x50f   : > { %5791 = vmatmul.msk.f32.gmra.mxu3 %vm3895_vm0, %v9428_v20  ;;  %v9734_v42 = vpop.permute.xlu0 %3376  ;;  %v3082_v6 = vsel %vm3073_vm15, %v3054_v10, %v9623_v30 }
 0x510   : > { %v3385_v49 = vsel %vm3382_vm14, %v9589_v57, %v9734_v42  ;;  %v3449_v57 = vrot.slane %v3415_v1, 2  ;;  %v3140_v18 = vmul.f32 %v9285_v37, %v3082_v6 }
 0x511   : > { %5355 = vperm.xlu1 %5964, %v5753_v5   ;;  %v3416_v9 = vmul.f32 %v3385_v49, %v9324_v39 }
 0x512   : > { %5365 = vperm.xlu0 %5963, %v5755_v56   ;;  %v9745_v19 = vpop.permute.xlu2 %2924  ;;  %v3174_v51 = vrot.slane %v3140_v18, 7  ;;  %v3823_v18 = vld [vmem:[#allocation2 + $0x210] sm:$0x1] }
 0x513   : > { %v3450_v48 = vrot.slane %v3416_v9, 1  ;;  %5360 = vperm.xlu2 %5965, %v5754_v16   ;;  %5799 = vmatmul.msk.f32.gmra.mxu0 %vm3895_vm0, %v9384_v40 }
 0x514   : > { %5808 = vmatmul.msk.f32.gmra.mxu1 %vm3895_vm0, %v9384_v40 }
 0x515   : > { %v3463_v35 = vsel %vm420_vm6, %v3449_v57, %v3450_v48  ;;  %v5739_v57 = vld [vmem:[%s10850_s2 + $0x84] ss:$8 sm:$0x3] }
 0x516   : > { %v3464_v4 = vsel %vm422_vm7, %v3462_v28, %v3463_v35  ;;  %5811 = vmatmul.msk.f32.vlgmr.msra.gmra.mxu2 %vm3895_vm0, %v9375_v63  ;;  %v3060_v34 = vpop.permute.xlu1 %3059  ;;  %v9818_v48 = vperm.slane %v5739_v57, 1 }
 0x517   : > { %v3465_v36 = vsel %vm424_vm8, %v3461_v59, %v3464_v4  ;;  %5820 = vmatmul.msk.f32.vlgmr.msra.gmra.mxu3 %vm3895_vm0, %v9375_v63  ;;  %v3058_v27 = vpop.permute.xlu0 %3057  ;;  %v3079_v52 = vsel %vm3073_vm15, %v3060_v34, %v9662_v17 }
 0x518   : > { %3474 = vst [vmem:[#allocation2 + $0xd6] ss:$8 sm:$0xf] %v3465_v36  ;;  %v3080_v12 = vsel %vm3073_vm15, %v3058_v27, %v3060_v34  ;;  %v3081_v44 = vsel %vm3073_vm15, %v9623_v30, %v3058_v27  ;;  %v3083_v30 = vsel %vm3073_vm15, %v10913_v58, %v3054_v10 }
 0x519   : > { %3475 = vst [vmem:[#allocation2 + $0xd6] ss:$8 sm:$0xf0] %v3465_v36  ;;  %v3141_v24 = vmul.f32 %v9283_v26, %v3081_v44  ;;  %v3142_v8 = vmul.f32 %v9281_v50, %v3080_v12  ;;  %v3143_v26 = vmul.f32 %v9302_v0, %v3079_v52  ;;  %v3139_v49 = vmul.f32 %v9330_v54, %v3083_v30  ;;  %v3824_v30 = vld [vmem:[#allocation2 + $0x218] sm:$0x1] }
 0x51a   : > { %v9770_v46 = vpop.permute.xlu2 %3515  ;;  %v9827_v36 = vperm.slane %v5739_v57, 0 }
 0x51b   : > { %5800 = vmatmul.msk.f32.gmra.mxu0 %vm3895_vm0, %v9428_v20  ;;  %v3175_v13 = vrot.slane %v3141_v24, 6  ;;  %v3176_v21 = vrot.slane %v3142_v8, 5  ;;  %v3177_v2 = vrot.slane %v3143_v26, 4  ;;  %v3189_v9 = vsel %vm412_vm3, %v3139_v49, %v3174_v51  ;;  %v10916_v49 = vld [vmem:[#allocation5_spill] sm:$0xff] }
 0x51c   : > { %5809 = vmatmul.msk.f32.gmra.mxu1 %vm3895_vm0, %v9428_v20 }
 0x51d   : > { %v3190_v32 = vsel %vm414_vm2, %v3175_v13, %v3176_v21  ;;  %v3825_v13 = vld [vmem:[#allocation2 + $0x220] sm:$0x1]  ;;  %v3826_v21 = vld [vmem:[#allocation2 + $0x228] sm:$0x1] }
 0x51e   : > { %5812 = vmatmul.msk.f32.gmra.mxu2 %vm3895_vm0, %v9410_v11  ;;  %v3066_v50 = vpop.permute.xlu1 %3065 }
 0x51f   : > { %5821 = vmatmul.msk.f32.gmra.mxu3 %vm3895_vm0, %v9410_v11  ;;  %v3076_v47 = vsel %vm3073_vm15, %v3066_v50, %v9695_v14  ;;  %v3064_v37 = vpop.permute.xlu0 %3063  ;;  %v3783_v25 = vld [vmem:[#allocation2 + $0xd0] sm:$0xff]  ;;  %v3784_v55 = vld [vmem:[#allocation2 + $0xd8] sm:$0xff]  ;;  %v3785_v5 = vld [vmem:[#allocation2 + $0xe0] sm:$0xff] }
 0x520   : > { %v3146_v56 = vmul.f32 %v9324_v39, %v3076_v47  ;;  %v3077_v10 = vsel %vm3073_vm15, %v3064_v37, %v3066_v50  ;;  %v3078_v0 = vsel %vm3073_vm15, %v9662_v17, %v3064_v37  ;;  %4316 = vmatpush.msra.mxu0 %v3783_v25  ;;  %4357 = vmatpush.msra.mxu1 %v3784_v55  ;;  %v3786_v38 = vld [vmem:[#allocation2 + $0xe8] sm:$0xff] }
 0x521   : > { %v3144_v33 = vmul.f32 %v9300_v15, %v3078_v0  ;;  %v3145_v1 = vmul.f32 %v9322_v45, %v3077_v10  ;;  %4398 = vmatpush.msrb.mxu2 %v3785_v5  ;;  %4439 = vmatpush.msrb.mxu3 %v3786_v38  ;;  %v3191_v45 = vsel %vm416_vm4, %v3189_v9, %v3190_v32  ;;  %v3806_v55 = vld [vmem:[#allocation2 + $0x188] sm:$0xff]  ;;  %v10915_v10 = vld [vmem:[#allocation11_spill] sm:$0xff]  ;;  %v3807_v38 = vld [vmem:[#allocation2 + $0x190] sm:$0xff] }
 0x522   : > { %v9802_v39 = vpop.permute.xlu2 %3378  ;;  %v3180_v16 = vrot.slane %v3146_v56, 1  ;;  %v2930_v5 = vsel %vm2928_vm10, %v9450_v41, %v9745_v19 }
 0x523   : > { %v3178_v23 = vrot.slane %v3144_v33, 3  ;;  %v3179_v17 = vrot.slane %v3145_v1, 2  ;;  %v3788_v1 = vld [vmem:[#allocation2 + $0xf8] sm:$0xff] }
 0x525   : > { %v3192_v22 = vsel %vm418_vm5, %v3177_v2, %v3178_v23  ;;  %v3193_v15 = vsel %vm420_vm6, %v3179_v17, %v3180_v16  ;;  %v2963_v16 = vmul.f32 %v2930_v5, %v10916_v49  ;;  %v3789_v23 = vld [vmem:[#allocation2 + $0x100] sm:$0xff]  ;;  %v3790_v17 = vld [vmem:[#allocation2 + $0x108] sm:$0xff] }
 0x526   : > { %v3194_v7 = vsel %vm422_vm7, %v3192_v22, %v3193_v15  ;;  %5813 = vmatmul.msk.f32.gmra.mxu2 %vm3895_vm0, %v9461_v43 }
 0x527   : > { %v3195_v54 = vsel %vm424_vm8, %v3191_v45, %v3194_v7  ;;  %5822 = vmatmul.msk.f32.gmra.mxu3 %vm3895_vm0, %v9461_v43 }
 0x528   : > { %3204 = vst [vmem:[#allocation2 + $0x44] ss:$8 sm:$0xf] %v3195_v54 }
 0x529   : > { %3205 = vst [vmem:[#allocation2 + $0x44] ss:$8 sm:$0xf0] %v3195_v54 }
 0x52a   : > { %v3651_v28 = vpop.permute.xlu1 %3650  ;;  %v9820_v35 = vpop.permute.xlu2 %3071 }
 0x52b   : > { %v3649_v59 = vpop.permute.xlu0 %3648 }
 0x52c   : > { %v3653_v4 = vsel %vm3652_vm11, %v3649_v59, %v3651_v28  ;;  %v3654_v34 = vsel %vm3652_vm11, %v9328_v29, %v3649_v59 }
 0x52d   : > { %v3688_v27 = vmul.f32 %v3653_v4, %v9818_v48  ;;  %v3687_v12 = vmul.f32 %v3654_v34, %v9827_v36 }
 0x52e   : > { %5814 = vmatmul.msk.f32.gmra.mxu2 %vm3895_vm0, %v9505_v62 }
 0x52f   : > { %v3721_v44 = vrot.slane %v3688_v27, 7  ;;  %5823 = vmatmul.msk.f32.gmra.mxu3 %vm3895_vm0, %v9505_v62  ;;  %v3765_v6 = vld [vmem:[#allocation2 + $0x40] sm:$0xff]  ;;  %v3766_v24 = vld [vmem:[#allocation2 + $0x48] sm:$0xff]  ;;  %v3767_v8 = vld [vmem:[#allocation2 + $0x50] sm:$0xff] }
 0x530   : > { %4317 = vmatpush.msra.mxu0 %v3765_v6  ;;  %4358 = vmatpush.msra.mxu1 %v3766_v24  ;;  %v3768_v52 = vld [vmem:[#allocation2 + $0x58] sm:$0xff]  ;;  %v3769_v22 = vld [vmem:[#allocation2 + $0x60] sm:$0xff]  ;;  %v3771_v15 = vld [vmem:[#allocation2 + $0x70] sm:$0xff] }
 0x531   : > { %v3736_v29 = vsel %vm412_vm3, %v3687_v12, %v3721_v44  ;;  %4399 = vmatpush.msrb.mxu2 %v3767_v8  ;;  %4440 = vmatpush.msrb.mxu3 %v3768_v52  ;;  %v3772_v7 = vld [vmem:[#allocation2 + $0x78] sm:$0xff] }
 0x532   : > { %3747 = vst.msk [vmem:[#allocation2 + $0x230] ss:$8 sm:$0x3] %vm6216_vm1, %v3736_v29  ;;  %5829 = vmatmul.msk.f32.vlgmr.msra.gmra.mxu0 %vm3895_vm0, %v9375_v63  ;;  %5838 = vmatmul.msk.f32.vlgmr.msra.gmra.mxu1 %vm3895_vm0, %v9375_v63  ;;  %v9842_v50 = vpop.permute.xlu2 %3867  ;;  %v3805_v63 = vld [vmem:[#allocation2 + $0x180] sm:$0xff] }
 0x533   : > { %v3514_v26 = vpop.permute.xlu1 %3513  ;;  %5864 = vmatpush.msk.msrb.mxu0 %vm412_vm3, %v3823_v18  ;;  %5873 = vmatpush.msk.msrb.mxu1 %vm412_vm3, %v3824_v30 }
 0x534   : > { %v3518_v47 = vsel %vm3517_vm12, %v3514_v26, %v9770_v46  ;;  %v3519_v37 = vsel %vm3517_vm12, %v9392_v61, %v3514_v26  ;;  %v2927_v25 = vpop.permute.xlu0 %2926  ;;  %5882 = vmatpush.msk.msra.mxu2 %vm412_vm3, %v3825_v13  ;;  %5891 = vmatpush.msk.msra.mxu3 %vm412_vm3, %v3826_v21  ;;  %v3808_v61 = vld [vmem:[#allocation2 + $0x198] sm:$0xff] }
 0x535   : > { %v3553_v56 = vmul.f32 %v3518_v47, %v9818_v48  ;;  %v2929_v46 = vsel %vm2928_vm10, %v9745_v19, %v2927_v25  ;;  %4479 = vmatpush.msrb.mxu0 %v3805_v63  ;;  %4520 = vmatpush.msrb.mxu1 %v3806_v55  ;;  %v3552_v51 = vmul.f32 %v3519_v37, %v9827_v36  ;;  %v3787_v19 = vld [vmem:[#allocation2 + $0xf0] sm:$0xff] }
 0x536   : > { %v2964_v0 = vmul.f32 %v2929_v46, %v10915_v10  ;;  %5815 = vmatmul.msk.f32.gmra.mxu2 %vm3895_vm0, %v9293_v60  ;;  %4602 = vmatpush.msra.mxu3 %v3808_v61  ;;  %v9868_v41 = vpop.f32.mrf.mxu2  ;;  %v9871_v32 = vpop.f32.mrf.mxu3  ;;  %v3384_v47 = vsel %vm3382_vm14, %v9734_v42, %v9802_v39 }
 0x537   : > { %v3586_v33 = vrot.slane %v3553_v56, 7  ;;  %5824 = vmatmul.msk.f32.gmra.mxu3 %vm3895_vm0, %v9293_v60  ;;  %4561 = vmatpush.msra.mxu2 %v3807_v38  ;;  %v3770_v60 = vld [vmem:[#allocation2 + $0x68] sm:$0xff]  ;;  %v3417_v31 = vmul.f32 %v3384_v47, %v9827_v36 }
 0x538   : > { %v2997_v2 = vrot.slane %v2964_v0, 7  ;;  %4480 = vmatpush.msrb.mxu0 %v3787_v19  ;;  %4521 = vmatpush.msrb.mxu1 %v3788_v1 }
 0x539   : > { %v3601_v9 = vsel %vm412_vm3, %v3552_v51, %v3586_v33  ;;  %4562 = vmatpush.msra.mxu2 %v3789_v23  ;;  %4603 = vmatpush.msra.mxu3 %v3790_v17  ;;  %v3827_v54 = vld [vmem:[#allocation2 + $0x230] sm:$0x1]  ;;  %v3828_v59 = vld [vmem:[#allocation2 + $0x238] sm:$0x1] }
 0x53a   : > { %3612 = vst.msk [vmem:[#allocation2 + $0x1a3] ss:$8 sm:$0x3] %vm6216_vm1, %v3601_v9  ;;  %v3012_v45 = vsel %vm412_vm3, %v2963_v16, %v2997_v2  ;;  %4481 = vmatpush.msrb.mxu0 %v3769_v22  ;;  %4522 = vmatpush.msrb.mxu1 %v3770_v60  ;;  %v9877_v57 = vpop.permute.xlu2 %3877 }
 0x53b   : > { %3023 = vst.msk [vmem:[#allocation2 + $0x1a7] ss:$8 sm:$0x3] %vm6216_vm1, %v3012_v45  ;;  %v3246_v28 = vpop.permute.xlu1 %3245  ;;  %4563 = vmatpush.msra.mxu2 %v3771_v15  ;;  %4604 = vmatpush.msra.mxu3 %v3772_v7  ;;  %v4004_v46 = vadd.f32 %v9868_v41, %v9877_v57  ;;  %v4045_v10 = vadd.f32 %v9871_v32, %v9877_v57 }
 0x53c   : > { %v3244_v4 = vpop.permute.xlu0 %3243  ;;  %5900 = vmatpush.msk.msra.mxu0 %vm412_vm3, %v3827_v54  ;;  %5909 = vmatpush.msk.msra.mxu1 %vm412_vm3, %v3828_v59 }
 0x53d   : > { %v3248_v34 = vsel %vm3247_vm13, %v3244_v4, %v3246_v28  ;;  %v3249_v27 = vsel %vm3247_vm13, %v9625_v3, %v3244_v4  ;;  %5830 = vmatmul.msk.f32.gmra.mxu0 %vm3895_vm0, %v9410_v11  ;;  %5839 = vmatmul.msk.f32.gmra.mxu1 %vm3895_vm0, %v9410_v11  ;;  %v4928_v51 = vmul.f32 0.05, %v4004_v46  ;;  %v4929_v49 = vmul.f32 0.05, %v4045_v10 }
 0x53e   : > { %v3283_v12 = vmul.f32 %v3248_v34, %v9818_v48  ;;  %5816 = vmatmul.msk.f32.gmra.mxu2 %vm3895_vm0, %v9354_v53  ;;  %v3282_v44 = vmul.f32 %v3249_v27, %v9827_v36  ;;  %v9979_v34 = vld [vmem:[%s10849_s1 + $0x20] sm:$0xff] }
 0x53f   : > { %5825 = vmatmul.msk.f32.gmra.mxu3 %vm3895_vm0, %v9354_v53 }
 0x540   : > { %v3316_v6 = vrot.slane %v3283_v12, 7  ;;  %v3991_v24 = vpop.f32.mrf.mxu0  ;;  %v9988_v12 = vld [vmem:[%s10849_s1] sm:$0xff] }
 0x541   : > { %v9898_v8 = vpop.f32.mrf.mxu2  ;;  %v4032_v3 = vpop.f32.mrf.mxu1 }
 0x542   : > { %v3331_v52 = vsel %vm412_vm3, %v3282_v44, %v3316_v6  ;;  %v9901_v29 = vpop.f32.mrf.mxu3  ;;  %v3809_v11 = vld [vmem:[#allocation2 + $0x1a0] sm:$0xff]  ;;  %v3810_v18 = vld [vmem:[#allocation2 + $0x1a8] sm:$0xff]  ;;  %v9905_v53 = vpop.permute.xlu2 %3892 }
 0x543   : > { %3342 = vst.msk [vmem:[#allocation2 + $0x111] ss:$8 sm:$0x3] %vm6216_vm1, %v3331_v52  ;;  %4643 = vmatpush.msra.mxu0 %v3809_v11  ;;  %4684 = vmatpush.msra.mxu1 %v3810_v18  ;;  %v3070_v30 = vpop.permute.xlu1 %3069 }
 0x544   : > { %v3074_v26 = vsel %vm3073_vm15, %v3070_v30, %v9820_v35  ;;  %v3075_v13 = vsel %vm3073_vm15, %v9695_v14, %v3070_v30  ;;  %v3381_v21 = vpop.permute.xlu0 %3380 }
 0x545   : > { %v3148_v37 = vmul.f32 %v9818_v48, %v3074_v26  ;;  %v3383_v25 = vsel %vm3382_vm14, %v9802_v39, %v3381_v21  ;;  %5831 = vmatmul.msk.f32.gmra.mxu0 %vm3895_vm0, %v9461_v43  ;;  %5840 = vmatmul.msk.f32.gmra.mxu1 %vm3895_vm0, %v9461_v43  ;;  %v3147_v35 = vmul.f32 %v9827_v36, %v3075_v13 }
 0x546   : > { %v3418_v14 = vmul.f32 %v3383_v25, %v9818_v48  ;;  %5817 = vmatmul.msk.f32.gmra.mxu2 %vm3895_vm0, %v9384_v40 }
 0x547   : > { %v3181_v42 = vrot.slane %v3148_v37, 7  ;;  %5826 = vmatmul.msk.f32.gmra.mxu3 %vm3895_vm0, %v9384_v40 }
 0x548   : > { %v3451_v39 = vrot.slane %v3418_v14, 7  ;;  %v3994_v63 = vpop.f32.mrf.mxu0 }
 0x549   : > { %v3196_v55 = vsel %vm412_vm3, %v3147_v35, %v3181_v42  ;;  %v9933_v5 = vpop.f32.mrf.mxu2  ;;  %v4035_v43 = vpop.f32.mrf.mxu1 }
 0x54a   : > { %3207 = vst.msk [vmem:[#allocation2 + $0x84] ss:$8 sm:$0x3] %vm6216_vm1, %v3196_v55  ;;  %v3466_v48 = vsel %vm412_vm3, %v3417_v31, %v3451_v39  ;;  %v9938_v56 = vpop.f32.mrf.mxu3  ;;  %vm4785_vm3 = vcmp.ge.f32.partialorder %v4045_v10, 0.0 }
 0x54b   : > { %3477 = vst.msk [vmem:[#allocation2 + $0x116] ss:$8 sm:$0x3] %vm6216_vm1, %v3466_v48  ;;  %v9942_v40 = vpop.permute.xlu1 %3862  ;;  %vm4784_vm1 = vcmp.ge.f32.partialorder %v4004_v46, 0.0 }
 0x54c   : > { %v9944_v36 = vpop.permute.xlu0 %3857  ;;  %v3995_v58 = vadd.f32 %v3994_v63, %v9942_v40  ;;  %v4036_v0 = vadd.f32 %v4035_v43, %v9942_v40  ;;  %v9998_v6 = vsel %vm4784_vm1, %v4004_v46, %v4928_v51 }
 0x54d   : > { %5832 = vmatmul.msk.f32.gmra.mxu0 %vm3895_vm0, %v9505_v62  ;;  %5841 = vmatmul.msk.f32.gmra.mxu1 %vm3895_vm0, %v9505_v62  ;;  %v9952_v61 = vpop.permute.xlu2 %5156  ;;  %v3992_v62 = vadd.f32 %v3991_v24, %v9944_v36  ;;  %v4033_v41 = vadd.f32 %v4032_v3, %v9944_v36  ;;  %v10001_v24 = vsel %vm4785_vm3, %v4045_v10, %v4929_v49  ;;  %v10055_v49 = vld [vmem:[%s10849_s1 + $0x8] sm:$0xff] }
 0x54e   : > { %5818 = vmatmul.msk.f32.gmra.mxu2 %vm3895_vm0, %v9428_v20  ;;  %vm4730_vm2 = vcmp.ge.f32.partialorder %v3995_v58, 0.0  ;;  %v4874_v17 = vmul.f32 0.05, %v3995_v58  ;;  %v4875_v15 = vmul.f32 0.05, %v4036_v0  ;;  %vm4731_vm4 = vcmp.ge.f32.partialorder %v4036_v0, 0.0 }
 0x54f   : > { %5827 = vmatmul.msk.f32.gmra.mxu3 %vm3895_vm0, %v9428_v20  ;;  %v4856_v54 = vmul.f32 0.05, %v3992_v62  ;;  %v4857_v28 = vmul.f32 0.05, %v4033_v41  ;;  %vm4712_vm6 = vcmp.ge.f32.partialorder %v3992_v62, 0.0  ;;  %vm4713_vm7 = vcmp.ge.f32.partialorder %v4033_v41, 0.0 }
 0x550   : > { %v3997_v38 = vpop.f32.mrf.mxu0  ;;  %v9995_v44 = vsel %vm4730_vm2, %v3995_v58, %v4874_v17  ;;  %v10004_v3 = vsel %vm4731_vm4, %v4036_v0, %v4875_v15 }
 0x551   : > { %v4012_v33 = vpop.f32.mrf.mxu2  ;;  %v3998_v19 = vadd.f32 %v3997_v38, %v9842_v50  ;;  %v4038_v1 = vpop.f32.mrf.mxu1  ;;  %v3773_v22 = vld [vmem:[#allocation2 + $0x80] sm:$0xff]  ;;  %v3774_v60 = vld [vmem:[#allocation2 + $0x88] sm:$0xff]  ;;  %v5000_v30 = vsel %vm4712_vm6, %v3992_v62, %v4856_v54  ;;  %v5001_v26 = vsel %vm4713_vm7, %v4033_v41, %v4857_v28 }
 0x552   : > { %v4053_v16 = vpop.f32.mrf.mxu3  ;;  %v3791_v2 = vld [vmem:[#allocation2 + $0x110] sm:$0xff]  ;;  %v3792_v32 = vld [vmem:[#allocation2 + $0x118] sm:$0xff]  ;;  %v4013_v20 = vadd.f32 %v4012_v33, %v9905_v53  ;;  %v4039_v7 = vadd.f32 %v4038_v1, %v9842_v50  ;;  %v10041_v33 = vld [vmem:[%s10849_s1 + $0x28] sm:$0xff] }
 0x553   : > { %4644 = vmatpush.msra.mxu0 %v3791_v2  ;;  %4685 = vmatpush.msra.mxu1 %v3792_v32  ;;  %v9966_v23 = vpop.permute.xlu1 %3872  ;;  %v4892_v45 = vmul.f32 0.05, %v3998_v19  ;;  %vm4748_vm5 = vcmp.ge.f32.partialorder %v3998_v19, 0.0  ;;  %v9974_v4 = vadd.f32 %v4053_v16, %v9905_v53 }
 0x554   : > { %v9968_v9 = vpop.permute.xlu0 %3882  ;;  %v4982_v27 = vmul.f32 0.05, %v4013_v20  ;;  %vm4838_vm8 = vcmp.ge.f32.partialorder %v4013_v20, 0.0  ;;  %v4893_v11 = vmul.f32 0.05, %v4039_v7  ;;  %vm4749_vm9 = vcmp.ge.f32.partialorder %v4039_v7, 0.0 }
 0x555   : > { %4645 = vmatpush.msra.mxu0 %v3773_v22  ;;  %4686 = vmatpush.msra.mxu1 %v3774_v60  ;;  %v9971_v59 = vpop.permute.xlu2 %5171  ;;  %v5036_v52 = vsel %vm4748_vm5, %v3998_v19, %v4892_v45  ;;  %vm4839_vm10 = vcmp.ge.f32.partialorder %v9974_v4, 0.0  ;;  %v4983_v37 = vmul.f32 0.05, %v9974_v4  ;;  %v4007_v55 = vadd.f32 %v9898_v8, %v9968_v9 }
 0x556   : > { %5833 = vmatmul.msk.f32.gmra.mxu0 %vm3895_vm0, %v9979_v34  ;;  %5842 = vmatmul.msk.f32.gmra.mxu1 %vm3895_vm0, %v9979_v34  ;;  %v10016_v42 = vsel %vm4838_vm8, %v4013_v20, %v4982_v27  ;;  %v10022_v63 = vmul.f32 %v9952_v61, %v5036_v52  ;;  %v5037_v46 = vsel %vm4749_vm9, %v4039_v7, %v4893_v11 }
 0x557   : > { %5847 = vmatmul.msk.f32.vlgmr.msrb.gmra.mxu2 %vm3895_vm0, %v9988_v12  ;;  %5856 = vmatmul.msk.f32.vlgmr.msrb.gmra.mxu3 %vm3895_vm0, %v9988_v12  ;;  %v10049_v41 = vadd.f32 %v9901_v29, %v9968_v9  ;;  %vm4802_vm15 = vcmp.ge.f32.partialorder %v4007_v55, 0.0  ;;  %v4946_v20 = vmul.f32 0.05, %v4007_v55 }
 0x558   : > { %v4000_v18 = vpop.f32.mrf.mxu0 }
 0x559   : > { %v4073_v13 = vpop.f32.mrf.mxu2  ;;  %v4001_v21 = vadd.f32 %v4000_v18, %v9966_v23  ;;  %v4041_v47 = vpop.f32.mrf.mxu1  ;;  %vm4803_vm2 = vcmp.ge.f32.partialorder %v10049_v41, 0.0 }
 0x55a   : > { %v4074_v25 = vadd.f32 %v4073_v13, %v9944_v36  ;;  %v4114_v14 = vpop.f32.mrf.mxu3  ;;  %v4042_v35 = vadd.f32 %v4041_v47, %v9966_v23  ;;  %v10086_v13 = vsel %vm4839_vm10, %v9974_v4, %v4983_v37  ;;  %v5090_v4 = vsel %vm4802_vm15, %v4007_v55, %v4946_v20  ;;  %v10105_v37 = vld [vmem:[%s10849_s1 + $0x30] sm:$0xff] }
 0x55b   : > { %v4115_v31 = vadd.f32 %v4114_v14, %v9944_v36  ;;  %v10019_v39 = vpop.permute.xlu1 %3887  ;;  %v4910_v10 = vmul.f32 0.05, %v4001_v21  ;;  %vm4766_vm13 = vcmp.ge.f32.partialorder %v4001_v21, 0.0 }
 0x55c   : > { %vm4714_vm11 = vcmp.ge.f32.partialorder %v4074_v25, 0.0  ;;  %v4858_v43 = vmul.f32 0.05, %v4074_v25  ;;  %v10026_v48 = vpop.permute.xlu0 %5146  ;;  %v4911_v62 = vmul.f32 0.05, %v4042_v35  ;;  %vm4767_vm14 = vcmp.ge.f32.partialorder %v4042_v35, 0.0 }
 0x55d   : > { %vm4715_vm12 = vcmp.ge.f32.partialorder %v4115_v31, 0.0  ;;  %v4859_v58 = vmul.f32 0.05, %v4115_v31  ;;  %v5184_v0 = vmul.f32 %v10026_v48, %v5000_v30  ;;  %v5185_v38 = vmul.f32 %v10026_v48, %v5001_v26  ;;  %v10031_v51 = vpop.permute.xlu2 %5330 }
 0x55e   : > { %v5002_v8 = vsel %vm4714_vm11, %v4074_v25, %v4858_v43  ;;  %5834 = vmatmul.msk.f32.gmra.mxu0 %vm3895_vm0, %v10041_v33  ;;  %5843 = vmatmul.msk.f32.gmra.mxu1 %vm3895_vm0, %v10041_v33  ;;  %v5054_v60 = vsel %vm4766_vm13, %v4001_v21, %v4910_v10  ;;  %v10070_v7 = vadd.f32 %v9933_v5, %v10019_v39  ;;  %v10115_v10 = vld [vmem:[%s10849_s1 + $0x10] sm:$0xff] }
 0x55f   : > { %v5003_v19 = vsel %vm4715_vm12, %v4115_v31, %v4859_v58  ;;  %v5186_v1 = vmul.f32 %v10026_v48, %v5002_v8  ;;  %5848 = vmatmul.msk.f32.gmra.mxu2 %vm3895_vm0, %v10055_v49  ;;  %5857 = vmatmul.msk.f32.gmra.mxu3 %vm3895_vm0, %v10055_v49  ;;  %v5368_v16 = vadd.f32 %v10031_v51, %v5184_v0 }
 0x560   : > { %v5187_v29 = vmul.f32 %v10026_v48, %v5003_v19  ;;  %v5369_v2 = vadd.f32 %v10031_v51, %v5185_v38  ;;  %v4155_v32 = vpop.f32.mrf.mxu0  ;;  %v5055_v27 = vsel %vm4767_vm14, %v4042_v35, %v4911_v62  ;;  %v4051_v11 = vadd.f32 %v9938_v56, %v10019_v39 }
 0x561   : > { %v4076_v17 = vpop.f32.mrf.mxu2  ;;  %v5370_v22 = vadd.f32 %v10031_v51, %v5186_v1  ;;  %5512 = vst [vmem:[%s10036_s26] sm:$0xff] %v5368_v16  ;;  %v4156_v15 = vadd.f32 %v4155_v32, %v9944_v36  ;;  %v4196_v45 = vpop.f32.mrf.mxu1  ;;  %v10089_v21 = vmul.f32 %v9952_v61, %v5037_v46  ;;  %v4947_v56 = vmul.f32 0.05, %v10049_v41 }
 0x562   : > { %v4117_v54 = vpop.f32.mrf.mxu3  ;;  %v5371_v28 = vadd.f32 %v10031_v51, %v5187_v29  ;;  %5513 = vst [vmem:[%s10036_s26 + $0x8] sm:$0xff] %v5369_v2  ;;  %v4197_v52 = vadd.f32 %v4196_v45, %v9944_v36  ;;  %v4077_v18 = vadd.f32 %v4076_v17, %v9942_v40  ;;  %vm4820_vm3 = vcmp.ge.f32.partialorder %v10070_v7, 0.0 }
 0x563   : > { %v4118_v30 = vadd.f32 %v4117_v54, %v9942_v40  ;;  %v10080_v26 = vpop.permute.xlu1 %5151  ;;  %5514 = vst [vmem:[%s10036_s26 + $0x10] sm:$0xff] %v5370_v22  ;;  %vm4716_vm1 = vcmp.ge.f32.partialorder %v4156_v15, 0.0  ;;  %v4860_v5 = vmul.f32 0.05, %v4156_v15  ;;  %vm4821_vm5 = vcmp.ge.f32.partialorder %v4051_v11, 0.0 }
 0x564   : > { %v10091_v47 = vpop.permute.xlu0 %5161  ;;  %5515 = vst [vmem:[%s10036_s26 + $0x18] sm:$0xff] %v5371_v28  ;;  %vm4717_vm4 = vcmp.ge.f32.partialorder %v4197_v52, 0.0  ;;  %v4861_v43 = vmul.f32 0.05, %v4197_v52  ;;  %vm4732_vm6 = vcmp.ge.f32.partialorder %v4077_v18, 0.0 }
 0x565   : > { %v5238_v25 = vmul.f32 %v10091_v47, %v5054_v60  ;;  %v5239_v14 = vmul.f32 %v10091_v47, %v5055_v27  ;;  %v10098_v35 = vpop.permute.xlu2 %5345  ;;  %v5004_v31 = vsel %vm4716_vm1, %v4156_v15, %v4860_v5  ;;  %v4876_v46 = vmul.f32 0.05, %v4077_v18 }
 0x566   : > { %5835 = vmatmul.msk.f32.gmra.mxu0 %vm3895_vm0, %v10105_v37  ;;  %5844 = vmatmul.msk.f32.gmra.mxu1 %vm3895_vm0, %v10105_v37  ;;  %v4877_v55 = vmul.f32 0.05, %v4118_v30  ;;  %v5188_v38 = vmul.f32 %v10026_v48, %v5004_v31  ;;  %v5005_v8 = vsel %vm4717_vm4, %v4197_v52, %v4861_v43  ;;  %v4964_v62 = vmul.f32 0.05, %v10070_v7 }
 0x567   : > { %5849 = vmatmul.msk.f32.gmra.mxu2 %vm3895_vm0, %v10115_v10  ;;  %5858 = vmatmul.msk.f32.gmra.mxu3 %vm3895_vm0, %v10115_v10  ;;  %v5422_v58 = vadd.f32 %v10098_v35, %v5238_v25  ;;  %v5423_v0 = vadd.f32 %v10098_v35, %v5239_v14  ;;  %vm4733_vm7 = vcmp.ge.f32.partialorder %v4118_v30, 0.0  ;;  %v5189_v16 = vmul.f32 %v10026_v48, %v5005_v8 }
 0x568   : > { %v4158_v19 = vpop.f32.mrf.mxu0  ;;  %v4965_v29 = vmul.f32 0.05, %v4051_v11  ;;  %v5372_v22 = vadd.f32 %v10031_v51, %v5188_v38  ;;  %v5091_v15 = vsel %vm4803_vm2, %v10049_v41, %v4947_v56  ;;  %v5020_v45 = vsel %vm4732_vm6, %v4077_v18, %v4876_v46 }
 0x569   : > { %v4079_v1 = vpop.f32.mrf.mxu2  ;;  %5566 = vst [vmem:[%s10036_s26 + $0x1b0] sm:$0xff] %v5422_v58  ;;  %v4159_v2 = vadd.f32 %v4158_v19, %v9942_v40  ;;  %v4199_v32 = vpop.f32.mrf.mxu1  ;;  %v5373_v27 = vadd.f32 %v10031_v51, %v5189_v16  ;;  %v10141_v52 = vmul.f32 %v9971_v59, %v5090_v4  ;;  %v5021_v5 = vsel %vm4733_vm7, %v4118_v30, %v4877_v55  ;;  %v10159_v30 = vld [vmem:[%s10849_s1 + $0x38] sm:$0xff] }
 0x56a   : > { %v4080_v20 = vadd.f32 %v4079_v1, %v9842_v50  ;;  %v4120_v17 = vpop.f32.mrf.mxu3  ;;  %5567 = vst [vmem:[%s10036_s26 + $0x1b8] sm:$0xff] %v5423_v0  ;;  %v4200_v60 = vadd.f32 %v4199_v32, %v9942_v40  ;;  %v5108_v41 = vsel %vm4820_vm3, %v10070_v7, %v4964_v62  ;;  %v5109_v18 = vsel %vm4821_vm5, %v4051_v11, %v4965_v29  ;;  %v10170_v55 = vld [vmem:[%s10849_s1 + $0x18] sm:$0xff] }
 0x56b   : > { %v4121_v54 = vadd.f32 %v4120_v17, %v9842_v50  ;;  %v10137_v28 = vpop.permute.xlu1 %5166  ;;  %5516 = vst [vmem:[%s10036_s26 + $0x20] sm:$0xff] %v5372_v22  ;;  %vm4734_vm8 = vcmp.ge.f32.partialorder %v4159_v2, 0.0  ;;  %v4878_v7 = vmul.f32 0.05, %v4159_v2  ;;  %v5202_v46 = vmul.f32 %v10080_v26, %v9995_v44 }
 0x56c   : > { %v10144_v25 = vpop.permute.xlu0 %5176  ;;  %v4894_v56 = vmul.f32 0.05, %v4080_v20  ;;  %5517 = vst [vmem:[%s10036_s26 + $0x28] sm:$0xff] %v5373_v27  ;;  %vm4750_vm9 = vcmp.ge.f32.partialorder %v4080_v20, 0.0  ;;  %vm4735_vm10 = vcmp.ge.f32.partialorder %v4200_v60, 0.0  ;;  %v10178_v0 = vmul.f32 %v9971_v59, %v5091_v15 }
 0x56d   : > { %v4895_v14 = vmul.f32 0.05, %v4121_v54  ;;  %v10152_v31 = vpop.permute.xlu2 %5360  ;;  %v5292_v4 = vmul.f32 %v10144_v25, %v5108_v41  ;;  %v5293_v43 = vmul.f32 %v10144_v25, %v5109_v18  ;;  %v4879_v11 = vmul.f32 0.05, %v4200_v60 }
 0x56e   : > { %5836 = vmatmul.msk.f32.gmra.mxu0 %vm3895_vm0, %v10159_v30  ;;  %5845 = vmatmul.msk.f32.gmra.mxu1 %vm3895_vm0, %v10159_v30  ;;  %vm4751_vm11 = vcmp.ge.f32.partialorder %v4121_v54, 0.0  ;;  %v5203_v44 = vmul.f32 %v10080_v26, %v10004_v3  ;;  %v5022_v8 = vsel %vm4734_vm8, %v4159_v2, %v4878_v7  ;;  %v5204_v1 = vmul.f32 %v10080_v26, %v5020_v45 }
 0x56f   : > { %5850 = vmatmul.msk.f32.gmra.mxu2 %vm3895_vm0, %v10170_v55  ;;  %5859 = vmatmul.msk.f32.gmra.mxu3 %vm3895_vm0, %v10170_v55  ;;  %v5476_v58 = vadd.f32 %v10152_v31, %v5292_v4  ;;  %v5477_v38 = vadd.f32 %v10152_v31, %v5293_v43  ;;  %v5023_v62 = vsel %vm4735_vm10, %v4200_v60, %v4879_v11 }
 0x570   : > { %v4161_v19 = vpop.f32.mrf.mxu0  ;;  %v5205_v16 = vmul.f32 %v10080_v26, %v5021_v5  ;;  %v5038_v29 = vsel %vm4750_vm9, %v4080_v20, %v4894_v56  ;;  %v5039_v15 = vsel %vm4751_vm11, %v4121_v54, %v4895_v14  ;;  %v5206_v2 = vmul.f32 %v10080_v26, %v5022_v8 }
 0x571   : > { %v4082_v32 = vpop.f32.mrf.mxu2  ;;  %5620 = vst [vmem:[%s10036_s26 + $0x360] sm:$0xff] %v5476_v58  ;;  %v4162_v17 = vadd.f32 %v4161_v19, %v9842_v50  ;;  %v4202_v22 = vpop.f32.mrf.mxu1  ;;  %v5207_v20 = vmul.f32 %v10080_v26, %v5023_v62 }
 0x572   : > { %v4083_v3 = vadd.f32 %v4082_v32, %v9966_v23  ;;  %v4123_v27 = vpop.f32.mrf.mxu3  ;;  %5621 = vst [vmem:[%s10036_s26 + $0x368] sm:$0xff] %v5477_v38  ;;  %v4203_v60 = vadd.f32 %v4202_v22, %v9842_v50  ;;  %v5256_v38 = vmul.f32 %v10137_v28, %v9998_v6  ;;  %v5223_v32 = vmul.f32 %v9952_v61, %v5039_v15 }
 0x573   : > { %v4124_v45 = vadd.f32 %v4123_v27, %v9966_v23  ;;  %v10195_v5 = vpop.permute.xlu1 %5181  ;;  %vm4752_vm12 = vcmp.ge.f32.partialorder %v4162_v17, 0.0  ;;  %v4896_v41 = vmul.f32 0.05, %v4162_v17 }
 0x574   : > { %vm4768_vm13 = vcmp.ge.f32.partialorder %v4083_v3, 0.0  ;;  %v4912_v18 = vmul.f32 0.05, %v4083_v3  ;;  %v10198_v54 = vpop.permute.xlu0 %5335  ;;  %vm4753_vm14 = vcmp.ge.f32.partialorder %v4203_v60, 0.0  ;;  %v4897_v56 = vmul.f32 0.05, %v4203_v60 }
 0x575   : > { %vm4769_vm15 = vcmp.ge.f32.partialorder %v4124_v45, 0.0  ;;  %v4913_v14 = vmul.f32 0.05, %v4124_v45  ;;  %v5386_v4 = vadd.f32 %v10198_v54, %v5202_v46  ;;  %v5387_v43 = vadd.f32 %v10198_v54, %v5203_v44 }
 0x576   : > { %v5056_v7 = vsel %vm4768_vm13, %v4083_v3, %v4912_v18  ;;  %v5388_v11 = vadd.f32 %v10198_v54, %v5204_v1  ;;  %v5389_v58 = vadd.f32 %v10198_v54, %v5205_v16  ;;  %5865 = vmatmul.msk.f32.vlgmr.msrb.gmra.mxu0 %vm3895_vm0, %v9988_v12  ;;  %5874 = vmatmul.msk.f32.vlgmr.msrb.gmra.mxu1 %vm3895_vm0, %v9988_v12 }
 0x577   : > { %v5240_v8 = vmul.f32 %v10091_v47, %v5056_v7  ;;  %v5057_v46 = vsel %vm4769_vm15, %v4124_v45, %v4913_v14  ;;  %5530 = vst [vmem:[%s10036_s26 + $0x90] sm:$0xff] %v5386_v4  ;;  %5851 = vmatmul.msk.f32.gmra.mxu2 %vm3895_vm0, %v9979_v34  ;;  %5860 = vmatmul.msk.f32.gmra.mxu3 %vm3895_vm0, %v9979_v34 }
 0x578   : > { %v5257_v44 = vmul.f32 %v10137_v28, %v10001_v24  ;;  %v5241_v62 = vmul.f32 %v10091_v47, %v5057_v46  ;;  %5531 = vst [vmem:[%s10036_s26 + $0x98] sm:$0xff] %v5387_v43  ;;  %v5040_v19 = vsel %vm4752_vm12, %v4162_v17, %v4896_v41  ;;  %v5041_v6 = vsel %vm4753_vm14, %v4203_v60, %v4897_v56  ;;  %v4164_v1 = vpop.f32.mrf.mxu0 }
 0x579   : > { %v5222_v16 = vmul.f32 %v9952_v61, %v5038_v29  ;;  %v5424_v22 = vadd.f32 %v10098_v35, %v5240_v8  ;;  %5532 = vst [vmem:[%s10036_s26 + $0xa0] sm:$0xff] %v5388_v11  ;;  %v4085_v3 = vpop.f32.mrf.mxu2  ;;  %v5390_v24 = vadd.f32 %v10198_v54, %v5206_v2  ;;  %v4205_v27 = vpop.f32.mrf.mxu1  ;;  %v5391_v60 = vadd.f32 %v10198_v54, %v5207_v20 }
 0x57a   : > { %v5425_v45 = vadd.f32 %v10098_v35, %v5241_v62  ;;  %5533 = vst [vmem:[%s10036_s26 + $0xa8] sm:$0xff] %v5389_v58  ;;  %v4086_v17 = vadd.f32 %v4085_v3, %v9877_v57  ;;  %v4126_v41 = vpop.f32.mrf.mxu3  ;;  %v5224_v29 = vmul.f32 %v9952_v61, %v5040_v19  ;;  %v5225_v2 = vmul.f32 %v9952_v61, %v5041_v6 }
 0x57b   : > { %5568 = vst [vmem:[%s10036_s26 + $0x1c0] sm:$0xff] %v5424_v22  ;;  %v4127_v15 = vadd.f32 %v4126_v41, %v9877_v57  ;;  %v10234_v18 = vpop.permute.xlu1 %5340  ;;  %v10239_v56 = vmul.f32 %v10195_v5, %v10016_v42  ;;  %v4165_v14 = vadd.f32 %v4164_v1, %v9966_v23  ;;  %v4206_v58 = vadd.f32 %v4205_v27, %v9966_v23 }
 0x57c   : > { %5569 = vst [vmem:[%s10036_s26 + $0x1c8] sm:$0xff] %v5425_v45  ;;  %vm4786_vm1 = vcmp.ge.f32.partialorder %v4086_v17, 0.0  ;;  %v4930_v20 = vmul.f32 0.05, %v4086_v17  ;;  %v5404_v4 = vadd.f32 %v10234_v18, %v10022_v63  ;;  %v5405_v43 = vadd.f32 %v10234_v18, %v10089_v21  ;;  %v10247_v7 = vpop.permute.xlu0 %5350 }
 0x57d   : > { %vm4787_vm2 = vcmp.ge.f32.partialorder %v4127_v15, 0.0  ;;  %v4931_v11 = vmul.f32 0.05, %v4127_v15  ;;  %5534 = vst [vmem:[%s10036_s26 + $0xb0] sm:$0xff] %v5390_v24  ;;  %v5406_v42 = vadd.f32 %v10234_v18, %v5222_v16  ;;  %v5407_v46 = vadd.f32 %v10234_v18, %v5223_v32 }
 0x57e   : > { %v5074_v8 = vsel %vm4786_vm1, %v4086_v17, %v4930_v20  ;;  %5535 = vst [vmem:[%s10036_s26 + $0xb8] sm:$0xff] %v5391_v60  ;;  %5866 = vmatmul.msk.f32.gmra.mxu0 %vm3895_vm0, %v10055_v49  ;;  %5875 = vmatmul.msk.f32.gmra.mxu1 %vm3895_vm0, %v10055_v49  ;;  %v5311_v63 = vmul.f32 %v10195_v5, %v10086_v13  ;;  %vm4770_vm3 = vcmp.ge.f32.partialorder %v4165_v14, 0.0  ;;  %v4914_v13 = vmul.f32 0.05, %v4165_v14 }
 0x57f   : > { %v5258_v21 = vmul.f32 %v10137_v28, %v5074_v8  ;;  %v5075_v62 = vsel %vm4787_vm2, %v4127_v15, %v4931_v11  ;;  %5548 = vst [vmem:[%s10036_s26 + $0x120] sm:$0xff] %v5404_v4  ;;  %v5440_v19 = vadd.f32 %v10247_v7, %v5256_v38  ;;  %5852 = vmatmul.msk.f32.gmra.mxu2 %vm3895_vm0, %v10041_v33  ;;  %vm4771_vm4 = vcmp.ge.f32.partialorder %v4206_v58, 0.0 }
 0x580   : > { %5861 = vmatmul.msk.f32.gmra.mxu3 %vm3895_vm0, %v10041_v33  ;;  %v5259_v6 = vmul.f32 %v10137_v28, %v5075_v62  ;;  %5549 = vst [vmem:[%s10036_s26 + $0x128] sm:$0xff] %v5405_v43  ;;  %v5441_v1 = vadd.f32 %v10247_v7, %v5257_v44  ;;  %v4167_v16 = vpop.f32.mrf.mxu0  ;;  %v4915_v22 = vmul.f32 0.05, %v4206_v58  ;;  %v5408_v17 = vadd.f32 %v10234_v18, %v5224_v29 }
 0x581   : > { %5550 = vst [vmem:[%s10036_s26 + $0x130] sm:$0xff] %v5406_v42  ;;  %v5442_v32 = vadd.f32 %v10247_v7, %v5258_v21  ;;  %v4088_v38 = vpop.f32.mrf.mxu2  ;;  %v4168_v3 = vadd.f32 %v4167_v16, %v9877_v57  ;;  %v4208_v24 = vpop.f32.mrf.mxu1  ;;  %v5058_v41 = vsel %vm4770_vm3, %v4165_v14, %v4914_v13  ;;  %v5409_v15 = vadd.f32 %v10234_v18, %v5225_v2 }
 0x582   : > { %5551 = vst [vmem:[%s10036_s26 + $0x138] sm:$0xff] %v5407_v46  ;;  %v5443_v27 = vadd.f32 %v10247_v7, %v5259_v6  ;;  %v4089_v45 = vadd.f32 %v4088_v38, %v9968_v9  ;;  %v4129_v44 = vpop.f32.mrf.mxu3  ;;  %v5059_v4 = vsel %vm4771_vm4, %v4206_v58, %v4915_v22  ;;  %v4209_v43 = vadd.f32 %v4208_v24, %v9877_v57 }
 0x583   : > { %5584 = vst [vmem:[%s10036_s26 + $0x240] sm:$0xff] %v5440_v19  ;;  %v4130_v60 = vadd.f32 %v4129_v44, %v9968_v9  ;;  %v10280_v20 = vpop.permute.xlu1 %5355  ;;  %v5242_v29 = vmul.f32 %v10091_v47, %v5058_v41  ;;  %vm4788_vm6 = vcmp.ge.f32.partialorder %v4168_v3, 0.0  ;;  %v5243_v21 = vmul.f32 %v10091_v47, %v5059_v4 }
 0x584   : > { %5585 = vst [vmem:[%s10036_s26 + $0x248] sm:$0xff] %v5441_v1  ;;  %vm4804_vm5 = vcmp.ge.f32.partialorder %v4089_v45, 0.0  ;;  %v4948_v11 = vmul.f32 0.05, %v4089_v45  ;;  %v10284_v42 = vpop.permute.xlu0 %5365  ;;  %v5458_v2 = vadd.f32 %v10280_v20, %v10141_v52  ;;  %v5459_v58 = vadd.f32 %v10280_v20, %v10178_v0 }
 0x585   : > { %5586 = vst [vmem:[%s10036_s26 + $0x250] sm:$0xff] %v5442_v32  ;;  %vm4805_vm7 = vcmp.ge.f32.partialorder %v4130_v60, 0.0  ;;  %v4949_v14 = vmul.f32 0.05, %v4130_v60  ;;  %v5494_v46 = vadd.f32 %v10284_v42, %v10239_v56  ;;  %v4932_v0 = vmul.f32 0.05, %v4168_v3 }
 0x586   : > { %5587 = vst [vmem:[%s10036_s26 + $0x258] sm:$0xff] %v5443_v27  ;;  %v5092_v8 = vsel %vm4804_vm5, %v4089_v45, %v4948_v11  ;;  %5867 = vmatmul.msk.f32.gmra.mxu0 %vm3895_vm0, %v10115_v10  ;;  %5876 = vmatmul.msk.f32.gmra.mxu1 %vm3895_vm0, %v10115_v10  ;;  %vm4789_vm8 = vcmp.ge.f32.partialorder %v4209_v43, 0.0  ;;  %v5495_v19 = vadd.f32 %v10284_v42, %v5311_v63  ;;  %v4933_v1 = vmul.f32 0.05, %v4209_v43 }
 0x587   : > { %v5276_v52 = vmul.f32 %v9971_v59, %v5092_v8  ;;  %v5093_v62 = vsel %vm4805_vm7, %v4130_v60, %v4949_v14  ;;  %5552 = vst [vmem:[%s10036_s26 + $0x140] sm:$0xff] %v5408_v17  ;;  %5853 = vmatmul.msk.f32.gmra.mxu2 %vm3895_vm0, %v10105_v37  ;;  %v5426_v6 = vadd.f32 %v10098_v35, %v5242_v29 }
 0x588   : > { %5862 = vmatmul.msk.f32.gmra.mxu3 %vm3895_vm0, %v10105_v37  ;;  %v5277_v56 = vmul.f32 %v9971_v59, %v5093_v62  ;;  %5553 = vst [vmem:[%s10036_s26 + $0x148] sm:$0xff] %v5409_v15  ;;  %v4170_v13 = vpop.f32.mrf.mxu0  ;;  %v5427_v38 = vadd.f32 %v10098_v35, %v5243_v21  ;;  %v5076_v22 = vsel %vm4788_vm6, %v4168_v3, %v4932_v0 }
 0x589   : > { %v5460_v16 = vadd.f32 %v10280_v20, %v5276_v52  ;;  %5602 = vst [vmem:[%s10036_s26 + $0x2d0] sm:$0xff] %v5458_v2  ;;  %v4091_v32 = vpop.f32.mrf.mxu2  ;;  %v4171_v24 = vadd.f32 %v4170_v13, %v9968_v9  ;;  %v4211_v27 = vpop.f32.mrf.mxu1  ;;  %v5260_v17 = vmul.f32 %v10137_v28, %v5076_v22  ;;  %v5077_v41 = vsel %vm4789_vm8, %v4209_v43, %v4933_v1 }
 0x58a   : > { %v5461_v45 = vadd.f32 %v10280_v20, %v5277_v56  ;;  %5603 = vst [vmem:[%s10036_s26 + $0x2d8] sm:$0xff] %v5459_v58  ;;  %v4092_v63 = vadd.f32 %v4091_v32, %v10019_v39  ;;  %v4132_v44 = vpop.f32.mrf.mxu3  ;;  %v5261_v3 = vmul.f32 %v10137_v28, %v5077_v41  ;;  %v4212_v29 = vadd.f32 %v4211_v27, %v9968_v9 }
 0x58b   : > { %5604 = vst [vmem:[%s10036_s26 + $0x2e0] sm:$0xff] %v5460_v16  ;;  %v4133_v60 = vadd.f32 %v4132_v44, %v10019_v39  ;;  %vm4806_vm9 = vcmp.ge.f32.partialorder %v4171_v24, 0.0  ;;  %v4950_v15 = vmul.f32 0.05, %v4171_v24  ;;  %v5444_v11 = vadd.f32 %v10247_v7, %v5260_v17 }
 0x58c   : > { %5605 = vst [vmem:[%s10036_s26 + $0x2e8] sm:$0xff] %v5461_v45  ;;  %vm4822_vm10 = vcmp.ge.f32.partialorder %v4092_v63, 0.0  ;;  %v4966_v4 = vmul.f32 0.05, %v4092_v63  ;;  %v5445_v43 = vadd.f32 %v10247_v7, %v5261_v3  ;;  %vm4807_vm12 = vcmp.ge.f32.partialorder %v4212_v29, 0.0 }
 0x58d   : > { %5638 = vst [vmem:[%s10036_s26 + $0x3f0] sm:$0xff] %v5494_v46  ;;  %vm4823_vm11 = vcmp.ge.f32.partialorder %v4133_v60, 0.0  ;;  %v4967_v14 = vmul.f32 0.05, %v4133_v60  ;;  %v5094_v2 = vsel %vm4806_vm9, %v4171_v24, %v4950_v15  ;;  %v4951_v21 = vmul.f32 0.05, %v4212_v29 }
 0x58e   : > { %5639 = vst [vmem:[%s10036_s26 + $0x3f8] sm:$0xff] %v5495_v19  ;;  %v5110_v58 = vsel %vm4822_vm10, %v4092_v63, %v4966_v4  ;;  %5868 = vmatmul.msk.f32.gmra.mxu0 %vm3895_vm0, %v10170_v55  ;;  %5877 = vmatmul.msk.f32.gmra.mxu1 %vm3895_vm0, %v10170_v55  ;;  %v5278_v8 = vmul.f32 %v9971_v59, %v5094_v2 }
 0x58f   : > { %v5294_v46 = vmul.f32 %v10144_v25, %v5110_v58  ;;  %v5111_v52 = vsel %vm4823_vm11, %v4133_v60, %v4967_v14  ;;  %5570 = vst [vmem:[%s10036_s26 + $0x1d0] sm:$0xff] %v5426_v6  ;;  %5854 = vmatmul.msk.f32.gmra.mxu2 %vm3895_vm0, %v10159_v30  ;;  %v5095_v0 = vsel %vm4807_vm12, %v4212_v29, %v4951_v21 }
 0x590   : > { %5863 = vmatmul.msk.f32.gmra.mxu3 %vm3895_vm0, %v10159_v30  ;;  %v5295_v62 = vmul.f32 %v10144_v25, %v5111_v52  ;;  %5571 = vst [vmem:[%s10036_s26 + $0x1d8] sm:$0xff] %v5427_v38  ;;  %v4173_v56 = vpop.f32.mrf.mxu0  ;;  %v5462_v6 = vadd.f32 %v10280_v20, %v5278_v8  ;;  %v5279_v13 = vmul.f32 %v9971_v59, %v5095_v0 }
 0x591   : > { %v5478_v19 = vadd.f32 %v10152_v31, %v5294_v46  ;;  %v4094_v1 = vpop.f32.mrf.mxu2  ;;  %5588 = vst [vmem:[%s10036_s26 + $0x260] sm:$0xff] %v5444_v11  ;;  %v4174_v16 = vadd.f32 %v4173_v56, %v10019_v39  ;;  %v4214_v32 = vpop.f32.mrf.mxu1 }
 0x592   : > { %v5479_v22 = vadd.f32 %v10152_v31, %v5295_v62  ;;  %v4095_v24 = vadd.f32 %v4094_v1, %v9905_v53  ;;  %v4135_v38 = vpop.f32.mrf.mxu3  ;;  %5589 = vst [vmem:[%s10036_s26 + $0x268] sm:$0xff] %v5445_v43  ;;  %v4215_v27 = vadd.f32 %v4214_v32, %v10019_v39  ;;  %v5463_v63 = vadd.f32 %v10280_v20, %v5279_v13 }
 0x593   : > { %5622 = vst [vmem:[%s10036_s26 + $0x370] sm:$0xff] %v5478_v19  ;;  %v4136_v45 = vadd.f32 %v4135_v38, %v9905_v53  ;;  %vm4824_vm13 = vcmp.ge.f32.partialorder %v4174_v16, 0.0  ;;  %v4968_v44 = vmul.f32 0.05, %v4174_v16 }
 0x594   : > { %5623 = vst [vmem:[%s10036_s26 + $0x378] sm:$0xff] %v5479_v22  ;;  %vm4840_vm14 = vcmp.ge.f32.partialorder %v4095_v24, 0.0  ;;  %v4984_v17 = vmul.f32 0.05, %v4095_v24  ;;  %vm4825_vm15 = vcmp.ge.f32.partialorder %v4215_v27, 0.0 }
 0x595   : > { %vm4841_vm1 = vcmp.ge.f32.partialorder %v4136_v45, 0.0  ;;  %v4985_v41 = vmul.f32 0.05, %v4136_v45  ;;  %5606 = vst [vmem:[%s10036_s26 + $0x2f0] sm:$0xff] %v5462_v6  ;;  %v5112_v60 = vsel %vm4824_vm13, %v4174_v16, %v4968_v44  ;;  %v4969_v3 = vmul.f32 0.05, %v4215_v27 }
 0x596   : > { %v5128_v15 = vsel %vm4840_vm14, %v4095_v24, %v4984_v17  ;;  %5869 = vmatmul.msk.f32.gmra.mxu0 %vm3895_vm0, %v9979_v34  ;;  %5878 = vmatmul.msk.f32.gmra.mxu1 %vm3895_vm0, %v9979_v34  ;;  %5607 = vst [vmem:[%s10036_s26 + $0x2f8] sm:$0xff] %v5463_v63  ;;  %v5296_v4 = vmul.f32 %v10144_v25, %v5112_v60 }
 0x597   : > { %v5312_v11 = vmul.f32 %v10195_v5, %v5128_v15  ;;  %v5129_v29 = vsel %vm4841_vm1, %v4136_v45, %v4985_v41  ;;  %5883 = vmatmul.msk.f32.vlgmr.msra.gmra.mxu2 %vm3895_vm0, %v9988_v12  ;;  %v5113_v14 = vsel %vm4825_vm15, %v4215_v27, %v4969_v3 }
 0x598   : > { %5892 = vmatmul.msk.f32.vlgmr.msra.gmra.mxu3 %vm3895_vm0, %v9988_v12  ;;  %v5313_v43 = vmul.f32 %v10195_v5, %v5129_v29  ;;  %v5480_v2 = vadd.f32 %v10152_v31, %v5296_v4  ;;  %v5297_v58 = vmul.f32 %v10144_v25, %v5113_v14  ;;  %v4176_v8 = vpop.f32.mrf.mxu0 }
 0x599   : > { %v5496_v21 = vadd.f32 %v10284_v42, %v5312_v11  ;;  %v4237_v46 = vpop.f32.mrf.mxu2  ;;  %v4177_v52 = vadd.f32 %v4176_v8, %v9905_v53  ;;  %v4217_v62 = vpop.f32.mrf.mxu1 }
 0x59a   : > { %v5497_v0 = vadd.f32 %v10284_v42, %v5313_v43  ;;  %v4238_v56 = vadd.f32 %v4237_v46, %v9944_v36  ;;  %v4278_v19 = vpop.f32.mrf.mxu3  ;;  %5624 = vst [vmem:[%s10036_s26 + $0x380] sm:$0xff] %v5480_v2  ;;  %v5481_v1 = vadd.f32 %v10152_v31, %v5297_v58  ;;  %v4218_v6 = vadd.f32 %v4217_v62, %v9905_v53 }
 0x59b   : > { %5640 = vst [vmem:[%s10036_s26 + $0x400] sm:$0xff] %v5496_v21  ;;  %v4279_v13 = vadd.f32 %v4278_v19, %v9944_v36  ;;  %vm4842_vm2 = vcmp.ge.f32.partialorder %v4177_v52, 0.0  ;;  %v4986_v16 = vmul.f32 0.05, %v4177_v52 }
 0x59c   : > { %5641 = vst [vmem:[%s10036_s26 + $0x408] sm:$0xff] %v5497_v0  ;;  %vm4718_vm3 = vcmp.ge.f32.partialorder %v4238_v56, 0.0  ;;  %v4862_v32 = vmul.f32 0.05, %v4238_v56  ;;  %vm4843_vm4 = vcmp.ge.f32.partialorder %v4218_v6, 0.0 }
 0x59d   : > { %vm4719_vm5 = vcmp.ge.f32.partialorder %v4279_v13, 0.0  ;;  %v4863_v22 = vmul.f32 0.05, %v4279_v13  ;;  %5625 = vst [vmem:[%s10036_s26 + $0x388] sm:$0xff] %v5481_v1  ;;  %v5130_v24 = vsel %vm4842_vm2, %v4177_v52, %v4986_v16  ;;  %v4987_v38 = vmul.f32 0.05, %v4218_v6 }
 0x59e   : > { %v5006_v27 = vsel %vm4718_vm3, %v4238_v56, %v4862_v32  ;;  %5870 = vmatmul.msk.f32.gmra.mxu0 %vm3895_vm0, %v10041_v33  ;;  %5879 = vmatmul.msk.f32.gmra.mxu1 %vm3895_vm0, %v10041_v33  ;;  %v5314_v45 = vmul.f32 %v10195_v5, %v5130_v24 }
 0x59f   : > { %v5190_v63 = vmul.f32 %v10026_v48, %v5006_v27  ;;  %v5007_v44 = vsel %vm4719_vm5, %v4279_v13, %v4863_v22  ;;  %5884 = vmatmul.msk.f32.gmra.mxu2 %vm3895_vm0, %v10055_v49  ;;  %v5131_v17 = vsel %vm4843_vm4, %v4218_v6, %v4987_v38 }
 0x5a0   : > { %5893 = vmatmul.msk.f32.gmra.mxu3 %vm3895_vm0, %v10055_v49  ;;  %v5191_v41 = vmul.f32 %v10026_v48, %v5007_v44  ;;  %v5498_v60 = vadd.f32 %v10284_v42, %v5314_v45  ;;  %v5315_v3 = vmul.f32 %v10195_v5, %v5131_v17 }
 0x5a1   : > { %v5374_v15 = vadd.f32 %v10031_v51, %v5190_v63  ;;  %v4240_v4 = vpop.f32.mrf.mxu2 }
 0x5a2   : > { %v5375_v11 = vadd.f32 %v10031_v51, %v5191_v41  ;;  %v4241_v29 = vadd.f32 %v4240_v4, %v9942_v40  ;;  %v4281_v14 = vpop.f32.mrf.mxu3  ;;  %5642 = vst [vmem:[%s10036_s26 + $0x410] sm:$0xff] %v5498_v60  ;;  %v5499_v43 = vadd.f32 %v10284_v42, %v5315_v3 }
 0x5a3   : > { %5518 = vst [vmem:[%s10036_s26 + $0x30] sm:$0xff] %v5374_v15  ;;  %v4282_v2 = vadd.f32 %v4281_v14, %v9942_v40 }
 0x5a4   : > { %5519 = vst [vmem:[%s10036_s26 + $0x38] sm:$0xff] %v5375_v11  ;;  %vm4736_vm6 = vcmp.ge.f32.partialorder %v4241_v29, 0.0  ;;  %v4880_v58 = vmul.f32 0.05, %v4241_v29 }
 0x5a5   : > { %vm4737_vm7 = vcmp.ge.f32.partialorder %v4282_v2, 0.0  ;;  %v4881_v8 = vmul.f32 0.05, %v4282_v2  ;;  %5643 = vst [vmem:[%s10036_s26 + $0x418] sm:$0xff] %v5499_v43 }
 0x5a6   : > { %v5024_v21 = vsel %vm4736_vm6, %v4241_v29, %v4880_v58  ;;  %5871 = vmatmul.msk.f32.gmra.mxu0 %vm3895_vm0, %v10105_v37  ;;  %5880 = vmatmul.msk.f32.gmra.mxu1 %vm3895_vm0, %v10105_v37 }
 0x5a7   : > { %v5208_v46 = vmul.f32 %v10080_v26, %v5024_v21  ;;  %v5025_v52 = vsel %vm4737_vm7, %v4282_v2, %v4881_v8  ;;  %5885 = vmatmul.msk.f32.gmra.mxu2 %vm3895_vm0, %v10115_v10 }
 0x5a8   : > { %5894 = vmatmul.msk.f32.gmra.mxu3 %vm3895_vm0, %v10115_v10  ;;  %v5209_v62 = vmul.f32 %v10080_v26, %v5025_v52 }
 0x5a9   : > { %v5392_v0 = vadd.f32 %v10198_v54, %v5208_v46  ;;  %v4243_v56 = vpop.f32.mrf.mxu2 }
 0x5aa   : > { %v5393_v19 = vadd.f32 %v10198_v54, %v5209_v62  ;;  %v4244_v1 = vadd.f32 %v4243_v56, %v9842_v50  ;;  %v4284_v6 = vpop.f32.mrf.mxu3 }
 0x5ab   : > { %5536 = vst [vmem:[%s10036_s26 + $0xc0] sm:$0xff] %v5392_v0  ;;  %v4285_v13 = vadd.f32 %v4284_v6, %v9842_v50 }
 0x5ac   : > { %5537 = vst [vmem:[%s10036_s26 + $0xc8] sm:$0xff] %v5393_v19  ;;  %vm4754_vm8 = vcmp.ge.f32.partialorder %v4244_v1, 0.0  ;;  %v4898_v16 = vmul.f32 0.05, %v4244_v1 }
 0x5ad   : > { %vm4755_vm9 = vcmp.ge.f32.partialorder %v4285_v13, 0.0  ;;  %v4899_v32 = vmul.f32 0.05, %v4285_v13 }
 0x5ae   : > { %v5042_v22 = vsel %vm4754_vm8, %v4244_v1, %v4898_v16  ;;  %5872 = vmatmul.msk.f32.gmra.mxu0 %vm3895_vm0, %v10159_v30  ;;  %5881 = vmatmul.msk.f32.gmra.mxu1 %vm3895_vm0, %v10159_v30 }
 0x5af   : > { %v5226_v24 = vmul.f32 %v9952_v61, %v5042_v22  ;;  %v5043_v38 = vsel %vm4755_vm9, %v4285_v13, %v4899_v32  ;;  %5886 = vmatmul.msk.f32.gmra.mxu2 %vm3895_vm0, %v10170_v55  ;;  %v4319_v27 = vpop.f32.mrf.mxu0  ;;  %v4360_v45 = vpop.f32.mrf.mxu1 }
 0x5b0   : > { %5895 = vmatmul.msk.f32.gmra.mxu3 %vm3895_vm0, %v10170_v55  ;;  %v5227_v63 = vmul.f32 %v9952_v61, %v5043_v38  ;;  %v4320_v44 = vadd.f32 %v4319_v27, %v9944_v36  ;;  %v4361_v17 = vadd.f32 %v4360_v45, %v9944_v36 }
 0x5b1   : > { %v5410_v41 = vadd.f32 %v10234_v18, %v5226_v24  ;;  %v4246_v60 = vpop.f32.mrf.mxu2 }
 0x5b2   : > { %v5411_v3 = vadd.f32 %v10234_v18, %v5227_v63  ;;  %v4247_v15 = vadd.f32 %v4246_v60, %v9966_v23  ;;  %v4287_v4 = vpop.f32.mrf.mxu3  ;;  %vm4720_vm10 = vcmp.ge.f32.partialorder %v4320_v44, 0.0  ;;  %v4864_v11 = vmul.f32 0.05, %v4320_v44 }
 0x5b3   : > { %5554 = vst [vmem:[%s10036_s26 + $0x150] sm:$0xff] %v5410_v41  ;;  %v4288_v29 = vadd.f32 %v4287_v4, %v9966_v23  ;;  %vm4721_vm11 = vcmp.ge.f32.partialorder %v4361_v17, 0.0  ;;  %v4865_v14 = vmul.f32 0.05, %v4361_v17 }
 0x5b4   : > { %5555 = vst [vmem:[%s10036_s26 + $0x158] sm:$0xff] %v5411_v3  ;;  %vm4772_vm12 = vcmp.ge.f32.partialorder %v4247_v15, 0.0  ;;  %v4916_v43 = vmul.f32 0.05, %v4247_v15  ;;  %v5008_v2 = vsel %vm4720_vm10, %v4320_v44, %v4864_v11 }
 0x5b5   : > { %vm4773_vm13 = vcmp.ge.f32.partialorder %v4288_v29, 0.0  ;;  %v4917_v58 = vmul.f32 0.05, %v4288_v29  ;;  %v5192_v8 = vmul.f32 %v10026_v48, %v5008_v2  ;;  %v5009_v21 = vsel %vm4721_vm11, %v4361_v17, %v4865_v14 }
 0x5b6   : > { %v5060_v46 = vsel %vm4772_vm12, %v4247_v15, %v4916_v43  ;;  %v5193_v52 = vmul.f32 %v10026_v48, %v5009_v21  ;;  %5901 = vmatmul.msk.f32.vlgmr.msra.gmra.mxu0 %vm3895_vm0, %v9988_v12  ;;  %5910 = vmatmul.msk.f32.vlgmr.msra.gmra.mxu1 %vm3895_vm0, %v9988_v12 }
 0x5b7   : > { %v5244_v62 = vmul.f32 %v10091_v47, %v5060_v46  ;;  %v5061_v0 = vsel %vm4773_vm13, %v4288_v29, %v4917_v58  ;;  %v5376_v56 = vadd.f32 %v10031_v51, %v5192_v8  ;;  %5887 = vmatmul.msk.f32.gmra.mxu2 %vm3895_vm0, %v9979_v34 }
 0x5b8   : > { %5896 = vmatmul.msk.f32.gmra.mxu3 %vm3895_vm0, %v9979_v34  ;;  %v5245_v19 = vmul.f32 %v10091_v47, %v5061_v0  ;;  %v5377_v1 = vadd.f32 %v10031_v51, %v5193_v52 }
 0x5b9   : > { %v5428_v6 = vadd.f32 %v10098_v35, %v5244_v62  ;;  %5520 = vst [vmem:[%s10036_s26 + $0x40] sm:$0xff] %v5376_v56  ;;  %v4249_v12 = vpop.f32.mrf.mxu2 }
 0x5ba   : > { %v5429_v13 = vadd.f32 %v10098_v35, %v5245_v19  ;;  %5521 = vst [vmem:[%s10036_s26 + $0x48] sm:$0xff] %v5377_v1  ;;  %v4250_v16 = vadd.f32 %v4249_v12, %v9877_v57  ;;  %v4290_v32 = vpop.f32.mrf.mxu3  ;;  %v4322_v22 = vpop.f32.mrf.mxu0 }
 0x5bb   : > { %5572 = vst [vmem:[%s10036_s26 + $0x1e0] sm:$0xff] %v5428_v6  ;;  %v4291_v24 = vadd.f32 %v4290_v32, %v9877_v57  ;;  %v4323_v34 = vadd.f32 %v4322_v22, %v9942_v40  ;;  %v4363_v38 = vpop.f32.mrf.mxu1 }
 0x5bc   : > { %5573 = vst [vmem:[%s10036_s26 + $0x1e8] sm:$0xff] %v5429_v13  ;;  %vm4790_vm14 = vcmp.ge.f32.partialorder %v4250_v16, 0.0  ;;  %v4934_v27 = vmul.f32 0.05, %v4250_v16  ;;  %v4364_v45 = vadd.f32 %v4363_v38, %v9942_v40 }
 0x5bd   : > { %vm4791_vm15 = vcmp.ge.f32.partialorder %v4291_v24, 0.0  ;;  %v4935_v63 = vmul.f32 0.05, %v4291_v24  ;;  %vm4738_vm1 = vcmp.ge.f32.partialorder %v4323_v34, 0.0  ;;  %v4882_v44 = vmul.f32 0.05, %v4323_v34 }
 0x5be   : > { %v5078_v17 = vsel %vm4790_vm14, %v4250_v16, %v4934_v27  ;;  %vm4739_vm2 = vcmp.ge.f32.partialorder %v4364_v45, 0.0  ;;  %v4883_v41 = vmul.f32 0.05, %v4364_v45  ;;  %5902 = vmatmul.msk.f32.gmra.mxu0 %vm3895_vm0, %v10055_v49  ;;  %5911 = vmatmul.msk.f32.gmra.mxu1 %vm3895_vm0, %v10055_v49 }
 0x5bf   : > { %v5262_v60 = vmul.f32 %v10137_v28, %v5078_v17  ;;  %v5079_v3 = vsel %vm4791_vm15, %v4291_v24, %v4935_v63  ;;  %v5026_v15 = vsel %vm4738_vm1, %v4323_v34, %v4882_v44  ;;  %5888 = vmatmul.msk.f32.gmra.mxu2 %vm3895_vm0, %v10041_v33 }
 0x5c0   : > { %5897 = vmatmul.msk.f32.gmra.mxu3 %vm3895_vm0, %v10041_v33  ;;  %v5263_v4 = vmul.f32 %v10137_v28, %v5079_v3  ;;  %v5210_v11 = vmul.f32 %v10080_v26, %v5026_v15  ;;  %v5027_v29 = vsel %vm4739_vm2, %v4364_v45, %v4883_v41 }
 0x5c1   : > { %v5446_v14 = vadd.f32 %v10247_v7, %v5262_v60  ;;  %v5211_v49 = vmul.f32 %v10080_v26, %v5027_v29  ;;  %v4252_v43 = vpop.f32.mrf.mxu2 }
 0x5c2   : > { %v5447_v2 = vadd.f32 %v10247_v7, %v5263_v4  ;;  %v5394_v58 = vadd.f32 %v10198_v54, %v5210_v11  ;;  %v4253_v8 = vadd.f32 %v4252_v43, %v9968_v9  ;;  %v4293_v33 = vpop.f32.mrf.mxu3  ;;  %v4325_v21 = vpop.f32.mrf.mxu0 }
 0x5c3   : > { %5590 = vst [vmem:[%s10036_s26 + $0x270] sm:$0xff] %v5446_v14  ;;  %v5395_v46 = vadd.f32 %v10198_v54, %v5211_v49  ;;  %v4294_v52 = vadd.f32 %v4293_v33, %v9968_v9  ;;  %v4326_v62 = vadd.f32 %v4325_v21, %v9842_v50  ;;  %v4366_v0 = vpop.f32.mrf.mxu1 }
 0x5c4   : > { %5591 = vst [vmem:[%s10036_s26 + $0x278] sm:$0xff] %v5447_v2  ;;  %vm4808_vm3 = vcmp.ge.f32.partialorder %v4253_v8, 0.0  ;;  %v4952_v56 = vmul.f32 0.05, %v4253_v8  ;;  %v4367_v19 = vadd.f32 %v4366_v0, %v9842_v50 }
 0x5c5   : > { %5538 = vst [vmem:[%s10036_s26 + $0xd0] sm:$0xff] %v5394_v58  ;;  %vm4809_vm4 = vcmp.ge.f32.partialorder %v4294_v52, 0.0  ;;  %v4953_v1 = vmul.f32 0.05, %v4294_v52  ;;  %vm4756_vm5 = vcmp.ge.f32.partialorder %v4326_v62, 0.0 }
 0x5c6   : > { %5539 = vst [vmem:[%s10036_s26 + $0xd8] sm:$0xff] %v5395_v46  ;;  %v5096_v6 = vsel %vm4808_vm3, %v4253_v8, %v4952_v56  ;;  %v4900_v12 = vmul.f32 0.05, %v4326_v62  ;;  %vm4757_vm6 = vcmp.ge.f32.partialorder %v4367_v19, 0.0  ;;  %v4901_v13 = vmul.f32 0.05, %v4367_v19  ;;  %5903 = vmatmul.msk.f32.gmra.mxu0 %vm3895_vm0, %v10115_v10  ;;  %5912 = vmatmul.msk.f32.gmra.mxu1 %vm3895_vm0, %v10115_v10 }
 0x5c7   : > { %v5280_v16 = vmul.f32 %v9971_v59, %v5096_v6  ;;  %v5097_v32 = vsel %vm4809_vm4, %v4294_v52, %v4953_v1  ;;  %5889 = vmatmul.msk.f32.gmra.mxu2 %vm3895_vm0, %v10105_v37 }
 0x5c8   : > { %5898 = vmatmul.msk.f32.gmra.mxu3 %vm3895_vm0, %v10105_v37  ;;  %v5281_v22 = vmul.f32 %v9971_v59, %v5097_v32  ;;  %v5044_v24 = vsel %vm4756_vm5, %v4326_v62, %v4900_v12  ;;  %v5045_v34 = vsel %vm4757_vm6, %v4367_v19, %v4901_v13 }
 0x5c9   : > { %v5464_v38 = vadd.f32 %v10280_v20, %v5280_v16  ;;  %v5228_v27 = vmul.f32 %v9952_v61, %v5044_v24  ;;  %v5229_v10 = vmul.f32 %v9952_v61, %v5045_v34  ;;  %v4255_v45 = vpop.f32.mrf.mxu2 }
 0x5ca   : > { %v5465_v63 = vadd.f32 %v10280_v20, %v5281_v22  ;;  %v4256_v44 = vadd.f32 %v4255_v45, %v10019_v39  ;;  %v4296_v17 = vpop.f32.mrf.mxu3  ;;  %v4328_v37 = vpop.f32.mrf.mxu0 }
 0x5cb   : > { %5608 = vst [vmem:[%s10036_s26 + $0x300] sm:$0xff] %v5464_v38  ;;  %v5412_v41 = vadd.f32 %v10234_v18, %v5228_v27  ;;  %v5413_v60 = vadd.f32 %v10234_v18, %v5229_v10  ;;  %v4297_v3 = vadd.f32 %v4296_v17, %v10019_v39  ;;  %v4329_v15 = vadd.f32 %v4328_v37, %v9966_v23  ;;  %v4369_v4 = vpop.f32.mrf.mxu1  ;;  %v5976_v10 = vld [vmem:[%s10849_s1 + $0x20] sm:$0xff] }
 0x5cc   : > { %5609 = vst [vmem:[%s10036_s26 + $0x308] sm:$0xff] %v5465_v63  ;;  %vm4826_vm7 = vcmp.ge.f32.partialorder %v4256_v44, 0.0  ;;  %v4970_v11 = vmul.f32 0.05, %v4256_v44  ;;  %v4370_v29 = vadd.f32 %v4369_v4, %v9966_v23 }
 0x5cd   : > { %5556 = vst [vmem:[%s10036_s26 + $0x160] sm:$0xff] %v5412_v41  ;;  %vm4827_vm8 = vcmp.ge.f32.partialorder %v4297_v3, 0.0  ;;  %v4971_v14 = vmul.f32 0.05, %v4297_v3  ;;  %vm4774_vm9 = vcmp.ge.f32.partialorder %v4329_v15, 0.0 }
 0x5ce   : > { %5557 = vst [vmem:[%s10036_s26 + $0x168] sm:$0xff] %v5413_v60  ;;  %v5114_v49 = vsel %vm4826_vm7, %v4256_v44, %v4970_v11  ;;  %v4918_v43 = vmul.f32 0.05, %v4329_v15  ;;  %vm4775_vm10 = vcmp.ge.f32.partialorder %v4370_v29, 0.0  ;;  %v4919_v2 = vmul.f32 0.05, %v4370_v29  ;;  %5904 = vmatmul.msk.f32.gmra.mxu0 %vm3895_vm0, %v10170_v55  ;;  %5913 = vmatmul.msk.f32.gmra.mxu1 %vm3895_vm0, %v10170_v55 }
 0x5cf   : > { %v5298_v58 = vmul.f32 %v10144_v25, %v5114_v49  ;;  %v5115_v8 = vsel %vm4827_vm8, %v4297_v3, %v4971_v14  ;;  %5890 = vmatmul.msk.f32.gmra.mxu2 %vm3895_vm0, %v10159_v30 }
 0x5d0   : > { %5899 = vmatmul.msk.f32.gmra.mxu3 %vm3895_vm0, %v10159_v30  ;;  %v5299_v33 = vmul.f32 %v10144_v25, %v5115_v8  ;;  %v5062_v21 = vsel %vm4774_vm9, %v4329_v15, %v4918_v43  ;;  %v5063_v46 = vsel %vm4775_vm10, %v4370_v29, %v4919_v2 }
 0x5d1   : > { %v5482_v52 = vadd.f32 %v10152_v31, %v5298_v58  ;;  %v5246_v62 = vmul.f32 %v10091_v47, %v5062_v21  ;;  %v5247_v55 = vmul.f32 %v10091_v47, %v5063_v46  ;;  %v4258_v0 = vpop.f32.mrf.mxu2 }
 0x5d2   : > { %v5483_v56 = vadd.f32 %v10152_v31, %v5299_v33  ;;  %v4259_v19 = vadd.f32 %v4258_v0, %v9905_v53  ;;  %v4299_v1 = vpop.f32.mrf.mxu3 }
 0x5d3   : > { %5626 = vst [vmem:[%s10036_s26 + $0x390] sm:$0xff] %v5482_v52  ;;  %v5430_v30 = vadd.f32 %v10098_v35, %v5246_v62  ;;  %v5431_v6 = vadd.f32 %v10098_v35, %v5247_v55  ;;  %v4300_v12 = vadd.f32 %v4299_v1, %v9905_v53  ;;  %v4331_v13 = vpop.f32.mrf.mxu0  ;;  %v4372_v16 = vpop.f32.mrf.mxu1  ;;  %v5977_v55 = vld [vmem:[%s10849_s1 + $0x28] sm:$0xff] }
 0x5d4   : > { %5627 = vst [vmem:[%s10036_s26 + $0x398] sm:$0xff] %v5483_v56  ;;  %vm4844_vm11 = vcmp.ge.f32.partialorder %v4259_v19, 0.0  ;;  %v4988_v32 = vmul.f32 0.05, %v4259_v19  ;;  %v4332_v22 = vadd.f32 %v4331_v13, %v9877_v57  ;;  %v4373_v24 = vadd.f32 %v4372_v16, %v9877_v57 }
 0x5d5   : > { %5574 = vst [vmem:[%s10036_s26 + $0x1f0] sm:$0xff] %v5430_v30  ;;  %vm4845_vm12 = vcmp.ge.f32.partialorder %v4300_v12, 0.0  ;;  %v4989_v34 = vmul.f32 0.05, %v4300_v12 }
 0x5d6   : > { %5575 = vst [vmem:[%s10036_s26 + $0x1f8] sm:$0xff] %v5431_v6  ;;  %v5132_v38 = vsel %vm4844_vm11, %v4259_v19, %v4988_v32  ;;  %vm4792_vm13 = vcmp.ge.f32.partialorder %v4332_v22, 0.0  ;;  %v4936_v27 = vmul.f32 0.05, %v4332_v22  ;;  %vm4793_vm14 = vcmp.ge.f32.partialorder %v4373_v24, 0.0  ;;  %5905 = vmatmul.msk.f32.gmra.mxu0 %vm3895_vm0, %v5976_v10  ;;  %5914 = vmatmul.msk.f32.gmra.mxu1 %vm3895_vm0, %v5976_v10 }
 0x5d7   : > { %v5316_v45 = vmul.f32 %v10195_v5, %v5132_v38  ;;  %v5133_v63 = vsel %vm4845_vm12, %v4300_v12, %v4989_v34  ;;  %v4937_v44 = vmul.f32 0.05, %v4373_v24 }
 0x5d8   : > { %v5317_v17 = vmul.f32 %v10195_v5, %v5133_v63  ;;  %v5080_v37 = vsel %vm4792_vm13, %v4332_v22, %v4936_v27 }
 0x5d9   : > { %v5500_v41 = vadd.f32 %v10284_v42, %v5316_v45  ;;  %v5264_v60 = vmul.f32 %v10137_v28, %v5080_v37  ;;  %v5081_v3 = vsel %vm4793_vm14, %v4373_v24, %v4937_v44 }
 0x5da   : > { %v5501_v15 = vadd.f32 %v10284_v42, %v5317_v17  ;;  %v5265_v4 = vmul.f32 %v10137_v28, %v5081_v3  ;;  %v4401_v11 = vpop.f32.mrf.mxu2  ;;  %v4442_v29 = vpop.f32.mrf.mxu3 }
 0x5db   : > { %5644 = vst [vmem:[%s10036_s26 + $0x420] sm:$0xff] %v5500_v41  ;;  %v5448_v14 = vadd.f32 %v10247_v7, %v5264_v60  ;;  %v4402_v49 = vadd.f32 %v4401_v11, %v9944_v36  ;;  %v4443_v43 = vadd.f32 %v4442_v29, %v9944_v36  ;;  %v4334_v2 = vpop.f32.mrf.mxu0  ;;  %v4375_v58 = vpop.f32.mrf.mxu1 }
 0x5dc   : > { %5645 = vst [vmem:[%s10036_s26 + $0x428] sm:$0xff] %v5501_v15  ;;  %v5449_v8 = vadd.f32 %v10247_v7, %v5265_v4  ;;  %v4335_v33 = vadd.f32 %v4334_v2, %v9968_v9  ;;  %v4376_v21 = vadd.f32 %v4375_v58, %v9968_v9  ;;  %v5978_v15 = vld [vmem:[%s10849_s1 + $0x30] sm:$0xff] }
 0x5dd   : > { %5592 = vst [vmem:[%s10036_s26 + $0x280] sm:$0xff] %v5448_v14  ;;  %vm4722_vm15 = vcmp.ge.f32.partialorder %v4402_v49, 0.0  ;;  %v4866_v46 = vmul.f32 0.05, %v4402_v49  ;;  %vm4723_vm1 = vcmp.ge.f32.partialorder %v4443_v43, 0.0 }
 0x5de   : > { %5593 = vst [vmem:[%s10036_s26 + $0x288] sm:$0xff] %v5449_v8  ;;  %v4867_v52 = vmul.f32 0.05, %v4443_v43  ;;  %vm4810_vm2 = vcmp.ge.f32.partialorder %v4335_v33, 0.0  ;;  %v4954_v62 = vmul.f32 0.05, %v4335_v33  ;;  %5906 = vmatmul.msk.f32.gmra.mxu0 %vm3895_vm0, %v5977_v55  ;;  %5915 = vmatmul.msk.f32.gmra.mxu1 %vm3895_vm0, %v5977_v55 }
 0x5df   : > { %v5010_v0 = vsel %vm4722_vm15, %v4402_v49, %v4866_v46  ;;  %vm4811_vm3 = vcmp.ge.f32.partialorder %v4376_v21, 0.0  ;;  %v4955_v56 = vmul.f32 0.05, %v4376_v21 }
 0x5e0   : > { %v5194_v19 = vmul.f32 %v10026_v48, %v5010_v0  ;;  %v5011_v1 = vsel %vm4723_vm1, %v4443_v43, %v4867_v52  ;;  %v5098_v30 = vsel %vm4810_vm2, %v4335_v33, %v4954_v62 }
 0x5e1   : > { %v5195_v6 = vmul.f32 %v10026_v48, %v5011_v1  ;;  %v5282_v12 = vmul.f32 %v9971_v59, %v5098_v30  ;;  %v5099_v13 = vsel %vm4811_vm3, %v4376_v21, %v4955_v56 }
 0x5e2   : > { %v5378_v16 = vadd.f32 %v10031_v51, %v5194_v19  ;;  %v5283_v32 = vmul.f32 %v9971_v59, %v5099_v13  ;;  %v4404_v22 = vpop.f32.mrf.mxu2  ;;  %v4445_v24 = vpop.f32.mrf.mxu3 }
 0x5e3   : > { %v5379_v34 = vadd.f32 %v10031_v51, %v5195_v6  ;;  %v5466_v38 = vadd.f32 %v10280_v20, %v5282_v12  ;;  %v4405_v27 = vadd.f32 %v4404_v22, %v9942_v40  ;;  %v4446_v10 = vadd.f32 %v4445_v24, %v9942_v40  ;;  %v4337_v45 = vpop.f32.mrf.mxu0  ;;  %v4378_v63 = vpop.f32.mrf.mxu1 }
 0x5e4   : > { %5522 = vst [vmem:[%s10036_s26 + $0x50] sm:$0xff] %v5378_v16  ;;  %v5467_v44 = vadd.f32 %v10280_v20, %v5283_v32  ;;  %v4338_v17 = vadd.f32 %v4337_v45, %v10019_v39  ;;  %v4379_v37 = vadd.f32 %v4378_v63, %v10019_v39  ;;  %v5979_v32 = vld [vmem:[%s10849_s1 + $0x38] sm:$0xff] }
 0x5e5   : > { %5523 = vst [vmem:[%s10036_s26 + $0x58] sm:$0xff] %v5379_v34  ;;  %vm4740_vm4 = vcmp.ge.f32.partialorder %v4405_v27, 0.0  ;;  %v4884_v41 = vmul.f32 0.05, %v4405_v27  ;;  %vm4741_vm5 = vcmp.ge.f32.partialorder %v4446_v10, 0.0 }
 0x5e6   : > { %5610 = vst [vmem:[%s10036_s26 + $0x310] sm:$0xff] %v5466_v38  ;;  %v4885_v60 = vmul.f32 0.05, %v4446_v10  ;;  %vm4828_vm6 = vcmp.ge.f32.partialorder %v4338_v17, 0.0  ;;  %v4972_v3 = vmul.f32 0.05, %v4338_v17  ;;  %5907 = vmatmul.msk.f32.gmra.mxu0 %vm3895_vm0, %v5978_v15  ;;  %5916 = vmatmul.msk.f32.gmra.mxu1 %vm3895_vm0, %v5978_v15 }
 0x5e7   : > { %5611 = vst [vmem:[%s10036_s26 + $0x318] sm:$0xff] %v5467_v44  ;;  %v5028_v4 = vsel %vm4740_vm4, %v4405_v27, %v4884_v41  ;;  %vm4829_vm7 = vcmp.ge.f32.partialorder %v4379_v37, 0.0  ;;  %v4973_v11 = vmul.f32 0.05, %v4379_v37 }
 0x5e8   : > { %v5212_v29 = vmul.f32 %v10080_v26, %v5028_v4  ;;  %v5029_v14 = vsel %vm4741_vm5, %v4446_v10, %v4885_v60  ;;  %v5116_v49 = vsel %vm4828_vm6, %v4338_v17, %v4972_v3 }
 0x5e9   : > { %v5213_v43 = vmul.f32 %v10080_v26, %v5029_v14  ;;  %v5300_v2 = vmul.f32 %v10144_v25, %v5116_v49  ;;  %v5117_v58 = vsel %vm4829_vm7, %v4379_v37, %v4973_v11 }
 0x5ea   : > { %v5396_v8 = vadd.f32 %v10198_v54, %v5212_v29  ;;  %v5301_v33 = vmul.f32 %v10144_v25, %v5117_v58  ;;  %v4407_v21 = vpop.f32.mrf.mxu2  ;;  %v4448_v46 = vpop.f32.mrf.mxu3 }
 0x5eb   : > { %v5397_v52 = vadd.f32 %v10198_v54, %v5213_v43  ;;  %v5484_v62 = vadd.f32 %v10152_v31, %v5300_v2  ;;  %v4408_v55 = vadd.f32 %v4407_v21, %v9842_v50  ;;  %v4449_v0 = vadd.f32 %v4448_v46, %v9842_v50  ;;  %v4340_v56 = vpop.f32.mrf.mxu0  ;;  %v4381_v19 = vpop.f32.mrf.mxu1 }
 0x5ec   : > { %5540 = vst [vmem:[%s10036_s26 + $0xe0] sm:$0xff] %v5396_v8  ;;  %v5485_v1 = vadd.f32 %v10152_v31, %v5301_v33  ;;  %v4341_v30 = vadd.f32 %v4340_v56, %v9905_v53  ;;  %v4382_v6 = vadd.f32 %v4381_v19, %v9905_v53 }
 0x5ed   : > { %5541 = vst [vmem:[%s10036_s26 + $0xe8] sm:$0xff] %v5397_v52  ;;  %vm4758_vm8 = vcmp.ge.f32.partialorder %v4408_v55, 0.0  ;;  %v4902_v12 = vmul.f32 0.05, %v4408_v55  ;;  %vm4759_vm9 = vcmp.ge.f32.partialorder %v4449_v0, 0.0 }
 0x5ee   : > { %5628 = vst [vmem:[%s10036_s26 + $0x3a0] sm:$0xff] %v5484_v62  ;;  %v4903_v13 = vmul.f32 0.05, %v4449_v0  ;;  %vm4846_vm10 = vcmp.ge.f32.partialorder %v4341_v30, 0.0  ;;  %v4990_v16 = vmul.f32 0.05, %v4341_v30  ;;  %5908 = vmatmul.msk.f32.gmra.mxu0 %vm3895_vm0, %v5979_v32  ;;  %5917 = vmatmul.msk.f32.gmra.mxu1 %vm3895_vm0, %v5979_v32 }
 0x5ef   : > { %5629 = vst [vmem:[%s10036_s26 + $0x3a8] sm:$0xff] %v5485_v1  ;;  %v5046_v22 = vsel %vm4758_vm8, %v4408_v55, %v4902_v12  ;;  %vm4847_vm11 = vcmp.ge.f32.partialorder %v4382_v6, 0.0  ;;  %v4991_v24 = vmul.f32 0.05, %v4382_v6 }
 0x5f0   : > { %v5230_v34 = vmul.f32 %v9952_v61, %v5046_v22  ;;  %v5047_v38 = vsel %vm4759_vm9, %v4449_v0, %v4903_v13  ;;  %v5134_v27 = vsel %vm4846_vm10, %v4341_v30, %v4990_v16 }
 0x5f1   : > { %v5231_v10 = vmul.f32 %v9952_v61, %v5047_v38  ;;  %v5318_v45 = vmul.f32 %v10195_v5, %v5134_v27  ;;  %v5135_v63 = vsel %vm4847_vm11, %v4382_v6, %v4991_v24 }
 0x5f2   : > { %v5414_v44 = vadd.f32 %v10234_v18, %v5230_v34  ;;  %v5319_v17 = vmul.f32 %v10195_v5, %v5135_v63  ;;  %v4410_v37 = vpop.f32.mrf.mxu2  ;;  %v4451_v41 = vpop.f32.mrf.mxu3 }
 0x5f3   : > { %v5415_v60 = vadd.f32 %v10234_v18, %v5231_v10  ;;  %v5502_v3 = vadd.f32 %v10284_v42, %v5318_v45  ;;  %v4411_v15 = vadd.f32 %v4410_v37, %v9966_v23  ;;  %v4452_v4 = vadd.f32 %v4451_v41, %v9966_v23  ;;  %v4483_v11 = vpop.f32.mrf.mxu0  ;;  %v4524_v29 = vpop.f32.mrf.mxu1 }
 0x5f4   : > { %5558 = vst [vmem:[%s10036_s26 + $0x170] sm:$0xff] %v5414_v44  ;;  %v5503_v14 = vadd.f32 %v10284_v42, %v5319_v17  ;;  %v4484_v49 = vadd.f32 %v4483_v11, %v9944_v36  ;;  %v4525_v43 = vadd.f32 %v4524_v29, %v9944_v36 }
 0x5f5   : > { %5559 = vst [vmem:[%s10036_s26 + $0x178] sm:$0xff] %v5415_v60  ;;  %vm4776_vm0 = vcmp.ge.f32.partialorder %v4411_v15, 0.0  ;;  %v4920_v2 = vmul.f32 0.05, %v4411_v15  ;;  %vm4777_vm12 = vcmp.ge.f32.partialorder %v4452_v4, 0.0 }
 0x5f6   : > { %5646 = vst [vmem:[%s10036_s26 + $0x430] sm:$0xff] %v5502_v3  ;;  %v4921_v58 = vmul.f32 0.05, %v4452_v4  ;;  %vm4724_vm13 = vcmp.ge.f32.partialorder %v4484_v49, 0.0  ;;  %v4868_v8 = vmul.f32 0.05, %v4484_v49 }
 0x5f7   : > { %5647 = vst [vmem:[%s10036_s26 + $0x438] sm:$0xff] %v5503_v14  ;;  %v5064_v33 = vsel %vm4776_vm0, %v4411_v15, %v4920_v2  ;;  %vm4725_vm14 = vcmp.ge.f32.partialorder %v4525_v43, 0.0  ;;  %v4869_v21 = vmul.f32 0.05, %v4525_v43 }
 0x5f8   : > { %v5248_v46 = vmul.f32 %v10091_v47, %v5064_v33  ;;  %v5065_v52 = vsel %vm4777_vm12, %v4452_v4, %v4921_v58  ;;  %v5012_v62 = vsel %vm4724_vm13, %v4484_v49, %v4868_v8 }
 0x5f9   : > { %v5249_v55 = vmul.f32 %v10091_v47, %v5065_v52  ;;  %v5196_v0 = vmul.f32 %v10026_v48, %v5012_v62  ;;  %v5013_v56 = vsel %vm4725_vm14, %v4525_v43, %v4869_v21 }
 0x5fa   : > { %v5432_v19 = vadd.f32 %v10098_v35, %v5248_v46  ;;  %v5197_v1 = vmul.f32 %v10026_v48, %v5013_v56  ;;  %v4413_v30 = vpop.f32.mrf.mxu2  ;;  %v4454_v6 = vpop.f32.mrf.mxu3 }
 0x5fb   : > { %v5433_v12 = vadd.f32 %v10098_v35, %v5249_v55  ;;  %v5380_v13 = vadd.f32 %v10031_v51, %v5196_v0  ;;  %v4414_v16 = vadd.f32 %v4413_v30, %v9877_v57  ;;  %v4455_v32 = vadd.f32 %v4454_v6, %v9877_v57  ;;  %v4486_v22 = vpop.f32.mrf.mxu0  ;;  %v4527_v24 = vpop.f32.mrf.mxu1 }
 0x5fc   : > { %5576 = vst [vmem:[%s10036_s26 + $0x200] sm:$0xff] %v5432_v19  ;;  %v5381_v34 = vadd.f32 %v10031_v51, %v5197_v1  ;;  %v4487_v38 = vadd.f32 %v4486_v22, %v9942_v40  ;;  %v4528_v27 = vadd.f32 %v4527_v24, %v9942_v40 }
 0x5fd   : > { %5577 = vst [vmem:[%s10036_s26 + $0x208] sm:$0xff] %v5433_v12  ;;  %vm4794_vm15 = vcmp.ge.f32.partialorder %v4414_v16, 0.0  ;;  %v4938_v10 = vmul.f32 0.05, %v4414_v16  ;;  %vm4795_vm1 = vcmp.ge.f32.partialorder %v4455_v32, 0.0 }
 0x5fe   : > { %5524 = vst [vmem:[%s10036_s26 + $0x60] sm:$0xff] %v5380_v13  ;;  %v4939_v45 = vmul.f32 0.05, %v4455_v32  ;;  %vm4742_vm2 = vcmp.ge.f32.partialorder %v4487_v38, 0.0  ;;  %v4886_v63 = vmul.f32 0.05, %v4487_v38 }
 0x5ff   : > { %5525 = vst [vmem:[%s10036_s26 + $0x68] sm:$0xff] %v5381_v34  ;;  %v5082_v44 = vsel %vm4794_vm15, %v4414_v16, %v4938_v10  ;;  %vm4743_vm3 = vcmp.ge.f32.partialorder %v4528_v27, 0.0  ;;  %v4887_v17 = vmul.f32 0.05, %v4528_v27 }
 0x600   : > { %v5266_v37 = vmul.f32 %v10137_v28, %v5082_v44  ;;  %v5083_v41 = vsel %vm4795_vm1, %v4455_v32, %v4939_v45  ;;  %v5030_v60 = vsel %vm4742_vm2, %v4487_v38, %v4886_v63 }
 0x601   : > { %v5267_v3 = vmul.f32 %v10137_v28, %v5083_v41  ;;  %v5214_v15 = vmul.f32 %v10080_v26, %v5030_v60  ;;  %v5031_v4 = vsel %vm4743_vm3, %v4528_v27, %v4887_v17 }
 0x602   : > { %v5450_v11 = vadd.f32 %v10247_v7, %v5266_v37  ;;  %v5215_v29 = vmul.f32 %v10080_v26, %v5031_v4  ;;  %v4416_v14 = vpop.f32.mrf.mxu2 }
 0x603   : > { %v4457_v49 = vpop.f32.mrf.mxu3  ;;  %v5451_v43 = vadd.f32 %v10247_v7, %v5267_v3  ;;  %v5398_v2 = vadd.f32 %v10198_v54, %v5214_v15  ;;  %v4417_v58 = vadd.f32 %v4416_v14, %v9968_v9  ;;  %v4489_v33 = vpop.f32.mrf.mxu0 }
 0x604   : > { %v4458_v8 = vadd.f32 %v4457_v49, %v9968_v9  ;;  %v4530_v21 = vpop.f32.mrf.mxu1  ;;  %5594 = vst [vmem:[%s10036_s26 + $0x290] sm:$0xff] %v5450_v11  ;;  %v5399_v46 = vadd.f32 %v10198_v54, %v5215_v29  ;;  %v4490_v52 = vadd.f32 %v4489_v33, %v9842_v50 }
 0x605   : > { %v4531_v62 = vadd.f32 %v4530_v21, %v9842_v50  ;;  %5595 = vst [vmem:[%s10036_s26 + $0x298] sm:$0xff] %v5451_v43  ;;  %vm4812_vm4 = vcmp.ge.f32.partialorder %v4417_v58, 0.0  ;;  %v4956_v55 = vmul.f32 0.05, %v4417_v58 }
 0x606   : > { %vm4813_vm5 = vcmp.ge.f32.partialorder %v4458_v8, 0.0  ;;  %5542 = vst [vmem:[%s10036_s26 + $0xf0] sm:$0xff] %v5398_v2  ;;  %v4957_v0 = vmul.f32 0.05, %v4458_v8  ;;  %vm4760_vm6 = vcmp.ge.f32.partialorder %v4490_v52, 0.0 }
 0x607   : > { %v4904_v56 = vmul.f32 0.05, %v4490_v52  ;;  %5543 = vst [vmem:[%s10036_s26 + $0xf8] sm:$0xff] %v5399_v46  ;;  %v5100_v19 = vsel %vm4812_vm4, %v4417_v58, %v4956_v55  ;;  %vm4761_vm7 = vcmp.ge.f32.partialorder %v4531_v62, 0.0  ;;  %v4905_v1 = vmul.f32 0.05, %v4531_v62 }
 0x608   : > { %v5284_v30 = vmul.f32 %v9971_v59, %v5100_v19  ;;  %v5101_v6 = vsel %vm4813_vm5, %v4458_v8, %v4957_v0 }
 0x609   : > { %v5048_v12 = vsel %vm4760_vm6, %v4490_v52, %v4904_v56  ;;  %v5285_v13 = vmul.f32 %v9971_v59, %v5101_v6  ;;  %v5049_v32 = vsel %vm4761_vm7, %v4531_v62, %v4905_v1 }
 0x60a   : > { %v5232_v16 = vmul.f32 %v9952_v61, %v5048_v12  ;;  %v5468_v22 = vadd.f32 %v10280_v20, %v5284_v30  ;;  %v5233_v24 = vmul.f32 %v9952_v61, %v5049_v32  ;;  %v4419_v34 = vpop.f32.mrf.mxu2 }
 0x60b   : > { %v4460_v38 = vpop.f32.mrf.mxu3  ;;  %v5469_v27 = vadd.f32 %v10280_v20, %v5285_v13  ;;  %v4420_v45 = vadd.f32 %v4419_v34, %v10019_v39  ;;  %v4492_v44 = vpop.f32.mrf.mxu0 }
 0x60c   : > { %v5416_v10 = vadd.f32 %v10234_v18, %v5232_v16  ;;  %v4461_v63 = vadd.f32 %v4460_v38, %v10019_v39  ;;  %v4533_v17 = vpop.f32.mrf.mxu1  ;;  %5612 = vst [vmem:[%s10036_s26 + $0x320] sm:$0xff] %v5468_v22  ;;  %v5417_v37 = vadd.f32 %v10234_v18, %v5233_v24  ;;  %v4493_v41 = vadd.f32 %v4492_v44, %v9966_v23 }
 0x60d   : > { %v4534_v60 = vadd.f32 %v4533_v17, %v9966_v23  ;;  %5613 = vst [vmem:[%s10036_s26 + $0x328] sm:$0xff] %v5469_v27  ;;  %vm4830_vm8 = vcmp.ge.f32.partialorder %v4420_v45, 0.0  ;;  %v4974_v3 = vmul.f32 0.05, %v4420_v45 }
 0x60e   : > { %vm4831_vm9 = vcmp.ge.f32.partialorder %v4461_v63, 0.0  ;;  %5560 = vst [vmem:[%s10036_s26 + $0x180] sm:$0xff] %v5416_v10  ;;  %v4975_v15 = vmul.f32 0.05, %v4461_v63  ;;  %vm4778_vm10 = vcmp.ge.f32.partialorder %v4493_v41, 0.0 }
 0x60f   : > { %v4922_v4 = vmul.f32 0.05, %v4493_v41  ;;  %5561 = vst [vmem:[%s10036_s26 + $0x188] sm:$0xff] %v5417_v37  ;;  %v5118_v11 = vsel %vm4830_vm8, %v4420_v45, %v4974_v3  ;;  %vm4779_vm11 = vcmp.ge.f32.partialorder %v4534_v60, 0.0  ;;  %v4923_v29 = vmul.f32 0.05, %v4534_v60 }
 0x610   : > { %v5302_v14 = vmul.f32 %v10144_v25, %v5118_v11  ;;  %v5119_v49 = vsel %vm4831_vm9, %v4461_v63, %v4975_v15 }
 0x611   : > { %v5066_v43 = vsel %vm4778_vm10, %v4493_v41, %v4922_v4  ;;  %v5303_v2 = vmul.f32 %v10144_v25, %v5119_v49  ;;  %v5067_v8 = vsel %vm4779_vm11, %v4534_v60, %v4923_v29 }
 0x612   : > { %v5250_v58 = vmul.f32 %v10091_v47, %v5066_v43  ;;  %v5486_v33 = vadd.f32 %v10152_v31, %v5302_v14  ;;  %v5251_v21 = vmul.f32 %v10091_v47, %v5067_v8  ;;  %v4422_v46 = vpop.f32.mrf.mxu2 }
 0x613   : > { %v4463_v52 = vpop.f32.mrf.mxu3  ;;  %v5487_v62 = vadd.f32 %v10152_v31, %v5303_v2  ;;  %v4423_v0 = vadd.f32 %v4422_v46, %v9905_v53  ;;  %v4495_v19 = vpop.f32.mrf.mxu0 }
 0x614   : > { %v5434_v55 = vadd.f32 %v10098_v35, %v5250_v58  ;;  %v4464_v56 = vadd.f32 %v4463_v52, %v9905_v53  ;;  %v4536_v1 = vpop.f32.mrf.mxu1  ;;  %5630 = vst [vmem:[%s10036_s26 + $0x3b0] sm:$0xff] %v5486_v33  ;;  %v5435_v30 = vadd.f32 %v10098_v35, %v5251_v21  ;;  %v4496_v6 = vadd.f32 %v4495_v19, %v9877_v57 }
 0x615   : > { %v4537_v12 = vadd.f32 %v4536_v1, %v9877_v57  ;;  %5631 = vst [vmem:[%s10036_s26 + $0x3b8] sm:$0xff] %v5487_v62  ;;  %vm4848_vm0 = vcmp.ge.f32.partialorder %v4423_v0, 0.0  ;;  %v4992_v13 = vmul.f32 0.05, %v4423_v0 }
 0x616   : > { %vm4849_vm12 = vcmp.ge.f32.partialorder %v4464_v56, 0.0  ;;  %5578 = vst [vmem:[%s10036_s26 + $0x210] sm:$0xff] %v5434_v55  ;;  %v4993_v16 = vmul.f32 0.05, %v4464_v56  ;;  %vm4796_vm13 = vcmp.ge.f32.partialorder %v4496_v6, 0.0 }
 0x617   : > { %v4940_v32 = vmul.f32 0.05, %v4496_v6  ;;  %5579 = vst [vmem:[%s10036_s26 + $0x218] sm:$0xff] %v5435_v30  ;;  %v5136_v22 = vsel %vm4848_vm0, %v4423_v0, %v4992_v13  ;;  %vm4797_vm14 = vcmp.ge.f32.partialorder %v4537_v12, 0.0  ;;  %v4941_v24 = vmul.f32 0.05, %v4537_v12 }
 0x618   : > { %v5320_v34 = vmul.f32 %v10195_v5, %v5136_v22  ;;  %v5137_v38 = vsel %vm4849_vm12, %v4464_v56, %v4993_v16 }
 0x619   : > { %v5084_v27 = vsel %vm4796_vm13, %v4496_v6, %v4940_v32  ;;  %v5321_v10 = vmul.f32 %v10195_v5, %v5137_v38  ;;  %v5085_v63 = vsel %vm4797_vm14, %v4537_v12, %v4941_v24 }
 0x61a   : > { %v5268_v45 = vmul.f32 %v10137_v28, %v5084_v27  ;;  %v5504_v44 = vadd.f32 %v10284_v42, %v5320_v34  ;;  %v5269_v17 = vmul.f32 %v10137_v28, %v5085_v63  ;;  %v4565_v37 = vpop.f32.mrf.mxu2 }
 0x61b   : > { %v4606_v41 = vpop.f32.mrf.mxu3  ;;  %v5505_v60 = vadd.f32 %v10284_v42, %v5321_v10  ;;  %v4566_v15 = vadd.f32 %v4565_v37, %v9944_v36  ;;  %v4498_v11 = vpop.f32.mrf.mxu0 }
 0x61c   : > { %v5452_v3 = vadd.f32 %v10247_v7, %v5268_v45  ;;  %v4607_v4 = vadd.f32 %v4606_v41, %v9944_v36  ;;  %v4539_v29 = vpop.f32.mrf.mxu1  ;;  %5648 = vst [vmem:[%s10036_s26 + $0x440] sm:$0xff] %v5504_v44  ;;  %v5453_v14 = vadd.f32 %v10247_v7, %v5269_v17  ;;  %v4499_v49 = vadd.f32 %v4498_v11, %v9968_v9 }
 0x61d   : > { %v4540_v43 = vadd.f32 %v4539_v29, %v9968_v9  ;;  %5649 = vst [vmem:[%s10036_s26 + $0x448] sm:$0xff] %v5505_v60  ;;  %vm4726_vm15 = vcmp.ge.f32.partialorder %v4566_v15, 0.0  ;;  %v4870_v2 = vmul.f32 0.05, %v4566_v15 }
 0x61e   : > { %vm4727_vm1 = vcmp.ge.f32.partialorder %v4607_v4, 0.0  ;;  %5596 = vst [vmem:[%s10036_s26 + $0x2a0] sm:$0xff] %v5452_v3  ;;  %v4871_v58 = vmul.f32 0.05, %v4607_v4  ;;  %vm4814_vm2 = vcmp.ge.f32.partialorder %v4499_v49, 0.0 }
 0x61f   : > { %v4958_v8 = vmul.f32 0.05, %v4499_v49  ;;  %5597 = vst [vmem:[%s10036_s26 + $0x2a8] sm:$0xff] %v5453_v14  ;;  %v5014_v33 = vsel %vm4726_vm15, %v4566_v15, %v4870_v2  ;;  %vm4815_vm3 = vcmp.ge.f32.partialorder %v4540_v43, 0.0  ;;  %v4959_v21 = vmul.f32 0.05, %v4540_v43 }
 0x620   : > { %v5198_v46 = vmul.f32 %v10026_v48, %v5014_v33  ;;  %v5015_v52 = vsel %vm4727_vm1, %v4607_v4, %v4871_v58 }
 0x621   : > { %v5102_v62 = vsel %vm4814_vm2, %v4499_v49, %v4958_v8  ;;  %v5199_v55 = vmul.f32 %v10026_v48, %v5015_v52  ;;  %v5103_v56 = vsel %vm4815_vm3, %v4540_v43, %v4959_v21 }
 0x622   : > { %v5286_v0 = vmul.f32 %v9971_v59, %v5102_v62  ;;  %v5382_v19 = vadd.f32 %v10031_v51, %v5198_v46  ;;  %v5287_v1 = vmul.f32 %v9971_v59, %v5103_v56  ;;  %v4568_v30 = vpop.f32.mrf.mxu2 }
 0x623   : > { %v4609_v6 = vpop.f32.mrf.mxu3  ;;  %v5383_v12 = vadd.f32 %v10031_v51, %v5199_v55  ;;  %v4569_v16 = vadd.f32 %v4568_v30, %v9942_v40  ;;  %v4501_v22 = vpop.f32.mrf.mxu0 }
 0x624   : > { %v5470_v13 = vadd.f32 %v10280_v20, %v5286_v0  ;;  %v4610_v32 = vadd.f32 %v4609_v6, %v9942_v40  ;;  %v4542_v24 = vpop.f32.mrf.mxu1  ;;  %5526 = vst [vmem:[%s10036_s26 + $0x70] sm:$0xff] %v5382_v19  ;;  %v5471_v34 = vadd.f32 %v10280_v20, %v5287_v1  ;;  %v4502_v38 = vadd.f32 %v4501_v22, %v10019_v39 }
 0x625   : > { %v4543_v27 = vadd.f32 %v4542_v24, %v10019_v39  ;;  %5527 = vst [vmem:[%s10036_s26 + $0x78] sm:$0xff] %v5383_v12  ;;  %vm4744_vm4 = vcmp.ge.f32.partialorder %v4569_v16, 0.0  ;;  %v4888_v10 = vmul.f32 0.05, %v4569_v16 }
 0x626   : > { %vm4745_vm5 = vcmp.ge.f32.partialorder %v4610_v32, 0.0  ;;  %5614 = vst [vmem:[%s10036_s26 + $0x330] sm:$0xff] %v5470_v13  ;;  %v4889_v45 = vmul.f32 0.05, %v4610_v32  ;;  %vm4832_vm6 = vcmp.ge.f32.partialorder %v4502_v38, 0.0 }
 0x627   : > { %v4976_v63 = vmul.f32 0.05, %v4502_v38  ;;  %5615 = vst [vmem:[%s10036_s26 + $0x338] sm:$0xff] %v5471_v34  ;;  %v5032_v44 = vsel %vm4744_vm4, %v4569_v16, %v4888_v10  ;;  %vm4833_vm7 = vcmp.ge.f32.partialorder %v4543_v27, 0.0  ;;  %v4977_v17 = vmul.f32 0.05, %v4543_v27 }
 0x628   : > { %v5216_v37 = vmul.f32 %v10080_v26, %v5032_v44  ;;  %v5033_v41 = vsel %vm4745_vm5, %v4610_v32, %v4889_v45 }
 0x629   : > { %v5120_v60 = vsel %vm4832_vm6, %v4502_v38, %v4976_v63  ;;  %v5217_v3 = vmul.f32 %v10080_v26, %v5033_v41  ;;  %v5121_v4 = vsel %vm4833_vm7, %v4543_v27, %v4977_v17 }
 0x62a   : > { %v5304_v15 = vmul.f32 %v10144_v25, %v5120_v60  ;;  %v5400_v11 = vadd.f32 %v10198_v54, %v5216_v37  ;;  %v5305_v29 = vmul.f32 %v10144_v25, %v5121_v4  ;;  %v4571_v14 = vpop.f32.mrf.mxu2 }
 0x62b   : > { %v4612_v49 = vpop.f32.mrf.mxu3  ;;  %v5401_v43 = vadd.f32 %v10198_v54, %v5217_v3  ;;  %v4572_v58 = vadd.f32 %v4571_v14, %v9842_v50  ;;  %v4504_v33 = vpop.f32.mrf.mxu0 }
 0x62c   : > { %v5488_v2 = vadd.f32 %v10152_v31, %v5304_v15  ;;  %v4613_v8 = vadd.f32 %v4612_v49, %v9842_v50  ;;  %v4545_v21 = vpop.f32.mrf.mxu1  ;;  %5544 = vst [vmem:[%s10036_s26 + $0x100] sm:$0xff] %v5400_v11  ;;  %v5489_v46 = vadd.f32 %v10152_v31, %v5305_v29  ;;  %v4505_v52 = vadd.f32 %v4504_v33, %v9905_v53 }
 0x62d   : > { %v4546_v62 = vadd.f32 %v4545_v21, %v9905_v53  ;;  %5545 = vst [vmem:[%s10036_s26 + $0x108] sm:$0xff] %v5401_v43  ;;  %vm4762_vm8 = vcmp.ge.f32.partialorder %v4572_v58, 0.0  ;;  %v4906_v55 = vmul.f32 0.05, %v4572_v58 }
 0x62e   : > { %vm4763_vm9 = vcmp.ge.f32.partialorder %v4613_v8, 0.0  ;;  %5632 = vst [vmem:[%s10036_s26 + $0x3c0] sm:$0xff] %v5488_v2  ;;  %v4907_v0 = vmul.f32 0.05, %v4613_v8  ;;  %vm4850_vm10 = vcmp.ge.f32.partialorder %v4505_v52, 0.0 }
 0x62f   : > { %v4994_v56 = vmul.f32 0.05, %v4505_v52  ;;  %5633 = vst [vmem:[%s10036_s26 + $0x3c8] sm:$0xff] %v5489_v46  ;;  %v5050_v19 = vsel %vm4762_vm8, %v4572_v58, %v4906_v55  ;;  %vm4851_vm11 = vcmp.ge.f32.partialorder %v4546_v62, 0.0  ;;  %v4995_v1 = vmul.f32 0.05, %v4546_v62 }
 0x630   : > { %v5234_v30 = vmul.f32 %v9952_v61, %v5050_v19  ;;  %v5051_v6 = vsel %vm4763_vm9, %v4613_v8, %v4907_v0 }
 0x631   : > { %v5138_v12 = vsel %vm4850_vm10, %v4505_v52, %v4994_v56  ;;  %v5235_v13 = vmul.f32 %v9952_v61, %v5051_v6  ;;  %v5139_v32 = vsel %vm4851_vm11, %v4546_v62, %v4995_v1 }
 0x632   : > { %v5322_v16 = vmul.f32 %v10195_v5, %v5138_v12  ;;  %v5418_v22 = vadd.f32 %v10234_v18, %v5234_v30  ;;  %v5323_v24 = vmul.f32 %v10195_v5, %v5139_v32  ;;  %v4574_v34 = vpop.f32.mrf.mxu2 }
 0x633   : > { %v4615_v38 = vpop.f32.mrf.mxu3  ;;  %v5419_v27 = vadd.f32 %v10234_v18, %v5235_v13  ;;  %v4575_v45 = vadd.f32 %v4574_v34, %v9966_v23  ;;  %v4647_v44 = vpop.f32.mrf.mxu0 }
 0x634   : > { %v5506_v10 = vadd.f32 %v10284_v42, %v5322_v16  ;;  %v4616_v63 = vadd.f32 %v4615_v38, %v9966_v23  ;;  %v4688_v17 = vpop.f32.mrf.mxu1  ;;  %5562 = vst [vmem:[%s10036_s26 + $0x190] sm:$0xff] %v5418_v22  ;;  %v5507_v37 = vadd.f32 %v10284_v42, %v5323_v24  ;;  %v4648_v41 = vadd.f32 %v4647_v44, %v9944_v36 }
 0x635   : > { %v4689_v60 = vadd.f32 %v4688_v17, %v9944_v36  ;;  %5563 = vst [vmem:[%s10036_s26 + $0x198] sm:$0xff] %v5419_v27  ;;  %vm4780_vm0 = vcmp.ge.f32.partialorder %v4575_v45, 0.0  ;;  %v4924_v3 = vmul.f32 0.05, %v4575_v45 }
 0x636   : > { %vm4781_vm12 = vcmp.ge.f32.partialorder %v4616_v63, 0.0  ;;  %5650 = vst [vmem:[%s10036_s26 + $0x450] sm:$0xff] %v5506_v10  ;;  %v4925_v15 = vmul.f32 0.05, %v4616_v63  ;;  %vm4728_vm13 = vcmp.ge.f32.partialorder %v4648_v41, 0.0 }
 0x637   : > { %v4872_v4 = vmul.f32 0.05, %v4648_v41  ;;  %5651 = vst [vmem:[%s10036_s26 + $0x458] sm:$0xff] %v5507_v37  ;;  %v5068_v11 = vsel %vm4780_vm0, %v4575_v45, %v4924_v3  ;;  %vm4729_vm14 = vcmp.ge.f32.partialorder %v4689_v60, 0.0  ;;  %v4873_v29 = vmul.f32 0.05, %v4689_v60 }
 0x638   : > { %v5252_v14 = vmul.f32 %v10091_v47, %v5068_v11  ;;  %v5069_v49 = vsel %vm4781_vm12, %v4616_v63, %v4925_v15 }
 0x639   : > { %v5016_v43 = vsel %vm4728_vm13, %v4648_v41, %v4872_v4  ;;  %v5253_v2 = vmul.f32 %v10091_v47, %v5069_v49  ;;  %v5017_v58 = vsel %vm4729_vm14, %v4689_v60, %v4873_v29 }
 0x63a   : > { %v5200_v36 = vmul.f32 %v10026_v48, %v5016_v43  ;;  %v5436_v8 = vadd.f32 %v10098_v35, %v5252_v14  ;;  %v5201_v33 = vmul.f32 %v10026_v48, %v5017_v58  ;;  %v4577_v21 = vpop.f32.mrf.mxu2 }
 0x63b   : > { %v4618_v46 = vpop.f32.mrf.mxu3  ;;  %v5437_v52 = vadd.f32 %v10098_v35, %v5253_v2  ;;  %v4578_v55 = vadd.f32 %v4577_v21, %v9877_v57  ;;  %v4650_v56 = vpop.f32.mrf.mxu0 }
 0x63c   : > { %v5384_v62 = vadd.f32 %v10031_v51, %v5200_v36  ;;  %v4619_v0 = vadd.f32 %v4618_v46, %v9877_v57  ;;  %v4691_v19 = vpop.f32.mrf.mxu1  ;;  %5580 = vst [vmem:[%s10036_s26 + $0x220] sm:$0xff] %v5436_v8  ;;  %v5385_v1 = vadd.f32 %v10031_v51, %v5201_v33  ;;  %v4651_v30 = vadd.f32 %v4650_v56, %v9942_v40 }
 0x63d   : > { %v4692_v48 = vadd.f32 %v4691_v19, %v9942_v40  ;;  %5581 = vst [vmem:[%s10036_s26 + $0x228] sm:$0xff] %v5437_v52  ;;  %vm4798_vm15 = vcmp.ge.f32.partialorder %v4578_v55, 0.0  ;;  %v4942_v6 = vmul.f32 0.05, %v4578_v55 }
 0x63e   : > { %vm4799_vm1 = vcmp.ge.f32.partialorder %v4619_v0, 0.0  ;;  %5528 = vst [vmem:[%s10036_s26 + $0x80] sm:$0xff] %v5384_v62  ;;  %v4943_v12 = vmul.f32 0.05, %v4619_v0  ;;  %vm4746_vm2 = vcmp.ge.f32.partialorder %v4651_v30, 0.0 }
 0x63f   : > { %v4890_v13 = vmul.f32 0.05, %v4651_v30  ;;  %5529 = vst [vmem:[%s10036_s26 + $0x88] sm:$0xff] %v5385_v1  ;;  %v5086_v16 = vsel %vm4798_vm15, %v4578_v55, %v4942_v6  ;;  %vm4747_vm3 = vcmp.ge.f32.partialorder %v4692_v48, 0.0  ;;  %v4891_v32 = vmul.f32 0.05, %v4692_v48 }
 0x640   : > { %v5270_v22 = vmul.f32 %v10137_v28, %v5086_v16  ;;  %v5087_v51 = vsel %vm4799_vm1, %v4619_v0, %v4943_v12 }
 0x641   : > { %v5034_v24 = vsel %vm4746_vm2, %v4651_v30, %v4890_v13  ;;  %v5271_v34 = vmul.f32 %v10137_v28, %v5087_v51  ;;  %v5035_v38 = vsel %vm4747_vm3, %v4692_v48, %v4891_v32 }
 0x642   : > { %v5218_v40 = vmul.f32 %v10080_v26, %v5034_v24  ;;  %v5454_v27 = vadd.f32 %v10247_v7, %v5270_v22  ;;  %v5219_v10 = vmul.f32 %v10080_v26, %v5035_v38  ;;  %v4580_v45 = vpop.f32.mrf.mxu2 }
 0x643   : > { %v4621_v63 = vpop.f32.mrf.mxu3  ;;  %v5455_v44 = vadd.f32 %v10247_v7, %v5271_v34  ;;  %v4581_v37 = vadd.f32 %v4580_v45, %v9968_v9  ;;  %v4653_v60 = vpop.f32.mrf.mxu0 }
 0x644   : > { %v5402_v17 = vadd.f32 %v10198_v54, %v5218_v40  ;;  %v4622_v41 = vadd.f32 %v4621_v63, %v9968_v9  ;;  %v4694_v3 = vpop.f32.mrf.mxu1  ;;  %5598 = vst [vmem:[%s10036_s26 + $0x2b0] sm:$0xff] %v5454_v27  ;;  %v5403_v15 = vadd.f32 %v10198_v54, %v5219_v10  ;;  %v4654_v4 = vadd.f32 %v4653_v60, %v9842_v50 }
 0x645   : > { %v4695_v26 = vadd.f32 %v4694_v3, %v9842_v50  ;;  %5599 = vst [vmem:[%s10036_s26 + $0x2b8] sm:$0xff] %v5455_v44  ;;  %vm4816_vm4 = vcmp.ge.f32.partialorder %v4581_v37, 0.0  ;;  %v4960_v11 = vmul.f32 0.05, %v4581_v37 }
 0x646   : > { %vm4817_vm5 = vcmp.ge.f32.partialorder %v4622_v41, 0.0  ;;  %5546 = vst [vmem:[%s10036_s26 + $0x110] sm:$0xff] %v5402_v17  ;;  %v4961_v29 = vmul.f32 0.05, %v4622_v41  ;;  %vm4764_vm6 = vcmp.ge.f32.partialorder %v4654_v4, 0.0 }
 0x647   : > { %v4908_v14 = vmul.f32 0.05, %v4654_v4  ;;  %5547 = vst [vmem:[%s10036_s26 + $0x118] sm:$0xff] %v5403_v15  ;;  %v5104_v49 = vsel %vm4816_vm4, %v4581_v37, %v4960_v11  ;;  %vm4765_vm7 = vcmp.ge.f32.partialorder %v4695_v26, 0.0  ;;  %v4909_v43 = vmul.f32 0.05, %v4695_v26 }
 0x648   : > { %v5288_v2 = vmul.f32 %v9971_v59, %v5104_v49  ;;  %v5105_v54 = vsel %vm4817_vm5, %v4622_v41, %v4961_v29 }
 0x649   : > { %v5052_v36 = vsel %vm4764_vm6, %v4654_v4, %v4908_v14  ;;  %v5289_v58 = vmul.f32 %v9971_v59, %v5105_v54  ;;  %v5053_v8 = vsel %vm4765_vm7, %v4695_v26, %v4909_v43 }
 0x64a   : > { %v5236_v50 = vmul.f32 %v9952_v61, %v5052_v36  ;;  %v5472_v33 = vadd.f32 %v10280_v20, %v5288_v2  ;;  %v5237_v21 = vmul.f32 %v9952_v61, %v5053_v8  ;;  %v4583_v46 = vpop.f32.mrf.mxu2 }
 0x64b   : > { %v4624_v52 = vpop.f32.mrf.mxu3  ;;  %v5473_v62 = vadd.f32 %v10280_v20, %v5289_v58  ;;  %v4584_v0 = vadd.f32 %v4583_v46, %v10019_v39  ;;  %v4656_v19 = vpop.f32.mrf.mxu0 }
 0x64c   : > { %v5420_v55 = vadd.f32 %v10234_v18, %v5236_v50  ;;  %v4625_v56 = vadd.f32 %v4624_v52, %v10019_v39  ;;  %v4697_v1 = vpop.f32.mrf.mxu1  ;;  %5616 = vst [vmem:[%s10036_s26 + $0x340] sm:$0xff] %v5472_v33  ;;  %v5421_v30 = vadd.f32 %v10234_v18, %v5237_v21  ;;  %v4657_v48 = vadd.f32 %v4656_v19, %v9966_v23 }
 0x64d   : > { %v4698_v61 = vadd.f32 %v4697_v1, %v9966_v23  ;;  %5617 = vst [vmem:[%s10036_s26 + $0x348] sm:$0xff] %v5473_v62  ;;  %vm4834_vm8 = vcmp.ge.f32.partialorder %v4584_v0, 0.0  ;;  %v4978_v6 = vmul.f32 0.05, %v4584_v0 }
 0x64e   : > { %vm4835_vm9 = vcmp.ge.f32.partialorder %v4625_v56, 0.0  ;;  %5564 = vst [vmem:[%s10036_s26 + $0x1a0] sm:$0xff] %v5420_v55  ;;  %v4979_v12 = vmul.f32 0.05, %v4625_v56  ;;  %vm4782_vm10 = vcmp.ge.f32.partialorder %v4657_v48, 0.0 }
 0x64f   : > { %v4926_v13 = vmul.f32 0.05, %v4657_v48  ;;  %5565 = vst [vmem:[%s10036_s26 + $0x1a8] sm:$0xff] %v5421_v30  ;;  %v5122_v16 = vsel %vm4834_vm8, %v4584_v0, %v4978_v6  ;;  %vm4783_vm11 = vcmp.ge.f32.partialorder %v4698_v61, 0.0  ;;  %v4927_v32 = vmul.f32 0.05, %v4698_v61 }
 0x650   : > { %v5306_v22 = vmul.f32 %v10144_v25, %v5122_v16  ;;  %v5123_v18 = vsel %vm4835_vm9, %v4625_v56, %v4979_v12 }
 0x651   : > { %v5070_v51 = vsel %vm4782_vm10, %v4657_v48, %v4926_v13  ;;  %v5307_v24 = vmul.f32 %v10144_v25, %v5123_v18  ;;  %v5071_v34 = vsel %vm4783_vm11, %v4698_v61, %v4927_v32 }
 0x652   : > { %v5254_v23 = vmul.f32 %v10091_v47, %v5070_v51  ;;  %v5490_v40 = vadd.f32 %v10152_v31, %v5306_v22  ;;  %v5255_v38 = vmul.f32 %v10091_v47, %v5071_v34  ;;  %v4586_v27 = vpop.f32.mrf.mxu2 }
 0x653   : > { %v4627_v10 = vpop.f32.mrf.mxu3  ;;  %v5491_v45 = vadd.f32 %v10152_v31, %v5307_v24  ;;  %v4587_v44 = vadd.f32 %v4586_v27, %v9905_v53  ;;  %v4659_v37 = vpop.f32.mrf.mxu0 }
 0x654   : > { %v5438_v63 = vadd.f32 %v10098_v35, %v5254_v23  ;;  %v4628_v17 = vadd.f32 %v4627_v10, %v9905_v53  ;;  %v4700_v41 = vpop.f32.mrf.mxu1  ;;  %5634 = vst [vmem:[%s10036_s26 + $0x3d0] sm:$0xff] %v5490_v40  ;;  %v5439_v60 = vadd.f32 %v10098_v35, %v5255_v38  ;;  %v4660_v3 = vadd.f32 %v4659_v37, %v9877_v57 }
 0x655   : > { %v4701_v47 = vadd.f32 %v4700_v41, %v9877_v57  ;;  %5635 = vst [vmem:[%s10036_s26 + $0x3d8] sm:$0xff] %v5491_v45  ;;  %vm4852_vm0 = vcmp.ge.f32.partialorder %v4587_v44, 0.0  ;;  %v4996_v15 = vmul.f32 0.05, %v4587_v44 }
 0x656   : > { %vm4853_vm12 = vcmp.ge.f32.partialorder %v4628_v17, 0.0  ;;  %5582 = vst [vmem:[%s10036_s26 + $0x230] sm:$0xff] %v5438_v63  ;;  %v4997_v4 = vmul.f32 0.05, %v4628_v17  ;;  %vm4800_vm13 = vcmp.ge.f32.partialorder %v4660_v3, 0.0 }
 0x657   : > { %v4944_v26 = vmul.f32 0.05, %v4660_v3  ;;  %5583 = vst [vmem:[%s10036_s26 + $0x238] sm:$0xff] %v5439_v60  ;;  %v5140_v11 = vsel %vm4852_vm0, %v4587_v44, %v4996_v15  ;;  %vm4801_vm14 = vcmp.ge.f32.partialorder %v4701_v47, 0.0  ;;  %v4945_v29 = vmul.f32 0.05, %v4701_v47 }
 0x658   : > { %v5324_v14 = vmul.f32 %v10195_v5, %v5140_v11  ;;  %v5141_v35 = vsel %vm4853_vm12, %v4628_v17, %v4997_v4 }
 0x659   : > { %v5088_v49 = vsel %vm4800_vm13, %v4660_v3, %v4944_v26  ;;  %v5325_v57 = vmul.f32 %v10195_v5, %v5141_v35  ;;  %v5089_v2 = vsel %vm4801_vm14, %v4701_v47, %v4945_v29 }
 0x65a   : > { %v5272_v43 = vmul.f32 %v10137_v28, %v5088_v49  ;;  %v5508_v54 = vadd.f32 %v10284_v42, %v5324_v14  ;;  %v5273_v36 = vmul.f32 %v10137_v28, %v5089_v2 }
 0x65b   : > { %v5509_v58 = vadd.f32 %v10284_v42, %v5325_v57  ;;  %v4662_v8 = vpop.f32.mrf.mxu0 }
 0x65c   : > { %v5456_v50 = vadd.f32 %v10247_v7, %v5272_v43  ;;  %v4703_v33 = vpop.f32.mrf.mxu1  ;;  %5652 = vst [vmem:[%s10036_s26 + $0x460] sm:$0xff] %v5508_v54  ;;  %v5457_v21 = vadd.f32 %v10247_v7, %v5273_v36  ;;  %v4663_v46 = vadd.f32 %v4662_v8, %v9968_v9 }
 0x65d   : > { %v4704_v52 = vadd.f32 %v4703_v33, %v9968_v9  ;;  %5653 = vst [vmem:[%s10036_s26 + $0x468] sm:$0xff] %v5509_v58 }
 0x65e   : > { %5600 = vst [vmem:[%s10036_s26 + $0x2c0] sm:$0xff] %v5456_v50  ;;  %vm4818_vm15 = vcmp.ge.f32.partialorder %v4663_v46, 0.0  ;;  %v4962_v62 = vmul.f32 0.05, %v4663_v46 }
 0x65f   : > { %vm4819_vm1 = vcmp.ge.f32.partialorder %v4704_v52, 0.0  ;;  %5601 = vst [vmem:[%s10036_s26 + $0x2c8] sm:$0xff] %v5457_v21  ;;  %v4963_v28 = vmul.f32 0.05, %v4704_v52 }
 0x660   : > { %v5106_v55 = vsel %vm4818_vm15, %v4663_v46, %v4962_v62 }
 0x661   : > { %v5290_v0 = vmul.f32 %v9971_v59, %v5106_v55  ;;  %v5107_v56 = vsel %vm4819_vm1, %v4704_v52, %v4963_v28 }
 0x662   : > { %v5291_v19 = vmul.f32 %v9971_v59, %v5107_v56 }
 0x663   : > { %v5474_v7 = vadd.f32 %v10280_v20, %v5290_v0  ;;  %v4665_v1 = vpop.f32.mrf.mxu0 }
 0x664   : > { %v4706_v30 = vpop.f32.mrf.mxu1  ;;  %v5475_v9 = vadd.f32 %v10280_v20, %v5291_v19  ;;  %v4666_v48 = vadd.f32 %v4665_v1, %v10019_v39 }
 0x665   : > { %v4707_v61 = vadd.f32 %v4706_v30, %v10019_v39  ;;  %5618 = vst [vmem:[%s10036_s26 + $0x350] sm:$0xff] %v5474_v7 }
 0x666   : > { %5619 = vst [vmem:[%s10036_s26 + $0x358] sm:$0xff] %v5475_v9  ;;  %vm4836_vm2 = vcmp.ge.f32.partialorder %v4666_v48, 0.0  ;;  %v4980_v6 = vmul.f32 0.05, %v4666_v48 }
 0x667   : > { %vm4837_vm3 = vcmp.ge.f32.partialorder %v4707_v61, 0.0  ;;  %v4981_v12 = vmul.f32 0.05, %v4707_v61 }
 0x668   : > { %v5124_v13 = vsel %vm4836_vm2, %v4666_v48, %v4980_v6 }
 0x669   : > { %v5308_v59 = vmul.f32 %v10144_v25, %v5124_v13  ;;  %v5125_v16 = vsel %vm4837_vm3, %v4707_v61, %v4981_v12 }
 0x66a   : > { %v5309_v32 = vmul.f32 %v10144_v25, %v5125_v16 }
 0x66b   : > { %v5492_v20 = vadd.f32 %v10152_v31, %v5308_v59  ;;  %v4668_v22 = vpop.f32.mrf.mxu0 }
 0x66c   : > { %v4709_v18 = vpop.f32.mrf.mxu1  ;;  %v5493_v39 = vadd.f32 %v10152_v31, %v5309_v32  ;;  %v4669_v51 = vadd.f32 %v4668_v22, %v9905_v53 }
 0x66d   : > { %v4710_v24 = vadd.f32 %v4709_v18, %v9905_v53  ;;  %5636 = vst [vmem:[%s10036_s26 + $0x3e0] sm:$0xff] %v5492_v20 }
 0x66e   : > { %5637 = vst [vmem:[%s10036_s26 + $0x3e8] sm:$0xff] %v5493_v39  ;;  %vm4854_vm4 = vcmp.ge.f32.partialorder %v4669_v51, 0.0  ;;  %v4998_v23 = vmul.f32 0.05, %v4669_v51 }
 0x66f   : > { %vm4855_vm5 = vcmp.ge.f32.partialorder %v4710_v24, 0.0  ;;  %v4999_v34 = vmul.f32 0.05, %v4710_v24 }
 0x670   : > { %v5142_v40 = vsel %vm4854_vm4, %v4669_v51, %v4998_v23 }
 0x671   : > { %v5326_v25 = vmul.f32 %v10195_v5, %v5142_v40  ;;  %v5143_v38 = vsel %vm4855_vm5, %v4710_v24, %v4999_v34 }
 0x672   : > { %v5327_v27 = vmul.f32 %v10195_v5, %v5143_v38 }
 0x673   : > { %v5510_v10 = vadd.f32 %v10284_v42, %v5326_v25 }
 0x674   : > { %v5511_v31 = vadd.f32 %v10284_v42, %v5327_v27 }
 0x675   : > { %5654 = vst [vmem:[%s10036_s26 + $0x470] sm:$0xff] %v5510_v10 }
 0x676   : > { %5655 = vst [vmem:[%s10036_s26 + $0x478] sm:$0xff] %v5511_v31 }
 0x677 PF: > { %s14_s15 = sadd.s32 1, %s5986_s15  }
 0x678   : > { %p11_p4 = scmp.ge.s32.totalorder %s14_s15, 4  }
 0x67a   :  { %13 = sbr.rel (!%p11_p4) target bundleno = 1 (0x1), region = 156 }

</bundles_post_ra>
